<compile_context>
chip_gen: v7x
topology: tpu7x:2x2x1
jax: 0.10.0
libtpu: 0.0.40
codegen_flags: <defaults>
</compile_context>

<pallas_src>
import functools
import math

import jax
import jax.numpy as jnp
from jax import lax
from jax.experimental import pallas as pl
from jax.experimental.pallas import tpu as pltpu

TM_MAX = 1024          # max rows per output tile
MIN_TILES = 8          # aim for >= 8 grid steps (>= 4 per v7x TensorCore)  [R10]
BN_EPS = 1e-5


def _round_up(x, m):
    return ((x + m - 1) // m) * m


def _pick_tm(m):
    # enough tiles to spread across both v7x TensorCores, multiple of 8
    # sublanes, capped so large problems amortize per-grid-step overhead.
    tm = _round_up(max(-(-m // MIN_TILES), 8), 8)
    return min(TM_MAX, tm)


def make_geom(n, h, w):
    """Static geometry of one conv 'stage' (all convs at this spatial size)."""
    hp, wp = h + 2, w + 2
    m = n * hp * wp                      # flat rows over the zero-padded grid
    tm = _pick_tm(m)
    mp = _round_up(m, tm)
    win = _round_up(tm + 2 * wp + 2, 8)  # haloed input-row window per tile
    return {
        "N": n, "H": h, "W": w, "Hp": hp, "Wp": wp,
        "M": m, "tm": tm, "Mp": mp,
        "halo": wp + 1,                  # leading zero rows so all tap offsets >= 0
        "win": win,
        "rows": mp - tm + win,           # rows of the padded flat input in HBM
    }


# ----------------------------------------------------------------------------
# Pallas kernel: streamed, fused-im2col 3x3 conv (one MXU matmul per tile)
# ----------------------------------------------------------------------------
def _conv3x3_kernel(x_hbm, w_ref, b_ref, o_ref, xwin, slab, sem,
                    *, tm, wp, win, cin_p):
    """x_hbm : (rows, cin_p) bf16 flattened zero-padded input, left in HBM.
    w_ref : (9*cin_p, cout) bf16 filter taps, VMEM-resident.
    b_ref : (1, cout) f32 bias, VMEM-resident.
    o_ref : (tm, cout) output tile (bf16 intermediate layers, f32 heads).
    xwin  : (win, cin_p) bf16 scratch -- streamed haloed input window.  [R3]
    slab  : (tm, 9*cin_p) bf16 scratch -- fused im2col slab.            [R2]
    """
    base = pl.multiple_of(pl.program_id(0) * tm, 8)

    # [R3] stream only this tile's haloed window from HBM into VMEM.
    # TODO(synk): cross-iteration double-buffered prefetch of the next window
    # (needs per-core first-step detection under "parallel" semantics).
    cp = pltpu.make_async_copy(x_hbm.at[pl.ds(base, win)], xwin, sem)
    cp.start()
    cp.wait()

    # [R2] build the (tm, 9*cin_p) im2col slab; tap (dy, dx) of output row f
    # lives at flat row f + dy*Wp + dx (all offsets are compile-time static).
    for k in range(9):
        dy, dx = divmod(k, 3)
        off = dy * wp + dx
        slab[:, k * cin_p:(k + 1) * cin_p] = xwin[off:off + tm, :]

    # [R1][R2] one MXU matmul with K = 9*cin_p; all tap accumulation happens
    # inside the MXU; the finished tile is stored exactly once.
    acc = jnp.dot(slab[...], w_ref[...], preferred_element_type=jnp.float32)
    acc = acc + b_ref[...]
    o_ref[...] = acc.astype(o_ref.dtype)


def _vmem_limit_bytes(geom, cin_p, cout, out_bytes):
    # [R8] per-layer VMEM budget from actual buffer sizes, 48 MiB v7x ceiling.
    est = (geom["win"] * cin_p * 2              # streamed input window scratch
           + geom["tm"] * 9 * cin_p * 2         # im2col slab scratch
           + 2 * (9 * cin_p * cout * 2 + cout * 4)   # double-buffered weights/bias
           + 2 * geom["tm"] * cout * out_bytes)      # double-buffered output tile
    return int(min(max(32 << 20, 2 * est + (4 << 20)), 48 << 20))


def conv3x3_flat(flat, geom, w, b, out_dtype):
    """3x3, stride-1, padding-1 conv on a flattened zero-padded activation.

    flat: (n_rows, Cin) bf16; rows indexed over the zero-padded (N, Hp, Wp)
          grid (border / tail rows must already be zero).
    Returns (Mp, Cout) in out_dtype (rows >= M / border rows hold garbage that
    downstream code masks or slices away).
    """
    cin, cout = w.shape[2], w.shape[3]
    cin_p = _round_up(max(cin, 8), 8)   # never a degenerate MXU contraction dim

    n_rows = flat.shape[0]
    xs = jnp.pad(flat.astype(jnp.bfloat16),
                 ((geom["halo"], geom["rows"] - geom["halo"] - n_rows),
                  (0, cin_p - cin)))

    wq = w.astype(jnp.bfloat16)
    if cin_p != cin:
        wq = jnp.pad(wq, ((0, 0), (0, 0), (0, cin_p - cin), (0, 0)))
    wmat = wq.reshape(9 * cin_p, cout)
    bias = b.reshape(1, cout).astype(jnp.float32)

    tm, mp, wp, win = geom["tm"], geom["Mp"], geom["Wp"], geom["win"]
    kernel = functools.partial(_conv3x3_kernel, tm=tm, wp=wp, win=win, cin_p=cin_p)

    # TODO(synk): fold (tm, cout) tiles into lane-dense (tm*cout/128, 128)
    # output slabs (esp. the Cout=1 heads); kept as the plain (tm, cout) store
    # to avoid a Mosaic relayout that may not lower for small minor dims.
    return pl.pallas_call(
        kernel,
        out_shape=jax.ShapeDtypeStruct((mp, cout), out_dtype),
        grid_spec=pltpu.PrefetchScalarGridSpec(
            num_scalar_prefetch=0,
            grid=(mp // tm,),
            in_specs=[
                pl.BlockSpec(memory_space=pl.ANY),           # [R3] stays in HBM
                pl.BlockSpec(wmat.shape, lambda i: (0, 0)),   # resident weights
                pl.BlockSpec(bias.shape, lambda i: (0, 0)),   # resident bias
            ],
            out_specs=pl.BlockSpec((tm, cout), lambda i: (i, 0)),
            scratch_shapes=[
                pltpu.VMEM((win, cin_p), jnp.bfloat16),
                pltpu.VMEM((tm, 9 * cin_p), jnp.bfloat16),
                pltpu.SemaphoreType.DMA,
            ],
        ),
        compiler_params=pltpu.CompilerParams(
            dimension_semantics=("parallel",),
            vmem_limit_bytes=_vmem_limit_bytes(
                geom, cin_p, cout, jnp.dtype(out_dtype).itemsize),
        ),
    )(xs, wmat, bias)


# ----------------------------------------------------------------------------
# Flat-layout glue: padding/flattening, fused BN+ReLU+mask, pool, upsample
# ----------------------------------------------------------------------------
def nhwc_to_flat(x, geom):
    xp = jnp.pad(x.astype(jnp.bfloat16), ((0, 0), (1, 1), (1, 1), (0, 0)))
    return xp.reshape(geom["M"], x.shape[-1])


def flat_to_nhwc(y, geom):
    h, w = geom["H"], geom["W"]
    y = y[:geom["M"]].reshape(geom["N"], geom["Hp"], geom["Wp"], -1)
    return y[:, 1:h + 1, 1:w + 1, :]


def _valid_mask(geom):
    # 1.0 exactly at real interior pixels of the padded (N, Hp, Wp) flat grid.
    f = jnp.arange(geom["Mp"], dtype=jnp.int32)
    c = f % geom["Wp"]
    r = (f // geom["Wp"]) % geom["Hp"]
    valid = ((f < geom["M"])
             & (r >= 1) & (r <= geom["H"])
             & (c >= 1) & (c <= geom["W"]))
    return valid.astype(jnp.float32)[:, None]


def bn_relu_flat(y, geom, gamma, beta, eps=BN_EPS):
    """Training-mode BatchNorm2d (biased batch stats, matching a freshly
    constructed PyTorch module in train()) + ReLU + border masking, fused into
    one elementwise pass on the flat conv output.  The masked result doubles as
    the zero-padded input of the next 3x3 conv.  [R6][R7]
    # TODO(synk): in-kernel per-tile BN partial sums would save one more bf16
    # read pass; stats are currently reduced here in XLA.
    # TODO(synk): if the PyTorch reference is run under .eval() (running stats
    # mean=0, var=1), replace the batch statistics below accordingly.
    """
    mask = _valid_mask(geom)
    cnt = geom["N"] * geom["H"] * geom["W"]
    y32 = y.astype(jnp.float32)
    mean = jnp.sum(y32 * mask, axis=0) / cnt
    # centered (two-pass) variance: avoids E[x^2]-E[x]^2 cancellation.
    var = jnp.sum(jnp.square(y32 - mean) * mask, axis=0) / cnt
    scale = gamma * lax.rsqrt(var + eps)
    shift = beta - mean * scale
    act = jnp.maximum(y32 * scale + shift, 0.0) * mask
    return act.astype(jnp.bfloat16)


def maxpool2(x):
    # TODO(synk): could be fused into the preceding conv's epilogue.
    n, h, w, c = x.shape
    return jnp.max(x.reshape(n, h // 2, 2, w // 2, 2, c), axis=(2, 4))


def _upsample_axis_x2(x, axis):
    # nn.Upsample(scale_factor=2, mode='bilinear'), align_corners=False.
    # Closed form: out[2i] = 0.75*x[i] + 0.25*x[i-1], out[2i+1] = 0.75*x[i] + 0.25*x[i+1]
    # (edges clamped) -- pure elementwise, no gathers.
    n = x.shape[axis]
    first = lax.slice_in_dim(x, 0, 1, axis=axis)
    last = lax.slice_in_dim(x, n - 1, n, axis=axis)
    prev = jnp.concatenate([first, lax.slice_in_dim(x, 0, n - 1, axis=axis)], axis=axis)
    nxt = jnp.concatenate([lax.slice_in_dim(x, 1, n, axis=axis), last], axis=axis)
    even = 0.75 * x + 0.25 * prev
    odd = 0.75 * x + 0.25 * nxt
    y = jnp.stack([even, odd], axis=axis + 1)
    new_shape = list(x.shape)
    new_shape[axis] = 2 * n
    return y.reshape(new_shape)


def upsample_bilinear_x2(x):
    x = _upsample_axis_x2(x, axis=1)
    x = _upsample_axis_x2(x, axis=2)
    return x


# ----------------------------------------------------------------------------
# Parameter init (deterministic, matches PyTorch Conv2d default init scheme)
# ----------------------------------------------------------------------------
def _init_conv(key, cin, cout):
    wk, bk = jax.random.split(key)
    bound = 1.0 / math.sqrt(9 * cin)
    w = jax.random.uniform(wk, (3, 3, cin, cout), jnp.float32, -bound, bound)
    b = jax.random.uniform(bk, (cout,), jnp.float32, -bound, bound)
    return w, b


def _init_block(key, cin, cmid, cout):
    k1, k2 = jax.random.split(key)
    w1, b1 = _init_conv(k1, cin, cmid)
    w2, b2 = _init_conv(k2, cmid, cout)
    return {
        "w1": w1, "b1": b1, "g1": jnp.ones((cmid,)), "be1": jnp.zeros((cmid,)),
        "w2": w2, "b2": b2, "g2": jnp.ones((cout,)), "be2": jnp.zeros((cout,)),
    }


def init_ptychonn_params(key, nconv=32):
    keys = jax.random.split(key, 11)
    enc = [
        _init_block(keys[0], 1, nconv, nconv),
        _init_block(keys[1], nconv, 2 * nconv, 2 * nconv),
        _init_block(keys[2], 2 * nconv, 4 * nconv, 4 * nconv),
    ]
    amp = [
        _init_block(keys[3], 4 * nconv, 4 * nconv, 4 * nconv),
        _init_block(keys[4], 4 * nconv, 2 * nconv, 2 * nconv),
        _init_block(keys[5], 2 * nconv, 2 * nconv, 2 * nconv),
    ]
    amp_hw, amp_hb = _init_conv(keys[6], 2 * nconv, 1)
    phs = [
        _init_block(keys[7], 4 * nconv, 4 * nconv, 4 * nconv),
        _init_block(keys[8], 4 * nconv, 2 * nconv, 2 * nconv),
        _init_block(keys[9], 2 * nconv, 2 * nconv, 2 * nconv),
    ]
    phs_hw, phs_hb = _init_conv(keys[10], 2 * nconv, 1)
    return {
        "encoder": enc,
        "amp_blocks": amp, "amp_head_w": amp_hw, "amp_head_b": amp_hb,
        "phase_blocks": phs, "phase_head_w": phs_hw, "phase_head_b": phs_hb,
    }


# ----------------------------------------------------------------------------
# Model forward
# ----------------------------------------------------------------------------
def _contraction(p, x):
    n, h, w, _ = x.shape
    geom = make_geom(n, h, w)
    y = conv3x3_flat(nhwc_to_flat(x, geom), geom, p["w1"], p["b1"], jnp.bfloat16)
    a = bn_relu_flat(y, geom, p["g1"], p["be1"])
    y = conv3x3_flat(a, geom, p["w2"], p["b2"], jnp.bfloat16)   # [R7] flat chain
    a = bn_relu_flat(y, geom, p["g2"], p["be2"])
    return maxpool2(flat_to_nhwc(a, geom))


def _expansion(p, x):
    n, h, w, _ = x.shape
    geom = make_geom(n, h, w)
    y = conv3x3_flat(nhwc_to_flat(x, geom), geom, p["w1"], p["b1"], jnp.bfloat16)
    a = bn_relu_flat(y, geom, p["g1"], p["be1"])
    y = conv3x3_flat(a, geom, p["w2"], p["b2"], jnp.bfloat16)   # [R7] flat chain
    a = bn_relu_flat(y, geom, p["g2"], p["be2"])
    return upsample_bilinear_x2(flat_to_nhwc(a, geom))


def _head(x, hw, hb):
    n, h, w, _ = x.shape
    geom = make_geom(n, h, w)
    y = conv3x3_flat(nhwc_to_flat(x, geom), geom, hw, hb, jnp.float32)
    return flat_to_nhwc(y, geom)


def ptychonn_forward(params, x_nchw):
    x = jnp.transpose(x_nchw, (0, 2, 3, 1)).astype(jnp.float32)  # NCHW -> NHWC

    for p in params["encoder"]:
        x = _contraction(p, x)
    encoded = x

    a = encoded
    for p in params["amp_blocks"]:
        a = _expansion(p, a)
    amps = jax.nn.sigmoid(_head(a, params["amp_head_w"], params["amp_head_b"]))

    ph = encoded
    for p in params["phase_blocks"]:
        ph = _expansion(p, ph)
    phis = jnp.tanh(_head(ph, params["phase_head_w"], params["phase_head_b"]))
    phis = phis * jnp.float32(math.pi)

    # back to PyTorch NCHW convention
    return (jnp.transpose(amps, (0, 3, 1, 2)),
            jnp.transpose(phis, (0, 3, 1, 2)))


if __name__ == "__main__":
    key = jax.random.PRNGKey(0)
    pkey, xkey = jax.random.split(key)

    nconv = 8                                  # small synthetic config
    params = init_ptychonn_params(pkey, nconv=nconv)

    # input: batch=2, 1 channel, 16x16 (NCHW, as in PyTorch)
    x = jax.random.normal(xkey, (2, 1, 16, 16), dtype=jnp.float32)

    fwd = jax.jit(ptychonn_forward)
    amps, phis = fwd(params, x)
    jax.block_until_ready((amps, phis))

    assert amps.shape == (2, 1, 16, 16) and phis.shape == (2, 1, 16, 16)
    assert bool(jnp.all(jnp.isfinite(amps))) and bool(jnp.all(jnp.isfinite(phis)))
    print("KERNEL_OK")
</pallas_src>

<mosaic_0001>
module attributes {stable_mosaic.version = 11 : i64} {
  func.func @_conv3x3_kernel(%arg0: i32, %arg1: memref<744x8xbf16, #tpu.memory_space<any>>, %arg2: memref<72x8xbf16, #tpu.memory_space<vmem>>, %arg3: memref<1x8xf32, #tpu.memory_space<vmem>>, %arg4: memref<88x8xbf16, #tpu.memory_space<vmem>>, %arg5: memref<128x8xbf16, #tpu.memory_space<vmem>>, %arg6: memref<88x72xbf16, #tpu.memory_space<vmem>>, %arg7: memref<!tpu.dma_semaphore, #tpu.memory_space<semaphore_mem>>) attributes {dimension_semantics = [#tpu.dimension_semantics<parallel>], iteration_bounds = array<i64: 8>, scalar_prefetch = 0 : i64, scratch_operands = 3 : i64, tpu.core_type = #tpu.core_type<tc>, window_params = [{}, {pipeline_mode = #tpu.pipeline_mode<synchronous>, transform_indices = @transform_1, window_bounds = array<i64: 72, 8>}, {pipeline_mode = #tpu.pipeline_mode<synchronous>, transform_indices = @transform_2, window_bounds = array<i64: 1, 8>}, {transform_indices = @transform_3, window_bounds = array<i64: 88, 8>}]} {
    %c88_i32 = arith.constant 88 : i32
    %0 = arith.muli %arg0, %c88_i32 : i32
    %1 = tpu.assume_multiple %0, 8 : i32
    %c0_i32 = arith.constant 0 : i32
    %2 = tpu.memref_slice %arg1[%1, %c0_i32] : memref<744x8xbf16, #tpu.memory_space<any>> -> memref<128x8xbf16, #tpu.memory_space<any>>
    tpu.enqueue_dma source(%2 : memref<128x8xbf16, #tpu.memory_space<any>>) target(%arg5 : memref<128x8xbf16, #tpu.memory_space<vmem>>) target_semaphore(%arg7 : memref<!tpu.dma_semaphore, #tpu.memory_space<semaphore_mem>>)
    %c0_i32_0 = arith.constant 0 : i32
    %3 = tpu.memref_slice %arg1[%1, %c0_i32_0] : memref<744x8xbf16, #tpu.memory_space<any>> -> memref<128x8xbf16, #tpu.memory_space<any>>
    tpu.wait_dma2 semaphore(%arg7 : memref<!tpu.dma_semaphore, #tpu.memory_space<semaphore_mem>>) src(%3 : memref<128x8xbf16, #tpu.memory_space<any>>) dst(%arg5 : memref<128x8xbf16, #tpu.memory_space<vmem>>)
    %c0 = arith.constant 0 : index
    %c0_1 = arith.constant 0 : index
    %4 = vector.load %arg5[%c0, %c0_1] : memref<128x8xbf16, #tpu.memory_space<vmem>>, vector<88x8xbf16>
    %c0_2 = arith.constant 0 : index
    %c0_3 = arith.constant 0 : index
    %5 = vector.load %arg6[%c0_2, %c0_3] : memref<88x72xbf16, #tpu.memory_space<vmem>>, vector<88x8xbf16>
    tpu.vector_store %arg6[%c0_2, %c0_3], %4 {strides = array<i32>} : memref<88x72xbf16, #tpu.memory_space<vmem>>, vector<88x8xbf16>,
    %c1 = arith.constant 1 : index
    %c0_4 = arith.constant 0 : index
    %6 = vector.load %arg5[%c1, %c0_4] : memref<128x8xbf16, #tpu.memory_space<vmem>>, vector<88x8xbf16>
    %c0_5 = arith.constant 0 : index
    %c8 = arith.constant 8 : index
    %7 = vector.load %arg6[%c0_5, %c8] : memref<88x72xbf16, #tpu.memory_space<vmem>>, vector<88x8xbf16>
    tpu.vector_store %arg6[%c0_5, %c8], %6 {strides = array<i32>} : memref<88x72xbf16, #tpu.memory_space<vmem>>, vector<88x8xbf16>,
    %c2 = arith.constant 2 : index
    %c0_6 = arith.constant 0 : index
    %8 = vector.load %arg5[%c2, %c0_6] : memref<128x8xbf16, #tpu.memory_space<vmem>>, vector<88x8xbf16>
    %c0_7 = arith.constant 0 : index
    %c16 = arith.constant 16 : index
    %9 = vector.load %arg6[%c0_7, %c16] : memref<88x72xbf16, #tpu.memory_space<vmem>>, vector<88x8xbf16>
    tpu.vector_store %arg6[%c0_7, %c16], %8 {strides = array<i32>} : memref<88x72xbf16, #tpu.memory_space<vmem>>, vector<88x8xbf16>,
    %c18 = arith.constant 18 : index
    %c0_8 = arith.constant 0 : index
    %10 = vector.load %arg5[%c18, %c0_8] : memref<128x8xbf16, #tpu.memory_space<vmem>>, vector<88x8xbf16>
    %c0_9 = arith.constant 0 : index
    %c24 = arith.constant 24 : index
    %11 = vector.load %arg6[%c0_9, %c24] : memref<88x72xbf16, #tpu.memory_space<vmem>>, vector<88x8xbf16>
    tpu.vector_store %arg6[%c0_9, %c24], %10 {strides = array<i32>} : memref<88x72xbf16, #tpu.memory_space<vmem>>, vector<88x8xbf16>,
    %c19 = arith.constant 19 : index
    %c0_10 = arith.constant 0 : index
    %12 = vector.load %arg5[%c19, %c0_10] : memref<128x8xbf16, #tpu.memory_space<vmem>>, vector<88x8xbf16>
    %c0_11 = arith.constant 0 : index
    %c32 = arith.constant 32 : index
    %13 = vector.load %arg6[%c0_11, %c32] : memref<88x72xbf16, #tpu.memory_space<vmem>>, vector<88x8xbf16>
    tpu.vector_store %arg6[%c0_11, %c32], %12 {strides = array<i32>} : memref<88x72xbf16, #tpu.memory_space<vmem>>, vector<88x8xbf16>,
    %c20 = arith.constant 20 : index
    %c0_12 = arith.constant 0 : index
    %14 = vector.load %arg5[%c20, %c0_12] : memref<128x8xbf16, #tpu.memory_space<vmem>>, vector<88x8xbf16>
    %c0_13 = arith.constant 0 : index
    %c40 = arith.constant 40 : index
    %15 = vector.load %arg6[%c0_13, %c40] : memref<88x72xbf16, #tpu.memory_space<vmem>>, vector<88x8xbf16>
    tpu.vector_store %arg6[%c0_13, %c40], %14 {strides = array<i32>} : memref<88x72xbf16, #tpu.memory_space<vmem>>, vector<88x8xbf16>,
    %c36 = arith.constant 36 : index
    %c0_14 = arith.constant 0 : index
    %16 = vector.load %arg5[%c36, %c0_14] : memref<128x8xbf16, #tpu.memory_space<vmem>>, vector<88x8xbf16>
    %c0_15 = arith.constant 0 : index
    %c48 = arith.constant 48 : index
    %17 = vector.load %arg6[%c0_15, %c48] : memref<88x72xbf16, #tpu.memory_space<vmem>>, vector<88x8xbf16>
    tpu.vector_store %arg6[%c0_15, %c48], %16 {strides = array<i32>} : memref<88x72xbf16, #tpu.memory_space<vmem>>, vector<88x8xbf16>,
    %c37 = arith.constant 37 : index
    %c0_16 = arith.constant 0 : index
    %18 = vector.load %arg5[%c37, %c0_16] : memref<128x8xbf16, #tpu.memory_space<vmem>>, vector<88x8xbf16>
    %c0_17 = arith.constant 0 : index
    %c56 = arith.constant 56 : index
    %19 = vector.load %arg6[%c0_17, %c56] : memref<88x72xbf16, #tpu.memory_space<vmem>>, vector<88x8xbf16>
    tpu.vector_store %arg6[%c0_17, %c56], %18 {strides = array<i32>} : memref<88x72xbf16, #tpu.memory_space<vmem>>, vector<88x8xbf16>,
    %c38 = arith.constant 38 : index
    %c0_18 = arith.constant 0 : index
    %20 = vector.load %arg5[%c38, %c0_18] : memref<128x8xbf16, #tpu.memory_space<vmem>>, vector<88x8xbf16>
    %c0_19 = arith.constant 0 : index
    %c64 = arith.constant 64 : index
    %21 = vector.load %arg6[%c0_19, %c64] : memref<88x72xbf16, #tpu.memory_space<vmem>>, vector<88x8xbf16>
    tpu.vector_store %arg6[%c0_19, %c64], %20 {strides = array<i32>} : memref<88x72xbf16, #tpu.memory_space<vmem>>, vector<88x8xbf16>,
    %c0_20 = arith.constant 0 : index
    %c0_21 = arith.constant 0 : index
    %22 = vector.load %arg6[%c0_20, %c0_21] : memref<88x72xbf16, #tpu.memory_space<vmem>>, vector<88x72xbf16>
    %c0_22 = arith.constant 0 : index
    %c0_23 = arith.constant 0 : index
    %23 = vector.load %arg2[%c0_22, %c0_23] : memref<72x8xbf16, #tpu.memory_space<vmem>>, vector<72x8xbf16>
    %cst = arith.constant dense<0.000000e+00> : vector<88x8xf32>
    %24 = tpu.matmul %22, %23, %cst {dimension_numbers = #tpu.dot_dimension_numbers<[1], [0], [0], [1], [0, 0, 1, 1], [], []>} : vector<88x72xbf16>, vector<72x8xbf16>, vector<88x8xf32> -> vector<88x8xf32>
    %c0_24 = arith.constant 0 : index
    %c0_25 = arith.constant 0 : index
    %25 = vector.load %arg3[%c0_24, %c0_25] : memref<1x8xf32, #tpu.memory_space<vmem>>, vector<1x8xf32>
    %26 = vector.broadcast %25 : vector<1x8xf32> to vector<88x8xf32>
    %27 = arith.addf %24, %26 : vector<88x8xf32>
    %28 = arith.truncf %27 : vector<88x8xf32> to vector<88x8xbf16>
    %c0_26 = arith.constant 0 : index
    %c0_27 = arith.constant 0 : index
    %29 = vector.load %arg4[%c0_26, %c0_27] : memref<88x8xbf16, #tpu.memory_space<vmem>>, vector<88x8xbf16>
    tpu.vector_store %arg4[%c0_26, %c0_27], %28 {strides = array<i32>} : memref<88x8xbf16, #tpu.memory_space<vmem>>, vector<88x8xbf16>,
    return
  }
  func.func @transform_1(%arg0: i32) -> (i32, i32) {
    %c0_i32 = arith.constant 0 : i32
    %c0_i32_0 = arith.constant 0 : i32
    %c0_i32_1 = arith.constant 0 : i32
    return %c0_i32, %c0_i32_0 : i32, i32
  }
  func.func @transform_2(%arg0: i32) -> (i32, i32) {
    %c0_i32 = arith.constant 0 : i32
    %c0_i32_0 = arith.constant 0 : i32
    %c0_i32_1 = arith.constant 0 : i32
    return %c0_i32, %c0_i32_0 : i32, i32
  }
  func.func @transform_3(%arg0: i32) -> (i32, i32) {
    %c0_i32 = arith.constant 0 : i32
    %c0_i32_0 = arith.constant 0 : i32
    return %arg0, %c0_i32 : i32, i32
  }
}

module attributes {stable_mosaic.version = 11 : i64} {
  func.func @_conv3x3_kernel(%arg0: i32, %arg1: memref<248x8xbf16, #tpu.memory_space<any>>, %arg2: memref<72x16xbf16, #tpu.memory_space<vmem>>, %arg3: memref<1x16xf32, #tpu.memory_space<vmem>>, %arg4: memref<32x16xbf16, #tpu.memory_space<vmem>>, %arg5: memref<56x8xbf16, #tpu.memory_space<vmem>>, %arg6: memref<32x72xbf16, #tpu.memory_space<vmem>>, %arg7: memref<!tpu.dma_semaphore, #tpu.memory_space<semaphore_mem>>) attributes {dimension_semantics = [#tpu.dimension_semantics<parallel>], iteration_bounds = array<i64: 7>, scalar_prefetch = 0 : i64, scratch_operands = 3 : i64, tpu.core_type = #tpu.core_type<tc>, window_params = [{}, {pipeline_mode = #tpu.pipeline_mode<synchronous>, transform_indices = @transform_1, window_bounds = array<i64: 72, 16>}, {pipeline_mode = #tpu.pipeline_mode<synchronous>, transform_indices = @transform_2, window_bounds = array<i64: 1, 16>}, {transform_indices = @transform_3, window_bounds = array<i64: 32, 16>}]} {
    %c32_i32 = arith.constant 32 : i32
    %0 = arith.muli %arg0, %c32_i32 : i32
    %1 = tpu.assume_multiple %0, 8 : i32
    %c0_i32 = arith.constant 0 : i32
    %2 = tpu.memref_slice %arg1[%1, %c0_i32] : memref<248x8xbf16, #tpu.memory_space<any>> -> memref<56x8xbf16, #tpu.memory_space<any>>
    tpu.enqueue_dma source(%2 : memref<56x8xbf16, #tpu.memory_space<any>>) target(%arg5 : memref<56x8xbf16, #tpu.memory_space<vmem>>) target_semaphore(%arg7 : memref<!tpu.dma_semaphore, #tpu.memory_space<semaphore_mem>>)
    %c0_i32_0 = arith.constant 0 : i32
    %3 = tpu.memref_slice %arg1[%1, %c0_i32_0] : memref<248x8xbf16, #tpu.memory_space<any>> -> memref<56x8xbf16, #tpu.memory_space<any>>
    tpu.wait_dma2 semaphore(%arg7 : memref<!tpu.dma_semaphore, #tpu.memory_space<semaphore_mem>>) src(%3 : memref<56x8xbf16, #tpu.memory_space<any>>) dst(%arg5 : memref<56x8xbf16, #tpu.memory_space<vmem>>)
    %c0 = arith.constant 0 : index
    %c0_1 = arith.constant 0 : index
    %4 = vector.load %arg5[%c0, %c0_1] : memref<56x8xbf16, #tpu.memory_space<vmem>>, vector<32x8xbf16>
    %c0_2 = arith.constant 0 : index
    %c0_3 = arith.constant 0 : index
    %5 = vector.load %arg6[%c0_2, %c0_3] : memref<32x72xbf16, #tpu.memory_space<vmem>>, vector<32x8xbf16>
    tpu.vector_store %arg6[%c0_2, %c0_3], %4 {strides = array<i32>} : memref<32x72xbf16, #tpu.memory_space<vmem>>, vector<32x8xbf16>,
    %c1 = arith.constant 1 : index
    %c0_4 = arith.constant 0 : index
    %6 = vector.load %arg5[%c1, %c0_4] : memref<56x8xbf16, #tpu.memory_space<vmem>>, vector<32x8xbf16>
    %c0_5 = arith.constant 0 : index
    %c8 = arith.constant 8 : index
    %7 = vector.load %arg6[%c0_5, %c8] : memref<32x72xbf16, #tpu.memory_space<vmem>>, vector<32x8xbf16>
    tpu.vector_store %arg6[%c0_5, %c8], %6 {strides = array<i32>} : memref<32x72xbf16, #tpu.memory_space<vmem>>, vector<32x8xbf16>,
    %c2 = arith.constant 2 : index
    %c0_6 = arith.constant 0 : index
    %8 = vector.load %arg5[%c2, %c0_6] : memref<56x8xbf16, #tpu.memory_space<vmem>>, vector<32x8xbf16>
    %c0_7 = arith.constant 0 : index
    %c16 = arith.constant 16 : index
    %9 = vector.load %arg6[%c0_7, %c16] : memref<32x72xbf16, #tpu.memory_space<vmem>>, vector<32x8xbf16>
    tpu.vector_store %arg6[%c0_7, %c16], %8 {strides = array<i32>} : memref<32x72xbf16, #tpu.memory_space<vmem>>, vector<32x8xbf16>,
    %c10 = arith.constant 10 : index
    %c0_8 = arith.constant 0 : index
    %10 = vector.load %arg5[%c10, %c0_8] : memref<56x8xbf16, #tpu.memory_space<vmem>>, vector<32x8xbf16>
    %c0_9 = arith.constant 0 : index
    %c24 = arith.constant 24 : index
    %11 = vector.load %arg6[%c0_9, %c24] : memref<32x72xbf16, #tpu.memory_space<vmem>>, vector<32x8xbf16>
    tpu.vector_store %arg6[%c0_9, %c24], %10 {strides = array<i32>} : memref<32x72xbf16, #tpu.memory_space<vmem>>, vector<32x8xbf16>,
    %c11 = arith.constant 11 : index
    %c0_10 = arith.constant 0 : index
    %12 = vector.load %arg5[%c11, %c0_10] : memref<56x8xbf16, #tpu.memory_space<vmem>>, vector<32x8xbf16>
    %c0_11 = arith.constant 0 : index
    %c32 = arith.constant 32 : index
    %13 = vector.load %arg6[%c0_11, %c32] : memref<32x72xbf16, #tpu.memory_space<vmem>>, vector<32x8xbf16>
    tpu.vector_store %arg6[%c0_11, %c32], %12 {strides = array<i32>} : memref<32x72xbf16, #tpu.memory_space<vmem>>, vector<32x8xbf16>,
    %c12 = arith.constant 12 : index
    %c0_12 = arith.constant 0 : index
    %14 = vector.load %arg5[%c12, %c0_12] : memref<56x8xbf16, #tpu.memory_space<vmem>>, vector<32x8xbf16>
    %c0_13 = arith.constant 0 : index
    %c40 = arith.constant 40 : index
    %15 = vector.load %arg6[%c0_13, %c40] : memref<32x72xbf16, #tpu.memory_space<vmem>>, vector<32x8xbf16>
    tpu.vector_store %arg6[%c0_13, %c40], %14 {strides = array<i32>} : memref<32x72xbf16, #tpu.memory_space<vmem>>, vector<32x8xbf16>,
    %c20 = arith.constant 20 : index
    %c0_14 = arith.constant 0 : index
    %16 = vector.load %arg5[%c20, %c0_14] : memref<56x8xbf16, #tpu.memory_space<vmem>>, vector<32x8xbf16>
    %c0_15 = arith.constant 0 : index
    %c48 = arith.constant 48 : index
    %17 = vector.load %arg6[%c0_15, %c48] : memref<32x72xbf16, #tpu.memory_space<vmem>>, vector<32x8xbf16>
    tpu.vector_store %arg6[%c0_15, %c48], %16 {strides = array<i32>} : memref<32x72xbf16, #tpu.memory_space<vmem>>, vector<32x8xbf16>,
    %c21 = arith.constant 21 : index
    %c0_16 = arith.constant 0 : index
    %18 = vector.load %arg5[%c21, %c0_16] : memref<56x8xbf16, #tpu.memory_space<vmem>>, vector<32x8xbf16>
    %c0_17 = arith.constant 0 : index
    %c56 = arith.constant 56 : index
    %19 = vector.load %arg6[%c0_17, %c56] : memref<32x72xbf16, #tpu.memory_space<vmem>>, vector<32x8xbf16>
    tpu.vector_store %arg6[%c0_17, %c56], %18 {strides = array<i32>} : memref<32x72xbf16, #tpu.memory_space<vmem>>, vector<32x8xbf16>,
    %c22 = arith.constant 22 : index
    %c0_18 = arith.constant 0 : index
    %20 = vector.load %arg5[%c22, %c0_18] : memref<56x8xbf16, #tpu.memory_space<vmem>>, vector<32x8xbf16>
    %c0_19 = arith.constant 0 : index
    %c64 = arith.constant 64 : index
    %21 = vector.load %arg6[%c0_19, %c64] : memref<32x72xbf16, #tpu.memory_space<vmem>>, vector<32x8xbf16>
    tpu.vector_store %arg6[%c0_19, %c64], %20 {strides = array<i32>} : memref<32x72xbf16, #tpu.memory_space<vmem>>, vector<32x8xbf16>,
    %c0_20 = arith.constant 0 : index
    %c0_21 = arith.constant 0 : index
    %22 = vector.load %arg6[%c0_20, %c0_21] : memref<32x72xbf16, #tpu.memory_space<vmem>>, vector<32x72xbf16>
    %c0_22 = arith.constant 0 : index
    %c0_23 = arith.constant 0 : index
    %23 = vector.load %arg2[%c0_22, %c0_23] : memref<72x16xbf16, #tpu.memory_space<vmem>>, vector<72x16xbf16>
    %cst = arith.constant dense<0.000000e+00> : vector<32x16xf32>
    %24 = tpu.matmul %22, %23, %cst {dimension_numbers = #tpu.dot_dimension_numbers<[1], [0], [0], [1], [0, 0, 1, 1], [], []>} : vector<32x72xbf16>, vector<72x16xbf16>, vector<32x16xf32> -> vector<32x16xf32>
    %c0_24 = arith.constant 0 : index
    %c0_25 = arith.constant 0 : index
    %25 = vector.load %arg3[%c0_24, %c0_25] : memref<1x16xf32, #tpu.memory_space<vmem>>, vector<1x16xf32>
    %26 = vector.broadcast %25 : vector<1x16xf32> to vector<32x16xf32>
    %27 = arith.addf %24, %26 : vector<32x16xf32>
    %28 = arith.truncf %27 : vector<32x16xf32> to vector<32x16xbf16>
    %c0_26 = arith.constant 0 : index
    %c0_27 = arith.constant 0 : index
    %29 = vector.load %arg4[%c0_26, %c0_27] : memref<32x16xbf16, #tpu.memory_space<vmem>>, vector<32x16xbf16>
    tpu.vector_store %arg4[%c0_26, %c0_27], %28 {strides = array<i32>} : memref<32x16xbf16, #tpu.memory_space<vmem>>, vector<32x16xbf16>,
    return
  }
  func.func @transform_1(%arg0: i32) -> (i32, i32) {
    %c0_i32 = arith.constant 0 : i32
    %c0_i32_0 = arith.constant 0 : i32
    %c0_i32_1 = arith.constant 0 : i32
    return %c0_i32, %c0_i32_0 : i32, i32
  }
  func.func @transform_2(%arg0: i32) -> (i32, i32) {
    %c0_i32 = arith.constant 0 : i32
    %c0_i32_0 = arith.constant 0 : i32
    %c0_i32_1 = arith.constant 0 : i32
    return %c0_i32, %c0_i32_0 : i32, i32
  }
  func.func @transform_3(%arg0: i32) -> (i32, i32) {
    %c0_i32 = arith.constant 0 : i32
    %c0_i32_0 = arith.constant 0 : i32
    return %arg0, %c0_i32 : i32, i32
  }
}

module attributes {stable_mosaic.version = 11 : i64} {
  func.func @_conv3x3_kernel(%arg0: i32, %arg1: memref<248x16xbf16, #tpu.memory_space<any>>, %arg2: memref<144x16xbf16, #tpu.memory_space<vmem>>, %arg3: memref<1x16xf32, #tpu.memory_space<vmem>>, %arg4: memref<32x16xbf16, #tpu.memory_space<vmem>>, %arg5: memref<56x16xbf16, #tpu.memory_space<vmem>>, %arg6: memref<32x144xbf16, #tpu.memory_space<vmem>>, %arg7: memref<!tpu.dma_semaphore, #tpu.memory_space<semaphore_mem>>) attributes {dimension_semantics = [#tpu.dimension_semantics<parallel>], iteration_bounds = array<i64: 7>, scalar_prefetch = 0 : i64, scratch_operands = 3 : i64, tpu.core_type = #tpu.core_type<tc>, window_params = [{}, {pipeline_mode = #tpu.pipeline_mode<synchronous>, transform_indices = @transform_1, window_bounds = array<i64: 144, 16>}, {pipeline_mode = #tpu.pipeline_mode<synchronous>, transform_indices = @transform_2, window_bounds = array<i64: 1, 16>}, {transform_indices = @transform_3, window_bounds = array<i64: 32, 16>}]} {
    %c32_i32 = arith.constant 32 : i32
    %0 = arith.muli %arg0, %c32_i32 : i32
    %1 = tpu.assume_multiple %0, 8 : i32
    %c0_i32 = arith.constant 0 : i32
    %2 = tpu.memref_slice %arg1[%1, %c0_i32] : memref<248x16xbf16, #tpu.memory_space<any>> -> memref<56x16xbf16, #tpu.memory_space<any>>
    tpu.enqueue_dma source(%2 : memref<56x16xbf16, #tpu.memory_space<any>>) target(%arg5 : memref<56x16xbf16, #tpu.memory_space<vmem>>) target_semaphore(%arg7 : memref<!tpu.dma_semaphore, #tpu.memory_space<semaphore_mem>>)
    %c0_i32_0 = arith.constant 0 : i32
    %3 = tpu.memref_slice %arg1[%1, %c0_i32_0] : memref<248x16xbf16, #tpu.memory_space<any>> -> memref<56x16xbf16, #tpu.memory_space<any>>
    tpu.wait_dma2 semaphore(%arg7 : memref<!tpu.dma_semaphore, #tpu.memory_space<semaphore_mem>>) src(%3 : memref<56x16xbf16, #tpu.memory_space<any>>) dst(%arg5 : memref<56x16xbf16, #tpu.memory_space<vmem>>)
    %c0 = arith.constant 0 : index
    %c0_1 = arith.constant 0 : index
    %4 = vector.load %arg5[%c0, %c0_1] : memref<56x16xbf16, #tpu.memory_space<vmem>>, vector<32x16xbf16>
    %c0_2 = arith.constant 0 : index
    %c0_3 = arith.constant 0 : index
    %5 = vector.load %arg6[%c0_2, %c0_3] : memref<32x144xbf16, #tpu.memory_space<vmem>>, vector<32x16xbf16>
    tpu.vector_store %arg6[%c0_2, %c0_3], %4 {strides = array<i32>} : memref<32x144xbf16, #tpu.memory_space<vmem>>, vector<32x16xbf16>,
    %c1 = arith.constant 1 : index
    %c0_4 = arith.constant 0 : index
    %6 = vector.load %arg5[%c1, %c0_4] : memref<56x16xbf16, #tpu.memory_space<vmem>>, vector<32x16xbf16>
    %c0_5 = arith.constant 0 : index
    %c16 = arith.constant 16 : index
    %7 = vector.load %arg6[%c0_5, %c16] : memref<32x144xbf16, #tpu.memory_space<vmem>>, vector<32x16xbf16>
    tpu.vector_store %arg6[%c0_5, %c16], %6 {strides = array<i32>} : memref<32x144xbf16, #tpu.memory_space<vmem>>, vector<32x16xbf16>,
    %c2 = arith.constant 2 : index
    %c0_6 = arith.constant 0 : index
    %8 = vector.load %arg5[%c2, %c0_6] : memref<56x16xbf16, #tpu.memory_space<vmem>>, vector<32x16xbf16>
    %c0_7 = arith.constant 0 : index
    %c32 = arith.constant 32 : index
    %9 = vector.load %arg6[%c0_7, %c32] : memref<32x144xbf16, #tpu.memory_space<vmem>>, vector<32x16xbf16>
    tpu.vector_store %arg6[%c0_7, %c32], %8 {strides = array<i32>} : memref<32x144xbf16, #tpu.memory_space<vmem>>, vector<32x16xbf16>,
    %c10 = arith.constant 10 : index
    %c0_8 = arith.constant 0 : index
    %10 = vector.load %arg5[%c10, %c0_8] : memref<56x16xbf16, #tpu.memory_space<vmem>>, vector<32x16xbf16>
    %c0_9 = arith.constant 0 : index
    %c48 = arith.constant 48 : index
    %11 = vector.load %arg6[%c0_9, %c48] : memref<32x144xbf16, #tpu.memory_space<vmem>>, vector<32x16xbf16>
    tpu.vector_store %arg6[%c0_9, %c48], %10 {strides = array<i32>} : memref<32x144xbf16, #tpu.memory_space<vmem>>, vector<32x16xbf16>,
    %c11 = arith.constant 11 : index
    %c0_10 = arith.constant 0 : index
    %12 = vector.load %arg5[%c11, %c0_10] : memref<56x16xbf16, #tpu.memory_space<vmem>>, vector<32x16xbf16>
    %c0_11 = arith.constant 0 : index
    %c64 = arith.constant 64 : index
    %13 = vector.load %arg6[%c0_11, %c64] : memref<32x144xbf16, #tpu.memory_space<vmem>>, vector<32x16xbf16>
    tpu.vector_store %arg6[%c0_11, %c64], %12 {strides = array<i32>} : memref<32x144xbf16, #tpu.memory_space<vmem>>, vector<32x16xbf16>,
    %c12 = arith.constant 12 : index
    %c0_12 = arith.constant 0 : index
    %14 = vector.load %arg5[%c12, %c0_12] : memref<56x16xbf16, #tpu.memory_space<vmem>>, vector<32x16xbf16>
    %c0_13 = arith.constant 0 : index
    %c80 = arith.constant 80 : index
    %15 = vector.load %arg6[%c0_13, %c80] : memref<32x144xbf16, #tpu.memory_space<vmem>>, vector<32x16xbf16>
    tpu.vector_store %arg6[%c0_13, %c80], %14 {strides = array<i32>} : memref<32x144xbf16, #tpu.memory_space<vmem>>, vector<32x16xbf16>,
    %c20 = arith.constant 20 : index
    %c0_14 = arith.constant 0 : index
    %16 = vector.load %arg5[%c20, %c0_14] : memref<56x16xbf16, #tpu.memory_space<vmem>>, vector<32x16xbf16>
    %c0_15 = arith.constant 0 : index
    %c96 = arith.constant 96 : index
    %17 = vector.load %arg6[%c0_15, %c96] : memref<32x144xbf16, #tpu.memory_space<vmem>>, vector<32x16xbf16>
    tpu.vector_store %arg6[%c0_15, %c96], %16 {strides = array<i32>} : memref<32x144xbf16, #tpu.memory_space<vmem>>, vector<32x16xbf16>,
    %c21 = arith.constant 21 : index
    %c0_16 = arith.constant 0 : index
    %18 = vector.load %arg5[%c21, %c0_16] : memref<56x16xbf16, #tpu.memory_space<vmem>>, vector<32x16xbf16>
    %c0_17 = arith.constant 0 : index
    %c112 = arith.constant 112 : index
    %19 = vector.load %arg6[%c0_17, %c112] : memref<32x144xbf16, #tpu.memory_space<vmem>>, vector<32x16xbf16>
    tpu.vector_store %arg6[%c0_17, %c112], %18 {strides = array<i32>} : memref<32x144xbf16, #tpu.memory_space<vmem>>, vector<32x16xbf16>,
    %c22 = arith.constant 22 : index
    %c0_18 = arith.constant 0 : index
    %20 = vector.load %arg5[%c22, %c0_18] : memref<56x16xbf16, #tpu.memory_space<vmem>>, vector<32x16xbf16>
    %c0_19 = arith.constant 0 : index
    %c128 = arith.constant 128 : index
    %21 = vector.load %arg6[%c0_19, %c128] : memref<32x144xbf16, #tpu.memory_space<vmem>>, vector<32x16xbf16>
    tpu.vector_store %arg6[%c0_19, %c128], %20 {strides = array<i32>} : memref<32x144xbf16, #tpu.memory_space<vmem>>, vector<32x16xbf16>,
    %c0_20 = arith.constant 0 : index
    %c0_21 = arith.constant 0 : index
    %22 = vector.load %arg6[%c0_20, %c0_21] : memref<32x144xbf16, #tpu.memory_space<vmem>>, vector<32x144xbf16>
    %c0_22 = arith.constant 0 : index
    %c0_23 = arith.constant 0 : index
    %23 = vector.load %arg2[%c0_22, %c0_23] : memref<144x16xbf16, #tpu.memory_space<vmem>>, vector<144x16xbf16>
    %cst = arith.constant dense<0.000000e+00> : vector<32x16xf32>
    %24 = tpu.matmul %22, %23, %cst {dimension_numbers = #tpu.dot_dimension_numbers<[1], [0], [0], [1], [0, 0, 1, 1], [], []>} : vector<32x144xbf16>, vector<144x16xbf16>, vector<32x16xf32> -> vector<32x16xf32>
    %c0_24 = arith.constant 0 : index
    %c0_25 = arith.constant 0 : index
    %25 = vector.load %arg3[%c0_24, %c0_25] : memref<1x16xf32, #tpu.memory_space<vmem>>, vector<1x16xf32>
    %26 = vector.broadcast %25 : vector<1x16xf32> to vector<32x16xf32>
    %27 = arith.addf %24, %26 : vector<32x16xf32>
    %28 = arith.truncf %27 : vector<32x16xf32> to vector<32x16xbf16>
    %c0_26 = arith.constant 0 : index
    %c0_27 = arith.constant 0 : index
    %29 = vector.load %arg4[%c0_26, %c0_27] : memref<32x16xbf16, #tpu.memory_space<vmem>>, vector<32x16xbf16>
    tpu.vector_store %arg4[%c0_26, %c0_27], %28 {strides = array<i32>} : memref<32x16xbf16, #tpu.memory_space<vmem>>, vector<32x16xbf16>,
    return
  }
  func.func @transform_1(%arg0: i32) -> (i32, i32) {
    %c0_i32 = arith.constant 0 : i32
    %c0_i32_0 = arith.constant 0 : i32
    %c0_i32_1 = arith.constant 0 : i32
    return %c0_i32, %c0_i32_0 : i32, i32
  }
  func.func @transform_2(%arg0: i32) -> (i32, i32) {
    %c0_i32 = arith.constant 0 : i32
    %c0_i32_0 = arith.constant 0 : i32
    %c0_i32_1 = arith.constant 0 : i32
    return %c0_i32, %c0_i32_0 : i32, i32
  }
  func.func @transform_3(%arg0: i32) -> (i32, i32) {
    %c0_i32 = arith.constant 0 : i32
    %c0_i32_0 = arith.constant 0 : i32
    return %arg0, %c0_i32 : i32, i32
  }
}

module attributes {stable_mosaic.version = 11 : i64} {
  func.func @_conv3x3_kernel(%arg0: i32, %arg1: memref<96x16xbf16, #tpu.memory_space<any>>, %arg2: memref<144x32xbf16, #tpu.memory_space<vmem>>, %arg3: memref<1x32xf32, #tpu.memory_space<vmem>>, %arg4: memref<16x32xbf16, #tpu.memory_space<vmem>>, %arg5: memref<32x16xbf16, #tpu.memory_space<vmem>>, %arg6: memref<16x144xbf16, #tpu.memory_space<vmem>>, %arg7: memref<!tpu.dma_semaphore, #tpu.memory_space<semaphore_mem>>) attributes {dimension_semantics = [#tpu.dimension_semantics<parallel>], iteration_bounds = array<i64: 5>, scalar_prefetch = 0 : i64, scratch_operands = 3 : i64, tpu.core_type = #tpu.core_type<tc>, window_params = [{}, {pipeline_mode = #tpu.pipeline_mode<synchronous>, transform_indices = @transform_1, window_bounds = array<i64: 144, 32>}, {pipeline_mode = #tpu.pipeline_mode<synchronous>, transform_indices = @transform_2, window_bounds = array<i64: 1, 32>}, {transform_indices = @transform_3, window_bounds = array<i64: 16, 32>}]} {
    %c16_i32 = arith.constant 16 : i32
    %0 = arith.muli %arg0, %c16_i32 : i32
    %1 = tpu.assume_multiple %0, 8 : i32
    %c0_i32 = arith.constant 0 : i32
    %2 = tpu.memref_slice %arg1[%1, %c0_i32] : memref<96x16xbf16, #tpu.memory_space<any>> -> memref<32x16xbf16, #tpu.memory_space<any>>
    tpu.enqueue_dma source(%2 : memref<32x16xbf16, #tpu.memory_space<any>>) target(%arg5 : memref<32x16xbf16, #tpu.memory_space<vmem>>) target_semaphore(%arg7 : memref<!tpu.dma_semaphore, #tpu.memory_space<semaphore_mem>>)
    %c0_i32_0 = arith.constant 0 : i32
    %3 = tpu.memref_slice %arg1[%1, %c0_i32_0] : memref<96x16xbf16, #tpu.memory_space<any>> -> memref<32x16xbf16, #tpu.memory_space<any>>
    tpu.wait_dma2 semaphore(%arg7 : memref<!tpu.dma_semaphore, #tpu.memory_space<semaphore_mem>>) src(%3 : memref<32x16xbf16, #tpu.memory_space<any>>) dst(%arg5 : memref<32x16xbf16, #tpu.memory_space<vmem>>)
    %c0 = arith.constant 0 : index
    %c0_1 = arith.constant 0 : index
    %4 = vector.load %arg5[%c0, %c0_1] : memref<32x16xbf16, #tpu.memory_space<vmem>>, vector<16x16xbf16>
    %c0_2 = arith.constant 0 : index
    %c0_3 = arith.constant 0 : index
    %5 = vector.load %arg6[%c0_2, %c0_3] : memref<16x144xbf16, #tpu.memory_space<vmem>>, vector<16x16xbf16>
    tpu.vector_store %arg6[%c0_2, %c0_3], %4 {strides = array<i32>} : memref<16x144xbf16, #tpu.memory_space<vmem>>, vector<16x16xbf16>,
    %c1 = arith.constant 1 : index
    %c0_4 = arith.constant 0 : index
    %6 = vector.load %arg5[%c1, %c0_4] : memref<32x16xbf16, #tpu.memory_space<vmem>>, vector<16x16xbf16>
    %c0_5 = arith.constant 0 : index
    %c16 = arith.constant 16 : index
    %7 = vector.load %arg6[%c0_5, %c16] : memref<16x144xbf16, #tpu.memory_space<vmem>>, vector<16x16xbf16>
    tpu.vector_store %arg6[%c0_5, %c16], %6 {strides = array<i32>} : memref<16x144xbf16, #tpu.memory_space<vmem>>, vector<16x16xbf16>,
    %c2 = arith.constant 2 : index
    %c0_6 = arith.constant 0 : index
    %8 = vector.load %arg5[%c2, %c0_6] : memref<32x16xbf16, #tpu.memory_space<vmem>>, vector<16x16xbf16>
    %c0_7 = arith.constant 0 : index
    %c32 = arith.constant 32 : index
    %9 = vector.load %arg6[%c0_7, %c32] : memref<16x144xbf16, #tpu.memory_space<vmem>>, vector<16x16xbf16>
    tpu.vector_store %arg6[%c0_7, %c32], %8 {strides = array<i32>} : memref<16x144xbf16, #tpu.memory_space<vmem>>, vector<16x16xbf16>,
    %c6 = arith.constant 6 : index
    %c0_8 = arith.constant 0 : index
    %10 = vector.load %arg5[%c6, %c0_8] : memref<32x16xbf16, #tpu.memory_space<vmem>>, vector<16x16xbf16>
    %c0_9 = arith.constant 0 : index
    %c48 = arith.constant 48 : index
    %11 = vector.load %arg6[%c0_9, %c48] : memref<16x144xbf16, #tpu.memory_space<vmem>>, vector<16x16xbf16>
    tpu.vector_store %arg6[%c0_9, %c48], %10 {strides = array<i32>} : memref<16x144xbf16, #tpu.memory_space<vmem>>, vector<16x16xbf16>,
    %c7 = arith.constant 7 : index
    %c0_10 = arith.constant 0 : index
    %12 = vector.load %arg5[%c7, %c0_10] : memref<32x16xbf16, #tpu.memory_space<vmem>>, vector<16x16xbf16>
    %c0_11 = arith.constant 0 : index
    %c64 = arith.constant 64 : index
    %13 = vector.load %arg6[%c0_11, %c64] : memref<16x144xbf16, #tpu.memory_space<vmem>>, vector<16x16xbf16>
    tpu.vector_store %arg6[%c0_11, %c64], %12 {strides = array<i32>} : memref<16x144xbf16, #tpu.memory_space<vmem>>, vector<16x16xbf16>,
    %c8 = arith.constant 8 : index
    %c0_12 = arith.constant 0 : index
    %14 = vector.load %arg5[%c8, %c0_12] : memref<32x16xbf16, #tpu.memory_space<vmem>>, vector<16x16xbf16>
    %c0_13 = arith.constant 0 : index
    %c80 = arith.constant 80 : index
    %15 = vector.load %arg6[%c0_13, %c80] : memref<16x144xbf16, #tpu.memory_space<vmem>>, vector<16x16xbf16>
    tpu.vector_store %arg6[%c0_13, %c80], %14 {strides = array<i32>} : memref<16x144xbf16, #tpu.memory_space<vmem>>, vector<16x16xbf16>,
    %c12 = arith.constant 12 : index
    %c0_14 = arith.constant 0 : index
    %16 = vector.load %arg5[%c12, %c0_14] : memref<32x16xbf16, #tpu.memory_space<vmem>>, vector<16x16xbf16>
    %c0_15 = arith.constant 0 : index
    %c96 = arith.constant 96 : index
    %17 = vector.load %arg6[%c0_15, %c96] : memref<16x144xbf16, #tpu.memory_space<vmem>>, vector<16x16xbf16>
    tpu.vector_store %arg6[%c0_15, %c96], %16 {strides = array<i32>} : memref<16x144xbf16, #tpu.memory_space<vmem>>, vector<16x16xbf16>,
    %c13 = arith.constant 13 : index
    %c0_16 = arith.constant 0 : index
    %18 = vector.load %arg5[%c13, %c0_16] : memref<32x16xbf16, #tpu.memory_space<vmem>>, vector<16x16xbf16>
    %c0_17 = arith.constant 0 : index
    %c112 = arith.constant 112 : index
    %19 = vector.load %arg6[%c0_17, %c112] : memref<16x144xbf16, #tpu.memory_space<vmem>>, vector<16x16xbf16>
    tpu.vector_store %arg6[%c0_17, %c112], %18 {strides = array<i32>} : memref<16x144xbf16, #tpu.memory_space<vmem>>, vector<16x16xbf16>,
    %c14 = arith.constant 14 : index
    %c0_18 = arith.constant 0 : index
    %20 = vector.load %arg5[%c14, %c0_18] : memref<32x16xbf16, #tpu.memory_space<vmem>>, vector<16x16xbf16>
    %c0_19 = arith.constant 0 : index
    %c128 = arith.constant 128 : index
    %21 = vector.load %arg6[%c0_19, %c128] : memref<16x144xbf16, #tpu.memory_space<vmem>>, vector<16x16xbf16>
    tpu.vector_store %arg6[%c0_19, %c128], %20 {strides = array<i32>} : memref<16x144xbf16, #tpu.memory_space<vmem>>, vector<16x16xbf16>,
    %c0_20 = arith.constant 0 : index
    %c0_21 = arith.constant 0 : index
    %22 = vector.load %arg6[%c0_20, %c0_21] : memref<16x144xbf16, #tpu.memory_space<vmem>>, vector<16x144xbf16>
    %c0_22 = arith.constant 0 : index
    %c0_23 = arith.constant 0 : index
    %23 = vector.load %arg2[%c0_22, %c0_23] : memref<144x32xbf16, #tpu.memory_space<vmem>>, vector<144x32xbf16>
    %cst = arith.constant dense<0.000000e+00> : vector<16x32xf32>
    %24 = tpu.matmul %22, %23, %cst {dimension_numbers = #tpu.dot_dimension_numbers<[1], [0], [0], [1], [0, 0, 1, 1], [], []>} : vector<16x144xbf16>, vector<144x32xbf16>, vector<16x32xf32> -> vector<16x32xf32>
    %c0_24 = arith.constant 0 : index
    %c0_25 = arith.constant 0 : index
    %25 = vector.load %arg3[%c0_24, %c0_25] : memref<1x32xf32, #tpu.memory_space<vmem>>, vector<1x32xf32>
    %26 = vector.broadcast %25 : vector<1x32xf32> to vector<16x32xf32>
    %27 = arith.addf %24, %26 : vector<16x32xf32>
    %28 = arith.truncf %27 : vector<16x32xf32> to vector<16x32xbf16>
    %c0_26 = arith.constant 0 : index
    %c0_27 = arith.constant 0 : index
    %29 = vector.load %arg4[%c0_26, %c0_27] : memref<16x32xbf16, #tpu.memory_space<vmem>>, vector<16x32xbf16>
    tpu.vector_store %arg4[%c0_26, %c0_27], %28 {strides = array<i32>} : memref<16x32xbf16, #tpu.memory_space<vmem>>, vector<16x32xbf16>,
    return
  }
  func.func @transform_1(%arg0: i32) -> (i32, i32) {
    %c0_i32 = arith.constant 0 : i32
    %c0_i32_0 = arith.constant 0 : i32
    %c0_i32_1 = arith.constant 0 : i32
    return %c0_i32, %c0_i32_0 : i32, i32
  }
  func.func @transform_2(%arg0: i32) -> (i32, i32) {
    %c0_i32 = arith.constant 0 : i32
    %c0_i32_0 = arith.constant 0 : i32
    %c0_i32_1 = arith.constant 0 : i32
    return %c0_i32, %c0_i32_0 : i32, i32
  }
  func.func @transform_3(%arg0: i32) -> (i32, i32) {
    %c0_i32 = arith.constant 0 : i32
    %c0_i32_0 = arith.constant 0 : i32
    return %arg0, %c0_i32 : i32, i32
  }
}

module attributes {stable_mosaic.version = 11 : i64} {
  func.func @_conv3x3_kernel(%arg0: i32, %arg1: memref<96x32xbf16, #tpu.memory_space<any>>, %arg2: memref<288x32xbf16, #tpu.memory_space<vmem>>, %arg3: memref<1x32xf32, #tpu.memory_space<vmem>>, %arg4: memref<16x32xbf16, #tpu.memory_space<vmem>>, %arg5: memref<32x32xbf16, #tpu.memory_space<vmem>>, %arg6: memref<16x288xbf16, #tpu.memory_space<vmem>>, %arg7: memref<!tpu.dma_semaphore, #tpu.memory_space<semaphore_mem>>) attributes {dimension_semantics = [#tpu.dimension_semantics<parallel>], iteration_bounds = array<i64: 5>, scalar_prefetch = 0 : i64, scratch_operands = 3 : i64, tpu.core_type = #tpu.core_type<tc>, window_params = [{}, {pipeline_mode = #tpu.pipeline_mode<synchronous>, transform_indices = @transform_1, window_bounds = array<i64: 288, 32>}, {pipeline_mode = #tpu.pipeline_mode<synchronous>, transform_indices = @transform_2, window_bounds = array<i64: 1, 32>}, {transform_indices = @transform_3, window_bounds = array<i64: 16, 32>}]} {
    %c16_i32 = arith.constant 16 : i32
    %0 = arith.muli %arg0, %c16_i32 : i32
    %1 = tpu.assume_multiple %0, 8 : i32
    %c0_i32 = arith.constant 0 : i32
    %2 = tpu.memref_slice %arg1[%1, %c0_i32] : memref<96x32xbf16, #tpu.memory_space<any>> -> memref<32x32xbf16, #tpu.memory_space<any>>
    tpu.enqueue_dma source(%2 : memref<32x32xbf16, #tpu.memory_space<any>>) target(%arg5 : memref<32x32xbf16, #tpu.memory_space<vmem>>) target_semaphore(%arg7 : memref<!tpu.dma_semaphore, #tpu.memory_space<semaphore_mem>>)
    %c0_i32_0 = arith.constant 0 : i32
    %3 = tpu.memref_slice %arg1[%1, %c0_i32_0] : memref<96x32xbf16, #tpu.memory_space<any>> -> memref<32x32xbf16, #tpu.memory_space<any>>
    tpu.wait_dma2 semaphore(%arg7 : memref<!tpu.dma_semaphore, #tpu.memory_space<semaphore_mem>>) src(%3 : memref<32x32xbf16, #tpu.memory_space<any>>) dst(%arg5 : memref<32x32xbf16, #tpu.memory_space<vmem>>)
    %c0 = arith.constant 0 : index
    %c0_1 = arith.constant 0 : index
    %4 = vector.load %arg5[%c0, %c0_1] : memref<32x32xbf16, #tpu.memory_space<vmem>>, vector<16x32xbf16>
    %c0_2 = arith.constant 0 : index
    %c0_3 = arith.constant 0 : index
    %5 = vector.load %arg6[%c0_2, %c0_3] : memref<16x288xbf16, #tpu.memory_space<vmem>>, vector<16x32xbf16>
    tpu.vector_store %arg6[%c0_2, %c0_3], %4 {strides = array<i32>} : memref<16x288xbf16, #tpu.memory_space<vmem>>, vector<16x32xbf16>,
    %c1 = arith.constant 1 : index
    %c0_4 = arith.constant 0 : index
    %6 = vector.load %arg5[%c1, %c0_4] : memref<32x32xbf16, #tpu.memory_space<vmem>>, vector<16x32xbf16>
    %c0_5 = arith.constant 0 : index
    %c32 = arith.constant 32 : index
    %7 = vector.load %arg6[%c0_5, %c32] : memref<16x288xbf16, #tpu.memory_space<vmem>>, vector<16x32xbf16>
    tpu.vector_store %arg6[%c0_5, %c32], %6 {strides = array<i32>} : memref<16x288xbf16, #tpu.memory_space<vmem>>, vector<16x32xbf16>,
    %c2 = arith.constant 2 : index
    %c0_6 = arith.constant 0 : index
    %8 = vector.load %arg5[%c2, %c0_6] : memref<32x32xbf16, #tpu.memory_space<vmem>>, vector<16x32xbf16>
    %c0_7 = arith.constant 0 : index
    %c64 = arith.constant 64 : index
    %9 = vector.load %arg6[%c0_7, %c64] : memref<16x288xbf16, #tpu.memory_space<vmem>>, vector<16x32xbf16>
    tpu.vector_store %arg6[%c0_7, %c64], %8 {strides = array<i32>} : memref<16x288xbf16, #tpu.memory_space<vmem>>, vector<16x32xbf16>,
    %c6 = arith.constant 6 : index
    %c0_8 = arith.constant 0 : index
    %10 = vector.load %arg5[%c6, %c0_8] : memref<32x32xbf16, #tpu.memory_space<vmem>>, vector<16x32xbf16>
    %c0_9 = arith.constant 0 : index
    %c96 = arith.constant 96 : index
    %11 = vector.load %arg6[%c0_9, %c96] : memref<16x288xbf16, #tpu.memory_space<vmem>>, vector<16x32xbf16>
    tpu.vector_store %arg6[%c0_9, %c96], %10 {strides = array<i32>} : memref<16x288xbf16, #tpu.memory_space<vmem>>, vector<16x32xbf16>,
    %c7 = arith.constant 7 : index
    %c0_10 = arith.constant 0 : index
    %12 = vector.load %arg5[%c7, %c0_10] : memref<32x32xbf16, #tpu.memory_space<vmem>>, vector<16x32xbf16>
    %c0_11 = arith.constant 0 : index
    %c128 = arith.constant 128 : index
    %13 = vector.load %arg6[%c0_11, %c128] : memref<16x288xbf16, #tpu.memory_space<vmem>>, vector<16x32xbf16>
    tpu.vector_store %arg6[%c0_11, %c128], %12 {strides = array<i32>} : memref<16x288xbf16, #tpu.memory_space<vmem>>, vector<16x32xbf16>,
    %c8 = arith.constant 8 : index
    %c0_12 = arith.constant 0 : index
    %14 = vector.load %arg5[%c8, %c0_12] : memref<32x32xbf16, #tpu.memory_space<vmem>>, vector<16x32xbf16>
    %c0_13 = arith.constant 0 : index
    %c160 = arith.constant 160 : index
    %15 = vector.load %arg6[%c0_13, %c160] : memref<16x288xbf16, #tpu.memory_space<vmem>>, vector<16x32xbf16>
    tpu.vector_store %arg6[%c0_13, %c160], %14 {strides = array<i32>} : memref<16x288xbf16, #tpu.memory_space<vmem>>, vector<16x32xbf16>,
    %c12 = arith.constant 12 : index
    %c0_14 = arith.constant 0 : index
    %16 = vector.load %arg5[%c12, %c0_14] : memref<32x32xbf16, #tpu.memory_space<vmem>>, vector<16x32xbf16>
    %c0_15 = arith.constant 0 : index
    %c192 = arith.constant 192 : index
    %17 = vector.load %arg6[%c0_15, %c192] : memref<16x288xbf16, #tpu.memory_space<vmem>>, vector<16x32xbf16>
    tpu.vector_store %arg6[%c0_15, %c192], %16 {strides = array<i32>} : memref<16x288xbf16, #tpu.memory_space<vmem>>, vector<16x32xbf16>,
    %c13 = arith.constant 13 : index
    %c0_16 = arith.constant 0 : index
    %18 = vector.load %arg5[%c13, %c0_16] : memref<32x32xbf16, #tpu.memory_space<vmem>>, vector<16x32xbf16>
    %c0_17 = arith.constant 0 : index
    %c224 = arith.constant 224 : index
    %19 = vector.load %arg6[%c0_17, %c224] : memref<16x288xbf16, #tpu.memory_space<vmem>>, vector<16x32xbf16>
    tpu.vector_store %arg6[%c0_17, %c224], %18 {strides = array<i32>} : memref<16x288xbf16, #tpu.memory_space<vmem>>, vector<16x32xbf16>,
    %c14 = arith.constant 14 : index
    %c0_18 = arith.constant 0 : index
    %20 = vector.load %arg5[%c14, %c0_18] : memref<32x32xbf16, #tpu.memory_space<vmem>>, vector<16x32xbf16>
    %c0_19 = arith.constant 0 : index
    %c256 = arith.constant 256 : index
    %21 = vector.load %arg6[%c0_19, %c256] : memref<16x288xbf16, #tpu.memory_space<vmem>>, vector<16x32xbf16>
    tpu.vector_store %arg6[%c0_19, %c256], %20 {strides = array<i32>} : memref<16x288xbf16, #tpu.memory_space<vmem>>, vector<16x32xbf16>,
    %c0_20 = arith.constant 0 : index
    %c0_21 = arith.constant 0 : index
    %22 = vector.load %arg6[%c0_20, %c0_21] : memref<16x288xbf16, #tpu.memory_space<vmem>>, vector<16x288xbf16>
    %c0_22 = arith.constant 0 : index
    %c0_23 = arith.constant 0 : index
    %23 = vector.load %arg2[%c0_22, %c0_23] : memref<288x32xbf16, #tpu.memory_space<vmem>>, vector<288x32xbf16>
    %cst = arith.constant dense<0.000000e+00> : vector<16x32xf32>
    %24 = tpu.matmul %22, %23, %cst {dimension_numbers = #tpu.dot_dimension_numbers<[1], [0], [0], [1], [0, 0, 1, 1], [], []>} : vector<16x288xbf16>, vector<288x32xbf16>, vector<16x32xf32> -> vector<16x32xf32>
    %c0_24 = arith.constant 0 : index
    %c0_25 = arith.constant 0 : index
    %25 = vector.load %arg3[%c0_24, %c0_25] : memref<1x32xf32, #tpu.memory_space<vmem>>, vector<1x32xf32>
    %26 = vector.broadcast %25 : vector<1x32xf32> to vector<16x32xf32>
    %27 = arith.addf %24, %26 : vector<16x32xf32>
    %28 = arith.truncf %27 : vector<16x32xf32> to vector<16x32xbf16>
    %c0_26 = arith.constant 0 : index
    %c0_27 = arith.constant 0 : index
    %29 = vector.load %arg4[%c0_26, %c0_27] : memref<16x32xbf16, #tpu.memory_space<vmem>>, vector<16x32xbf16>
    tpu.vector_store %arg4[%c0_26, %c0_27], %28 {strides = array<i32>} : memref<16x32xbf16, #tpu.memory_space<vmem>>, vector<16x32xbf16>,
    return
  }
  func.func @transform_1(%arg0: i32) -> (i32, i32) {
    %c0_i32 = arith.constant 0 : i32
    %c0_i32_0 = arith.constant 0 : i32
    %c0_i32_1 = arith.constant 0 : i32
    return %c0_i32, %c0_i32_0 : i32, i32
  }
  func.func @transform_2(%arg0: i32) -> (i32, i32) {
    %c0_i32 = arith.constant 0 : i32
    %c0_i32_0 = arith.constant 0 : i32
    %c0_i32_1 = arith.constant 0 : i32
    return %c0_i32, %c0_i32_0 : i32, i32
  }
  func.func @transform_3(%arg0: i32) -> (i32, i32) {
    %c0_i32 = arith.constant 0 : i32
    %c0_i32_0 = arith.constant 0 : i32
    return %arg0, %c0_i32 : i32, i32
  }
}

module attributes {stable_mosaic.version = 11 : i64} {
  func.func @_conv3x3_kernel(%arg0: i32, %arg1: memref<48x32xbf16, #tpu.memory_space<any>>, %arg2: memref<288x32xbf16, #tpu.memory_space<vmem>>, %arg3: memref<1x32xf32, #tpu.memory_space<vmem>>, %arg4: memref<8x32xbf16, #tpu.memory_space<vmem>>, %arg5: memref<24x32xbf16, #tpu.memory_space<vmem>>, %arg6: memref<8x288xbf16, #tpu.memory_space<vmem>>, %arg7: memref<!tpu.dma_semaphore, #tpu.memory_space<semaphore_mem>>) attributes {dimension_semantics = [#tpu.dimension_semantics<parallel>], iteration_bounds = array<i64: 4>, scalar_prefetch = 0 : i64, scratch_operands = 3 : i64, tpu.core_type = #tpu.core_type<tc>, window_params = [{}, {pipeline_mode = #tpu.pipeline_mode<synchronous>, transform_indices = @transform_1, window_bounds = array<i64: 288, 32>}, {pipeline_mode = #tpu.pipeline_mode<synchronous>, transform_indices = @transform_2, window_bounds = array<i64: 1, 32>}, {transform_indices = @transform_3, window_bounds = array<i64: 8, 32>}]} {
    %c8_i32 = arith.constant 8 : i32
    %0 = arith.muli %arg0, %c8_i32 : i32
    %1 = tpu.assume_multiple %0, 8 : i32
    %c0_i32 = arith.constant 0 : i32
    %2 = tpu.memref_slice %arg1[%1, %c0_i32] : memref<48x32xbf16, #tpu.memory_space<any>> -> memref<24x32xbf16, #tpu.memory_space<any>>
    tpu.enqueue_dma source(%2 : memref<24x32xbf16, #tpu.memory_space<any>>) target(%arg5 : memref<24x32xbf16, #tpu.memory_space<vmem>>) target_semaphore(%arg7 : memref<!tpu.dma_semaphore, #tpu.memory_space<semaphore_mem>>)
    %c0_i32_0 = arith.constant 0 : i32
    %3 = tpu.memref_slice %arg1[%1, %c0_i32_0] : memref<48x32xbf16, #tpu.memory_space<any>> -> memref<24x32xbf16, #tpu.memory_space<any>>
    tpu.wait_dma2 semaphore(%arg7 : memref<!tpu.dma_semaphore, #tpu.memory_space<semaphore_mem>>) src(%3 : memref<24x32xbf16, #tpu.memory_space<any>>) dst(%arg5 : memref<24x32xbf16, #tpu.memory_space<vmem>>)
    %c0 = arith.constant 0 : index
    %c0_1 = arith.constant 0 : index
    %4 = vector.load %arg5[%c0, %c0_1] : memref<24x32xbf16, #tpu.memory_space<vmem>>, vector<8x32xbf16>
    %c0_2 = arith.constant 0 : index
    %c0_3 = arith.constant 0 : index
    %5 = vector.load %arg6[%c0_2, %c0_3] : memref<8x288xbf16, #tpu.memory_space<vmem>>, vector<8x32xbf16>
    tpu.vector_store %arg6[%c0_2, %c0_3], %4 {strides = array<i32>} : memref<8x288xbf16, #tpu.memory_space<vmem>>, vector<8x32xbf16>,
    %c1 = arith.constant 1 : index
    %c0_4 = arith.constant 0 : index
    %6 = vector.load %arg5[%c1, %c0_4] : memref<24x32xbf16, #tpu.memory_space<vmem>>, vector<8x32xbf16>
    %c0_5 = arith.constant 0 : index
    %c32 = arith.constant 32 : index
    %7 = vector.load %arg6[%c0_5, %c32] : memref<8x288xbf16, #tpu.memory_space<vmem>>, vector<8x32xbf16>
    tpu.vector_store %arg6[%c0_5, %c32], %6 {strides = array<i32>} : memref<8x288xbf16, #tpu.memory_space<vmem>>, vector<8x32xbf16>,
    %c2 = arith.constant 2 : index
    %c0_6 = arith.constant 0 : index
    %8 = vector.load %arg5[%c2, %c0_6] : memref<24x32xbf16, #tpu.memory_space<vmem>>, vector<8x32xbf16>
    %c0_7 = arith.constant 0 : index
    %c64 = arith.constant 64 : index
    %9 = vector.load %arg6[%c0_7, %c64] : memref<8x288xbf16, #tpu.memory_space<vmem>>, vector<8x32xbf16>
    tpu.vector_store %arg6[%c0_7, %c64], %8 {strides = array<i32>} : memref<8x288xbf16, #tpu.memory_space<vmem>>, vector<8x32xbf16>,
    %c4 = arith.constant 4 : index
    %c0_8 = arith.constant 0 : index
    %10 = vector.load %arg5[%c4, %c0_8] : memref<24x32xbf16, #tpu.memory_space<vmem>>, vector<8x32xbf16>
    %c0_9 = arith.constant 0 : index
    %c96 = arith.constant 96 : index
    %11 = vector.load %arg6[%c0_9, %c96] : memref<8x288xbf16, #tpu.memory_space<vmem>>, vector<8x32xbf16>
    tpu.vector_store %arg6[%c0_9, %c96], %10 {strides = array<i32>} : memref<8x288xbf16, #tpu.memory_space<vmem>>, vector<8x32xbf16>,
    %c5 = arith.constant 5 : index
    %c0_10 = arith.constant 0 : index
    %12 = vector.load %arg5[%c5, %c0_10] : memref<24x32xbf16, #tpu.memory_space<vmem>>, vector<8x32xbf16>
    %c0_11 = arith.constant 0 : index
    %c128 = arith.constant 128 : index
    %13 = vector.load %arg6[%c0_11, %c128] : memref<8x288xbf16, #tpu.memory_space<vmem>>, vector<8x32xbf16>
    tpu.vector_store %arg6[%c0_11, %c128], %12 {strides = array<i32>} : memref<8x288xbf16, #tpu.memory_space<vmem>>, vector<8x32xbf16>,
    %c6 = arith.constant 6 : index
    %c0_12 = arith.constant 0 : index
    %14 = vector.load %arg5[%c6, %c0_12] : memref<24x32xbf16, #tpu.memory_space<vmem>>, vector<8x32xbf16>
    %c0_13 = arith.constant 0 : index
    %c160 = arith.constant 160 : index
    %15 = vector.load %arg6[%c0_13, %c160] : memref<8x288xbf16, #tpu.memory_space<vmem>>, vector<8x32xbf16>
    tpu.vector_store %arg6[%c0_13, %c160], %14 {strides = array<i32>} : memref<8x288xbf16, #tpu.memory_space<vmem>>, vector<8x32xbf16>,
    %c8 = arith.constant 8 : index
    %c0_14 = arith.constant 0 : index
    %16 = vector.load %arg5[%c8, %c0_14] : memref<24x32xbf16, #tpu.memory_space<vmem>>, vector<8x32xbf16>
    %c0_15 = arith.constant 0 : index
    %c192 = arith.constant 192 : index
    %17 = vector.load %arg6[%c0_15, %c192] : memref<8x288xbf16, #tpu.memory_space<vmem>>, vector<8x32xbf16>
    tpu.vector_store %arg6[%c0_15, %c192], %16 {strides = array<i32>} : memref<8x288xbf16, #tpu.memory_space<vmem>>, vector<8x32xbf16>,
    %c9 = arith.constant 9 : index
    %c0_16 = arith.constant 0 : index
    %18 = vector.load %arg5[%c9, %c0_16] : memref<24x32xbf16, #tpu.memory_space<vmem>>, vector<8x32xbf16>
    %c0_17 = arith.constant 0 : index
    %c224 = arith.constant 224 : index
    %19 = vector.load %arg6[%c0_17, %c224] : memref<8x288xbf16, #tpu.memory_space<vmem>>, vector<8x32xbf16>
    tpu.vector_store %arg6[%c0_17, %c224], %18 {strides = array<i32>} : memref<8x288xbf16, #tpu.memory_space<vmem>>, vector<8x32xbf16>,
    %c10 = arith.constant 10 : index
    %c0_18 = arith.constant 0 : index
    %20 = vector.load %arg5[%c10, %c0_18] : memref<24x32xbf16, #tpu.memory_space<vmem>>, vector<8x32xbf16>
    %c0_19 = arith.constant 0 : index
    %c256 = arith.constant 256 : index
    %21 = vector.load %arg6[%c0_19, %c256] : memref<8x288xbf16, #tpu.memory_space<vmem>>, vector<8x32xbf16>
    tpu.vector_store %arg6[%c0_19, %c256], %20 {strides = array<i32>} : memref<8x288xbf16, #tpu.memory_space<vmem>>, vector<8x32xbf16>,
    %c0_20 = arith.constant 0 : index
    %c0_21 = arith.constant 0 : index
    %22 = vector.load %arg6[%c0_20, %c0_21] : memref<8x288xbf16, #tpu.memory_space<vmem>>, vector<8x288xbf16>
    %c0_22 = arith.constant 0 : index
    %c0_23 = arith.constant 0 : index
    %23 = vector.load %arg2[%c0_22, %c0_23] : memref<288x32xbf16, #tpu.memory_space<vmem>>, vector<288x32xbf16>
    %cst = arith.constant dense<0.000000e+00> : vector<8x32xf32>
    %24 = tpu.matmul %22, %23, %cst {dimension_numbers = #tpu.dot_dimension_numbers<[1], [0], [0], [1], [0, 0, 1, 1], [], []>} : vector<8x288xbf16>, vector<288x32xbf16>, vector<8x32xf32> -> vector<8x32xf32>
    %c0_24 = arith.constant 0 : index
    %c0_25 = arith.constant 0 : index
    %25 = vector.load %arg3[%c0_24, %c0_25] : memref<1x32xf32, #tpu.memory_space<vmem>>, vector<1x32xf32>
    %26 = vector.broadcast %25 : vector<1x32xf32> to vector<8x32xf32>
    %27 = arith.addf %24, %26 : vector<8x32xf32>
    %28 = arith.truncf %27 : vector<8x32xf32> to vector<8x32xbf16>
    %c0_26 = arith.constant 0 : index
    %c0_27 = arith.constant 0 : index
    %29 = vector.load %arg4[%c0_26, %c0_27] : memref<8x32xbf16, #tpu.memory_space<vmem>>, vector<8x32xbf16>
    tpu.vector_store %arg4[%c0_26, %c0_27], %28 {strides = array<i32>} : memref<8x32xbf16, #tpu.memory_space<vmem>>, vector<8x32xbf16>,
    return
  }
  func.func @transform_1(%arg0: i32) -> (i32, i32) {
    %c0_i32 = arith.constant 0 : i32
    %c0_i32_0 = arith.constant 0 : i32
    %c0_i32_1 = arith.constant 0 : i32
    return %c0_i32, %c0_i32_0 : i32, i32
  }
  func.func @transform_2(%arg0: i32) -> (i32, i32) {
    %c0_i32 = arith.constant 0 : i32
    %c0_i32_0 = arith.constant 0 : i32
    %c0_i32_1 = arith.constant 0 : i32
    return %c0_i32, %c0_i32_0 : i32, i32
  }
  func.func @transform_3(%arg0: i32) -> (i32, i32) {
    %c0_i32 = arith.constant 0 : i32
    %c0_i32_0 = arith.constant 0 : i32
    return %arg0, %c0_i32 : i32, i32
  }
}

module attributes {stable_mosaic.version = 11 : i64} {
  func.func @_conv3x3_kernel(%arg0: i32, %arg1: memref<96x32xbf16, #tpu.memory_space<any>>, %arg2: memref<288x16xbf16, #tpu.memory_space<vmem>>, %arg3: memref<1x16xf32, #tpu.memory_space<vmem>>, %arg4: memref<16x16xbf16, #tpu.memory_space<vmem>>, %arg5: memref<32x32xbf16, #tpu.memory_space<vmem>>, %arg6: memref<16x288xbf16, #tpu.memory_space<vmem>>, %arg7: memref<!tpu.dma_semaphore, #tpu.memory_space<semaphore_mem>>) attributes {dimension_semantics = [#tpu.dimension_semantics<parallel>], iteration_bounds = array<i64: 5>, scalar_prefetch = 0 : i64, scratch_operands = 3 : i64, tpu.core_type = #tpu.core_type<tc>, window_params = [{}, {pipeline_mode = #tpu.pipeline_mode<synchronous>, transform_indices = @transform_1, window_bounds = array<i64: 288, 16>}, {pipeline_mode = #tpu.pipeline_mode<synchronous>, transform_indices = @transform_2, window_bounds = array<i64: 1, 16>}, {transform_indices = @transform_3, window_bounds = array<i64: 16, 16>}]} {
    %c16_i32 = arith.constant 16 : i32
    %0 = arith.muli %arg0, %c16_i32 : i32
    %1 = tpu.assume_multiple %0, 8 : i32
    %c0_i32 = arith.constant 0 : i32
    %2 = tpu.memref_slice %arg1[%1, %c0_i32] : memref<96x32xbf16, #tpu.memory_space<any>> -> memref<32x32xbf16, #tpu.memory_space<any>>
    tpu.enqueue_dma source(%2 : memref<32x32xbf16, #tpu.memory_space<any>>) target(%arg5 : memref<32x32xbf16, #tpu.memory_space<vmem>>) target_semaphore(%arg7 : memref<!tpu.dma_semaphore, #tpu.memory_space<semaphore_mem>>)
    %c0_i32_0 = arith.constant 0 : i32
    %3 = tpu.memref_slice %arg1[%1, %c0_i32_0] : memref<96x32xbf16, #tpu.memory_space<any>> -> memref<32x32xbf16, #tpu.memory_space<any>>
    tpu.wait_dma2 semaphore(%arg7 : memref<!tpu.dma_semaphore, #tpu.memory_space<semaphore_mem>>) src(%3 : memref<32x32xbf16, #tpu.memory_space<any>>) dst(%arg5 : memref<32x32xbf16, #tpu.memory_space<vmem>>)
    %c0 = arith.constant 0 : index
    %c0_1 = arith.constant 0 : index
    %4 = vector.load %arg5[%c0, %c0_1] : memref<32x32xbf16, #tpu.memory_space<vmem>>, vector<16x32xbf16>
    %c0_2 = arith.constant 0 : index
    %c0_3 = arith.constant 0 : index
    %5 = vector.load %arg6[%c0_2, %c0_3] : memref<16x288xbf16, #tpu.memory_space<vmem>>, vector<16x32xbf16>
    tpu.vector_store %arg6[%c0_2, %c0_3], %4 {strides = array<i32>} : memref<16x288xbf16, #tpu.memory_space<vmem>>, vector<16x32xbf16>,
    %c1 = arith.constant 1 : index
    %c0_4 = arith.constant 0 : index
    %6 = vector.load %arg5[%c1, %c0_4] : memref<32x32xbf16, #tpu.memory_space<vmem>>, vector<16x32xbf16>
    %c0_5 = arith.constant 0 : index
    %c32 = arith.constant 32 : index
    %7 = vector.load %arg6[%c0_5, %c32] : memref<16x288xbf16, #tpu.memory_space<vmem>>, vector<16x32xbf16>
    tpu.vector_store %arg6[%c0_5, %c32], %6 {strides = array<i32>} : memref<16x288xbf16, #tpu.memory_space<vmem>>, vector<16x32xbf16>,
    %c2 = arith.constant 2 : index
    %c0_6 = arith.constant 0 : index
    %8 = vector.load %arg5[%c2, %c0_6] : memref<32x32xbf16, #tpu.memory_space<vmem>>, vector<16x32xbf16>
    %c0_7 = arith.constant 0 : index
    %c64 = arith.constant 64 : index
    %9 = vector.load %arg6[%c0_7, %c64] : memref<16x288xbf16, #tpu.memory_space<vmem>>, vector<16x32xbf16>
    tpu.vector_store %arg6[%c0_7, %c64], %8 {strides = array<i32>} : memref<16x288xbf16, #tpu.memory_space<vmem>>, vector<16x32xbf16>,
    %c6 = arith.constant 6 : index
    %c0_8 = arith.constant 0 : index
    %10 = vector.load %arg5[%c6, %c0_8] : memref<32x32xbf16, #tpu.memory_space<vmem>>, vector<16x32xbf16>
    %c0_9 = arith.constant 0 : index
    %c96 = arith.constant 96 : index
    %11 = vector.load %arg6[%c0_9, %c96] : memref<16x288xbf16, #tpu.memory_space<vmem>>, vector<16x32xbf16>
    tpu.vector_store %arg6[%c0_9, %c96], %10 {strides = array<i32>} : memref<16x288xbf16, #tpu.memory_space<vmem>>, vector<16x32xbf16>,
    %c7 = arith.constant 7 : index
    %c0_10 = arith.constant 0 : index
    %12 = vector.load %arg5[%c7, %c0_10] : memref<32x32xbf16, #tpu.memory_space<vmem>>, vector<16x32xbf16>
    %c0_11 = arith.constant 0 : index
    %c128 = arith.constant 128 : index
    %13 = vector.load %arg6[%c0_11, %c128] : memref<16x288xbf16, #tpu.memory_space<vmem>>, vector<16x32xbf16>
    tpu.vector_store %arg6[%c0_11, %c128], %12 {strides = array<i32>} : memref<16x288xbf16, #tpu.memory_space<vmem>>, vector<16x32xbf16>,
    %c8 = arith.constant 8 : index
    %c0_12 = arith.constant 0 : index
    %14 = vector.load %arg5[%c8, %c0_12] : memref<32x32xbf16, #tpu.memory_space<vmem>>, vector<16x32xbf16>
    %c0_13 = arith.constant 0 : index
    %c160 = arith.constant 160 : index
    %15 = vector.load %arg6[%c0_13, %c160] : memref<16x288xbf16, #tpu.memory_space<vmem>>, vector<16x32xbf16>
    tpu.vector_store %arg6[%c0_13, %c160], %14 {strides = array<i32>} : memref<16x288xbf16, #tpu.memory_space<vmem>>, vector<16x32xbf16>,
    %c12 = arith.constant 12 : index
    %c0_14 = arith.constant 0 : index
    %16 = vector.load %arg5[%c12, %c0_14] : memref<32x32xbf16, #tpu.memory_space<vmem>>, vector<16x32xbf16>
    %c0_15 = arith.constant 0 : index
    %c192 = arith.constant 192 : index
    %17 = vector.load %arg6[%c0_15, %c192] : memref<16x288xbf16, #tpu.memory_space<vmem>>, vector<16x32xbf16>
    tpu.vector_store %arg6[%c0_15, %c192], %16 {strides = array<i32>} : memref<16x288xbf16, #tpu.memory_space<vmem>>, vector<16x32xbf16>,
    %c13 = arith.constant 13 : index
    %c0_16 = arith.constant 0 : index
    %18 = vector.load %arg5[%c13, %c0_16] : memref<32x32xbf16, #tpu.memory_space<vmem>>, vector<16x32xbf16>
    %c0_17 = arith.constant 0 : index
    %c224 = arith.constant 224 : index
    %19 = vector.load %arg6[%c0_17, %c224] : memref<16x288xbf16, #tpu.memory_space<vmem>>, vector<16x32xbf16>
    tpu.vector_store %arg6[%c0_17, %c224], %18 {strides = array<i32>} : memref<16x288xbf16, #tpu.memory_space<vmem>>, vector<16x32xbf16>,
    %c14 = arith.constant 14 : index
    %c0_18 = arith.constant 0 : index
    %20 = vector.load %arg5[%c14, %c0_18] : memref<32x32xbf16, #tpu.memory_space<vmem>>, vector<16x32xbf16>
    %c0_19 = arith.constant 0 : index
    %c256 = arith.constant 256 : index
    %21 = vector.load %arg6[%c0_19, %c256] : memref<16x288xbf16, #tpu.memory_space<vmem>>, vector<16x32xbf16>
    tpu.vector_store %arg6[%c0_19, %c256], %20 {strides = array<i32>} : memref<16x288xbf16, #tpu.memory_space<vmem>>, vector<16x32xbf16>,
    %c0_20 = arith.constant 0 : index
    %c0_21 = arith.constant 0 : index
    %22 = vector.load %arg6[%c0_20, %c0_21] : memref<16x288xbf16, #tpu.memory_space<vmem>>, vector<16x288xbf16>
    %c0_22 = arith.constant 0 : index
    %c0_23 = arith.constant 0 : index
    %23 = vector.load %arg2[%c0_22, %c0_23] : memref<288x16xbf16, #tpu.memory_space<vmem>>, vector<288x16xbf16>
    %cst = arith.constant dense<0.000000e+00> : vector<16x16xf32>
    %24 = tpu.matmul %22, %23, %cst {dimension_numbers = #tpu.dot_dimension_numbers<[1], [0], [0], [1], [0, 0, 1, 1], [], []>} : vector<16x288xbf16>, vector<288x16xbf16>, vector<16x16xf32> -> vector<16x16xf32>
    %c0_24 = arith.constant 0 : index
    %c0_25 = arith.constant 0 : index
    %25 = vector.load %arg3[%c0_24, %c0_25] : memref<1x16xf32, #tpu.memory_space<vmem>>, vector<1x16xf32>
    %26 = vector.broadcast %25 : vector<1x16xf32> to vector<16x16xf32>
    %27 = arith.addf %24, %26 : vector<16x16xf32>
    %28 = arith.truncf %27 : vector<16x16xf32> to vector<16x16xbf16>
    %c0_26 = arith.constant 0 : index
    %c0_27 = arith.constant 0 : index
    %29 = vector.load %arg4[%c0_26, %c0_27] : memref<16x16xbf16, #tpu.memory_space<vmem>>, vector<16x16xbf16>
    tpu.vector_store %arg4[%c0_26, %c0_27], %28 {strides = array<i32>} : memref<16x16xbf16, #tpu.memory_space<vmem>>, vector<16x16xbf16>,
    return
  }
  func.func @transform_1(%arg0: i32) -> (i32, i32) {
    %c0_i32 = arith.constant 0 : i32
    %c0_i32_0 = arith.constant 0 : i32
    %c0_i32_1 = arith.constant 0 : i32
    return %c0_i32, %c0_i32_0 : i32, i32
  }
  func.func @transform_2(%arg0: i32) -> (i32, i32) {
    %c0_i32 = arith.constant 0 : i32
    %c0_i32_0 = arith.constant 0 : i32
    %c0_i32_1 = arith.constant 0 : i32
    return %c0_i32, %c0_i32_0 : i32, i32
  }
  func.func @transform_3(%arg0: i32) -> (i32, i32) {
    %c0_i32 = arith.constant 0 : i32
    %c0_i32_0 = arith.constant 0 : i32
    return %arg0, %c0_i32 : i32, i32
  }
}

module attributes {stable_mosaic.version = 11 : i64} {
  func.func @_conv3x3_kernel(%arg0: i32, %arg1: memref<96x16xbf16, #tpu.memory_space<any>>, %arg2: memref<144x16xbf16, #tpu.memory_space<vmem>>, %arg3: memref<1x16xf32, #tpu.memory_space<vmem>>, %arg4: memref<16x16xbf16, #tpu.memory_space<vmem>>, %arg5: memref<32x16xbf16, #tpu.memory_space<vmem>>, %arg6: memref<16x144xbf16, #tpu.memory_space<vmem>>, %arg7: memref<!tpu.dma_semaphore, #tpu.memory_space<semaphore_mem>>) attributes {dimension_semantics = [#tpu.dimension_semantics<parallel>], iteration_bounds = array<i64: 5>, scalar_prefetch = 0 : i64, scratch_operands = 3 : i64, tpu.core_type = #tpu.core_type<tc>, window_params = [{}, {pipeline_mode = #tpu.pipeline_mode<synchronous>, transform_indices = @transform_1, window_bounds = array<i64: 144, 16>}, {pipeline_mode = #tpu.pipeline_mode<synchronous>, transform_indices = @transform_2, window_bounds = array<i64: 1, 16>}, {transform_indices = @transform_3, window_bounds = array<i64: 16, 16>}]} {
    %c16_i32 = arith.constant 16 : i32
    %0 = arith.muli %arg0, %c16_i32 : i32
    %1 = tpu.assume_multiple %0, 8 : i32
    %c0_i32 = arith.constant 0 : i32
    %2 = tpu.memref_slice %arg1[%1, %c0_i32] : memref<96x16xbf16, #tpu.memory_space<any>> -> memref<32x16xbf16, #tpu.memory_space<any>>
    tpu.enqueue_dma source(%2 : memref<32x16xbf16, #tpu.memory_space<any>>) target(%arg5 : memref<32x16xbf16, #tpu.memory_space<vmem>>) target_semaphore(%arg7 : memref<!tpu.dma_semaphore, #tpu.memory_space<semaphore_mem>>)
    %c0_i32_0 = arith.constant 0 : i32
    %3 = tpu.memref_slice %arg1[%1, %c0_i32_0] : memref<96x16xbf16, #tpu.memory_space<any>> -> memref<32x16xbf16, #tpu.memory_space<any>>
    tpu.wait_dma2 semaphore(%arg7 : memref<!tpu.dma_semaphore, #tpu.memory_space<semaphore_mem>>) src(%3 : memref<32x16xbf16, #tpu.memory_space<any>>) dst(%arg5 : memref<32x16xbf16, #tpu.memory_space<vmem>>)
    %c0 = arith.constant 0 : index
    %c0_1 = arith.constant 0 : index
    %4 = vector.load %arg5[%c0, %c0_1] : memref<32x16xbf16, #tpu.memory_space<vmem>>, vector<16x16xbf16>
    %c0_2 = arith.constant 0 : index
    %c0_3 = arith.constant 0 : index
    %5 = vector.load %arg6[%c0_2, %c0_3] : memref<16x144xbf16, #tpu.memory_space<vmem>>, vector<16x16xbf16>
    tpu.vector_store %arg6[%c0_2, %c0_3], %4 {strides = array<i32>} : memref<16x144xbf16, #tpu.memory_space<vmem>>, vector<16x16xbf16>,
    %c1 = arith.constant 1 : index
    %c0_4 = arith.constant 0 : index
    %6 = vector.load %arg5[%c1, %c0_4] : memref<32x16xbf16, #tpu.memory_space<vmem>>, vector<16x16xbf16>
    %c0_5 = arith.constant 0 : index
    %c16 = arith.constant 16 : index
    %7 = vector.load %arg6[%c0_5, %c16] : memref<16x144xbf16, #tpu.memory_space<vmem>>, vector<16x16xbf16>
    tpu.vector_store %arg6[%c0_5, %c16], %6 {strides = array<i32>} : memref<16x144xbf16, #tpu.memory_space<vmem>>, vector<16x16xbf16>,
    %c2 = arith.constant 2 : index
    %c0_6 = arith.constant 0 : index
    %8 = vector.load %arg5[%c2, %c0_6] : memref<32x16xbf16, #tpu.memory_space<vmem>>, vector<16x16xbf16>
    %c0_7 = arith.constant 0 : index
    %c32 = arith.constant 32 : index
    %9 = vector.load %arg6[%c0_7, %c32] : memref<16x144xbf16, #tpu.memory_space<vmem>>, vector<16x16xbf16>
    tpu.vector_store %arg6[%c0_7, %c32], %8 {strides = array<i32>} : memref<16x144xbf16, #tpu.memory_space<vmem>>, vector<16x16xbf16>,
    %c6 = arith.constant 6 : index
    %c0_8 = arith.constant 0 : index
    %10 = vector.load %arg5[%c6, %c0_8] : memref<32x16xbf16, #tpu.memory_space<vmem>>, vector<16x16xbf16>
    %c0_9 = arith.constant 0 : index
    %c48 = arith.constant 48 : index
    %11 = vector.load %arg6[%c0_9, %c48] : memref<16x144xbf16, #tpu.memory_space<vmem>>, vector<16x16xbf16>
    tpu.vector_store %arg6[%c0_9, %c48], %10 {strides = array<i32>} : memref<16x144xbf16, #tpu.memory_space<vmem>>, vector<16x16xbf16>,
    %c7 = arith.constant 7 : index
    %c0_10 = arith.constant 0 : index
    %12 = vector.load %arg5[%c7, %c0_10] : memref<32x16xbf16, #tpu.memory_space<vmem>>, vector<16x16xbf16>
    %c0_11 = arith.constant 0 : index
    %c64 = arith.constant 64 : index
    %13 = vector.load %arg6[%c0_11, %c64] : memref<16x144xbf16, #tpu.memory_space<vmem>>, vector<16x16xbf16>
    tpu.vector_store %arg6[%c0_11, %c64], %12 {strides = array<i32>} : memref<16x144xbf16, #tpu.memory_space<vmem>>, vector<16x16xbf16>,
    %c8 = arith.constant 8 : index
    %c0_12 = arith.constant 0 : index
    %14 = vector.load %arg5[%c8, %c0_12] : memref<32x16xbf16, #tpu.memory_space<vmem>>, vector<16x16xbf16>
    %c0_13 = arith.constant 0 : index
    %c80 = arith.constant 80 : index
    %15 = vector.load %arg6[%c0_13, %c80] : memref<16x144xbf16, #tpu.memory_space<vmem>>, vector<16x16xbf16>
    tpu.vector_store %arg6[%c0_13, %c80], %14 {strides = array<i32>} : memref<16x144xbf16, #tpu.memory_space<vmem>>, vector<16x16xbf16>,
    %c12 = arith.constant 12 : index
    %c0_14 = arith.constant 0 : index
    %16 = vector.load %arg5[%c12, %c0_14] : memref<32x16xbf16, #tpu.memory_space<vmem>>, vector<16x16xbf16>
    %c0_15 = arith.constant 0 : index
    %c96 = arith.constant 96 : index
    %17 = vector.load %arg6[%c0_15, %c96] : memref<16x144xbf16, #tpu.memory_space<vmem>>, vector<16x16xbf16>
    tpu.vector_store %arg6[%c0_15, %c96], %16 {strides = array<i32>} : memref<16x144xbf16, #tpu.memory_space<vmem>>, vector<16x16xbf16>,
    %c13 = arith.constant 13 : index
    %c0_16 = arith.constant 0 : index
    %18 = vector.load %arg5[%c13, %c0_16] : memref<32x16xbf16, #tpu.memory_space<vmem>>, vector<16x16xbf16>
    %c0_17 = arith.constant 0 : index
    %c112 = arith.constant 112 : index
    %19 = vector.load %arg6[%c0_17, %c112] : memref<16x144xbf16, #tpu.memory_space<vmem>>, vector<16x16xbf16>
    tpu.vector_store %arg6[%c0_17, %c112], %18 {strides = array<i32>} : memref<16x144xbf16, #tpu.memory_space<vmem>>, vector<16x16xbf16>,
    %c14 = arith.constant 14 : index
    %c0_18 = arith.constant 0 : index
    %20 = vector.load %arg5[%c14, %c0_18] : memref<32x16xbf16, #tpu.memory_space<vmem>>, vector<16x16xbf16>
    %c0_19 = arith.constant 0 : index
    %c128 = arith.constant 128 : index
    %21 = vector.load %arg6[%c0_19, %c128] : memref<16x144xbf16, #tpu.memory_space<vmem>>, vector<16x16xbf16>
    tpu.vector_store %arg6[%c0_19, %c128], %20 {strides = array<i32>} : memref<16x144xbf16, #tpu.memory_space<vmem>>, vector<16x16xbf16>,
    %c0_20 = arith.constant 0 : index
    %c0_21 = arith.constant 0 : index
    %22 = vector.load %arg6[%c0_20, %c0_21] : memref<16x144xbf16, #tpu.memory_space<vmem>>, vector<16x144xbf16>
    %c0_22 = arith.constant 0 : index
    %c0_23 = arith.constant 0 : index
    %23 = vector.load %arg2[%c0_22, %c0_23] : memref<144x16xbf16, #tpu.memory_space<vmem>>, vector<144x16xbf16>
    %cst = arith.constant dense<0.000000e+00> : vector<16x16xf32>
    %24 = tpu.matmul %22, %23, %cst {dimension_numbers = #tpu.dot_dimension_numbers<[1], [0], [0], [1], [0, 0, 1, 1], [], []>} : vector<16x144xbf16>, vector<144x16xbf16>, vector<16x16xf32> -> vector<16x16xf32>
    %c0_24 = arith.constant 0 : index
    %c0_25 = arith.constant 0 : index
    %25 = vector.load %arg3[%c0_24, %c0_25] : memref<1x16xf32, #tpu.memory_space<vmem>>, vector<1x16xf32>
    %26 = vector.broadcast %25 : vector<1x16xf32> to vector<16x16xf32>
    %27 = arith.addf %24, %26 : vector<16x16xf32>
    %28 = arith.truncf %27 : vector<16x16xf32> to vector<16x16xbf16>
    %c0_26 = arith.constant 0 : index
    %c0_27 = arith.constant 0 : index
    %29 = vector.load %arg4[%c0_26, %c0_27] : memref<16x16xbf16, #tpu.memory_space<vmem>>, vector<16x16xbf16>
    tpu.vector_store %arg4[%c0_26, %c0_27], %28 {strides = array<i32>} : memref<16x16xbf16, #tpu.memory_space<vmem>>, vector<16x16xbf16>,
    return
  }
  func.func @transform_1(%arg0: i32) -> (i32, i32) {
    %c0_i32 = arith.constant 0 : i32
    %c0_i32_0 = arith.constant 0 : i32
    %c0_i32_1 = arith.constant 0 : i32
    return %c0_i32, %c0_i32_0 : i32, i32
  }
  func.func @transform_2(%arg0: i32) -> (i32, i32) {
    %c0_i32 = arith.constant 0 : i32
    %c0_i32_0 = arith.constant 0 : i32
    %c0_i32_1 = arith.constant 0 : i32
    return %c0_i32, %c0_i32_0 : i32, i32
  }
  func.func @transform_3(%arg0: i32) -> (i32, i32) {
    %c0_i32 = arith.constant 0 : i32
    %c0_i32_0 = arith.constant 0 : i32
    return %arg0, %c0_i32 : i32, i32
  }
}

module attributes {stable_mosaic.version = 11 : i64} {
  func.func @_conv3x3_kernel(%arg0: i32, %arg1: memref<744x16xbf16, #tpu.memory_space<any>>, %arg2: memref<144x1xbf16, #tpu.memory_space<vmem>>, %arg3: memref<1x1xf32, #tpu.memory_space<vmem>>, %arg4: memref<88x1xf32, #tpu.memory_space<vmem>>, %arg5: memref<128x16xbf16, #tpu.memory_space<vmem>>, %arg6: memref<88x144xbf16, #tpu.memory_space<vmem>>, %arg7: memref<!tpu.dma_semaphore, #tpu.memory_space<semaphore_mem>>) attributes {dimension_semantics = [#tpu.dimension_semantics<parallel>], iteration_bounds = array<i64: 8>, scalar_prefetch = 0 : i64, scratch_operands = 3 : i64, tpu.core_type = #tpu.core_type<tc>, window_params = [{}, {pipeline_mode = #tpu.pipeline_mode<synchronous>, transform_indices = @transform_1, window_bounds = array<i64: 144, 1>}, {pipeline_mode = #tpu.pipeline_mode<synchronous>, transform_indices = @transform_2, window_bounds = array<i64: 1, 1>}, {transform_indices = @transform_3, window_bounds = array<i64: 88, 1>}]} {
    %c88_i32 = arith.constant 88 : i32
    %0 = arith.muli %arg0, %c88_i32 : i32
    %1 = tpu.assume_multiple %0, 8 : i32
    %c0_i32 = arith.constant 0 : i32
    %2 = tpu.memref_slice %arg1[%1, %c0_i32] : memref<744x16xbf16, #tpu.memory_space<any>> -> memref<128x16xbf16, #tpu.memory_space<any>>
    tpu.enqueue_dma source(%2 : memref<128x16xbf16, #tpu.memory_space<any>>) target(%arg5 : memref<128x16xbf16, #tpu.memory_space<vmem>>) target_semaphore(%arg7 : memref<!tpu.dma_semaphore, #tpu.memory_space<semaphore_mem>>)
    %c0_i32_0 = arith.constant 0 : i32
    %3 = tpu.memref_slice %arg1[%1, %c0_i32_0] : memref<744x16xbf16, #tpu.memory_space<any>> -> memref<128x16xbf16, #tpu.memory_space<any>>
    tpu.wait_dma2 semaphore(%arg7 : memref<!tpu.dma_semaphore, #tpu.memory_space<semaphore_mem>>) src(%3 : memref<128x16xbf16, #tpu.memory_space<any>>) dst(%arg5 : memref<128x16xbf16, #tpu.memory_space<vmem>>)
    %c0 = arith.constant 0 : index
    %c0_1 = arith.constant 0 : index
    %4 = vector.load %arg5[%c0, %c0_1] : memref<128x16xbf16, #tpu.memory_space<vmem>>, vector<88x16xbf16>
    %c0_2 = arith.constant 0 : index
    %c0_3 = arith.constant 0 : index
    %5 = vector.load %arg6[%c0_2, %c0_3] : memref<88x144xbf16, #tpu.memory_space<vmem>>, vector<88x16xbf16>
    tpu.vector_store %arg6[%c0_2, %c0_3], %4 {strides = array<i32>} : memref<88x144xbf16, #tpu.memory_space<vmem>>, vector<88x16xbf16>,
    %c1 = arith.constant 1 : index
    %c0_4 = arith.constant 0 : index
    %6 = vector.load %arg5[%c1, %c0_4] : memref<128x16xbf16, #tpu.memory_space<vmem>>, vector<88x16xbf16>
    %c0_5 = arith.constant 0 : index
    %c16 = arith.constant 16 : index
    %7 = vector.load %arg6[%c0_5, %c16] : memref<88x144xbf16, #tpu.memory_space<vmem>>, vector<88x16xbf16>
    tpu.vector_store %arg6[%c0_5, %c16], %6 {strides = array<i32>} : memref<88x144xbf16, #tpu.memory_space<vmem>>, vector<88x16xbf16>,
    %c2 = arith.constant 2 : index
    %c0_6 = arith.constant 0 : index
    %8 = vector.load %arg5[%c2, %c0_6] : memref<128x16xbf16, #tpu.memory_space<vmem>>, vector<88x16xbf16>
    %c0_7 = arith.constant 0 : index
    %c32 = arith.constant 32 : index
    %9 = vector.load %arg6[%c0_7, %c32] : memref<88x144xbf16, #tpu.memory_space<vmem>>, vector<88x16xbf16>
    tpu.vector_store %arg6[%c0_7, %c32], %8 {strides = array<i32>} : memref<88x144xbf16, #tpu.memory_space<vmem>>, vector<88x16xbf16>,
    %c18 = arith.constant 18 : index
    %c0_8 = arith.constant 0 : index
    %10 = vector.load %arg5[%c18, %c0_8] : memref<128x16xbf16, #tpu.memory_space<vmem>>, vector<88x16xbf16>
    %c0_9 = arith.constant 0 : index
    %c48 = arith.constant 48 : index
    %11 = vector.load %arg6[%c0_9, %c48] : memref<88x144xbf16, #tpu.memory_space<vmem>>, vector<88x16xbf16>
    tpu.vector_store %arg6[%c0_9, %c48], %10 {strides = array<i32>} : memref<88x144xbf16, #tpu.memory_space<vmem>>, vector<88x16xbf16>,
    %c19 = arith.constant 19 : index
    %c0_10 = arith.constant 0 : index
    %12 = vector.load %arg5[%c19, %c0_10] : memref<128x16xbf16, #tpu.memory_space<vmem>>, vector<88x16xbf16>
    %c0_11 = arith.constant 0 : index
    %c64 = arith.constant 64 : index
    %13 = vector.load %arg6[%c0_11, %c64] : memref<88x144xbf16, #tpu.memory_space<vmem>>, vector<88x16xbf16>
    tpu.vector_store %arg6[%c0_11, %c64], %12 {strides = array<i32>} : memref<88x144xbf16, #tpu.memory_space<vmem>>, vector<88x16xbf16>,
    %c20 = arith.constant 20 : index
    %c0_12 = arith.constant 0 : index
    %14 = vector.load %arg5[%c20, %c0_12] : memref<128x16xbf16, #tpu.memory_space<vmem>>, vector<88x16xbf16>
    %c0_13 = arith.constant 0 : index
    %c80 = arith.constant 80 : index
    %15 = vector.load %arg6[%c0_13, %c80] : memref<88x144xbf16, #tpu.memory_space<vmem>>, vector<88x16xbf16>
    tpu.vector_store %arg6[%c0_13, %c80], %14 {strides = array<i32>} : memref<88x144xbf16, #tpu.memory_space<vmem>>, vector<88x16xbf16>,
    %c36 = arith.constant 36 : index
    %c0_14 = arith.constant 0 : index
    %16 = vector.load %arg5[%c36, %c0_14] : memref<128x16xbf16, #tpu.memory_space<vmem>>, vector<88x16xbf16>
    %c0_15 = arith.constant 0 : index
    %c96 = arith.constant 96 : index
    %17 = vector.load %arg6[%c0_15, %c96] : memref<88x144xbf16, #tpu.memory_space<vmem>>, vector<88x16xbf16>
    tpu.vector_store %arg6[%c0_15, %c96], %16 {strides = array<i32>} : memref<88x144xbf16, #tpu.memory_space<vmem>>, vector<88x16xbf16>,
    %c37 = arith.constant 37 : index
    %c0_16 = arith.constant 0 : index
    %18 = vector.load %arg5[%c37, %c0_16] : memref<128x16xbf16, #tpu.memory_space<vmem>>, vector<88x16xbf16>
    %c0_17 = arith.constant 0 : index
    %c112 = arith.constant 112 : index
    %19 = vector.load %arg6[%c0_17, %c112] : memref<88x144xbf16, #tpu.memory_space<vmem>>, vector<88x16xbf16>
    tpu.vector_store %arg6[%c0_17, %c112], %18 {strides = array<i32>} : memref<88x144xbf16, #tpu.memory_space<vmem>>, vector<88x16xbf16>,
    %c38 = arith.constant 38 : index
    %c0_18 = arith.constant 0 : index
    %20 = vector.load %arg5[%c38, %c0_18] : memref<128x16xbf16, #tpu.memory_space<vmem>>, vector<88x16xbf16>
    %c0_19 = arith.constant 0 : index
    %c128 = arith.constant 128 : index
    %21 = vector.load %arg6[%c0_19, %c128] : memref<88x144xbf16, #tpu.memory_space<vmem>>, vector<88x16xbf16>
    tpu.vector_store %arg6[%c0_19, %c128], %20 {strides = array<i32>} : memref<88x144xbf16, #tpu.memory_space<vmem>>, vector<88x16xbf16>,
    %c0_20 = arith.constant 0 : index
    %c0_21 = arith.constant 0 : index
    %22 = vector.load %arg6[%c0_20, %c0_21] : memref<88x144xbf16, #tpu.memory_space<vmem>>, vector<88x144xbf16>
    %c0_22 = arith.constant 0 : index
    %c0_23 = arith.constant 0 : index
    %23 = vector.load %arg2[%c0_22, %c0_23] : memref<144x1xbf16, #tpu.memory_space<vmem>>, vector<144x1xbf16>
    %cst = arith.constant dense<0.000000e+00> : vector<88x1xf32>
    %24 = tpu.matmul %22, %23, %cst {dimension_numbers = #tpu.dot_dimension_numbers<[1], [0], [0], [1], [0, 0, 1, 1], [], []>} : vector<88x144xbf16>, vector<144x1xbf16>, vector<88x1xf32> -> vector<88x1xf32>
    %c0_24 = arith.constant 0 : index
    %c0_25 = arith.constant 0 : index
    %25 = vector.load %arg3[%c0_24, %c0_25] : memref<1x1xf32, #tpu.memory_space<vmem>>, vector<1x1xf32>
    %26 = vector.broadcast %25 : vector<1x1xf32> to vector<88x1xf32>
    %27 = arith.addf %24, %26 : vector<88x1xf32>
    %c0_26 = arith.constant 0 : index
    %c0_27 = arith.constant 0 : index
    %28 = vector.load %arg4[%c0_26, %c0_27] : memref<88x1xf32, #tpu.memory_space<vmem>>, vector<88x1xf32>
    tpu.vector_store %arg4[%c0_26, %c0_27], %27 {strides = array<i32>} : memref<88x1xf32, #tpu.memory_space<vmem>>, vector<88x1xf32>,
    return
  }
  func.func @transform_1(%arg0: i32) -> (i32, i32) {
    %c0_i32 = arith.constant 0 : i32
    %c0_i32_0 = arith.constant 0 : i32
    %c0_i32_1 = arith.constant 0 : i32
    return %c0_i32, %c0_i32_0 : i32, i32
  }
  func.func @transform_2(%arg0: i32) -> (i32, i32) {
    %c0_i32 = arith.constant 0 : i32
    %c0_i32_0 = arith.constant 0 : i32
    %c0_i32_1 = arith.constant 0 : i32
    return %c0_i32, %c0_i32_0 : i32, i32
  }
  func.func @transform_3(%arg0: i32) -> (i32, i32) {
    %c0_i32 = arith.constant 0 : i32
    %c0_i32_0 = arith.constant 0 : i32
    return %arg0, %c0_i32 : i32, i32
  }
}

</mosaic_0001>

<bundles_post_ra>
// kernel: ptychonn_forward.20
= control target key start
LH: loop header
LB: loop body
LE: loop exit
PB: predicated region body
PF: predicated region fallthrough
CT: control target
= control target key end

     0   :  { %s2052_s12 = smov 0   ;;  %s2854_s0 = inlined_call_operand.vmem [shape: bf16[744,8], index: 0, kind: input, shape index: {}]   ;;  %s2855_s1 = inlined_call_operand.vmem [shape: bf16[72,8], index: 1, kind: input, shape index: {}]   ;;  %s2856_s2 = inlined_call_operand.vmem [shape: f32[1,8], index: 2, kind: input, shape index: {}]   ;;  %s2857_s3 = inlined_call_operand.vmem [shape: bf16[704,8], index: 3, kind: output, shape index: {}]  }
   0x1 LB: > { %s1736_s13 = sadd.s32 4294967295, %s2022_s12   ;;  %p1739_p0 = scmp.ge.s32.totalorder %s2022_s12, 1  ;;  %s2022_s12 = sphi %s2052_s12, %s13_s12  }
   0x2   : > { %p103_p1 = scmp.lt.s32.totalorder %s2022_s12, 9 }
   0x4   : > { %p104_p2 = pnand %p1739_p0, %p103_p1 }
   0x5   : > { %s120_s14 = smul.u32 (!%p104_p2), 11, %s1736_s13 }
   0x6   : > { %107 = sbr.rel (%p104_p2) target bundleno = 545 (0x221), region = 28 }
   0x7   : > { %s127_s15 = smul.u32 (!%p104_p2), 88, %s1736_s13  ;;  %p121_p3 = scmp.lt.s32.totalorder (!%p104_p2), %s120_s14, 87 }
   0x9   : > { %s128_s16 = sshra.s32 (!%p104_p2), %s127_s15, 3 }
   0xa   : > { %s1741_s17 = sshll.u32 (!%p104_p2), %s128_s16, 2 }
   0xb   : > { %s131_s21 = scalar_lea.vmem (!%p104_p2), %s2854_s0, %s1741_s17 }
   0xc   : > { %v164_v0 = vld [vmem:[%s131_s21] sm:$0xff] (!%p104_p2)  ;;  %v166_v1 = vld [vmem:[%s131_s21 + $0x8] sm:$0xff] (!%p104_p2)  ;;  %v168_v2 = vld [vmem:[%s131_s21 + $0x10] sm:$0xff] (!%p104_p2) }
   0xd   : > { %s2890_s14 = smov (!%p121_p3, %s120_s14), 87  ;;  %165 = vst [vmem:[#allocation2] sm:$0xff] %v164_v0  ;;  %167 = vst [vmem:[#allocation2 + $0x8] sm:$0xff] %v166_v1  ;;  %v170_v3 = vld [vmem:[%s131_s21 + $0x18] sm:$0xff]  ;;  %v172_v4 = vld [vmem:[%s131_s21 + $0x20] sm:$0xff] }
   0xe   : > { %s1740_s18 = sshll.u32 %s2890_s14, 2  ;;  %169 = vst [vmem:[#allocation2 + $0x10] sm:$0xff] %v168_v2  ;;  %v174_v5 = vld [vmem:[%s131_s21 + $0x28] sm:$0xff]  ;;  %171 = vst [vmem:[#allocation2 + $0x18] sm:$0xff] %v170_v3  ;;  %v176_v6 = vld [vmem:[%s131_s21 + $0x30] sm:$0xff] }
   0xf   : > { %s2066_s24 = scalar_lea.vmem %s2857_s3, %s1740_s18  ;;  %173 = vst [vmem:[#allocation2 + $0x20] sm:$0xff] %v172_v4  ;;  %175 = vst [vmem:[#allocation2 + $0x28] sm:$0xff] %v174_v5  ;;  %v178_v7 = vld [vmem:[%s131_s21 + $0x38] sm:$0xff] }
  0x10   : > { %177 = vst [vmem:[#allocation2 + $0x30] sm:$0xff] %v176_v6  ;;  %179 = vst [vmem:[#allocation2 + $0x38] sm:$0xff] %v178_v7 }
  0x11   : > { %187 = vsyncadd [#allocation4], 1024 }
  0x12   : > { %2018 = dma.done.wait [#allocation4], 1024 }
  0x13   : > { %2019 = vsyncadd [#allocation4], 4294966272  ;;  %vm483_vm0 = vcmask 1042432   ;;  %vm484_vm1 = vcmask 1046532   ;;  %vm285_vm3 = vsmask.f32 3328 }
  0x14   : > { %vm2084_vm2 = vmor %vm483_vm0, %vm484_vm1  ;;  %s2024_s25 = smov 16   ;;  %vm286_vm4 = vsmask.f32 7440  ;;  %s2025_s26 = smov 24   ;;  %vm716_vm6 = vsmask.f32 2304 }
  0x15   : > { %v449_v8 = vld [vmem:[#allocation2 + $0x10] sm:$0xff]  ;;  %v450_v9 = vld [vmem:[#allocation2 + $0x18] sm:$0xff]  ;;  %vm2142_vm5 = vmor %vm285_vm3, %vm286_vm4  ;;  %s2026_s27 = smov 8   ;;  %vm717_vm7 = vsmask.f32 6416  ;;  %vm918_vm9 = vcmask 1041408  }
  0x16   : > { %v451_v10 = vld [vmem:[#allocation2 + $0x20] sm:$0xff]  ;;  %v2068_v11 = vcombine.high %v449_v8, %v449_v8  ;;  %v2070_v12 = vcombine.low %v450_v9, %v450_v9  ;;  %v2072_v13 = vcombine.high %v450_v9, %v450_v9  ;;  %v2074_v14 = vcombine.low %v449_v8, %v449_v8  ;;  %v2121_v43 = vld [vmem:[#allocation2 + $0x28] sm:$0xff]  ;;  %vm2194_vm8 = vmor %vm716_vm6, %vm717_vm7  ;;  %s2027_s28 = smov 32   ;;  %s2028_s29 = smov 40  }
  0x17   : > { %v2076_v15 = vcombine.low %v451_v10, %v451_v10  ;;  %v2127_v46 = vcombine.high %v451_v10, %v451_v10  ;;  %v2139_v51 = vcombine.low %v2121_v43, %v2121_v43  ;;  %vm919_vm10 = vcmask 1045508   ;;  %s2029_s30 = smov 48   ;;  %s2030_s8 = smov 56  }
  0x18   : > { %v500_v16 = vrot.slane %v2068_v11, 5  ;;  %v503_v17 = vrot.slane %v2070_v12, 5  ;;  %v506_v18 = vrot.slane %v2072_v13, 5  ;;  %v2082_v19 = vrot.slane %v2074_v14, 5  ;;  %vm2223_vm11 = vmor %vm918_vm9, %vm919_vm10  ;;  %s2031_s14 = smov 64  }
  0x19   : > { %v509_v21 = vrot.slane %v2076_v15, 5  ;;  %v348_v22 = vshll.u32 %v2070_v12, 16  ;;  %v352_v23 = vshrl.u32 %v2070_v12, 16  ;;  %v358_v24 = vshll.u32 %v2072_v13, 16 }
  0x1a   : > { %v502_v25 = vrot.slane %v500_v16, 4  ;;  %v499_v26 = vrot.slane %v2082_v19, 4  ;;  %v508_v27 = vrot.slane %v506_v18, 4  ;;  %v505_v28 = vrot.slane %v503_v17, 4 }
  0x1b   : > { %v2093_v29 = vrot.slane %v348_v22, 5  ;;  %v354_v30 = vrot.slane %v352_v23, 4  ;;  %v2859_v31 = vshll.u32 %v2074_v14, 16  ;;  %v360_v34 = vrot.slane %v358_v24, 5 }
  0x1c   : > { %v2098_v32 = vsel %vm2084_vm2, %v502_v25, %v503_v17  ;;  %v2102_v33 = vsel %vm2084_vm2, %v499_v26, %v500_v16  ;;  %v510_v35 = vsel %vm2084_vm2, %v508_v27, %v509_v21  ;;  %v2860_v37 = vshrl.u32 %v2074_v14, 16 }
  0x1d   : > { %530 = vrot.lane.b32.xlu1 %v2098_v32, %s2024_s25  ;;  %528 = vrot.lane.b32.xlu0 %v2102_v33, %s2024_s25  ;;  %v2112_v36 = vrot.slane %v2859_v31, 5  ;;  %v2862_v38 = vshll.u32 %v2068_v11, 16  ;;  %v507_v39 = vsel %vm2084_vm2, %v505_v28, %v506_v18  ;;  %v355_v40 = vor.u32 %v354_v30, %v2093_v29 }
  0x1e   : > { %v362_v41 = vshrl.u32 %v2072_v13, 16  ;;  %v2863_v42 = vshrl.u32 %v2068_v11, 16  ;;  %v334_v44 = vrot.slane %v2860_v37, 4  ;;  %v2130_v47 = vshll.u32 %v2076_v15, 16 }
  0x1f   : > { %v340_v45 = vrot.slane %v2862_v38, 5  ;;  %v356_v52 = vrot.slane %v355_v40, 4  ;;  %v621_v58 = vrot.slane %v2127_v46, 5  ;;  %v2149_v62 = vshrl.u32 %v2076_v15, 16 }
  0x20   : > { %v364_v48 = vrot.slane %v362_v41, 4  ;;  %v344_v49 = vrot.slane %v2863_v42, 4  ;;  %v335_v50 = vor.u32 %v334_v44, %v2112_v36  ;;  %v370_v57 = vrot.slane %v2130_v47, 5 }
  0x21   : > { %534 = vrot.lane.b32.xlu1 %v510_v35, %s2024_s25  ;;  %532 = vrot.lane.b32.xlu0 %v507_v39, %s2024_s25  ;;  %v771_v61 = vrot.slane %v362_v41, 5  ;;  %v774_v63 = vrot.slane %v358_v24, 6  ;;  %v361_v0 = vsel %vm2142_vm5, %v356_v52, %v360_v34  ;;  %v624_v2 = vrot.slane %v2139_v51, 5 }
  0x22   : > { %v365_v53 = vor.u32 %v364_v48, %v360_v34  ;;  %v345_v54 = vor.u32 %v344_v49, %v340_v45  ;;  %v336_v56 = vrot.slane %v335_v50, 4  ;;  %v761_v3 = vrot.slane %v352_v23, 5 }
  0x23   : > { %v764_v4 = vrot.slane %v348_v22, 6  ;;  %v2159_v5 = vshrl.u32 %v2127_v46, 16  ;;  %v2162_v6 = vshll.u32 %v2127_v46, 16  ;;  %v2168_v8 = vrot.slane %v621_v58, 4 }
  0x24   : > { %v366_v59 = vrot.slane %v365_v53, 4  ;;  %v346_v60 = vrot.slane %v345_v54, 4  ;;  %v341_v1 = vsel %vm2142_vm5, %v336_v56, %v340_v45  ;;  %v620_v9 = vrot.slane %v509_v21, 4 }
  0x25   : > { %645 = vrot.lane.b32.xlu1 %v510_v35, %s2025_s26  ;;  %643 = vrot.lane.b32.xlu0 %v507_v39, %s2025_s26  ;;  %v781_v10 = vrot.slane %v2149_v62, 5  ;;  %v775_v17 = vor.u32 %v774_v63, %v771_v61  ;;  %v784_v18 = vrot.slane %v2130_v47, 6  ;;  %v799_v22 = vshrl.u32 %v2139_v51, 16 }
  0x26   : > { %v371_v7 = vsel %vm2142_vm5, %v366_v59, %v370_v57  ;;  %v351_v16 = vsel %vm2142_vm5, %v346_v60, %v2093_v29  ;;  %v2178_v23 = vor.u32 %v764_v4, %v761_v3  ;;  %v791_v21 = vrot.slane %v2159_v5, 5  ;;  %v2240_v4 = vld [vmem:[#allocation2 + $0x30] sm:$0xff] }
  0x27   : > { %v794_v24 = vrot.slane %v2162_v6, 6  ;;  %v802_v25 = vshll.u32 %v2139_v51, 16  ;;  %v625_v26 = vsel %vm2084_vm2, %v2168_v8, %v624_v2  ;;  %v2192_v27 = vsel %vm2084_vm2, %v620_v9, %v621_v58 }
  0x28   : > { %v777_v28 = vrot.slane %v775_v17, 4  ;;  %v785_v29 = vor.u32 %v784_v18, %v781_v10  ;;  %v767_v34 = vrot.slane %v2178_v23, 4  ;;  %v801_v39 = vrot.slane %v799_v22, 5 }
  0x29   : > { %414 = vrot.lane.b32.xlu1 %v361_v0, %s2026_s27  ;;  %410 = vrot.lane.b32.xlu0 %v341_v1, %s2026_s27  ;;  %v795_v35 = vor.u32 %v794_v24, %v791_v21  ;;  %v804_v40 = vrot.slane %v802_v25, 6  ;;  %v935_v45 = vrot.slane %v2072_v13, 6  ;;  %v2858_v52 = vrot.slane %v2070_v12, 6 }
  0x2a   : > { %v786_v41 = vsel %vm2194_vm8, %v777_v28, %v785_v29  ;;  %v787_v44 = vrot.slane %v785_v29, 4  ;;  %v776_v48 = vsel %vm2194_vm8, %v767_v34, %v775_v17  ;;  %v2215_v54 = vrot.slane %v2076_v15, 6  ;;  %v249_v29 = vld [vmem:[#allocation2] sm:$0xff] }
  0x2b   : > { %v797_v49 = vrot.slane %v795_v35, 4  ;;  %v2209_v50 = vor.u32 %v804_v40, %v801_v39  ;;  %v937_v53 = vrot.slane %v935_v45, 4  ;;  %v941_v13 = vrot.slane %v2127_v46, 6 }
  0x2c   : > { %v796_v58 = vsel %vm2194_vm8, %v787_v44, %v795_v35  ;;  %v934_v60 = vrot.slane %v2858_v52, 4  ;;  %v944_v61 = vrot.slane %v2139_v51, 6  ;;  %v2232_v63 = vcombine.high %v2121_v43, %v2121_v43 }
  0x2d   : > { %416 = vrot.lane.b32.xlu1 %v371_v7, %s2026_s27  ;;  %412 = vrot.lane.b32.xlu0 %v351_v16, %s2026_s27  ;;  %v806_v56 = vsel %vm2194_vm8, %v797_v49, %v2209_v50  ;;  %v939_v0 = vsel %vm2223_vm11, %v937_v53, %v2215_v54  ;;  %v943_v1 = vrot.slane %v941_v13, 4  ;;  %v940_v3 = vrot.slane %v2215_v54, 4 }
  0x2e   : > { %v936_v7 = vsel %vm2223_vm11, %v934_v60, %v935_v45  ;;  %v1206_v9 = vrot.slane %v2159_v5, 6  ;;  %v1209_v43 = vrot.slane %v2162_v6, 7  ;;  %v2248_v10 = vcombine.low %v2240_v4, %v2240_v4 }
  0x2f   : > { %v1056_v16 = vrot.slane %v2232_v63, 6  ;;  %vm1151_vm12 = vsmask.f32 1280  ;;  %v945_v17 = vsel %vm2223_vm11, %v943_v1, %v944_v61  ;;  %v942_v18 = vsel %vm2223_vm11, %v940_v3, %v941_v13 }
  0x30   : > { %v1224_v21 = vshrl.u32 %v2232_v63, 16  ;;  %v2864_v24 = vshll.u32 %v2232_v63, 16  ;;  %v1199_v28 = vrot.slane %v2130_v47, 7  ;;  %vm1152_vm13 = vsmask.f32 5392 }
  0x31   : > { %649 = vrot.lane.b32.xlu1 %v625_v26, %s2025_s26  ;;  %647 = vrot.lane.b32.xlu0 %v2192_v27, %s2025_s26  ;;  %v1196_v26 = vrot.slane %v2149_v62, 6  ;;  %v1210_v34 = vor.u32 %v1209_v43, %v1206_v9  ;;  %v1216_v35 = vrot.slane %v799_v22, 6  ;;  %v1219_v39 = vrot.slane %v802_v25, 7  ;;  %vm2291_vm0 = vmor %vm1151_vm12, %vm1152_vm13  ;;  %v250_v43 = vld [vmem:[#allocation2 + $0x8] sm:$0xff] }
  0x32   : > { %v2263_v40 = vrot.slane %v1056_v16, 4  ;;  %v1055_v44 = vrot.slane %v944_v61, 4  ;;  %v1234_v45 = vshrl.u32 %v2248_v10, 16  ;;  %v1229_v49 = vrot.slane %v2864_v24, 7 }
  0x33   : > { %v1237_v22 = vshll.u32 %v2248_v10, 16  ;;  %v2274_v25 = vcombine.high %v249_v29, %v249_v29  ;;  %v2276_v53 = vor.u32 %v1199_v28, %v1196_v26  ;;  %v2278_v13 = vcombine.low %v249_v29, %v249_v29 }
  0x34   : > { %vm1353_vm14 = vcmask 1040384   ;;  %vm1354_vm15 = vcmask 1044484   ;;  %v2287_v61 = vsel %vm2223_vm11, %v1055_v44, %v1056_v16  ;;  %v1236_v1 = vrot.slane %v1234_v45, 6 }
  0x35   : > { %847 = vrot.lane.b32.xlu1 %v786_v41, %s2027_s28  ;;  %845 = vrot.lane.b32.xlu0 %v776_v48, %s2027_s28  ;;  %v2861_v41 = vrot.slane %v2248_v10, 6  ;;  %v1226_v48 = vrot.slane %v1224_v21, 6  ;;  %v1370_v3 = vrot.slane %v2127_v46, 7  ;;  %v1239_v9 = vrot.slane %v1237_v22, 7  ;;  %v2314_v22 = vld [vmem:[#allocation2 + $0x28] sm:$0x1f]  ;;  %vm2336_vm1 = vmor %vm1353_vm14, %vm1354_vm15 }
  0x36   : > { %v298_v16 = vshll.u32 %v2274_v25, 16  ;;  %v302_v26 = vshrl.u32 %v2274_v25, 16  ;;  %v1202_v28 = vrot.slane %v2276_v53, 4  ;;  %v2327_v42 = vcombine.low %v2314_v22, %v2314_v22  ;;  %v2004_v46 = vld [vmem:[%s2855_s1 + $0x18] sm:$0xff]  }
  0x37   : > { %v1060_v60 = vsel %vm2223_vm11, %v2263_v40, %v2861_v41  ;;  %v1372_v45 = vrot.slane %v1370_v3, 4  ;;  %v384_v24 = vrot.slane %v2159_v5, 4  ;;  %vm237_vm3 = vcmask 60416  }
  0x38   : > { %v2321_v52 = vrot.slane %v298_v16, 5  ;;  %v304_v31 = vrot.slane %v302_v26, 4  ;;  %v1211_v37 = vsel %vm2291_vm0, %v1202_v28, %v1210_v34  ;;  %v374_v26 = vrot.slane %v2149_v62, 4  ;;  %239 = vst.msk [vmem:[#allocation3 + $0x4] sm:$0xf] %vm237_vm3, %v2274_v25 }
  0x39   : > { %851 = vrot.lane.b32.xlu1 %v806_v56, %s2027_s28  ;;  %849 = vrot.lane.b32.xlu0 %v796_v58, %s2027_s28  ;;  %v1212_v56 = vrot.slane %v1210_v34, 4  ;;  %v1220_v58 = vor.u32 %v1219_v39, %v1216_v35  ;;  %v289_v35 = vshrl.u32 %v2278_v13, 16  ;;  %v292_v39 = vshll.u32 %v2278_v13, 16  ;;  %238 = vst.msk [vmem:[#allocation3] sm:$0xf] %vm237_vm3, %v2278_v13 }
  0x3a   : > { %v305_v28 = vor.u32 %v304_v31, %v2321_v52  ;;  %v680_v13 = vld [vmem:[#allocation2 + $0x8] sm:$0xfe]  ;;  %vm435_vm4 = vcmask 126016   ;;  %vm668_vm6 = vcmask 257216   ;;  %vm870_vm7 = vcmask 322816  }
  0x3b   : > { %v1222_v29 = vrot.slane %v1220_v58, 4  ;;  %v1221_v44 = vsel %vm2291_vm0, %v1212_v56, %v1220_v58  ;;  %v2319_v58 = vor.u32 %v1239_v9, %v1236_v1  ;;  %v291_v41 = vrot.slane %v289_v35, 4  ;;  %v2000_v1 = vld [vmem:[%s2855_s1 + $0x8] sm:$0xff]  }
  0x3c   : > { %v294_v38 = vrot.slane %v292_v39, 5  ;;  %v2340_v9 = vcombine.high %v250_v43, %v250_v43  ;;  %v2349_v35 = vld [vmem:[#allocation2 + $0x8] sm:$0xfe]  ;;  %vm1103_vm9 = vcmask 454016   ;;  %vm1305_vm10 = vcmask 519616  }
  0x3d   : > { %965 = vrot.lane.b32.xlu1 %v939_v0, %s2028_s29  ;;  %963 = vrot.lane.b32.xlu0 %v936_v7, %s2028_s29  ;;  %v1230_v7 = vor.u32 %v1229_v49, %v1226_v48  ;;  %v2865_v48 = vrot.slane %v2076_v15, 7  ;;  %v2312_v49 = vcombine.low %v250_v43, %v250_v43  ;;  %vm1517_vm12 = vcmask 588800  }
  0x3e   : > { %v295_v62 = vor.u32 %v294_v38, %v291_v41  ;;  %v375_v41 = vor.u32 %v374_v26, %v370_v57 }
  0x3f   : > { %v1232_v56 = vrot.slane %v1230_v7, 4  ;;  %v308_v16 = vshll.u32 %v2312_v49, 16  ;;  %v1231_v5 = vsel %vm2291_vm0, %v1222_v29, %v1230_v7  ;;  %v1369_v39 = vrot.slane %v2865_v48, 4  ;;  %v2002_v29 = vld [vmem:[%s2855_s1 + $0x10] sm:$0xff]  }
  0x40   : > { %v388_v7 = vshll.u32 %v2327_v42, 16  ;;  %v296_v57 = vrot.slane %v295_v62, 4  ;;  %v1376_v48 = vrot.slane %v2232_v63, 7  ;;  %v627_v62 = vrot.slane %v2232_v63, 5 }
  0x41   : > { %969 = vrot.lane.b32.xlu1 %v945_v17, %s2028_s29  ;;  %967 = vrot.lane.b32.xlu0 %v942_v18, %s2028_s29  ;;  %v1241_v43 = vsel %vm2291_vm0, %v1232_v56, %v2319_v58  ;;  %v2367_v38 = vrot.slane %v308_v16, 5  ;;  %v318_v56 = vshll.u32 %v2340_v9, 16  ;;  %v312_v16 = vshrl.u32 %v2312_v49, 16 }
  0x42   : > { %v1371_v47 = vsel %vm2336_vm1, %v1369_v39, %v1370_v3  ;;  %v376_v3 = vrot.slane %v375_v41, 4  ;;  %v301_v41 = vsel %vm2142_vm5, %v296_v57, %v2321_v52  ;;  %v447_v57 = vld [vmem:[#allocation2] sm:$0xfe] }
  0x45   : > { %1080 = vrot.lane.b32.xlu1 %v945_v17, %s2029_s30  ;;  %1078 = vrot.lane.b32.xlu0 %v942_v18, %s2029_s30  ;;  %v1373_v17 = vrot.slane %v2139_v51, 7  ;;  %v1999_v18 = vld [vmem:[%s2855_s1] sm:$0xff]   ;;  %v1764_v51 = vcombine.high %v2314_v22, %v2314_v22 }
  0x46   : > { %1930 = vmatprep.subr.bf16.mxu1 %v1999_v18  ;;  %1908 = vmatprep.subr.bf16.mxu0 %v1999_v18 }
  0x47   : > { %1935 = vmatpush3.bf16.msra.mxu1 %v1999_v18  ;;  %1909 = vmatpush3.bf16.msra.mxu0 %v1999_v18  ;;  %v2866_v18 = vrot.slane %v2340_v9, 5  ;;  %v1375_v52 = vrot.slane %v1373_v17, 4  ;;  %v398_v22 = vshll.u32 %v1764_v51, 16  ;;  %v452_v51 = vld [vmem:[#allocation2 + $0x28] sm:$0x1f] }
  0x48   : > { %1931 = vmatprep.subr.bf16.mxu1 %v2000_v1  ;;  %1910 = vmatprep.subr.bf16.mxu0 %v2000_v1 }
  0x49   : > { %1084 = vrot.lane.b32.xlu1 %v1060_v60, %s2029_s30  ;;  %1082 = vrot.lane.b32.xlu0 %v2287_v61, %s2029_s30  ;;  %v380_v60 = vrot.slane %v2162_v6, 5  ;;  %v811_v6 = vrot.slane %v1224_v21, 5  ;;  %v1766_v21 = vcombine.high %v447_v57, %v447_v57 }
  0x4b   : > { %v385_v31 = vor.u32 %v384_v24, %v380_v60  ;;  %1936 = vmatpush3.bf16.msra.mxu1 %v2000_v1  ;;  %1911 = vmatpush3.bf16.msra.mxu0 %v2000_v1  ;;  %v1779_v24 = vcombine.high %v2349_v35, %v2349_v35  ;;  %v322_v1 = vshrl.u32 %v2340_v9, 16 }
  0x4c   : > { %1932 = vmatprep.subr.bf16.mxu1 %v2002_v29  ;;  %1912 = vmatprep.subr.bf16.mxu0 %v2002_v29 }
  0x4d   : > { %1282 = vrot.lane.b32.xlu1 %v1221_v44, %s2030_s8  ;;  %1280 = vrot.lane.b32.xlu0 %v1211_v37, %s2030_s8  ;;  %v1374_v37 = vsel %vm2336_vm1, %v1372_v45, %v1373_v17  ;;  %v2373_v44 = vrot.slane %v2866_v18, 4  ;;  %v306_v45 = vrot.slane %v305_v28, 4  ;;  %v390_v28 = vrot.slane %v388_v7, 5 }
  0x4e   : > { %v320_v7 = vrot.slane %v318_v56, 5  ;;  %v324_v26 = vrot.slane %v322_v1, 4  ;;  %v392_v18 = vshrl.u32 %v2327_v42, 16  ;;  %v1379_v56 = vrot.slane %v2248_v10, 7 }
  0x4f   : > { %1937 = vmatpush3.bf16.msra.mxu1 %v2002_v29  ;;  %1913 = vmatpush3.bf16.msra.mxu0 %v2002_v29  ;;  %v314_v29 = vrot.slane %v312_v16, 4  ;;  %v381_v1 = vsel %vm2142_vm5, %v376_v3, %v380_v60  ;;  %v1765_v3 = vcombine.low %v447_v57, %v447_v57  ;;  %v400_v57 = vrot.slane %v398_v22, 5 }
  0x50   : > { %1933 = vmatprep.subr.bf16.mxu1 %v2004_v46  ;;  %1914 = vmatprep.subr.bf16.mxu0 %v2004_v46  ;;  %v325_v16 = vor.u32 %v324_v26, %v320_v7  ;;  %v394_v17 = vrot.slane %v392_v18, 4  ;;  %v2880_v18 = vshrl.u32 %v2068_v11, 16  ;;  %v1776_v22 = vcombine.high %v452_v51, %v452_v51 }
  0x51   : > { %1286 = vrot.lane.b32.xlu1 %v1241_v43, %s2030_s8  ;;  %1284 = vrot.lane.b32.xlu0 %v1231_v5, %s2030_s8  ;;  %v2390_v43 = vrot.slane %v1779_v24, 5  ;;  %v386_v5 = vrot.slane %v385_v31, 4  ;;  %v626_v24 = vrot.slane %v624_v2, 4  ;;  %v311_v31 = vsel %vm2142_vm5, %v306_v45, %v2367_v38 }
  0x52   : > { %v1378_v45 = vrot.slane %v1376_v48, 4 }
  0x53   : > { %v605_v39 = vrot.slane %v2390_v43, 4  ;;  %1938 = vmatpush3.bf16.msra.mxu1 %v2004_v46  ;;  %1915 = vmatpush3.bf16.msra.mxu0 %v2004_v46  ;;  %v391_v42 = vsel %vm2142_vm5, %v386_v5, %v390_v28  ;;  %v807_v46 = vrot.slane %v2209_v50, 4  ;;  %v2879_v5 = vshll.u32 %v2232_v63, 16 }
  0x54   : > { %v1380_v26 = vsel %vm2336_vm1, %v1378_v45, %v1379_v56  ;;  %v326_v50 = vrot.slane %v325_v16, 4 }
  0x55   : > { %1400 = vrot.lane.b32.xlu1 %v1374_v37, %s2031_s14  ;;  %1398 = vrot.lane.b32.xlu0 %v1371_v47, %s2031_s14  ;;  %v2412_v2 = vsel %vm2084_vm2, %v605_v39, %v2082_v19  ;;  %v2418_v37 = vsel %vm2084_vm2, %v626_v24, %v627_v62  ;;  %v315_v47 = vor.u32 %v314_v29, %v2367_v38  ;;  %v814_v60 = vrot.slane %v2879_v5, 6 }
  0x56   : > { %v1377_v38 = vsel %vm2336_vm1, %v1375_v52, %v1376_v48  ;;  %v751_v24 = vrot.slane %v2880_v18, 5  ;;  %v395_v29 = vor.u32 %v394_v17, %v390_v28  ;;  %v2881_v48 = vshll.u32 %v2068_v11, 16  ;;  %v2007_v17 = vld [vmem:[#allocation2 + $0x28] ss:$0 sps:$4 sm:$0xff]  }
  0x57   : > { %v2445_v39 = vor.u32 %v814_v60, %v811_v6  ;;  %v488_v28 = vrot.slane %v1766_v21, 5  ;;  %v195_v6 = vld [vmem:[#allocation2 + $0x18] sm:$0xff]  ;;  %v491_v5 = vrot.slane %v2312_v49, 5  ;;  %v194_v60 = vld [vmem:[#allocation2 + $0x10] sm:$0xff]  ;;  %248 = vst.msk [vmem:[#allocation3 + $0x28] sm:$0xf] %vm237_vm3, %v2007_v17  ;;  %v2501_v18 = vcombine.high %v2240_v4, %v2240_v4 }
  0x58   : > { %v754_v45 = vrot.slane %v2881_v48, 6  ;;  %v2493_v49 = vcombine.high %v195_v6, %v195_v6  ;;  %v570_v48 = vld [vmem:[#allocation2 + $0x30] sm:$0x1f] }
  0x59   : > { %404 = vrot.lane.b32.xlu1 %v311_v31, %s2026_s27  ;;  %402 = vrot.lane.b32.xlu0 %v301_v41, %s2026_s27  ;;  %v316_v31 = vrot.slane %v315_v47, 4  ;;  %v2454_v41 = vsel %vm2194_vm8, %v807_v46, %v2445_v39  ;;  %v396_v47 = vrot.slane %v395_v29, 4  ;;  %v493_v25 = vrot.slane %v491_v5, 4 }
  0x5a   : > { %v2458_v52 = vor.u32 %v754_v45, %v751_v24  ;;  %245 = vst.msk [vmem:[#allocation3 + $0x1c] sm:$0xf] %vm237_vm3, %v2493_v49  ;;  %v2882_v24 = vrot.slane %v2248_v10, 6  ;;  %v1778_v29 = vcombine.low %v2349_v35, %v2349_v35  ;;  %v1791_v45 = vcombine.low %v680_v13, %v680_v13 }
  0x5b   : > { %v321_v16 = vsel %vm2142_vm5, %v316_v31, %v320_v7  ;;  %v490_v7 = vrot.slane %v488_v28, 4 }
  0x5c   : > { %v757_v11 = vrot.slane %v2458_v52, 4  ;;  %v1061_v31 = vrot.slane %v2882_v24, 4 }
  0x5d   : > { %420 = vrot.lane.b32.xlu1 %v391_v42, %s2026_s27  ;;  %418 = vrot.lane.b32.xlu0 %v381_v1, %s2026_s27  ;;  %v331_v42 = vsel %vm2142_vm5, %v326_v50, %v2112_v36  ;;  %v1777_v1 = vrot.slane %v1765_v3, 9  ;;  %v2480_v3 = vcombine.low %v195_v6, %v195_v6  ;;  %v492_v55 = vsel %vm2084_vm2, %v490_v7, %v491_v5 }
  0x5e   : > { %v2471_v46 = vsel %vm2194_vm8, %v757_v11, %v2178_v23  ;;  %v1746_v23 = vcombine.low %v194_v60, %v194_v60  ;;  %v1747_v50 = vcombine.high %v194_v60, %v194_v60  ;;  %v720_v11 = vshrl.u32 %v1791_v45, 16 }
  0x5f   : > { %v489_v36 = vsel %vm2084_vm2, %v1777_v1, %v488_v28  ;;  %244 = vst.msk [vmem:[#allocation3 + $0x18] sm:$0xf] %vm237_vm3, %v2480_v3  ;;  %v2883_v1 = vrot.slane %v2340_v9, 5  ;;  %v1790_v9 = vrot.slane %v1778_v29, 9  ;;  %v1174_v17 = vshrl.u32 %v2480_v3, 16 }
  0x60   : > { %242 = vst.msk [vmem:[#allocation3 + $0x10] sm:$0xf] %vm237_vm3, %v1746_v23  ;;  %243 = vst.msk [vmem:[#allocation3 + $0x14] sm:$0xf] %vm237_vm3, %v1747_v50  ;;  %v1177_v6 = vshll.u32 %v2480_v3, 16  ;;  %v2884_v60 = vsel %vm2084_vm2, %v2373_v44, %v2082_v19  ;;  %v722_v23 = vrot.slane %v720_v11, 5  ;;  %v1789_v50 = vcombine.high %v570_v48, %v570_v48 }
  0x61   : > { %1404 = vrot.lane.b32.xlu1 %v1380_v26, %s2031_s14  ;;  %1402 = vrot.lane.b32.xlu0 %v1377_v38, %s2031_s14  ;;  %v401_v26 = vsel %vm2142_vm5, %v396_v47, %v400_v57  ;;  %v1775_v38 = vcombine.low %v452_v51, %v452_v51  ;;  %v495_v4 = vsel %vm2084_vm2, %v493_v25, %v2883_v1  ;;  %v723_v51 = vshll.u32 %v1791_v45, 16  ;;  %v685_v25 = vld [vmem:[#allocation2 + $0x30] sm:$0x3f] }
  0x62   : > { %v1792_v47 = vcombine.high %v680_v13, %v680_v13  ;;  %v1788_v57 = vcombine.low %v570_v48, %v570_v48  ;;  %v1244_v13 = vshrl.u32 %v2501_v18, 16  ;;  %v1247_v19 = vshll.u32 %v2501_v18, 16 }
  0x63   : > { %v515_v21 = vrot.slane %v1775_v38, 5  ;;  %v629_v38 = vrot.slane %v627_v62, 4  ;;  %v1242_v48 = vrot.slane %v2319_v58, 4  ;;  %vm553_vm5 = vcmask 191616  }
  0x64   : > { %v732_v7 = vshll.u32 %v1792_v47, 16  ;;  %v630_v5 = vrot.slane %v1788_v57, 5  ;;  %v1246_v29 = vrot.slane %v1244_v13, 6  ;;  %v1249_v62 = vrot.slane %v1247_v19, 7  ;;  %v882_v13 = vld [vmem:[#allocation2 + $0x8] sm:$0xfc] }
  0x65   : > { %408 = vrot.lane.b32.xlu1 %v331_v42, %s2026_s27  ;;  %406 = vrot.lane.b32.xlu0 %v321_v16, %s2026_s27  ;;  %v1062_v42 = vrot.slane %v2501_v18, 6  ;;  %v516_v28 = vsel %vm2084_vm2, %v2168_v8, %v515_v21  ;;  %v517_v16 = vrot.slane %v515_v21, 4  ;;  %v1176_v21 = vrot.slane %v1174_v17, 6 }
  0x66   : > { %v632_v44 = vrot.slane %v630_v5, 4  ;;  %v631_v45 = vsel %vm2084_vm2, %v629_v38, %v630_v5  ;;  %v2556_v57 = vor.u32 %v1249_v62, %v1246_v29  ;;  %v1802_v5 = vcombine.high %v685_v25, %v685_v25  ;;  %v2006_v29 = vld [vmem:[%s2855_s1 + $0x20] ss:$0 sps:$4 sm:$0xff]  }
  0x67   : > { %v2522_v35 = vsel %vm2223_vm11, %v1061_v31, %v1062_v42  ;;  %v734_v31 = vrot.slane %v732_v7, 6  ;;  %v1381_v38 = vrot.slane %v1379_v56, 4  ;;  %v817_v19 = vrot.slane %v2445_v39, 4 }
  0x68   : > { %v2567_v7 = vsel %vm2291_vm0, %v1242_v48, %v2556_v57  ;;  %v1252_v59 = vrot.slane %v2556_v57, 4 }
  0x69   : > { %520 = vrot.lane.b32.xlu1 %v489_v36, %s2024_s25  ;;  %422 = vrot.lane.b32.xlu0 %v401_v26, %s2026_s27  ;;  %v729_v36 = vshrl.u32 %v1792_v47, 16  ;;  %v604_v26 = vsel %vm2084_vm2, %v1790_v9, %v2390_v43  ;;  %v1801_v43 = vcombine.low %v685_v25, %v685_v25  ;;  %v2886_v9 = vshll.u32 %v2074_v14, 16 }
  0x6a   : > { %v1361_v25 = vrot.slane %v2480_v3, 7 }
  0x6b   : > { %v731_v24 = vrot.slane %v729_v36, 5  ;;  %v744_v11 = vrot.slane %v2886_v9, 6  ;;  %v822_v36 = vshll.u32 %v1801_v43, 16 }
  0x6d   : > { %536 = vrot.lane.b32.xlu1 %v2192_v27, %s2024_s25  ;;  %522 = vrot.lane.b32.xlu0 %v492_v55, %s2024_s25  ;;  %v518_v27 = vrot.slane %v1776_v22, 5  ;;  %v725_v55 = vrot.slane %v723_v51, 6  ;;  %v1179_v22 = vrot.slane %v1177_v6, 7  ;;  %v819_v6 = vshrl.u32 %v1801_v43, 16 }
  0x6e   : > { %v824_v56 = vrot.slane %v822_v36, 6  ;;  %v1804_v43 = vcombine.high %v882_v13, %v882_v13 }
  0x6f   : > { %v519_v8 = vsel %vm2084_vm2, %v517_v16, %v518_v27  ;;  %v726_v63 = vor.u32 %v725_v55, %v722_v23  ;;  %v2550_v1 = vor.u32 %v1179_v22, %v1176_v21  ;;  %v735_v16 = vor.u32 %v734_v31, %v731_v24  ;;  %v196_v31 = vld [vmem:[#allocation2 + $0x20] sm:$0xff] }
  0x70   : > { %v633_v27 = vrot.slane %v1789_v50, 5  ;;  %v1382_v50 = vrot.slane %v2501_v18, 7  ;;  %v821_v10 = vrot.slane %v819_v6, 5  ;;  %v829_v21 = vshrl.u32 %v1802_v5, 16 }
  0x71   : > { %524 = vrot.lane.b32.xlu1 %v495_v4, %s2024_s25  ;;  %538 = vrot.lane.b32.xlu0 %v516_v28, %s2024_s25  ;;  %v1184_v4 = vshrl.u32 %v2493_v49, 16  ;;  %v1187_v28 = vshll.u32 %v2493_v49, 16  ;;  %v727_v17 = vrot.slane %v726_v63, 4  ;;  %v737_v23 = vrot.slane %v735_v16, 4 }
  0x72   : > { %v832_v22 = vshll.u32 %v1802_v5, 16  ;;  %v2592_v24 = vsel %vm2336_vm1, %v1381_v38, %v1382_v50  ;;  %v1751_v48 = vcombine.high %v196_v31, %v196_v31  ;;  %v926_v6 = vrot.slane %v2074_v14, 6  ;;  %v2013_v38 = vld [vmem:[#allocation2 + $0x10] sm:$0xff] }
  0x73   : > { %v1186_v58 = vrot.slane %v1184_v4, 6  ;;  %v1189_v51 = vrot.slane %v1187_v28, 7  ;;  %v736_v20 = vsel %vm2194_vm8, %v727_v17, %v735_v16  ;;  %v831_v4 = vrot.slane %v829_v21, 5  ;;  %v1000_v21 = vld [vmem:[#allocation2 + $0x10] sm:$0xfc] }
  0x74   : > { %v834_v28 = vrot.slane %v832_v22, 6  ;;  %247 = vst.msk [vmem:[#allocation3 + $0x24] sm:$0xf] %vm237_vm3, %v1751_v48  ;;  %v1750_v16 = vcombine.low %v196_v31, %v196_v31  ;;  %v1803_v17 = vcombine.low %v882_v13, %v882_v13  ;;  %v1816_v31 = vcombine.low %v1000_v21, %v1000_v21 }
  0x75   : > { %540 = vrot.lane.b32.xlu1 %v519_v8, %s2024_s25  ;;  %526 = vrot.lane.b32.xlu0 %v2884_v60, %s2024_s25  ;;  %v1182_v8 = vrot.slane %v2550_v1, 4  ;;  %v2569_v60 = vor.u32 %v1189_v51, %v1186_v58  ;;  %v1384_v0 = vrot.slane %v1382_v50, 4 }
  0x76   : > { %246 = vst.msk [vmem:[#allocation3 + $0x20] sm:$0xf] %vm237_vm3, %v1750_v16  ;;  %v1815_v5 = vrot.slane %v1803_v17, 10  ;;  %v2887_v16 = vrot.slane %v2070_v12, 6 }
  0x77   : > { %v1192_v57 = vrot.slane %v2569_v60, 4 }
  0x79   : > { %637 = vrot.lane.b32.xlu1 %v2412_v2, %s2025_s26  ;;  %635 = vrot.lane.b32.xlu0 %v604_v26, %s2025_s26  ;;  %v2885_v2 = vshrl.u32 %v2074_v14, 16  ;;  %v634_v26 = vsel %vm2084_vm2, %v632_v44, %v633_v27  ;;  %v193_v44 = vld [vmem:[#allocation2 + $0x8] sm:$0xff]  ;;  %vm1536_vm2 = vcmask 1043456  }
  0x7a   : > { %v1745_v27 = vcombine.high %v193_v44, %v193_v44  ;;  %1941 = vmatprep.subr.msk.bf16.mxu1 %vm1536_vm2, %v2006_v29  ;;  %1940 = vmatprep.subr.msk.bf16.mxu0 %vm1536_vm2, %v2006_v29 }
  0x7b   : > { %v741_v47 = vrot.slane %v2885_v2, 5  ;;  %v1744_v2 = vcombine.low %v193_v44, %v193_v44  ;;  %v928_v44 = vrot.slane %v926_v6, 4 }
  0x7c   : > { %241 = vst.msk [vmem:[#allocation3 + $0xc] sm:$0xf] %vm237_vm3, %v1745_v27 }
  0x7d   : > { %653 = vrot.lane.b32.xlu1 %v631_v45, %s2025_s26  ;;  %651 = vrot.lane.b32.xlu0 %v2418_v37, %s2025_s26  ;;  %v745_v55 = vor.u32 %v744_v11, %v741_v47  ;;  %v2578_v37 = vsel %vm2291_vm0, %v1182_v8, %v2569_v60  ;;  %v825_v45 = vor.u32 %v824_v56, %v821_v10  ;;  %v1538_v47 = vsel %vm1536_vm2, %v2006_v29, 0 }
  0x7e   : > { %v923_v11 = vrot.slane %v1804_v43, 6  ;;  %240 = vst.msk [vmem:[#allocation3 + $0x8] sm:$0xf] %vm237_vm3, %v1744_v2  ;;  %v835_v8 = vor.u32 %v834_v28, %v831_v4  ;;  %1939 = vmatpush3.bf16.msra.mxu1 %v1538_v47  ;;  %1917 = vmatpush3.bf16.msra.mxu0 %v1538_v47 }
  0x7f   : > { %v747_v63 = vrot.slane %v745_v55, 4  ;;  %v746_v39 = vsel %vm2194_vm8, %v737_v23, %v745_v55  ;;  %v826_v58 = vsel %vm2194_vm8, %v817_v19, %v825_v45  ;;  %v827_v51 = vrot.slane %v825_v45, 4 }
  0x80   : > { %v1806_v23 = vcombine.high %v2013_v38, %v2013_v38  ;;  %v924_v14 = vsel %vm2223_vm11, %v1815_v5, %v923_v11  ;;  %v1120_v5 = vld [vmem:[#allocation2 + $0x38] sm:$0x7f] }
  0x81   : > { %641 = vrot.lane.b32.xlu1 %v2098_v32, %s2025_s26  ;;  %639 = vrot.lane.b32.xlu0 %v2102_v33, %s2025_s26  ;;  %v1364_v32 = vrot.slane %v2493_v49, 7  ;;  %v1363_v33 = vrot.slane %v1361_v25, 4  ;;  %v756_v9 = vsel %vm2194_vm8, %v747_v63, %v2458_v52  ;;  %v925_v52 = vrot.slane %v923_v11, 4  ;;  %v1115_v63 = vld [vmem:[#allocation2 + $0x10] sm:$0xfc] }
  0x82   : > { %v836_v36 = vsel %vm2194_vm8, %v827_v51, %v835_v8  ;;  %v929_v56 = vrot.slane %v1806_v23, 6  ;;  %v1830_v28 = vcombine.high %v1115_v63, %v1115_v63  ;;  %v1829_v47 = vcombine.low %v1115_v63, %v1115_v63 }
  0x83   : > { %v2607_v62 = vsel %vm2336_vm1, %v1363_v33, %v1364_v32  ;;  %v927_v10 = vsel %vm2223_vm11, %v925_v52, %v926_v6  ;;  %v1817_v33 = vcombine.high %v1000_v21, %v1000_v21  ;;  %v1839_v21 = vcombine.low %v1120_v5, %v1120_v5 }
  0x84   : > { %v931_v19 = vrot.slane %v929_v56, 4  ;;  %v930_v27 = vsel %vm2223_vm11, %v928_v44, %v929_v56  ;;  %v1164_v8 = vshrl.u32 %v1830_v28, 16  ;;  %v1167_v17 = vshll.u32 %v1830_v28, 16 }
  0x85   : > { %837 = vrot.lane.b32.xlu1 %v736_v20, %s2027_s28  ;;  %655 = vrot.lane.b32.xlu0 %v634_v26, %s2025_s26  ;;  %v1038_v45 = vrot.slane %v1817_v33, 6  ;;  %v1155_v6 = vshrl.u32 %v1829_v47, 16  ;;  %v1257_v63 = vshll.u32 %v1839_v21, 16  ;;  %vm988_vm8 = vcmask 388416  }
  0x86   : > { %v1169_v56 = vrot.slane %v1167_v17, 7  ;;  %v1366_v18 = vrot.slane %v1364_v32, 4 }
  0x87   : > { %v1040_v51 = vrot.slane %v1038_v45, 4 }
  0x89   : > { %853 = vrot.lane.b32.xlu1 %v2454_v41, %s2027_s28  ;;  %839 = vrot.lane.b32.xlu0 %v746_v39, %s2027_s28  ;;  %v887_v41 = vld [vmem:[#allocation2 + $0x30] sm:$0x3f]  ;;  %v1828_v39 = vrot.slane %v1816_v31, 10 }
  0x8a   : > { %v1813_v26 = vcombine.low %v887_v41, %v887_v41  ;;  %v1814_v29 = vcombine.high %v887_v41, %v887_v41 }
  0x8b   : > { %v1039_v12 = vsel %vm2223_vm11, %v1828_v39, %v1038_v45 }
  0x8c   : > { %v950_v30 = vrot.slane %v1813_v26, 6  ;;  %v953_v2 = vrot.slane %v1814_v29, 6  ;;  %v1254_v29 = vshrl.u32 %v1839_v21, 16 }
  0x8d   : > { %841 = vrot.lane.b32.xlu1 %v756_v9, %s2027_s28  ;;  %855 = vrot.lane.b32.xlu0 %v826_v58, %s2027_s28  ;;  %v1005_v58 = vld [vmem:[#allocation2 + $0x38] sm:$0x3f] }
  0x8e   : > { %v952_v4 = vrot.slane %v950_v30, 4  ;;  %v1826_v52 = vcombine.low %v1005_v58, %v1005_v58  ;;  %v1827_v31 = vcombine.high %v1005_v58, %v1005_v58 }
  0x8f   : > { %v2628_v55 = vpop.permute.xlu1 %530  ;;  %v529_v20 = vpop.permute.xlu0 %528 }
  0x90   : > { %v954_v41 = vsel %vm2223_vm11, %v952_v4, %v953_v2  ;;  %v1068_v39 = vrot.slane %v1827_v31, 6 }
  0x91   : > { %857 = vrot.lane.b32.xlu1 %v836_v36, %s2027_s28  ;;  %843 = vrot.lane.b32.xlu0 %v2471_v46, %s2027_s28  ;;  %v951_v46 = vsel %vm2223_vm11, %v2263_v40, %v950_v30  ;;  %v933_v40 = vsel %vm2223_vm11, %v931_v19, %v2887_v16  ;;  %v1158_v36 = vshll.u32 %v1829_v47, 16  ;;  %v1166_v30 = vrot.slane %v1164_v8, 6 }
  0x92   : > { %v1256_v16 = vrot.slane %v1254_v29, 6 }
  0x93   : > { %v535_v22 = vpop.permute.xlu1 %534  ;;  %v533_v13 = vpop.permute.xlu0 %532  ;;  %v1160_v33 = vrot.slane %v1158_v36, 7  ;;  %v1170_v44 = vor.u32 %v1169_v56, %v1166_v30 }
  0x95   : > { %957 = vrot.lane.b32.xlu1 %v927_v10, %s2028_s29  ;;  %955 = vrot.lane.b32.xlu0 %v924_v14, %s2028_s29  ;;  %v1064_v10 = vrot.slane %v1062_v42, 4  ;;  %v1157_v42 = vrot.slane %v1155_v6, 6 }
  0x97   : > { %v646_v43 = vpop.permute.xlu1 %645  ;;  %v644_v48 = vpop.permute.xlu0 %643  ;;  %v1161_v45 = vor.u32 %v1160_v33, %v1157_v42 }
  0x99   : > { %973 = vrot.lane.b32.xlu1 %v951_v46, %s2028_s29  ;;  %971 = vrot.lane.b32.xlu0 %v2287_v61, %s2028_s29  ;;  %v1041_v61 = vrot.slane %v2480_v3, 6  ;;  %v1162_v47 = vrot.slane %v1161_v45, 4 }
  0x9b   : > { %v415_v9 = vpop.permute.xlu1 %414  ;;  %v411_v11 = vpop.permute.xlu0 %410  ;;  %v1043_v23 = vrot.slane %v1041_v61, 4  ;;  %v1042_v14 = vsel %vm2223_vm11, %v1040_v51, %v1041_v61  ;;  %v1317_v51 = vld [vmem:[#allocation2 + $0x10] sm:$0xf8] }
  0x9c   : > { %442 = vst.msk [vmem:[#allocation3 + $0x18] sm:$0xf] %vm435_vm4, %v415_v9  ;;  %440 = vst.msk [vmem:[#allocation3 + $0x10] sm:$0xf] %vm435_vm4, %v411_v11  ;;  %v1840_v9 = vcombine.high %v1120_v5, %v1120_v5  ;;  %v1842_v6 = vcombine.high %v1317_v51, %v1317_v51 }
  0x9d   : > { %558 = vst.msk [vmem:[#allocation3 + $0x10] sm:$0xf] %vm553_vm5, %v529_v20  ;;  %560 = vst.msk [vmem:[#allocation3 + $0x18] sm:$0xf] %vm553_vm5, %v533_v13  ;;  %961 = vrot.lane.b32.xlu1 %v933_v40, %s2028_s29  ;;  %959 = vrot.lane.b32.xlu0 %v930_v27, %s2028_s29  ;;  %v1044_v20 = vrot.slane %v2493_v49, 6  ;;  %v1065_v13 = vrot.slane %v1826_v52, 6 }
  0x9e   : > { %673 = vst.msk [vmem:[#allocation3 + $0x10] sm:$0xf] %vm668_vm6, %v644_v48  ;;  %v1259_v40 = vrot.slane %v1257_v63, 7  ;;  %v1264_v8 = vshrl.u32 %v1840_v9, 16  ;;  %v1267_v17 = vshll.u32 %v1840_v9, 16  ;;  %v1358_v60 = vrot.slane %v1842_v6, 7 }
  0x9f   : > { %v417_v26 = vpop.permute.xlu1 %416  ;;  %v413_v38 = vpop.permute.xlu0 %412  ;;  %v1045_v19 = vsel %vm2223_vm11, %v1043_v23, %v1044_v20  ;;  %v1067_v48 = vrot.slane %v1065_v13, 4 }
  0xa0   : > { %443 = vst.msk [vmem:[#allocation3 + $0x1c] sm:$0xf] %vm435_vm4, %v417_v26  ;;  %441 = vst.msk [vmem:[#allocation3 + $0x14] sm:$0xf] %vm435_vm4, %v413_v38  ;;  %v1266_v5 = vrot.slane %v1264_v8, 6  ;;  %v1269_v26 = vrot.slane %v1267_v17, 7 }
  0xa1   : > { %561 = vst.msk [vmem:[#allocation3 + $0x1c] sm:$0xf] %vm553_vm5, %v535_v22  ;;  %559 = vst.msk [vmem:[#allocation3 + $0x14] sm:$0xf] %vm553_vm5, %v2628_v55  ;;  %1070 = vrot.lane.b32.xlu1 %v1039_v12, %s2029_s30  ;;  %975 = vrot.lane.b32.xlu0 %v954_v41, %s2028_s29  ;;  %v1046_v55 = vrot.slane %v1044_v20, 4  ;;  %v1069_v27 = vsel %vm2223_vm11, %v1067_v48, %v1068_v39  ;;  %v1260_v12 = vor.u32 %v1259_v40, %v1256_v16 }
  0xa2   : > { %674 = vst.msk [vmem:[#allocation3 + $0x14] sm:$0xf] %vm668_vm6, %v646_v43  ;;  %v1066_v43 = vsel %vm2223_vm11, %v1064_v10, %v1065_v13  ;;  %v1201_v10 = vsel %vm2291_vm0, %v1192_v57, %v2276_v53  ;;  %v1270_v30 = vor.u32 %v1269_v26, %v1266_v5  ;;  %v1322_v13 = vld [vmem:[#allocation2 + $0x38] sm:$0x7f]  ;;  %v1360_v31 = vrot.slane %v1358_v60, 4 }
  0xa3   : > { %v650_v22 = vpop.permute.xlu1 %649  ;;  %v648_v46 = vpop.permute.xlu0 %647  ;;  %v1048_v2 = vsel %vm2223_vm11, %v1046_v55, %v2215_v54  ;;  %v1171_v54 = vsel %vm2291_vm0, %v1162_v47, %v1170_v44  ;;  %v1261_v36 = vsel %vm2291_vm0, %v1252_v59, %v1260_v12  ;;  %v1851_v42 = vcombine.low %v1322_v13, %v1322_v13 }
  0xa4   : > { %676 = vst.msk [vmem:[#allocation3 + $0x1c] sm:$0xf] %vm668_vm6, %v650_v22  ;;  %675 = vst.msk [vmem:[#allocation3 + $0x18] sm:$0xf] %vm668_vm6, %v648_v46  ;;  %v1852_v55 = vcombine.high %v1322_v13, %v1322_v13  ;;  %vm1423_vm11 = vcmask 585216  }
  0xa5   : > { %1086 = vrot.lane.b32.xlu1 %v2522_v35, %s2029_s30  ;;  %1072 = vrot.lane.b32.xlu0 %v1042_v14, %s2029_s30  ;;  %v1172_v35 = vrot.slane %v1170_v44, 4  ;;  %v1262_v14 = vrot.slane %v1260_v12, 4  ;;  %v1385_v46 = vrot.slane %v1851_v42, 7 }
  0xa6   : > { %v1388_v29 = vrot.slane %v1852_v55, 7 }
  0xa7   : > { %v848_v4 = vpop.permute.xlu1 %847  ;;  %v846_v28 = vpop.permute.xlu0 %845  ;;  %v1181_v61 = vsel %vm2291_vm0, %v1172_v35, %v2550_v1  ;;  %v1841_v1 = vcombine.low %v1317_v51, %v1317_v51  ;;  %v1271_v53 = vsel %vm2291_vm0, %v1262_v14, %v1270_v30  ;;  %v1386_v3 = vsel %vm2336_vm1, %v1384_v0, %v1385_v46 }
  0xa8   : > { %876 = vst.msk [vmem:[#allocation3 + $0x14] sm:$0xf] %vm870_vm7, %v848_v4  ;;  %875 = vst.msk [vmem:[#allocation3 + $0x10] sm:$0xf] %vm870_vm7, %v846_v28 }
  0xa9   : > { %1074 = vrot.lane.b32.xlu1 %v1045_v19, %s2029_s30  ;;  %1088 = vrot.lane.b32.xlu0 %v1066_v43, %s2029_s30  ;;  %v1853_v20 = vrot.slane %v1841_v1, 11  ;;  %v2888_v43 = vrot.slane %v2076_v15, 7 }
  0xab   : > { %v852_v11 = vpop.permute.xlu1 %851  ;;  %v850_v58 = vpop.permute.xlu0 %849  ;;  %v1368_v49 = vsel %vm2336_vm1, %v1366_v18, %v2888_v43 }
  0xac   : > { %878 = vst.msk [vmem:[#allocation3 + $0x1c] sm:$0xf] %vm870_vm7, %v852_v11  ;;  %877 = vst.msk [vmem:[#allocation3 + $0x18] sm:$0xf] %vm870_vm7, %v850_v58 }
  0xad   : > { %1090 = vrot.lane.b32.xlu1 %v1069_v27, %s2029_s30  ;;  %1076 = vrot.lane.b32.xlu0 %v1048_v2, %s2029_s30 }
  0xaf   : > { %v966_v41 = vpop.permute.xlu1 %965  ;;  %v964_v52 = vpop.permute.xlu0 %963 }
  0xb0   : > { %994 = vst.msk [vmem:[#allocation3 + $0x14] sm:$0xf] %vm988_vm8, %v966_v41  ;;  %993 = vst.msk [vmem:[#allocation3 + $0x10] sm:$0xf] %vm988_vm8, %v964_v52 }
  0xb1   : > { %1274 = vrot.lane.b32.xlu1 %v1181_v61, %s2030_s8  ;;  %1272 = vrot.lane.b32.xlu0 %v1171_v54, %s2030_s8 }
  0xb3   : > { %v970_v38 = vpop.permute.xlu1 %969  ;;  %v968_v23 = vpop.permute.xlu0 %967 }
  0xb4   : > { %996 = vst.msk [vmem:[#allocation3 + $0x1c] sm:$0xf] %vm988_vm8, %v970_v38  ;;  %995 = vst.msk [vmem:[#allocation3 + $0x18] sm:$0xf] %vm988_vm8, %v968_v23 }
  0xb5   : > { %1290 = vrot.lane.b32.xlu1 %v1261_v36, %s2030_s8  ;;  %1288 = vrot.lane.b32.xlu0 %v2567_v7, %s2030_s8  ;;  %v1359_v7 = vsel %vm2336_vm1, %v1853_v20, %v1358_v60 }
  0xb7   : > { %v1081_v56 = vpop.permute.xlu1 %1080  ;;  %v1079_v21 = vpop.permute.xlu0 %1078 }
  0xb8   : > { %1109 = vst.msk [vmem:[#allocation3 + $0x14] sm:$0xf] %vm1103_vm9, %v1081_v56  ;;  %1108 = vst.msk [vmem:[#allocation3 + $0x10] sm:$0xf] %vm1103_vm9, %v1079_v21 }
  0xb9   : > { %1278 = vrot.lane.b32.xlu1 %v1201_v10, %s2030_s8  ;;  %1276 = vrot.lane.b32.xlu0 %v2578_v37, %s2030_s8  ;;  %v1362_v37 = vsel %vm2336_vm1, %v1360_v31, %v1361_v25  ;;  %v1387_v25 = vrot.slane %v1385_v46, 4 }
  0xbb   : > { %v1085_v33 = vpop.permute.xlu1 %1084  ;;  %v1083_v22 = vpop.permute.xlu0 %1082 }
  0xbc   : > { %1111 = vst.msk [vmem:[#allocation3 + $0x1c] sm:$0xf] %vm1103_vm9, %v1085_v33  ;;  %1110 = vst.msk [vmem:[#allocation3 + $0x18] sm:$0xf] %vm1103_vm9, %v1083_v22 }
  0xbd   : > { %1390 = vrot.lane.b32.xlu1 %v1359_v7, %s2031_s14  ;;  %1292 = vrot.lane.b32.xlu0 %v1271_v53, %s2030_s8 }
  0xbf   : > { %v1283_v19 = vpop.permute.xlu1 %1282  ;;  %v1281_v44 = vpop.permute.xlu0 %1280 }
  0xc0   : > { %1311 = vst.msk [vmem:[#allocation3 + $0x14] sm:$0xf] %vm1305_vm10, %v1283_v19  ;;  %1310 = vst.msk [vmem:[#allocation3 + $0x10] sm:$0xf] %vm1305_vm10, %v1281_v44 }
  0xc1   : > { %1406 = vrot.lane.b32.xlu1 %v2592_v24, %s2031_s14  ;;  %1392 = vrot.lane.b32.xlu0 %v1362_v37, %s2031_s14  ;;  %v1389_v24 = vsel %vm2336_vm1, %v1387_v25, %v1388_v29 }
  0xc3   : > { %v1287_v50 = vpop.permute.xlu1 %1286  ;;  %v1285_v63 = vpop.permute.xlu0 %1284 }
  0xc4   : > { %1313 = vst.msk [vmem:[#allocation3 + $0x1c] sm:$0xf] %vm1305_vm10, %v1287_v50  ;;  %1312 = vst.msk [vmem:[#allocation3 + $0x18] sm:$0xf] %vm1305_vm10, %v1285_v63 }
  0xc5   : > { %1394 = vrot.lane.b32.xlu1 %v2607_v62, %s2031_s14  ;;  %1408 = vrot.lane.b32.xlu0 %v1386_v3, %s2031_s14 }
  0xc7   : > { %v1401_v32 = vpop.permute.xlu1 %1400  ;;  %v1399_v48 = vpop.permute.xlu0 %1398 }
  0xc8   : > { %1429 = vst.msk [vmem:[#allocation3 + $0x14] sm:$0xf] %vm1423_vm11, %v1401_v32  ;;  %1428 = vst.msk [vmem:[#allocation3 + $0x10] sm:$0xf] %vm1423_vm11, %v1399_v48 }
  0xc9   : > { %1410 = vrot.lane.b32.xlu1 %v1389_v24, %s2031_s14  ;;  %1396 = vrot.lane.b32.xlu0 %v1368_v49, %s2031_s14 }
  0xcb   : > { %v405_v62 = vpop.permute.xlu1 %404  ;;  %v403_v39 = vpop.permute.xlu0 %402 }
  0xcc   : > { %437 = vst.msk [vmem:[#allocation3 + $0x4] sm:$0xf] %vm435_vm4, %v405_v62  ;;  %436 = vst.msk [vmem:[#allocation3] sm:$0xf] %vm435_vm4, %v403_v39  ;;  %v1854_v62 = vld [vmem:[%s2856_s2] ss:$0 sm:$0xff] }
  0xcf   : > { %v421_v15 = vpop.permute.xlu1 %420  ;;  %v419_v34 = vpop.permute.xlu0 %418  ;;  %v2003_v45 = vld [vmem:[#allocation3 + $0x10] sm:$0xff]  }
  0xd0   : > { %445 = vst.msk [vmem:[#allocation3 + $0x24] sm:$0xf] %vm435_vm4, %v421_v15  ;;  %444 = vst.msk [vmem:[#allocation3 + $0x20] sm:$0xf] %vm435_vm4, %v419_v34  ;;  %1922 = vmatprep.mubr.msk.bf16.mxu1 %vm1517_vm12, %v2003_v45 }
  0xd3   : > { %v1405_v4 = vpop.permute.xlu1 %1404  ;;  %v1403_v28 = vpop.permute.xlu0 %1402 }
  0xd4   : > { %1431 = vst.msk [vmem:[#allocation3 + $0x1c] sm:$0xf] %vm1423_vm11, %v1405_v4  ;;  %1430 = vst.msk [vmem:[#allocation3 + $0x18] sm:$0xf] %vm1423_vm11, %v1403_v28 }
  0xd7   : > { %v409_v35 = vpop.permute.xlu1 %408  ;;  %v407_v16 = vpop.permute.xlu0 %406 }
  0xd8   : > { %439 = vst.msk [vmem:[#allocation3 + $0xc] sm:$0xf] %vm435_vm4, %v409_v35  ;;  %438 = vst.msk [vmem:[#allocation3 + $0x8] sm:$0xf] %vm435_vm4, %v407_v16 }
  0xdb   : > { %v521_v40 = vpop.permute.xlu1 %520  ;;  %v423_v27 = vpop.permute.xlu0 %422  ;;  %v2008_v2 = vld [vmem:[#allocation3 + $0x18] sm:$0xff]  }
  0xdc   : > { %554 = vst.msk [vmem:[#allocation3] sm:$0xf] %vm553_vm5, %v521_v40  ;;  %1923 = vmatmul.mubr.msk.bf16.vlgmr.msra.gmra.mrb[0].mxu1 %vm1517_vm12, %v2008_v2 }
  0xdd   : > { %446 = vst.msk [vmem:[#allocation3 + $0x28] sm:$0xf] %vm435_vm4, %v423_v27 }
  0xdf   : > { %v537_v47 = vpop.permute.xlu1 %536  ;;  %v523_v9 = vpop.permute.xlu0 %522 }
  0xe0   : > { %562 = vst.msk [vmem:[#allocation3 + $0x20] sm:$0xf] %vm553_vm5, %v537_v47  ;;  %555 = vst.msk [vmem:[#allocation3 + $0x4] sm:$0xf] %vm553_vm5, %v523_v9 }
  0xe3   : > { %v525_v11 = vpop.permute.xlu1 %524  ;;  %v539_v58 = vpop.permute.xlu0 %538 }
  0xe4   : > { %556 = vst.msk [vmem:[#allocation3 + $0x8] sm:$0xf] %vm553_vm5, %v525_v11  ;;  %563 = vst.msk [vmem:[#allocation3 + $0x24] sm:$0xf] %vm553_vm5, %v539_v58 }
  0xe7   : > { %v541_v61 = vpop.permute.xlu1 %540  ;;  %v527_v12 = vpop.permute.xlu0 %526 }
  0xe8   : > { %564 = vst.msk [vmem:[#allocation3 + $0x28] sm:$0xf] %vm553_vm5, %v541_v61  ;;  %557 = vst.msk [vmem:[#allocation3 + $0xc] sm:$0xf] %vm553_vm5, %v527_v12 }
  0xeb   : > { %v638_v54 = vpop.permute.xlu1 %637  ;;  %v636_v59 = vpop.permute.xlu0 %635 }
  0xec   : > { %670 = vst.msk [vmem:[#allocation3 + $0x4] sm:$0xf] %vm668_vm6, %v638_v54  ;;  %669 = vst.msk [vmem:[#allocation3] sm:$0xf] %vm668_vm6, %v636_v59 }
  0xef   : > { %v654_v51 = vpop.permute.xlu1 %653  ;;  %v652_v8 = vpop.permute.xlu0 %651 }
  0xf0   : > { %678 = vst.msk [vmem:[#allocation3 + $0x24] sm:$0xf] %vm668_vm6, %v654_v51  ;;  %677 = vst.msk [vmem:[#allocation3 + $0x20] sm:$0xf] %vm668_vm6, %v652_v8 }
  0xf3   : > { %v642_v17 = vpop.permute.xlu1 %641  ;;  %v640_v41 = vpop.permute.xlu0 %639 }
  0xf4   : > { %672 = vst.msk [vmem:[#allocation3 + $0xc] sm:$0xf] %vm668_vm6, %v642_v17  ;;  %671 = vst.msk [vmem:[#allocation3 + $0x8] sm:$0xf] %vm668_vm6, %v640_v41 }
  0xf7   : > { %v838_v52 = vpop.permute.xlu1 %837  ;;  %v656_v1 = vpop.permute.xlu0 %655 }
  0xf8   : > { %871 = vst.msk [vmem:[#allocation3] sm:$0xf] %vm870_vm7, %v838_v52 }
  0xf9   : > { %679 = vst.msk [vmem:[#allocation3 + $0x28] sm:$0xf] %vm668_vm6, %v656_v1 }
  0xfb   : > { %v854_v6 = vpop.permute.xlu1 %853  ;;  %v840_v36 = vpop.permute.xlu0 %839 }
  0xfc   : > { %879 = vst.msk [vmem:[#allocation3 + $0x20] sm:$0xf] %vm870_vm7, %v854_v6  ;;  %872 = vst.msk [vmem:[#allocation3 + $0x4] sm:$0xf] %vm870_vm7, %v840_v36 }
  0xff   : > { %v842_v57 = vpop.permute.xlu1 %841  ;;  %v856_v5 = vpop.permute.xlu0 %855 }
 0x100   : > { %873 = vst.msk [vmem:[#allocation3 + $0x8] sm:$0xf] %vm870_vm7, %v842_v57  ;;  %880 = vst.msk [vmem:[#allocation3 + $0x24] sm:$0xf] %vm870_vm7, %v856_v5 }
 0x103   : > { %v858_v26 = vpop.permute.xlu1 %857  ;;  %v844_v38 = vpop.permute.xlu0 %843 }
 0x104   : > { %881 = vst.msk [vmem:[#allocation3 + $0x28] sm:$0xf] %vm870_vm7, %v858_v26  ;;  %874 = vst.msk [vmem:[#allocation3 + $0xc] sm:$0xf] %vm870_vm7, %v844_v38 }
 0x107   : > { %v958_v23 = vpop.permute.xlu1 %957  ;;  %v956_v20 = vpop.permute.xlu0 %955 }
 0x108   : > { %990 = vst.msk [vmem:[#allocation3 + $0x4] sm:$0xf] %vm988_vm8, %v958_v23  ;;  %989 = vst.msk [vmem:[#allocation3] sm:$0xf] %vm988_vm8, %v956_v20 }
 0x10b   : > { %v974_v10 = vpop.permute.xlu1 %973  ;;  %v972_v60 = vpop.permute.xlu0 %971 }
 0x10c   : > { %998 = vst.msk [vmem:[#allocation3 + $0x24] sm:$0xf] %vm988_vm8, %v974_v10  ;;  %997 = vst.msk [vmem:[#allocation3 + $0x20] sm:$0xf] %vm988_vm8, %v972_v60 }
 0x10f   : > { %v962_v14 = vpop.permute.xlu1 %961  ;;  %v960_v30 = vpop.permute.xlu0 %959 }
 0x110   : > { %992 = vst.msk [vmem:[#allocation3 + $0xc] sm:$0xf] %vm988_vm8, %v962_v14  ;;  %991 = vst.msk [vmem:[#allocation3 + $0x8] sm:$0xf] %vm988_vm8, %v960_v30 }
 0x113   : > { %v1071_v56 = vpop.permute.xlu1 %1070  ;;  %v976_v21 = vpop.permute.xlu0 %975 }
 0x114   : > { %1104 = vst.msk [vmem:[#allocation3] sm:$0xf] %vm1103_vm9, %v1071_v56 }
 0x115   : > { %999 = vst.msk [vmem:[#allocation3 + $0x28] sm:$0xf] %vm988_vm8, %v976_v21 }
 0x117   : > { %v1087_v13 = vpop.permute.xlu1 %1086  ;;  %v1073_v7 = vpop.permute.xlu0 %1072 }
 0x118   : > { %1112 = vst.msk [vmem:[#allocation3 + $0x20] sm:$0xf] %vm1103_vm9, %v1087_v13  ;;  %1105 = vst.msk [vmem:[#allocation3 + $0x4] sm:$0xf] %vm1103_vm9, %v1073_v7 }
 0x11b   : > { %v1075_v53 = vpop.permute.xlu1 %1074  ;;  %v1089_v31 = vpop.permute.xlu0 %1088 }
 0x11c   : > { %1106 = vst.msk [vmem:[#allocation3 + $0x8] sm:$0xf] %vm1103_vm9, %v1075_v53  ;;  %1113 = vst.msk [vmem:[#allocation3 + $0x24] sm:$0xf] %vm1103_vm9, %v1089_v31 }
 0x11f   : > { %v1091_v42 = vpop.permute.xlu1 %1090  ;;  %v1077_v33 = vpop.permute.xlu0 %1076 }
 0x120   : > { %1114 = vst.msk [vmem:[#allocation3 + $0x28] sm:$0xf] %vm1103_vm9, %v1091_v42  ;;  %1107 = vst.msk [vmem:[#allocation3 + $0xc] sm:$0xf] %vm1103_vm9, %v1077_v33 }
 0x123   : > { %v1275_v22 = vpop.permute.xlu1 %1274  ;;  %v1273_v37 = vpop.permute.xlu0 %1272 }
 0x124   : > { %1307 = vst.msk [vmem:[#allocation3 + $0x4] sm:$0xf] %vm1305_vm10, %v1275_v22  ;;  %1306 = vst.msk [vmem:[#allocation3] sm:$0xf] %vm1305_vm10, %v1273_v37 }
 0x127   : > { %v1291_v0 = vpop.permute.xlu1 %1290  ;;  %v1289_v46 = vpop.permute.xlu0 %1288 }
 0x128   : > { %1315 = vst.msk [vmem:[#allocation3 + $0x24] sm:$0xf] %vm1305_vm10, %v1291_v0  ;;  %1314 = vst.msk [vmem:[#allocation3 + $0x20] sm:$0xf] %vm1305_vm10, %v1289_v46 }
 0x12b   : > { %v1279_v55 = vpop.permute.xlu1 %1278  ;;  %v1277_v19 = vpop.permute.xlu0 %1276 }
 0x12c   : > { %1309 = vst.msk [vmem:[#allocation3 + $0xc] sm:$0xf] %vm1305_vm10, %v1279_v55  ;;  %1308 = vst.msk [vmem:[#allocation3 + $0x8] sm:$0xf] %vm1305_vm10, %v1277_v19 }
 0x12f   : > { %v1391_v44 = vpop.permute.xlu1 %1390  ;;  %v1293_v3 = vpop.permute.xlu0 %1292 }
 0x130   : > { %1424 = vst.msk [vmem:[#allocation3] sm:$0xf] %vm1423_vm11, %v1391_v44 }
 0x131   : > { %1316 = vst.msk [vmem:[#allocation3 + $0x28] sm:$0xf] %vm1305_vm10, %v1293_v3 }
 0x133   : > { %v1407_v25 = vpop.permute.xlu1 %1406  ;;  %v1393_v29 = vpop.permute.xlu0 %1392 }
 0x134   : > { %1432 = vst.msk [vmem:[#allocation3 + $0x20] sm:$0xf] %vm1423_vm11, %v1407_v25  ;;  %1425 = vst.msk [vmem:[#allocation3 + $0x4] sm:$0xf] %vm1423_vm11, %v1393_v29 }
 0x137   : > { %v1395_v18 = vpop.permute.xlu1 %1394  ;;  %v1409_v50 = vpop.permute.xlu0 %1408 }
 0x138   : > { %1426 = vst.msk [vmem:[#allocation3 + $0x8] sm:$0xf] %vm1423_vm11, %v1395_v18  ;;  %1433 = vst.msk [vmem:[#allocation3 + $0x24] sm:$0xf] %vm1423_vm11, %v1409_v50 }
 0x13b   : > { %v1411_v63 = vpop.permute.xlu1 %1410  ;;  %v1397_v24 = vpop.permute.xlu0 %1396  ;;  %v2009_v43 = vld [vmem:[#allocation3] sm:$0xff]  }
 0x13c   : > { %1434 = vst.msk [vmem:[#allocation3 + $0x28] sm:$0xf] %vm1423_vm11, %v1411_v63  ;;  %1427 = vst.msk [vmem:[#allocation3 + $0xc] sm:$0xf] %vm1423_vm11, %v1397_v24  ;;  %1918 = vmatprep.mubr.msk.bf16.mxu0 %vm1517_vm12, %v2009_v43 }
 0x13f   : > { %v2010_v49 = vld [vmem:[#allocation3 + $0x20] sm:$0xff]  }
 0x140   : > { %1926 = vmatprep.mubr.msk.bf16.mxu1 %vm1517_vm12, %v2010_v49 }
 0x143   : > { %v2011_v32 = vld [vmem:[#allocation3 + $0x8] sm:$0xff]  }
 0x144   : > { %v2012_v48 = vld [vmem:[#allocation3 + $0x28] ss:$0 sps:$4 sm:$0xff]   ;;  %1919 = vmatmul.mubr.msk.bf16.vlgmr.msra.gmra.mrb[0].mxu0 %vm1517_vm12, %v2011_v32 }
 0x145   : > { %1927 = vmatmul.mubr.msk.bf16.gmra.mrb[4].mxu1 %vm1517_vm12, %v2012_v48 }
 0x1af   : > { %v1924_v39 = vpop.f32.mrb[0].mxu1 }
 0x1b0   : > { %v1599_v15 = vadd.f32 %v1924_v39, %v1854_v62  ;;  %v1590_v34 = vpop.f32.mrb[1].mxu1 }
 0x1b1   : > { %v1591_v45 = vadd.f32 %v1854_v62, %v1590_v34  ;;  %v1925_v4 = vpop.f32.mrb[2].mxu1 }
 0x1b2   : > { %v1892_v28 = vpack.c.bf16 %v1599_v15, %v1599_v15  ;;  %v1602_v35 = vadd.f32 %v1925_v4, %v1854_v62  ;;  %v1593_v16 = vpop.f32.mrb[3].mxu1 }
 0x1b3   : > { %v1890_v40 = vpack.c.bf16 %v1591_v45, %v1591_v45  ;;  %v1594_v27 = vadd.f32 %v1854_v62, %v1593_v16 }
 0x1b4   : > { %1671 = vst.msk [vmem:[%s2066_s24 + $0x18] sm:$0xf] %vm237_vm3, %v1892_v28  ;;  %v1893_v2 = vpack.c.bf16 %v1602_v35, %v1602_v35 }
 0x1b5   : > { %1669 = vst.msk [vmem:[%s2066_s24 + $0x10] sm:$0xf] %vm237_vm3, %v1890_v40  ;;  %v1891_v47 = vpack.c.bf16 %v1594_v27, %v1594_v27 }
 0x1b6   : > { %1672 = vst.msk [vmem:[%s2066_s24 + $0x1c] sm:$0xf] %vm237_vm3, %v1893_v2 }
 0x1b7   : > { %1670 = vst.msk [vmem:[%s2066_s24 + $0x14] sm:$0xf] %vm237_vm3, %v1891_v47 }
 0x217   : > { %v1920_v9 = vpop.f32.mrb[0].mxu0 }
 0x218   : > { %v1583_v11 = vadd.f32 %v1920_v9, %v1854_v62  ;;  %v1928_v58 = vpop.f32.mrb[4].mxu1  ;;  %v1574_v61 = vpop.f32.mrb[1].mxu0 }
 0x219   : > { %v1615_v12 = vadd.f32 %v1928_v58, %v1854_v62  ;;  %v1575_v54 = vadd.f32 %v1854_v62, %v1574_v61  ;;  %v1606_v59 = vpop.f32.mrb[5].mxu1  ;;  %v1921_v51 = vpop.f32.mrb[2].mxu0 }
 0x21a   : > { %v1888_v8 = vpack.c.bf16 %v1583_v11, %v1583_v11  ;;  %v1607_v17 = vadd.f32 %v1854_v62, %v1606_v59  ;;  %v1586_v41 = vadd.f32 %v1921_v51, %v1854_v62  ;;  %v1929_v52 = vpop.f32.mrb[6].mxu1  ;;  %v1577_v1 = vpop.f32.mrb[3].mxu0 }
 0x21b   : > { %v1896_v6 = vpack.c.bf16 %v1615_v12, %v1615_v12  ;;  %v1886_v36 = vpack.c.bf16 %v1575_v54, %v1575_v54  ;;  %v1578_v57 = vadd.f32 %v1854_v62, %v1577_v1  ;;  %v1609_v5 = vpop.f32.mrb[7].mxu1 }
 0x21c   : > { %1667 = vst.msk [vmem:[%s2066_s24 + $0x8] sm:$0xf] %vm237_vm3, %v1888_v8  ;;  %v1894_v26 = vpack.c.bf16 %v1607_v17, %v1607_v17  ;;  %v1889_v38 = vpack.c.bf16 %v1586_v41, %v1586_v41  ;;  %v1610_v23 = vadd.f32 %v1854_v62, %v1609_v5 }
 0x21d   : > { %1675 = vst.msk [vmem:[%s2066_s24 + $0x28] sm:$0xf] %vm237_vm3, %v1896_v6  ;;  %1665 = vst.msk [vmem:[%s2066_s24] sm:$0xf] %vm237_vm3, %v1886_v36  ;;  %v1887_v20 = vpack.c.bf16 %v1578_v57, %v1578_v57 }
 0x21e   : > { %1673 = vst.msk [vmem:[%s2066_s24 + $0x20] sm:$0xf] %vm237_vm3, %v1894_v26  ;;  %1668 = vst.msk [vmem:[%s2066_s24 + $0xc] sm:$0xf] %vm237_vm3, %v1889_v38  ;;  %v1895_v10 = vpack.c.bf16 %v1610_v23, %v1610_v23 }
 0x21f   : > { %1666 = vst.msk [vmem:[%s2066_s24 + $0x4] sm:$0xf] %vm237_vm3, %v1887_v20 }
 0x220   : > { %1674 = vst.msk [vmem:[%s2066_s24 + $0x24] sm:$0xf] %vm237_vm3, %v1895_v10 }
 0x221 PF: > { %s13_s12 = sadd.s32 1, %s2022_s12  }
 0x222   : > { %p10_p4 = scmp.ge.s32.totalorder %s13_s12, 10  }
 0x224   :  { %12 = sbr.rel (!%p10_p4) target bundleno = 1 (0x1), region = 98 }
 0x22b   :  { %1698 = vsyncmov [#allocation4] }
 0x22e   :  { %s1699_s19 = vpop.sfrf %1698 }
 0x22f   :  { %p1885_p5 = scmp.ne.s32.totalorder %s1699_s19, 0 }
 0x231   :  { %1703 = shalt.err (%p1885_p5)  }

// kernel: ptychonn_forward.22
= control target key start
LH: loop header
LB: loop body
LE: loop exit
PB: predicated region body
PF: predicated region fallthrough
CT: control target
= control target key end

     0   :  { %s885_s12 = smov 0   ;;  %s944_s0 = inlined_call_operand.vmem [shape: bf16[248,8], index: 0, kind: input, shape index: {}]   ;;  %s945_s1 = inlined_call_operand.vmem [shape: bf16[72,16], index: 1, kind: input, shape index: {}]   ;;  %s946_s2 = inlined_call_operand.vmem [shape: f32[1,16], index: 2, kind: input, shape index: {}]   ;;  %s947_s3 = inlined_call_operand.vmem [shape: bf16[224,16], index: 3, kind: output, shape index: {}]  }
   0x1 LB: > { %s724_s13 = sadd.s32 4294967295, %s855_s12   ;;  %p727_p0 = scmp.ge.s32.totalorder %s855_s12, 1  ;;  %s855_s12 = sphi %s885_s12, %s13_s12  }
   0x2   : > { %p103_p1 = scmp.lt.s32.totalorder %s855_s12, 8 }
   0x4   : > { %p104_p2 = pnand %p727_p0, %p103_p1 }
   0x5   : > { %s728_s14 = sshll.u32 (!%p104_p2), %s724_s13, 2  ;;  %s730_s15 = sshll.u32 (!%p104_p2), %s724_s13, 5 }
   0x6   : > { %107 = sbr.rel (%p104_p2) target bundleno = 395 (0x18b), region = 28  ;;  %p121_p3 = scmp.lt.s32.totalorder (!%p104_p2), %s728_s14, 27 }
   0x7   : > { %s128_s16 = sshra.s32 (!%p104_p2), %s730_s15, 3 }
   0x8   : > { %s731_s17 = sshll.u32 (!%p104_p2), %s128_s16, 2 }
   0x9   : > { %s131_s20 = scalar_lea.vmem (!%p104_p2), %s944_s0, %s731_s17 }
   0xa   : > { %v169_v0 = vld [vmem:[%s131_s20] sm:$0xff] (!%p104_p2)  ;;  %v171_v1 = vld [vmem:[%s131_s20 + $0x8] sm:$0xff] (!%p104_p2)  ;;  %v173_v2 = vld [vmem:[%s131_s20 + $0x10] sm:$0xff] (!%p104_p2) }
   0xb   : > { %170 = vst [vmem:[#allocation2] sm:$0xff] (!%p104_p2), %v169_v0  ;;  %172 = vst [vmem:[#allocation2 + $0x8] sm:$0xff] (!%p104_p2), %v171_v1  ;;  %v732_v3 = vld [vmem:[%s131_s20 + $0x18] sm:$0xf] (!%p104_p2) }
   0xc   : > { %174 = vst [vmem:[#allocation2 + $0x10] sm:$0xff] (!%p104_p2), %v173_v2  ;;  %185 = vst [vmem:[#allocation2 + $0x18] sm:$0xf] (!%p104_p2), %v732_v3 }
   0xd   : > { %s949_s14 = smov (!%p121_p3, %s728_s14), 27 }
   0xe   : > { %s729_s21 = sshll.u32 %s949_s14, 2 }
   0xf   : > { %s899_s24 = scalar_lea.vmem %s947_s3, %s729_s21 }
  0x10   : > { %189 = vsyncadd [#allocation4], 448 }
  0x11   : > { %851 = dma.done.wait [#allocation4], 448 }
  0x12   : > { %852 = vsyncadd [#allocation4], 4294966848  ;;  %vm279_vm0 = vcmask 1046528   ;;  %vm398_vm1 = vcmask 1045504   ;;  %v816_v4 = vld [vmem:[#allocation2 + $0x4] sm:$0xfe]  }
  0x13   : > { %v817_v5 = vld [vmem:[#allocation2 + $0xc] sm:$0xff]   ;;  %v312_v6 = vrot.slane %v816_v4, 1  ;;  %v818_v8 = vld [vmem:[#allocation2] sm:$0xfe]   ;;  %vm231_vm2 = vsmask.f32 7424 }
  0x14   : > { %v313_v7 = vrot.slane %v817_v5, 1  ;;  %v819_v9 = vld [vmem:[#allocation2 + $0x8] sm:$0xff]   ;;  %v280_v11 = vrot.slane %v818_v8, 1  ;;  %s857_s25 = smov 24   ;;  %v824_v15 = vld [vmem:[#allocation2] sm:$0xff]   ;;  %s858_s26 = smov 16  }
  0x15   : > { %v821_v12 = vld [vmem:[#allocation2 + $0xc] sm:$0xff]   ;;  %v281_v13 = vrot.slane %v819_v9, 1  ;;  %v820_v14 = vld [vmem:[#allocation2 + $0x4] sm:$0xfc]   ;;  %v233_v25 = vshrl.u32 %v824_v15, 16  ;;  %v235_v26 = vshll.u32 %v824_v15, 16 }
  0x16   : > { %v314_v10 = vsel %vm279_vm0, %v312_v6, %v313_v7  ;;  %v400_v16 = vrot.slane %v821_v12, 2  ;;  %v822_v17 = vld [vmem:[#allocation2 + $0x10] ss:$0 sps:$4 sm:$0x11]   ;;  %v399_v19 = vrot.slane %v820_v14, 2  ;;  %v825_v22 = vld [vmem:[#allocation2 + $0x8] sm:$0xff]  }
  0x17   : > { %317 = vrot.lane.b32.xlu0 %v314_v10, %s857_s25  ;;  %v282_v18 = vsel %vm279_vm0, %v280_v11, %v281_v13  ;;  %v823_v20 = vld [vmem:[#allocation2 + $0x14] ss:$0 sps:$4 sm:$0x11]   ;;  %v283_v21 = vrot.slane %v822_v17, 1  ;;  %v828_v27 = vld [vmem:[#allocation2 + $0xc] sm:$0xff]   ;;  %s859_s27 = smov 40  }
  0x18   : > { %285 = vrot.lane.b32.xlu1 %v282_v18, %s858_s26  ;;  %v401_v23 = vsel %vm398_vm1, %v399_v19, %v400_v16  ;;  %v315_v24 = vrot.slane %v823_v20, 1  ;;  %v240_v29 = vshll.u32 %v825_v22, 16  ;;  %v826_v30 = vld [vmem:[#allocation2 + $0x14] ss:$0 sps:$4 sm:$0x33]   ;;  %v237_v31 = vrot.slane %v235_v26, 1 }
  0x19   : > { %v284_v28 = vsel %vm279_vm0, %v281_v13, %v283_v21  ;;  %v827_v32 = vld [vmem:[#allocation2 + $0x10] ss:$0 sps:$4 sm:$0x11]   ;;  %vm344_vm3 = vsmask.f32 6400  ;;  %v402_v34 = vrot.slane %v826_v30, 2 }
  0x1a   : > { %v242_v33 = vrot.slane %v240_v29, 1  ;;  %v244_v35 = vshrl.u32 %v825_v22, 16  ;;  %v354_v36 = vshrl.u32 %v828_v27, 16  ;;  %v316_v37 = vsel %vm279_vm0, %v313_v7, %v315_v24  ;;  %v829_v42 = vld [vmem:[#allocation2 + $0x14] ss:$0 sps:$4 sm:$0x33]  }
  0x1b   : > { %404 = vrot.lane.b32.xlu0 %v401_v23, %s859_s27  ;;  %v238_v38 = vor.u32 %v237_v31, %v233_v25  ;;  %v248_v39 = vshll.u32 %v827_v32, 16  ;;  %v357_v40 = vshll.u32 %v828_v27, 16  ;;  %v830_v47 = vld [vmem:[#allocation2 + $0x4] sm:$0xfe]   ;;  %s860_s28 = smov 8   ;;  %v363_v48 = vshrl.u32 %v829_v42, 16 }
  0x1c   : > { %287 = vrot.lane.b32.xlu1 %v284_v28, %s858_s26  ;;  %v246_v41 = vor.u32 %v244_v35, %v242_v33  ;;  %v356_v43 = vrot.slane %v354_v36, 1  ;;  %v366_v49 = vshll.u32 %v829_v42, 16  ;;  %v403_v50 = vsel %vm398_vm1, %v400_v16, %v402_v34  ;;  %v831_v57 = vld [vmem:[#allocation2 + $0x8] sm:$0xfc]   ;;  %v832_v58 = vld [vmem:[#allocation2 + $0x10] sm:$0xff]   ;;  %s861_s29 = smov 32  }
  0x1d   : > { %v243_v44 = vsel %vm231_vm2, %v238_v38, %v242_v33  ;;  %v250_v45 = vrot.slane %v248_v39, 1  ;;  %v359_v46 = vrot.slane %v357_v40, 2  ;;  %v346_v52 = vshrl.u32 %v830_v47, 16  ;;  %v835_v59 = vld [vmem:[#allocation2 + $0x10] sm:$0xff]   ;;  %v834_v6 = vld [vmem:[#allocation2 + $0x8] sm:$0xfc]  }
  0x1e   : > { %v349_v53 = vshll.u32 %v830_v47, 16  ;;  %v365_v55 = vrot.slane %v363_v48, 1  ;;  %v368_v56 = vrot.slane %v366_v49, 2  ;;  %vm463_vm4 = vsmask.f32 5376  ;;  %v838_v18 = vld [vmem:[#allocation2 + $0x10] sm:$0xff]  }
  0x1f   : > { %252 = vrot.lane.b32.xlu0 %v243_v44, %s860_s28  ;;  %v251_v51 = vsel %vm231_vm2, %v246_v41, %v250_v45  ;;  %v360_v54 = vor.u32 %v359_v46, %v356_v43  ;;  %v348_v60 = vrot.slane %v346_v52, 1  ;;  %v431_v63 = vrot.slane %v831_v57, 2  ;;  %v833_v1 = vld [vmem:[#allocation2 + $0x18] ss:$0 sps:$4 sm:$0x33]   ;;  %s862_s30 = smov 48  }
  0x20   : > { %319 = vrot.lane.b32.xlu1 %v316_v37, %s857_s25  ;;  %v351_v61 = vrot.slane %v349_v53, 2  ;;  %v369_v62 = vor.u32 %v368_v56, %v365_v55  ;;  %v432_v0 = vrot.slane %v832_v58, 2  ;;  %v473_v2 = vshrl.u32 %v835_v59, 16  ;;  %v836_v10 = vld [vmem:[#allocation2 + $0x18] ss:$0 sps:$4 sm:$0x77]  }
  0x21   : > { %v434_v5 = vrot.slane %v833_v1, 2  ;;  %v476_v9 = vshll.u32 %v835_v59, 16  ;;  %v465_v12 = vshrl.u32 %v834_v6, 16  ;;  %v468_v13 = vshll.u32 %v834_v6, 16  ;;  %v837_v21 = vld [vmem:[#allocation2 + $0x8] sm:$0xf8]  }
  0x22   : > { %v352_v3 = vor.u32 %v351_v61, %v348_v60  ;;  %v370_v4 = vsel %vm344_vm3, %v360_v54, %v369_v62  ;;  %v475_v7 = vrot.slane %v473_v2, 2  ;;  %v433_v11 = vsel %vm398_vm1, %v431_v63, %v432_v0  ;;  %v839_v25 = vld [vmem:[#allocation2 + $0x18] ss:$0 sps:$4 sm:$0x77]   ;;  %v840_v29 = vld [vmem:[#allocation2] sm:$0xff]   ;;  %v841_v32 = vld [vmem:[#allocation2 + $0x8] sm:$0xff]  }
  0x23   : > { %254 = vrot.lane.b32.xlu0 %v251_v51, %s860_s28  ;;  %v435_v14 = vsel %vm398_vm1, %v432_v0, %v434_v5  ;;  %v478_v15 = vrot.slane %v476_v9, 3  ;;  %v482_v16 = vshrl.u32 %v836_v10, 16  ;;  %v485_v17 = vshll.u32 %v836_v10, 16  ;;  %v842_v35 = vld [vmem:[%s945_s1] sm:$0xff]   ;;  %v843_v36 = vld [vmem:[%s945_s1 + $0x8] sm:$0xff]   ;;  %s863_s8 = smov 56  }
  0x24   : > { %406 = vrot.lane.b32.xlu1 %v403_v50, %s859_s27  ;;  %v361_v8 = vsel %vm344_vm3, %v352_v3, %v360_v54  ;;  %v467_v19 = vrot.slane %v465_v12, 2  ;;  %v470_v20 = vrot.slane %v468_v13, 3  ;;  %vm210_vm5 = vcmask 64512   ;;  %785 = vmatprep.subr.bf16.mxu0 %v842_v35  ;;  %v844_v39 = vld [vmem:[%s945_s1 + $0x10] sm:$0xff]   ;;  %s864_s11 = smov 64   ;;  %v845_v40 = vld [vmem:[%s945_s1 + $0x18] sm:$0xff]  }
  0x25   : > { %v479_v22 = vor.u32 %v478_v15, %v475_v7  ;;  %v484_v23 = vrot.slane %v482_v16, 2  ;;  %v487_v24 = vrot.slane %v485_v17, 3  ;;  %v518_v27 = vrot.slane %v837_v21, 3  ;;  %211 = vst.msk [vmem:[#allocation3] sm:$0xff] %vm210_vm5, %v840_v29  ;;  %212 = vst.msk [vmem:[#allocation3 + $0x8] sm:$0xff] %vm210_vm5, %v841_v32  ;;  %786 = vmatpush3.bf16.msra.mxu0 %v842_v35 }
  0x26   : > { %v471_v26 = vor.u32 %v470_v20, %v467_v19  ;;  %v519_v28 = vrot.slane %v838_v18, 3  ;;  %v521_v31 = vrot.slane %v839_v25, 3  ;;  %vm517_vm6 = vcmask 1044480   ;;  %787 = vmatprep.subr.bf16.mxu0 %v843_v36  ;;  %v846_v41 = vld [vmem:[%s945_s1 + $0x20] ss:$0 sps:$4 sm:$0xff]  }
  0x27   : > { %371 = vrot.lane.b32.xlu0 %v361_v8, %s861_s29  ;;  %v488_v30 = vor.u32 %v487_v24, %v484_v23  ;;  %vm584_vm7 = vcmask 1043456   ;;  %vm258_vm8 = vcmask 130112   ;;  %vm291_vm9 = vcmask 195712   ;;  %v759_v61 = vld [vmem:[%s946_s2] ss:$0 sm:$0xff] }
  0x28   : > { %373 = vrot.lane.b32.xlu1 %v370_v4, %s861_s29  ;;  %v480_v33 = vsel %vm463_vm4, %v471_v26, %v479_v22  ;;  %v520_v37 = vsel %vm517_vm6, %v518_v27, %v519_v28  ;;  %v522_v38 = vsel %vm517_vm6, %v519_v28, %v521_v31  ;;  %v586_v42 = vsel %vm584_vm7, %v846_v41, 0 }
  0x29   : > { %v489_v34 = vsel %vm463_vm4, %v479_v22, %v488_v30  ;;  %788 = vmatpush3.bf16.msra.mxu0 %v843_v36  ;;  %vm323_vm10 = vcmask 261312   ;;  %vm377_vm11 = vcmask 326912   ;;  %vm410_vm12 = vcmask 392512  }
  0x2a   : > { %789 = vmatprep.subr.bf16.mxu0 %v844_v39  ;;  %vm442_vm13 = vcmask 458112   ;;  %vm496_vm14 = vcmask 523712   ;;  %vm529_vm15 = vcmask 589312   ;;  %vm577_vm0 = vcmask 588800  }
  0x2b   : > { %436 = vrot.lane.b32.xlu0 %v433_v11, %s862_s30  ;;  %vm653_vm1 = vcmask 125952  }
  0x2c   : > { %438 = vrot.lane.b32.xlu1 %v435_v14, %s862_s30 }
  0x2d   : > { %790 = vmatpush3.bf16.msra.mxu0 %v844_v39 }
  0x2e   : > { %791 = vmatprep.subr.bf16.mxu0 %v845_v40 }
  0x2f   : > { %490 = vrot.lane.b32.xlu0 %v480_v33, %s863_s8 }
  0x30   : > { %492 = vrot.lane.b32.xlu1 %v489_v34, %s863_s8 }
  0x31   : > { %792 = vmatpush3.bf16.msra.mxu0 %v845_v40 }
  0x32   : > { %799 = vmatprep.subr.msk.bf16.mxu0 %vm584_vm7, %v846_v41 }
  0x33   : > { %523 = vrot.lane.b32.xlu0 %v520_v37, %s864_s11 }
  0x34   : > { %525 = vrot.lane.b32.xlu1 %v522_v38, %s864_s11 }
  0x35   : > { %794 = vmatpush3.bf16.msra.mxu0 %v586_v42 }
  0x89   : > { %v318_v43 = vpop.permute.xlu0 %317 }
  0x8a   : > { %v286_v44 = vpop.permute.xlu1 %285 }
  0x8d   : > { %v405_v45 = vpop.permute.xlu0 %404 }
  0x8e   : > { %v288_v46 = vpop.permute.xlu1 %287 }
  0x91   : > { %v253_v48 = vpop.permute.xlu0 %252 }
  0x92   : > { %v320_v47 = vpop.permute.xlu1 %319  ;;  %259 = vst.msk [vmem:[#allocation3] sm:$0xff] %vm258_vm8, %v253_v48 }
  0x93   : > { %292 = vst.msk [vmem:[#allocation3] sm:$0xff] %vm291_vm9, %v286_v44 }
  0x94   : > { %324 = vst.msk [vmem:[#allocation3] sm:$0xff] %vm323_vm10, %v318_v43 }
  0x95   : > { %v255_v50 = vpop.permute.xlu0 %254 }
  0x96   : > { %v407_v49 = vpop.permute.xlu1 %406  ;;  %260 = vst.msk [vmem:[#allocation3 + $0x8] sm:$0xff] %vm258_vm8, %v255_v50 }
  0x97   : > { %293 = vst.msk [vmem:[#allocation3 + $0x8] sm:$0xff] %vm291_vm9, %v288_v46 }
  0x98   : > { %325 = vst.msk [vmem:[#allocation3 + $0x8] sm:$0xff] %vm323_vm10, %v320_v47 }
  0x99   : > { %v372_v52 = vpop.permute.xlu0 %371 }
  0x9a   : > { %v374_v51 = vpop.permute.xlu1 %373  ;;  %378 = vst.msk [vmem:[#allocation3] sm:$0xff] %vm377_vm11, %v372_v52 }
  0x9b   : > { %379 = vst.msk [vmem:[#allocation3 + $0x8] sm:$0xff] %vm377_vm11, %v374_v51 }
  0x9c   : > { %411 = vst.msk [vmem:[#allocation3] sm:$0xff] %vm410_vm12, %v405_v45  ;;  %412 = vst.msk [vmem:[#allocation3 + $0x8] sm:$0xff] %vm410_vm12, %v407_v49 }
  0x9d   : > { %v437_v53 = vpop.permute.xlu0 %436 }
  0x9e   : > { %v439_v54 = vpop.permute.xlu1 %438  ;;  %443 = vst.msk [vmem:[#allocation3] sm:$0xff] %vm442_vm13, %v437_v53 }
  0x9f   : > { %444 = vst.msk [vmem:[#allocation3 + $0x8] sm:$0xff] %vm442_vm13, %v439_v54 }
  0xa1   : > { %v491_v55 = vpop.permute.xlu0 %490 }
  0xa2   : > { %v493_v56 = vpop.permute.xlu1 %492  ;;  %497 = vst.msk [vmem:[#allocation3] sm:$0xff] %vm496_vm14, %v491_v55 }
  0xa3   : > { %498 = vst.msk [vmem:[#allocation3 + $0x8] sm:$0xff] %vm496_vm14, %v493_v56 }
  0xa5   : > { %v524_v57 = vpop.permute.xlu0 %523 }
  0xa6   : > { %v526_v58 = vpop.permute.xlu1 %525  ;;  %530 = vst.msk [vmem:[#allocation3] sm:$0xff] %vm529_vm15, %v524_v57 }
  0xa7   : > { %531 = vst.msk [vmem:[#allocation3 + $0x8] sm:$0xff] %vm529_vm15, %v526_v58 }
  0xad   : > { %v532_v59 = vld [vmem:[#allocation3] sm:$0xff] }
  0xae   : > { %v533_v60 = vld [vmem:[#allocation3 + $0x8] sm:$0xff]  ;;  %795 = vmatprep.mubr.msk.bf16.mxu0 %vm577_vm0, %v532_v59 }
  0xaf   : > { %796 = vmatmul.mubr.msk.bf16.vlgmr.msra.gmra.mrb[0].mxu0 %vm577_vm0, %v533_v60 }
 0x182   : > { %v797_v62 = vpop.f32.mrb[0].mxu0 }
 0x183   : > { %v631_v63 = vadd.f32 %v797_v62, %v759_v61  ;;  %v622_v0 = vpop.f32.mrb[1].mxu0 }
 0x184   : > { %v623_v1 = vadd.f32 %v759_v61, %v622_v0  ;;  %v798_v2 = vpop.f32.mrb[2].mxu0 }
 0x185   : > { %v776_v3 = vpack.c.bf16 %v631_v63, %v631_v63  ;;  %v634_v4 = vadd.f32 %v798_v2, %v759_v61  ;;  %v625_v5 = vpop.f32.mrb[3].mxu0 }
 0x186   : > { %v774_v6 = vpack.c.bf16 %v623_v1, %v623_v1  ;;  %v626_v7 = vadd.f32 %v759_v61, %v625_v5 }
 0x187   : > { %656 = vst.msk [vmem:[%s899_s24 + $0x8] sm:$0xf] %vm653_vm1, %v776_v3  ;;  %v777_v8 = vpack.c.bf16 %v634_v4, %v634_v4 }
 0x188   : > { %654 = vst.msk [vmem:[%s899_s24] sm:$0xf] %vm653_vm1, %v774_v6  ;;  %v775_v9 = vpack.c.bf16 %v626_v7, %v626_v7 }
 0x189   : > { %657 = vst.msk [vmem:[%s899_s24 + $0xc] sm:$0xf] %vm653_vm1, %v777_v8 }
 0x18a   : > { %655 = vst.msk [vmem:[%s899_s24 + $0x4] sm:$0xf] %vm653_vm1, %v775_v9 }
 0x18b PF: > { %s13_s12 = sadd.s32 1, %s855_s12  }
 0x18c   : > { %p10_p4 = scmp.ge.s32.totalorder %s13_s12, 9  }
 0x18e   :  { %12 = sbr.rel (!%p10_p4) target bundleno = 1 (0x1), region = 107 }
 0x195   :  { %680 = vsyncmov [#allocation4] }
 0x198   :  { %s681_s19 = vpop.sfrf %680 }
 0x199   :  { %p773_p5 = scmp.ne.s32.totalorder %s681_s19, 0 }
 0x19b   :  { %685 = shalt.err (%p773_p5)  }

// kernel: ptychonn_forward.23
= control target key start
LH: loop header
LB: loop body
LE: loop exit
PB: predicated region body
PF: predicated region fallthrough
CT: control target
= control target key end

     0   :  { %s917_s12 = smov 0   ;;  %s1014_s0 = inlined_call_operand.vmem [shape: bf16[248,16], index: 0, kind: input, shape index: {}]   ;;  %s1015_s1 = inlined_call_operand.vmem [shape: bf16[144,16], index: 1, kind: input, shape index: {}]   ;;  %s1016_s2 = inlined_call_operand.vmem [shape: f32[1,16], index: 2, kind: input, shape index: {}]   ;;  %s1017_s3 = inlined_call_operand.vmem [shape: bf16[224,16], index: 3, kind: output, shape index: {}]  }
   0x1 LB: > { %s752_s13 = sadd.s32 4294967295, %s887_s12   ;;  %p755_p0 = scmp.ge.s32.totalorder %s887_s12, 1  ;;  %s887_s12 = sphi %s917_s12, %s13_s12  }
   0x2   : > { %p103_p1 = scmp.lt.s32.totalorder %s887_s12, 8 }
   0x4   : > { %p104_p2 = pnand %p755_p0, %p103_p1 }
   0x5   : > { %s756_s14 = sshll.u32 (!%p104_p2), %s752_s13, 2  ;;  %s758_s15 = sshll.u32 (!%p104_p2), %s752_s13, 5 }
   0x6   : > { %107 = sbr.rel (%p104_p2) target bundleno = 390 (0x186), region = 28  ;;  %p121_p3 = scmp.lt.s32.totalorder (!%p104_p2), %s756_s14, 27 }
   0x7   : > { %s128_s16 = sshra.s32 (!%p104_p2), %s758_s15, 3 }
   0x8   : > { %s759_s17 = sshll.u32 (!%p104_p2), %s128_s16, 2 }
   0x9   : > { %s131_s20 = scalar_lea.vmem (!%p104_p2), %s1014_s0, %s759_s17 }
   0xa   : > { %v169_v0 = vld [vmem:[%s131_s20] sm:$0xff] (!%p104_p2)  ;;  %v171_v1 = vld [vmem:[%s131_s20 + $0x8] sm:$0xff] (!%p104_p2)  ;;  %v173_v2 = vld [vmem:[%s131_s20 + $0x10] sm:$0xff] (!%p104_p2) }
   0xb   : > { %170 = vst [vmem:[#allocation2] sm:$0xff] (!%p104_p2), %v169_v0  ;;  %172 = vst [vmem:[#allocation2 + $0x8] sm:$0xff] (!%p104_p2), %v171_v1  ;;  %v760_v3 = vld [vmem:[%s131_s20 + $0x18] sm:$0xf] (!%p104_p2) }
   0xc   : > { %174 = vst [vmem:[#allocation2 + $0x10] sm:$0xff] (!%p104_p2), %v173_v2  ;;  %185 = vst [vmem:[#allocation2 + $0x18] sm:$0xf] (!%p104_p2), %v760_v3 }
   0xd   : > { %s1019_s14 = smov (!%p121_p3, %s756_s14), 27 }
   0xe   : > { %s757_s21 = sshll.u32 %s1019_s14, 2 }
   0xf   : > { %s931_s24 = scalar_lea.vmem %s1017_s3, %s757_s21 }
  0x10   : > { %189 = vsyncadd [#allocation4], 448 }
  0x11   : > { %883 = dma.done.wait [#allocation4], 448 }
  0x12   : > { %884 = vsyncadd [#allocation4], 4294966848  ;;  %v889_v4 = vmov 0   ;;  %vm279_vm0 = vcmask 1046528   ;;  %vm398_vm1 = vcmask 1045504   ;;  %v847_v10 = vld [vmem:[#allocation2 + $0x8] sm:$0xff]  }
  0x13   : > { %616 = vmatprep.subr.bf16.mxu0 %v889_v4  ;;  %810 = vmatprep.subr.bf16.mxu1 %v889_v4  ;;  %v844_v5 = vld [vmem:[#allocation2 + $0x4] sm:$0xfe]   ;;  %v845_v6 = vld [vmem:[#allocation2 + $0xc] sm:$0xff]   ;;  %vm231_vm2 = vsmask.f32 7424  ;;  %s890_s25 = smov 48  }
  0x14   : > { %v312_v7 = vrot.slane %v844_v5, 1  ;;  %v313_v8 = vrot.slane %v845_v6, 1  ;;  %v846_v9 = vld [vmem:[#allocation2] sm:$0xfe]   ;;  %v849_v13 = vld [vmem:[#allocation2 + $0xc] sm:$0xff]   ;;  %v281_v14 = vrot.slane %v847_v10, 1 }
  0x15   : > { %v280_v12 = vrot.slane %v846_v9, 1  ;;  %v848_v15 = vld [vmem:[#allocation2 + $0x4] sm:$0xfc]   ;;  %v400_v17 = vrot.slane %v849_v13, 2  ;;  %s891_s26 = smov 32   ;;  %v856_v28 = vld [vmem:[#allocation2 + $0xc] sm:$0xff]  }
  0x16   : > { %v314_v11 = vsel %vm279_vm0, %v312_v7, %v313_v8  ;;  %v852_v16 = vld [vmem:[#allocation2] sm:$0xff]   ;;  %v850_v18 = vld [vmem:[#allocation2 + $0x10] ss:$0 sps:$4 sm:$0x11]   ;;  %v399_v20 = vrot.slane %v848_v15, 2  ;;  %v853_v23 = vld [vmem:[#allocation2 + $0x8] sm:$0xff]  }
  0x17   : > { %317 = vrot.lane.b32.xlu0 %v314_v11, %s890_s25  ;;  %v282_v19 = vsel %vm279_vm0, %v280_v12, %v281_v14  ;;  %v851_v21 = vld [vmem:[#allocation2 + $0x14] ss:$0 sps:$4 sm:$0x11]   ;;  %v283_v22 = vrot.slane %v850_v18, 1  ;;  %v233_v26 = vshrl.u32 %v852_v16, 16  ;;  %v235_v27 = vshll.u32 %v852_v16, 16 }
  0x18   : > { %285 = vrot.lane.b32.xlu1 %v282_v19, %s891_s26  ;;  %v401_v24 = vsel %vm398_vm1, %v399_v20, %v400_v17  ;;  %v315_v25 = vrot.slane %v851_v21, 1  ;;  %s892_s27 = smov 80   ;;  %v240_v30 = vshll.u32 %v853_v23, 16  ;;  %v854_v31 = vld [vmem:[#allocation2 + $0x14] ss:$0 sps:$4 sm:$0x33]  }
  0x19   : > { %v284_v29 = vsel %vm279_vm0, %v281_v14, %v283_v22  ;;  %v237_v32 = vrot.slane %v235_v27, 1  ;;  %v855_v33 = vld [vmem:[#allocation2 + $0x10] ss:$0 sps:$4 sm:$0x11]   ;;  %vm344_vm3 = vsmask.f32 6400 }
  0x1a   : > { %v242_v34 = vrot.slane %v240_v30, 1  ;;  %v402_v35 = vrot.slane %v854_v31, 2  ;;  %v244_v36 = vshrl.u32 %v853_v23, 16  ;;  %v354_v37 = vshrl.u32 %v856_v28, 16  ;;  %v858_v48 = vld [vmem:[#allocation2 + $0x4] sm:$0xfe]  }
  0x1b   : > { %404 = vrot.lane.b32.xlu0 %v401_v24, %s892_s27  ;;  %v316_v38 = vsel %vm279_vm0, %v313_v8, %v315_v25  ;;  %v238_v39 = vor.u32 %v237_v32, %v233_v26  ;;  %v248_v40 = vshll.u32 %v855_v33, 16  ;;  %v357_v41 = vshll.u32 %v856_v28, 16  ;;  %v857_v43 = vld [vmem:[#allocation2 + $0x14] ss:$0 sps:$4 sm:$0x33]   ;;  %s893_s28 = smov 16  }
  0x1c   : > { %287 = vrot.lane.b32.xlu1 %v284_v29, %s891_s26  ;;  %v246_v42 = vor.u32 %v244_v36, %v242_v34  ;;  %v356_v44 = vrot.slane %v354_v37, 1  ;;  %v363_v49 = vshrl.u32 %v857_v43, 16  ;;  %v366_v50 = vshll.u32 %v857_v43, 16  ;;  %v859_v55 = vld [vmem:[#allocation2 + $0x10] sm:$0xff]   ;;  %v865_v61 = vld [vmem:[%s1015_s1] sm:$0xff]   ;;  %v866_v12 = vld [vmem:[%s1015_s1 + $0x8] sm:$0xff]  }
  0x1d   : > { %v243_v45 = vsel %vm231_vm2, %v238_v39, %v242_v34  ;;  %v250_v46 = vrot.slane %v248_v40, 1  ;;  %v359_v47 = vrot.slane %v357_v41, 2  ;;  %v403_v51 = vsel %vm398_vm1, %v400_v17, %v402_v35  ;;  %v862_v56 = vld [vmem:[#allocation2 + $0x10] sm:$0xff]   ;;  %v860_v60 = vld [vmem:[#allocation2 + $0x18] ss:$0 sps:$4 sm:$0x33]   ;;  %617 = vmatpush1.bf16.msra.mxu0 %v865_v61  ;;  %819 = vmatpush1.bf16.msra.mxu1 %v865_v61 }
  0x1e   : > { %v346_v53 = vshrl.u32 %v858_v48, 16  ;;  %v349_v54 = vshll.u32 %v858_v48, 16  ;;  %v365_v58 = vrot.slane %v363_v49, 1  ;;  %v368_v59 = vrot.slane %v366_v50, 2  ;;  %v861_v5 = vld [vmem:[#allocation2 + $0x8] sm:$0xfc]   ;;  %618 = vmatprep.subr.bf16.mxu0 %v889_v4  ;;  %811 = vmatprep.subr.bf16.mxu1 %v889_v4 }
  0x1f   : > { %252 = vrot.lane.b32.xlu0 %v243_v45, %s893_s28  ;;  %v251_v52 = vsel %vm231_vm2, %v246_v42, %v250_v46  ;;  %v360_v57 = vor.u32 %v359_v47, %v356_v44  ;;  %v432_v0 = vrot.slane %v859_v55, 2  ;;  %vm463_vm4 = vsmask.f32 5376  ;;  %v863_v10 = vld [vmem:[#allocation2 + $0x18] ss:$0 sps:$4 sm:$0x77]  }
  0x20   : > { %319 = vrot.lane.b32.xlu1 %v316_v38, %s890_s25  ;;  %v348_v62 = vrot.slane %v346_v53, 1  ;;  %v351_v63 = vrot.slane %v349_v54, 2  ;;  %v473_v1 = vshrl.u32 %v862_v56, 16  ;;  %v369_v2 = vor.u32 %v368_v59, %v365_v58  ;;  %v867_v15 = vld [vmem:[%s1015_s1 + $0x10] sm:$0xff]   ;;  %s894_s8 = smov 64   ;;  %s895_s9 = smov 96  }
  0x21   : > { %v434_v3 = vrot.slane %v860_v60, 2  ;;  %v476_v6 = vshll.u32 %v862_v56, 16  ;;  %v431_v9 = vrot.slane %v861_v5, 2  ;;  %v482_v16 = vshrl.u32 %v863_v10, 16  ;;  %v864_v18 = vld [vmem:[#allocation2 + $0x8] sm:$0xfc]   ;;  %619 = vmatpush1.bf16.msra.mxu0 %v866_v12  ;;  %820 = vmatpush1.bf16.msra.mxu1 %v866_v12 }
  0x22   : > { %v352_v7 = vor.u32 %v351_v63, %v348_v62  ;;  %v370_v8 = vsel %vm344_vm3, %v360_v57, %v369_v2  ;;  %v475_v11 = vrot.slane %v473_v1, 2  ;;  %v485_v17 = vshll.u32 %v863_v10, 16  ;;  %620 = vmatprep.subr.bf16.mxu0 %v889_v4  ;;  %812 = vmatprep.subr.bf16.mxu1 %v889_v4  ;;  %v868_v29 = vld [vmem:[#allocation2 + $0x8] sm:$0xf8]   ;;  %v869_v32 = vld [vmem:[#allocation2 + $0x10] sm:$0xff]   ;;  %v871_v34 = vld [vmem:[#allocation2] sm:$0xff]  }
  0x23   : > { %254 = vrot.lane.b32.xlu0 %v251_v52, %s893_s28  ;;  %v478_v14 = vrot.slane %v476_v6, 3  ;;  %v435_v19 = vsel %vm398_vm1, %v432_v0, %v434_v3  ;;  %v433_v20 = vsel %vm398_vm1, %v431_v9, %v432_v0  ;;  %v484_v22 = vrot.slane %v482_v16, 2  ;;  %v870_v33 = vld [vmem:[#allocation2 + $0x18] ss:$0 sps:$4 sm:$0x77]   ;;  %s896_s13 = smov 112  }
  0x24   : > { %406 = vrot.lane.b32.xlu1 %v403_v51, %s892_s27  ;;  %v361_v13 = vsel %vm344_vm3, %v352_v7, %v360_v57  ;;  %v487_v23 = vrot.slane %v485_v17, 3  ;;  %v465_v24 = vshrl.u32 %v864_v18, 16  ;;  %v468_v25 = vshll.u32 %v864_v18, 16  ;;  %v872_v36 = vld [vmem:[%s1015_s1 + $0x18] sm:$0xff]   ;;  %v873_v40 = vld [vmem:[#allocation2 + $0x8] sm:$0xff]   ;;  %v874_v43 = vld [vmem:[%s1015_s1 + $0x20] sm:$0xff]  }
  0x25   : > { %v479_v21 = vor.u32 %v478_v14, %v475_v11  ;;  %vm210_vm5 = vcmask 130048   ;;  %621 = vmatpush1.bf16.msra.mxu0 %v867_v15  ;;  %821 = vmatpush1.bf16.msra.mxu1 %v867_v15  ;;  %vm517_vm6 = vcmask 1044480   ;;  %v518_v35 = vrot.slane %v868_v29, 3  ;;  %v875_v44 = vld [vmem:[%s1015_s1 + $0x28] sm:$0xff]   ;;  %v876_v45 = vld [vmem:[%s1015_s1 + $0x30] sm:$0xff]   ;;  %v877_v48 = vld [vmem:[%s1015_s1 + $0x38] sm:$0xff]  }
  0x26   : > { %v488_v26 = vor.u32 %v487_v23, %v484_v22  ;;  %v467_v27 = vrot.slane %v465_v24, 2  ;;  %v470_v28 = vrot.slane %v468_v25, 3  ;;  %622 = vmatprep.subr.bf16.mxu0 %v889_v4  ;;  %813 = vmatprep.subr.bf16.mxu1 %v889_v4  ;;  %v519_v38 = vrot.slane %v869_v32, 3  ;;  %211 = vst.msk [vmem:[#allocation3] sm:$0xff] %vm210_vm5, %v871_v34  ;;  %212 = vst.msk [vmem:[#allocation3 + $0x10] sm:$0xff] %vm210_vm5, %v873_v40  ;;  %v878_v49 = vld [vmem:[%s1015_s1 + $0x40] sm:$0xff]  }
  0x27   : > { %371 = vrot.lane.b32.xlu0 %v361_v13, %s894_s8  ;;  %v521_v39 = vrot.slane %v870_v33, 3  ;;  %vm258_vm7 = vcmask 261248   ;;  %vm291_vm8 = vcmask 392448   ;;  %vm323_vm9 = vcmask 523648   ;;  %v787_v1 = vld [vmem:[%s1016_s2] ss:$0 sm:$0xff] }
  0x28   : > { %373 = vrot.lane.b32.xlu1 %v370_v8, %s894_s8  ;;  %v489_v30 = vsel %vm463_vm4, %v479_v21, %v488_v26  ;;  %v471_v31 = vor.u32 %v470_v28, %v467_v27  ;;  %v520_v41 = vsel %vm517_vm6, %v518_v35, %v519_v38  ;;  %vm377_vm10 = vcmask 654848  }
  0x29   : > { %623 = vmatpush1.bf16.msra.mxu0 %v872_v36  ;;  %v522_v42 = vsel %vm517_vm6, %v519_v38, %v521_v39  ;;  %822 = vmatpush1.bf16.msra.mxu1 %v872_v36  ;;  %525 = vst.msk [vmem:[#allocation3 + $0x8] sm:$0xff] %vm210_vm5, %v520_v41  ;;  %vm410_vm11 = vcmask 786048   ;;  %vm442_vm12 = vcmask 917248   ;;  %vm496_vm13 = vcmask 1048448  }
  0x2a   : > { %v480_v37 = vsel %vm463_vm4, %v471_v31, %v479_v21  ;;  %624 = vmatprep.subr.bf16.mxu0 %v889_v4  ;;  %526 = vst.msk [vmem:[#allocation3 + $0x18] sm:$0xff] %vm210_vm5, %v522_v42  ;;  %814 = vmatprep.subr.bf16.mxu1 %v889_v4  ;;  %vm681_vm14 = vcmask 125952  }
  0x2b   : > { %436 = vrot.lane.b32.xlu0 %v433_v20, %s895_s9 }
  0x2c   : > { %438 = vrot.lane.b32.xlu1 %v435_v19, %s895_s9 }
  0x2d   : > { %625 = vmatpush1.bf16.msra.mxu0 %v874_v43  ;;  %823 = vmatpush1.bf16.msra.mxu1 %v874_v43 }
  0x2e   : > { %626 = vmatprep.subr.bf16.mxu0 %v889_v4  ;;  %815 = vmatprep.subr.bf16.mxu1 %v889_v4 }
  0x2f   : > { %490 = vrot.lane.b32.xlu0 %v480_v37, %s896_s13 }
  0x30   : > { %492 = vrot.lane.b32.xlu1 %v489_v30, %s896_s13  ;;  %v528_v46 = vld [vmem:[#allocation3 + $0x8] sm:$0xff] }
  0x31   : > { %627 = vmatpush1.bf16.msra.mxu0 %v875_v44  ;;  %824 = vmatpush1.bf16.msra.mxu1 %v875_v44  ;;  %v530_v47 = vld [vmem:[#allocation3 + $0x18] sm:$0xff] }
  0x32   : > { %628 = vmatprep.subr.bf16.mxu0 %v889_v4  ;;  %816 = vmatprep.subr.bf16.mxu1 %v889_v4 }
  0x33   : > { %797 = vmatprep.mubr.msk.bf16.mxu0 %vm210_vm5, %v528_v46  ;;  %798 = vmatprep.mubr.msk.bf16.mxu1 %vm210_vm5, %v530_v47 }
  0x35   : > { %629 = vmatpush1.bf16.msra.mxu0 %v876_v45  ;;  %825 = vmatpush1.bf16.msra.mxu1 %v876_v45 }
  0x36   : > { %630 = vmatprep.subr.bf16.mxu0 %v889_v4  ;;  %817 = vmatprep.subr.bf16.mxu1 %v889_v4 }
  0x39   : > { %631 = vmatpush1.bf16.msra.mxu0 %v877_v48  ;;  %826 = vmatpush1.bf16.msra.mxu1 %v877_v48 }
  0x3a   : > { %632 = vmatprep.subr.bf16.mxu0 %v889_v4  ;;  %818 = vmatprep.subr.bf16.mxu1 %v889_v4 }
  0x3d   : > { %633 = vmatpush1.bf16.msra.mxu0 %v878_v49  ;;  %827 = vmatpush1.bf16.msra.mxu1 %v878_v49 }
  0x89   : > { %v318_v50 = vpop.permute.xlu0 %317 }
  0x8a   : > { %v286_v51 = vpop.permute.xlu1 %285 }
  0x8d   : > { %v405_v52 = vpop.permute.xlu0 %404 }
  0x8e   : > { %v288_v53 = vpop.permute.xlu1 %287 }
  0x91   : > { %v253_v55 = vpop.permute.xlu0 %252 }
  0x92   : > { %v320_v54 = vpop.permute.xlu1 %319  ;;  %259 = vst.msk [vmem:[#allocation3] sm:$0xff] %vm258_vm7, %v253_v55 }
  0x93   : > { %292 = vst.msk [vmem:[#allocation3] sm:$0xff] %vm291_vm8, %v286_v51 }
  0x94   : > { %324 = vst.msk [vmem:[#allocation3] sm:$0xff] %vm323_vm9, %v318_v50 }
  0x95   : > { %v255_v57 = vpop.permute.xlu0 %254 }
  0x96   : > { %v407_v56 = vpop.permute.xlu1 %406  ;;  %260 = vst.msk [vmem:[#allocation3 + $0x10] sm:$0xff] %vm258_vm7, %v255_v57 }
  0x97   : > { %293 = vst.msk [vmem:[#allocation3 + $0x10] sm:$0xff] %vm291_vm8, %v288_v53 }
  0x98   : > { %325 = vst.msk [vmem:[#allocation3 + $0x10] sm:$0xff] %vm323_vm9, %v320_v54 }
  0x99   : > { %v372_v58 = vpop.permute.xlu0 %371 }
  0x9a   : > { %v374_v4 = vpop.permute.xlu1 %373  ;;  %378 = vst.msk [vmem:[#allocation3] sm:$0xff] %vm377_vm10, %v372_v58 }
  0x9b   : > { %379 = vst.msk [vmem:[#allocation3 + $0x10] sm:$0xff] %vm377_vm10, %v374_v4 }
  0x9c   : > { %412 = vst.msk [vmem:[#allocation3 + $0x10] sm:$0xff] %vm410_vm11, %v407_v56  ;;  %411 = vst.msk [vmem:[#allocation3] sm:$0xff] %vm410_vm11, %v405_v52 }
  0x9d   : > { %v437_v60 = vpop.permute.xlu0 %436 }
  0x9e   : > { %v439_v59 = vpop.permute.xlu1 %438  ;;  %443 = vst.msk [vmem:[#allocation3] sm:$0xff] %vm442_vm12, %v437_v60 }
  0x9f   : > { %444 = vst.msk [vmem:[#allocation3 + $0x10] sm:$0xff] %vm442_vm12, %v439_v59 }
  0xa1   : > { %v491_v62 = vpop.permute.xlu0 %490 }
  0xa2   : > { %v493_v61 = vpop.permute.xlu1 %492  ;;  %497 = vst.msk [vmem:[#allocation3] sm:$0xff] %vm496_vm13, %v491_v62 }
  0xa3   : > { %498 = vst.msk [vmem:[#allocation3 + $0x10] sm:$0xff] %vm496_vm13, %v493_v61 }
  0xa9   : > { %v527_v0 = vld [vmem:[#allocation3] sm:$0xff] }
  0xaa   : > { %v529_v63 = vld [vmem:[#allocation3 + $0x10] sm:$0xff]  ;;  %649 = vmatmul.mubr.bf16.vlgmr.msra.gmra.mrb[0].mxu0 %v527_v0 }
  0xab   : > { %657 = vmatmul.mubr.bf16.vlgmr.msra.gmra.mrb[0].mxu1 %v529_v63 }
 0x17d   : > { %v650_v3 = vpop.f32.mrb[0].mxu0 }
 0x17e   : > { %v658_v2 = vpop.f32.mrb[0].mxu1  ;;  %v651_v7 = vadd.f32 %v787_v1, %v650_v3  ;;  %v652_v8 = vpop.f32.mrb[1].mxu0 }
 0x17f   : > { %v659_v5 = vadd.f32 %v787_v1, %v658_v2  ;;  %v660_v6 = vpop.f32.mrb[1].mxu1  ;;  %v653_v11 = vpop.f32.mrb[2].mxu0 }
 0x180   : > { %v661_v9 = vpop.f32.mrb[2].mxu1  ;;  %v806_v14 = vpack.c.bf16 %v651_v7, %v651_v7  ;;  %v654_v15 = vadd.f32 %v787_v1, %v653_v11  ;;  %v655_v16 = vpop.f32.mrb[3].mxu0 }
 0x181   : > { %v808_v10 = vpack.c.bf16 %v659_v5, %v659_v5  ;;  %v662_v12 = vadd.f32 %v787_v1, %v661_v9  ;;  %v663_v13 = vpop.f32.mrb[3].mxu1 }
 0x182   : > { %682 = vst.msk [vmem:[%s931_s24] sm:$0xf] %vm681_vm14, %v806_v14  ;;  %v807_v18 = vpack.c.bf16 %v654_v15, %v654_v15 }
 0x183   : > { %684 = vst.msk [vmem:[%s931_s24 + $0x8] sm:$0xf] %vm681_vm14, %v808_v10  ;;  %v809_v17 = vpack.c.bf16 %v662_v12, %v662_v12 }
 0x184   : > { %683 = vst.msk [vmem:[%s931_s24 + $0x4] sm:$0xf] %vm681_vm14, %v807_v18 }
 0x185   : > { %685 = vst.msk [vmem:[%s931_s24 + $0xc] sm:$0xf] %vm681_vm14, %v809_v17 }
 0x186 PF: > { %s13_s12 = sadd.s32 1, %s887_s12  }
 0x187   : > { %p10_p4 = scmp.ge.s32.totalorder %s13_s12, 9  }
 0x189   :  { %12 = sbr.rel (!%p10_p4) target bundleno = 1 (0x1), region = 107 }
 0x190   :  { %708 = vsyncmov [#allocation4] }
 0x193   :  { %s709_s27 = vpop.sfrf %708 }
 0x194   :  { %p805_p5 = scmp.ne.s32.totalorder %s709_s27, 0 }
 0x196   :  { %713 = shalt.err (%p805_p5)  }

// kernel: ptychonn_forward.24
= control target key start
LH: loop header
LB: loop body
LE: loop exit
PB: predicated region body
PF: predicated region fallthrough
CT: control target
= control target key end

     0   :  { %s600_s12 = smov 0   ;;  %s670_s0 = inlined_call_operand.vmem [shape: bf16[96,16], index: 0, kind: input, shape index: {}]   ;;  %s671_s1 = inlined_call_operand.vmem [shape: bf16[144,32], index: 1, kind: input, shape index: {}]   ;;  %s672_s2 = inlined_call_operand.vmem [shape: f32[1,32], index: 2, kind: input, shape index: {}]   ;;  %s673_s3 = inlined_call_operand.vmem [shape: bf16[80,32], index: 3, kind: output, shape index: {}]  }
   0x1 LB: > { %s511_s13 = sadd.s32 4294967295, %s570_s12   ;;  %p514_p0 = scmp.ge.s32.totalorder %s570_s12, 1  ;;  %s570_s12 = sphi %s600_s12, %s13_s12  }
   0x2   : > { %p103_p1 = scmp.lt.s32.totalorder %s570_s12, 6 }
   0x4   : > { %p104_p2 = pnand %p514_p0, %p103_p1 }
   0x5   : > { %s515_s14 = sshll.u32 (!%p104_p2), %s511_s13, 1  ;;  %s517_s15 = sshll.u32 (!%p104_p2), %s511_s13, 4 }
   0x6   : > { %107 = sbr.rel (%p104_p2) target bundleno = 380 (0x17c), region = 28  ;;  %p121_p3 = scmp.lt.s32.totalorder (!%p104_p2), %s515_s14, 9 }
   0x7   : > { %s128_s16 = sshra.s32 (!%p104_p2), %s517_s15, 3 }
   0x8   : > { %s518_s17 = sshll.u32 (!%p104_p2), %s128_s16, 2 }
   0x9   : > { %s131_s20 = scalar_lea.vmem (!%p104_p2), %s670_s0, %s518_s17 }
   0xa   : > { %v164_v0 = vld [vmem:[%s131_s20] sm:$0xff] (!%p104_p2)  ;;  %v166_v1 = vld [vmem:[%s131_s20 + $0x8] sm:$0xff] (!%p104_p2) }
   0xb   : > { %165 = vst [vmem:[#allocation2] sm:$0xff] (!%p104_p2), %v164_v0  ;;  %167 = vst [vmem:[#allocation2 + $0x8] sm:$0xff] (!%p104_p2), %v166_v1 }
   0xd   : > { %s675_s14 = smov (!%p121_p3, %s515_s14), 9 }
   0xe   : > { %s516_s21 = sshll.u32 %s675_s14, 2 }
   0xf   : > { %s614_s24 = scalar_lea.vmem %s673_s3, %s516_s21 }
  0x10   : > { %175 = vsyncadd [#allocation4], 256 }
  0x11   : > { %566 = dma.done.wait [#allocation4], 256 }
  0x12   : > { %567 = vsyncadd [#allocation4], 4294967040  ;;  %v572_v2 = vmov 0   ;;  %vm207_vm0 = vcmask 1046528   ;;  %vm220_vm1 = vcmask 1044480   ;;  %vm181_vm3 = vcmask 130048  }
  0x13   : > { %399 = vmatprep.subr.bf16.mxu0 %v572_v2  ;;  %vm185_vm2 = vsmask.f32 7424  ;;  %v203_v3 = vld [vmem:[#allocation2] sm:$0xfe]  ;;  %v204_v4 = vld [vmem:[#allocation2 + $0x8] sm:$0x1] }
  0x14   : > { %v216_v5 = vld [vmem:[#allocation2] sm:$0xf8]  ;;  %vm231_vm4 = vsmask.f32 4352  ;;  %v208_v6 = vrot.slane %v203_v3, 1  ;;  %v209_v7 = vrot.slane %v204_v4, 1 }
  0x15   : > { %v217_v8 = vld [vmem:[#allocation2 + $0x8] sm:$0x7]  ;;  %v221_v9 = vrot.slane %v216_v5, 3  ;;  %v183_v10 = vld [vmem:[#allocation2] sm:$0xff]  ;;  %vm258_vm5 = vcmask 1043456   ;;  %s573_s27 = smov 32  }
  0x16   : > { %v222_v11 = vrot.slane %v217_v8, 3  ;;  %v184_v12 = vld [vmem:[#allocation2 + $0x8] sm:$0x1]  ;;  %v187_v13 = vshrl.u32 %v183_v10, 16  ;;  %v189_v14 = vshll.u32 %v183_v10, 16  ;;  %v553_v15 = vld [vmem:[%s671_s1] sm:$0xff]   ;;  %v210_v16 = vsel %vm207_vm0, %v208_v6, %v209_v7 }
  0x17   : > { %182 = vst.msk [vmem:[#allocation3] sm:$0xff] %vm181_vm3, %v183_v10  ;;  %v194_v17 = vshll.u32 %v184_v12, 16  ;;  %v229_v18 = vld [vmem:[#allocation2] sm:$0xf8]  ;;  %v230_v19 = vld [vmem:[#allocation2 + $0x8] sm:$0xf]  ;;  %211 = vrot.lane.b32.xlu0 %v210_v16, %s573_s27  ;;  %400 = vmatpush1.bf16.msra.mxu0 %v553_v15 }
  0x18   : > { %v223_v20 = vsel %vm220_vm1, %v221_v9, %v222_v11  ;;  %v191_v21 = vrot.slane %v189_v14, 1  ;;  %v233_v22 = vshrl.u32 %v229_v18, 16  ;;  %v236_v23 = vshll.u32 %v229_v18, 16  ;;  %v254_v24 = vld [vmem:[#allocation2] sm:$0xf0]  ;;  %v554_v25 = vld [vmem:[%s671_s1 + $0x8] sm:$0xff]   ;;  %401 = vmatprep.subr.bf16.mxu0 %v572_v2 }
  0x19   : > { %s574_s30 = smov 48   ;;  %v196_v26 = vrot.slane %v194_v17, 1  ;;  %v241_v27 = vshrl.u32 %v230_v19, 16  ;;  %v244_v28 = vshll.u32 %v230_v19, 16  ;;  %v255_v29 = vld [vmem:[#allocation2 + $0x8] sm:$0xf] }
  0x1a   : > { %224 = vrot.lane.b32.xlu1 %v223_v20, %s574_s30  ;;  %v259_v30 = vrot.slane %v254_v24, 4  ;;  %vm282_vm6 = vsmask.f32 1280  ;;  %v192_v31 = vor.u32 %v191_v21, %v187_v13  ;;  %v235_v32 = vrot.slane %v233_v22, 3  ;;  %v267_v35 = vld [vmem:[#allocation2] sm:$0xc0] }
  0x1b   : > { %v238_v33 = vrot.slane %v236_v23, 4  ;;  %v260_v34 = vrot.slane %v255_v29, 4  ;;  %v243_v36 = vrot.slane %v241_v27, 3  ;;  %v246_v37 = vrot.slane %v244_v28, 4  ;;  %v268_v38 = vld [vmem:[#allocation2 + $0x8] sm:$0x3f]  ;;  %402 = vmatpush1.bf16.msra.mxu0 %v554_v25 }
  0x1c   : > { %vm271_vm7 = vcmask 1041408   ;;  %v555_v39 = vld [vmem:[%s671_s1 + $0x10] sm:$0xff]   ;;  %v197_v40 = vsel %vm185_vm2, %v192_v31, %v196_v26  ;;  %v272_v42 = vrot.slane %v267_v35, 6  ;;  %v273_v43 = vrot.slane %v268_v38, 6  ;;  %v280_v44 = vld [vmem:[#allocation2] sm:$0xc0]  ;;  %403 = vmatprep.subr.bf16.mxu0 %v572_v2 }
  0x1d   : > { %v239_v41 = vor.u32 %v238_v33, %v235_v32  ;;  %v281_v45 = vld [vmem:[#allocation2 + $0x8] sm:$0x7f]  ;;  %s575_s6 = smov 16   ;;  %v247_v46 = vor.u32 %v246_v37, %v243_v36  ;;  %v284_v47 = vshrl.u32 %v280_v44, 16  ;;  %v287_v48 = vshll.u32 %v280_v44, 16  ;;  %s576_s7 = smov 64  }
  0x1e   : > { %198 = vrot.lane.b32.xlu0 %v197_v40, %s575_s6  ;;  %v292_v49 = vshrl.u32 %v281_v45, 16  ;;  %v261_v50 = vsel %vm258_vm5, %v259_v30, %v260_v34  ;;  %v295_v51 = vshll.u32 %v281_v45, 16  ;;  %v556_v57 = vld [vmem:[%s671_s1 + $0x18] sm:$0xff]   ;;  %s577_s10 = smov 80   ;;  %v274_v58 = vsel %vm271_vm7, %v272_v42, %v273_v43  ;;  %v557_v61 = vld [vmem:[%s671_s1 + $0x20] sm:$0xff]   ;;  %s578_s14 = smov 96  }
  0x1f   : > { %v248_v52 = vsel %vm231_vm4, %v239_v41, %v247_v46  ;;  %v286_v53 = vrot.slane %v284_v47, 6  ;;  %v289_v54 = vrot.slane %v287_v48, 7  ;;  %404 = vmatpush1.bf16.msra.mxu0 %v555_v39  ;;  %s579_s15 = smov 112   ;;  %v305_v63 = vld [vmem:[#allocation2] sm:$0x80]  ;;  %vm309_vm8 = vcmask 1040384  }
  0x20   : > { %v294_v55 = vrot.slane %v292_v49, 6  ;;  %249 = vrot.lane.b32.xlu1 %v248_v52, %s576_s7  ;;  %v297_v56 = vrot.slane %v295_v51, 7  ;;  %405 = vmatprep.subr.bf16.mxu0 %v572_v2  ;;  %v306_v0 = vld [vmem:[#allocation2 + $0x8] sm:$0x7f]  ;;  %v310_v1 = vrot.slane %v305_v63, 7  ;;  %v559_v6 = vld [vmem:[%s671_s1 + $0x30] sm:$0xff]  }
  0x21   : > { %v290_v59 = vor.u32 %v289_v54, %v286_v53  ;;  %v311_v3 = vrot.slane %v306_v0, 7  ;;  %v558_v4 = vld [vmem:[%s671_s1 + $0x28] sm:$0xff]   ;;  %v560_v7 = vld [vmem:[%s671_s1 + $0x38] sm:$0xff]   ;;  %v561_v9 = vld [vmem:[%s671_s1 + $0x40] sm:$0xff]   ;;  %vm201_vm9 = vcmask 261248   ;;  %vm214_vm10 = vcmask 392448  }
  0x22   : > { %262 = vrot.lane.b32.xlu0 %v261_v50, %s577_s10  ;;  %v298_v60 = vor.u32 %v297_v56, %v294_v55  ;;  %vm227_vm11 = vcmask 523648   ;;  %vm252_vm12 = vcmask 654848   ;;  %vm265_vm13 = vcmask 786048   ;;  %v519_v17 = vld [vmem:[%s672_s2] ss:$0 sm:$0xff] }
  0x23   : > { %406 = vmatpush1.bf16.msra.mxu0 %v556_v57  ;;  %v312_v5 = vsel %vm309_vm8, %v310_v1, %v311_v3  ;;  %vm278_vm14 = vcmask 917248   ;;  %vm303_vm15 = vcmask 1048448   ;;  %vm448_vm0 = vcmask 257024  }
  0x24   : > { %275 = vrot.lane.b32.xlu1 %v274_v58, %s578_s14  ;;  %v299_v62 = vsel %vm282_vm6, %v290_v59, %v298_v60  ;;  %407 = vmatprep.subr.bf16.mxu0 %v572_v2  ;;  %314 = vst.msk [vmem:[#allocation3 + $0x8] sm:$0xff] %vm181_vm3, %v312_v5 }
  0x26   : > { %300 = vrot.lane.b32.xlu0 %v299_v62, %s579_s15 }
  0x27   : > { %408 = vmatpush1.bf16.msra.mxu0 %v557_v61 }
  0x28   : > { %409 = vmatprep.subr.bf16.mxu0 %v572_v2 }
  0x2b   : > { %410 = vmatpush1.bf16.msra.mxu0 %v558_v4  ;;  %v316_v8 = vld [vmem:[#allocation3 + $0x8] sm:$0xff] }
  0x2c   : > { %411 = vmatprep.subr.bf16.mxu0 %v572_v2  ;;  %529 = vmatprep.mubr.msk.bf16.mxu0 %vm181_vm3, %v316_v8 }
  0x2f   : > { %412 = vmatpush1.bf16.msra.mxu0 %v559_v6 }
  0x30   : > { %413 = vmatprep.subr.bf16.mxu0 %v572_v2 }
  0x33   : > { %414 = vmatpush1.bf16.msra.mxu0 %v560_v7 }
  0x34   : > { %415 = vmatprep.subr.bf16.mxu0 %v572_v2 }
  0x37   : > { %416 = vmatpush1.bf16.msra.mxu0 %v561_v9 }
  0x89   : > { %v212_v10 = vpop.permute.xlu0 %211 }
  0x8c   : > { %v225_v11 = vpop.permute.xlu1 %224 }
  0x90   : > { %v199_v12 = vpop.permute.xlu0 %198 }
  0x91   : > { %202 = vst.msk [vmem:[#allocation3] sm:$0xff] %vm201_vm9, %v199_v12 }
  0x92   : > { %215 = vst.msk [vmem:[#allocation3] sm:$0xff] %vm214_vm10, %v212_v10  ;;  %v250_v13 = vpop.permute.xlu1 %249 }
  0x93   : > { %228 = vst.msk [vmem:[#allocation3] sm:$0xff] %vm227_vm11, %v225_v11 }
  0x94   : > { %v263_v14 = vpop.permute.xlu0 %262  ;;  %253 = vst.msk [vmem:[#allocation3] sm:$0xff] %vm252_vm12, %v250_v13 }
  0x95   : > { %266 = vst.msk [vmem:[#allocation3] sm:$0xff] %vm265_vm13, %v263_v14 }
  0x96   : > { %v276_v2 = vpop.permute.xlu1 %275 }
  0x97   : > { %279 = vst.msk [vmem:[#allocation3] sm:$0xff] %vm278_vm14, %v276_v2 }
  0x98   : > { %v301_v15 = vpop.permute.xlu0 %300 }
  0x99   : > { %304 = vst.msk [vmem:[#allocation3] sm:$0xff] %vm303_vm15, %v301_v15 }
  0xa0   : > { %v315_v16 = vld [vmem:[#allocation3] sm:$0xff] }
  0xa1   : > { %432 = vmatmul.mubr.bf16.vlgmr.msra.gmra.mrb[0].mxu0 %v315_v16 }
 0x174   : > { %v433_v18 = vpop.f32.mrb[0].mxu0 }
 0x175   : > { %v434_v19 = vadd.f32 %v519_v17, %v433_v18  ;;  %v435_v20 = vpop.f32.mrb[1].mxu0 }
 0x176   : > { %v436_v21 = vpop.f32.mrb[2].mxu0 }
 0x177   : > { %v535_v22 = vpack.c.bf16 %v434_v19, %v434_v19  ;;  %v437_v23 = vadd.f32 %v519_v17, %v436_v21  ;;  %v438_v24 = vpop.f32.mrb[3].mxu0 }
 0x179   : > { %449 = vst.msk [vmem:[%s614_s24] sm:$0xf] %vm448_vm0, %v535_v22  ;;  %v536_v25 = vpack.c.bf16 %v437_v23, %v437_v23 }
 0x17b   : > { %450 = vst.msk [vmem:[%s614_s24 + $0x4] sm:$0xf] %vm448_vm0, %v536_v25 }
 0x17c PF: > { %s13_s12 = sadd.s32 1, %s570_s12  }
 0x17d   : > { %p10_p4 = scmp.ge.s32.totalorder %s13_s12, 7  }
 0x17f   :  { %12 = sbr.rel (!%p10_p4) target bundleno = 1 (0x1), region = 98 }
 0x186   :  { %473 = vsyncmov [#allocation4] }
 0x189   :  { %s474_s27 = vpop.sfrf %473 }
 0x18a   :  { %p534_p5 = scmp.ne.s32.totalorder %s474_s27, 0 }
 0x18c   :  { %478 = shalt.err (%p534_p5)  }

// kernel: ptychonn_forward.25
= control target key start
LH: loop header
LB: loop body
LE: loop exit
PB: predicated region body
PF: predicated region fallthrough
CT: control target
= control target key end

     0   :  { %s753_s12 = smov 0   ;;  %s845_s0 = inlined_call_operand.vmem [shape: bf16[96,32], index: 0, kind: input, shape index: {}]   ;;  %s846_s1 = inlined_call_operand.vmem [shape: bf16[288,32], index: 1, kind: input, shape index: {}]   ;;  %s847_s2 = inlined_call_operand.vmem [shape: f32[1,32], index: 2, kind: input, shape index: {}]   ;;  %s848_s3 = inlined_call_operand.vmem [shape: bf16[80,32], index: 3, kind: output, shape index: {}]  }
   0x1 LB: > { %s619_s13 = sadd.s32 4294967295, %s726_s12   ;;  %p622_p0 = scmp.ge.s32.totalorder %s726_s12, 1  ;;  %s726_s12 = sphi %s753_s12, %s13_s12  }
   0x2   : > { %p103_p1 = scmp.lt.s32.totalorder %s726_s12, 6 }
   0x4   : > { %p104_p2 = pnand %p622_p0, %p103_p1 }
   0x5   : > { %s623_s14 = sshll.u32 (!%p104_p2), %s619_s13, 1  ;;  %s625_s15 = sshll.u32 (!%p104_p2), %s619_s13, 4 }
   0x6   : > { %107 = sbr.rel (%p104_p2) target bundleno = 382 (0x17e), region = 28  ;;  %p121_p3 = scmp.lt.s32.totalorder (!%p104_p2), %s623_s14, 9 }
   0x7   : > { %s128_s16 = sshra.s32 (!%p104_p2), %s625_s15, 3 }
   0x8   : > { %s626_s17 = sshll.u32 (!%p104_p2), %s128_s16, 2 }
   0x9   : > { %s131_s20 = scalar_lea.vmem (!%p104_p2), %s845_s0, %s626_s17 }
   0xa   : > { %v164_v0 = vld [vmem:[%s131_s20] sm:$0xff] (!%p104_p2)  ;;  %v166_v1 = vld [vmem:[%s131_s20 + $0x8] sm:$0xff] (!%p104_p2) }
   0xb   : > { %165 = vst [vmem:[#allocation2] sm:$0xff] (!%p104_p2), %v164_v0  ;;  %167 = vst [vmem:[#allocation2 + $0x8] sm:$0xff] (!%p104_p2), %v166_v1 }
   0xd   : > { %s850_s14 = smov (!%p121_p3, %s623_s14), 9 }
   0xe   : > { %s624_s21 = sshll.u32 %s850_s14, 2 }
   0xf   : > { %s767_s24 = scalar_lea.vmem %s848_s3, %s624_s21 }
  0x10   : > { %175 = vsyncadd [#allocation4], 256 }
  0x11   : > { %722 = dma.done.wait [#allocation4], 256 }
  0x12   : > { %723 = vsyncadd [#allocation4], 4294967040  ;;  %vm255_vm0 = vcmask 1043456   ;;  %vm267_vm1 = vcmask 1041408   ;;  %vm185_vm2 = vsmask.f32 7424 }
  0x13   : > { %vm207_vm3 = vcmask 1046528   ;;  %vm220_vm4 = vcmask 1044480   ;;  %vm181_vm5 = vcmask 261120   ;;  %v251_v2 = vld [vmem:[#allocation2] sm:$0xf0]  ;;  %s728_s29 = smov 32  }
  0x14   : > { %v252_v3 = vld [vmem:[#allocation2 + $0x8] sm:$0xf]  ;;  %v263_v4 = vld [vmem:[#allocation2] sm:$0xc0]  ;;  %v256_v5 = vrot.slane %v251_v2, 4  ;;  %s729_s5 = smov 64  }
  0x15   : > { %v257_v6 = vrot.slane %v252_v3, 4  ;;  %v264_v7 = vld [vmem:[#allocation2 + $0x8] sm:$0x3f]  ;;  %v268_v8 = vrot.slane %v263_v4, 6  ;;  %v183_v9 = vld [vmem:[#allocation2] sm:$0xff]  ;;  %vm303_vm7 = vcmask 1040384  }
  0x16   : > { %vm277_vm6 = vsmask.f32 1280  ;;  %v269_v10 = vrot.slane %v264_v7, 6  ;;  %v184_v11 = vld [vmem:[#allocation2 + $0x8] sm:$0x1]  ;;  %v187_v12 = vshrl.u32 %v183_v9, 16 }
  0x17   : > { %v189_v13 = vshll.u32 %v183_v9, 16  ;;  %v700_v14 = vld [vmem:[%s846_s1 + $0x40] sm:$0xff]   ;;  %182 = vst.msk [vmem:[#allocation3] sm:$0xff] %vm181_vm5, %v183_v9  ;;  %v258_v15 = vsel %vm255_vm0, %v256_v5, %v257_v6  ;;  %v194_v16 = vshll.u32 %v184_v11, 16  ;;  %v204_v18 = vld [vmem:[#allocation2 + $0x8] sm:$0x1] }
  0x18   : > { %v203_v17 = vld [vmem:[#allocation2] sm:$0xfe]  ;;  %259 = vrot.lane.b32.xlu0 %v258_v15, %s728_s29  ;;  %v270_v20 = vsel %vm267_vm1, %v268_v8, %v269_v10  ;;  %v209_v23 = vrot.slane %v204_v18, 1  ;;  %654 = vmatprep.subr.bf16.mxu0 %v700_v14  ;;  %v702_v25 = vld [vmem:[%s846_s1 + $0x48] sm:$0xff]   ;;  %v704_v48 = vld [vmem:[%s846_s1 + $0x50] sm:$0xff]   ;;  %s730_s13 = smov 96  }
  0x19   : > { %v701_v19 = vld [vmem:[%s846_s1] sm:$0xff]   ;;  %v191_v21 = vrot.slane %v189_v13, 1  ;;  %v208_v22 = vrot.slane %v203_v17, 1  ;;  %271 = vrot.lane.b32.xlu1 %v270_v20, %s729_s5  ;;  %v196_v26 = vrot.slane %v194_v16, 1  ;;  %v276_v27 = vld [vmem:[#allocation2 + $0x8] sm:$0x7f] }
  0x1a   : > { %v275_v24 = vld [vmem:[#allocation2] sm:$0xc0]  ;;  %655 = vmatpush3.bf16.msra.mxu0 %v701_v19  ;;  %v703_v30 = vld [vmem:[%s846_s1 + $0x8] sm:$0xff]   ;;  %v287_v33 = vshrl.u32 %v276_v27, 16  ;;  %v290_v34 = vshll.u32 %v276_v27, 16  ;;  %v705_v51 = vld [vmem:[%s846_s1 + $0x10] sm:$0xff]  }
  0x1b   : > { %v279_v28 = vshrl.u32 %v275_v24, 16  ;;  %v282_v29 = vshll.u32 %v275_v24, 16  ;;  %v192_v31 = vor.u32 %v191_v21, %v187_v12  ;;  %v210_v32 = vsel %vm207_vm3, %v208_v22, %v209_v23  ;;  %v216_v35 = vld [vmem:[#allocation2] sm:$0xf8]  ;;  %v217_v36 = vld [vmem:[#allocation2 + $0x8] sm:$0x7]  ;;  %656 = vmatprep.subr.bf16.mxu0 %v702_v25 }
  0x1c   : > { %v221_v39 = vrot.slane %v216_v35, 3  ;;  %v222_v40 = vrot.slane %v217_v36, 3  ;;  %v289_v42 = vrot.slane %v287_v33, 6  ;;  %v292_v43 = vrot.slane %v290_v34, 7  ;;  %v299_v45 = vld [vmem:[#allocation2] sm:$0x80] }
  0x1d   : > { %v281_v37 = vrot.slane %v279_v28, 6  ;;  %v284_v38 = vrot.slane %v282_v29, 7  ;;  %v197_v41 = vsel %vm185_vm2, %v192_v31, %v196_v26  ;;  %211 = vrot.lane.b32.xlu1 %v210_v32, %s729_s5  ;;  %v304_v49 = vrot.slane %v299_v45, 7  ;;  %v300_v52 = vld [vmem:[#allocation2 + $0x8] sm:$0x7f]  ;;  %v706_v53 = vld [vmem:[%s846_s1 + $0x58] sm:$0xff]  }
  0x1e   : > { %198 = vrot.lane.b32.xlu0 %v197_v41, %s728_s29  ;;  %v293_v46 = vor.u32 %v292_v43, %v289_v42  ;;  %v223_v47 = vsel %vm220_vm4, %v221_v39, %v222_v40  ;;  %657 = vmatpush3.bf16.msra.mxu0 %v703_v30  ;;  %vm231_vm8 = vsmask.f32 4352  ;;  %v305_v54 = vrot.slane %v300_v52, 7  ;;  %v707_v56 = vld [vmem:[%s846_s1 + $0x18] sm:$0xff]   ;;  %v229_v57 = vld [vmem:[#allocation2] sm:$0xf8] }
  0x1f   : > { %v285_v44 = vor.u32 %v284_v38, %v281_v37  ;;  %658 = vmatprep.subr.bf16.mxu0 %v704_v48  ;;  %v731_v55 = vmov 0.0   ;;  %v230_v58 = vld [vmem:[#allocation2 + $0x8] sm:$0xf]  ;;  %v233_v60 = vshrl.u32 %v229_v57, 16  ;;  %v236_v61 = vshll.u32 %v229_v57, 16  ;;  %v708_v63 = vld [vmem:[%s846_s1 + $0x60] sm:$0xff]  }
  0x20   : > { %679 = vmatprep.subr.bf16.mxu1 %v731_v55  ;;  %v306_v59 = vsel %vm303_vm7, %v304_v49, %v305_v54  ;;  %v241_v62 = vshrl.u32 %v230_v58, 16  ;;  %vm732_vm9 = vmmov 0   ;;  %v244_v0 = vshll.u32 %v230_v58, 16  ;;  %v709_v4 = vld [vmem:[%s846_s1 + $0x20] sm:$0xff]   ;;  %v710_v6 = vld [vmem:[%s846_s1 + $0x68] sm:$0xff]   ;;  %v712_v12 = vld [vmem:[%s846_s1 + $0x70] sm:$0xff]  }
  0x21   : > { %v294_v50 = vsel %vm277_vm6, %v285_v44, %v293_v46  ;;  %224 = vrot.lane.b32.xlu1 %v223_v47, %s730_s13  ;;  %683 = vmatprep.mubr.msk.bf16.mxu1 %vm732_vm9, %v731_v55  ;;  %308 = vst.msk [vmem:[#allocation3 + $0x10] sm:$0xff] %vm181_vm5, %v306_v59  ;;  %v235_v1 = vrot.slane %v233_v60, 3  ;;  %v238_v2 = vrot.slane %v236_v61, 4  ;;  %v711_v9 = vld [vmem:[%s846_s1 + $0x28] sm:$0xff]   ;;  %v714_v11 = vld [vmem:[%s846_s1 + $0x80] sm:$0xff]   ;;  %v713_v14 = vld [vmem:[%s846_s1 + $0x30] sm:$0xff]  }
  0x22   : > { %295 = vrot.lane.b32.xlu0 %v294_v50, %s730_s13  ;;  %659 = vmatpush3.bf16.msra.mxu0 %v705_v51  ;;  %v243_v3 = vrot.slane %v241_v62, 3  ;;  %v246_v5 = vrot.slane %v244_v0, 4  ;;  %v717_v13 = vld [vmem:[%s846_s1 + $0x88] sm:$0xff]   ;;  %v715_v15 = vld [vmem:[%s846_s1 + $0x78] sm:$0xff]   ;;  %vm201_vm10 = vcmask 523520   ;;  %vm214_vm11 = vcmask 785920  }
  0x23   : > { %660 = vmatprep.subr.bf16.mxu0 %v706_v53  ;;  %v239_v7 = vor.u32 %v238_v2, %v235_v1  ;;  %680 = vmatpush3.bf16.msra.mxu1 %v714_v11  ;;  %v716_v17 = vld [vmem:[%s846_s1 + $0x38] sm:$0xff]   ;;  %vm227_vm12 = vcmask 1048320   ;;  %v627_v32 = vld [vmem:[%s847_s2] ss:$0 sm:$0xff]  ;;  %vm556_vm13 = vcmask 257024  }
  0x24   : > { %v247_v8 = vor.u32 %v246_v5, %v243_v3  ;;  %681 = vmatprep.subr.bf16.mxu1 %v731_v55 }
  0x26   : > { %661 = vmatpush3.bf16.msra.mxu0 %v707_v56  ;;  %v248_v10 = vsel %vm231_vm8, %v239_v7, %v247_v8 }
  0x27   : > { %662 = vmatprep.subr.bf16.mxu0 %v708_v63  ;;  %250 = vst.msk [vmem:[#allocation3 + $0x8] sm:$0xff] %vm181_vm5, %v248_v10  ;;  %682 = vmatpush3.bf16.msra.mxu1 %v717_v13 }
  0x28   : > { %v311_v16 = vld [vmem:[#allocation3 + $0x10] sm:$0xff] }
  0x2a   : > { %663 = vmatpush3.bf16.msra.mxu0 %v709_v4  ;;  %684 = vmatmul.mubr.msk.bf16.vlgmr.msra.gmra.mrb[0].mxu1 %vm181_vm5, %v311_v16 }
  0x2b   : > { %664 = vmatprep.subr.bf16.mxu0 %v710_v6 }
  0x2e   : > { %665 = vmatpush3.bf16.msra.mxu0 %v711_v9 }
  0x2f   : > { %666 = vmatprep.subr.bf16.mxu0 %v712_v12 }
  0x32   : > { %667 = vmatpush3.bf16.msra.mxu0 %v713_v14 }
  0x33   : > { %668 = vmatprep.subr.bf16.mxu0 %v715_v15 }
  0x36   : > { %669 = vmatpush3.bf16.msra.mxu0 %v716_v17 }
  0x8a   : > { %v260_v18 = vpop.permute.xlu0 %259 }
  0x8b   : > { %262 = vst.msk [vmem:[#allocation3 + $0x8] sm:$0xff] %vm201_vm10, %v260_v18  ;;  %v272_v19 = vpop.permute.xlu1 %271 }
  0x8c   : > { %274 = vst.msk [vmem:[#allocation3 + $0x8] sm:$0xff] %vm214_vm11, %v272_v19 }
  0x8f   : > { %v212_v21 = vpop.permute.xlu1 %211 }
  0x90   : > { %v199_v20 = vpop.permute.xlu0 %198 }
  0x91   : > { %202 = vst.msk [vmem:[#allocation3] sm:$0xff] %vm201_vm10, %v199_v20 }
  0x92   : > { %215 = vst.msk [vmem:[#allocation3] sm:$0xff] %vm214_vm11, %v212_v21 }
  0x93   : > { %v225_v23 = vpop.permute.xlu1 %224 }
  0x94   : > { %v296_v22 = vpop.permute.xlu0 %295  ;;  %228 = vst.msk [vmem:[#allocation3] sm:$0xff] %vm227_vm12, %v225_v23 }
  0x95   : > { %298 = vst.msk [vmem:[#allocation3 + $0x8] sm:$0xff] %vm227_vm12, %v296_v22 }
  0x9b   : > { %v309_v25 = vld [vmem:[#allocation3] sm:$0xff] }
  0x9c   : > { %v310_v24 = vld [vmem:[#allocation3 + $0x8] sm:$0xff] }
  0x9d   : > { %498 = vmatprep.mubr.bf16.mxu0 %v310_v24 }
  0x9e   : > { %499 = vmatmul.mubr.bf16.vlgmr.msra.gmra.mrb[0].mxu0 %v309_v25 }
  0xfd   : > { %v541_v26 = vpop.f32.mrb[0].mxu1 }
  0xfe   : > { %v685_v27 = vpop.f32.mrb[1].mxu1 }
  0xff   : > { %v544_v28 = vpop.f32.mrb[2].mxu1 }
 0x100   : > { %v686_v29 = vpop.f32.mrb[3].mxu1 }
 0x171   : > { %v670_v30 = vpop.f32.mrb[0].mxu0 }
 0x172   : > { %v671_v31 = vpop.f32.mrb[1].mxu0 }
 0x173   : > { %v672_v33 = vadd.f32 %v671_v31, %v670_v30  ;;  %v673_v34 = vpop.f32.mrb[2].mxu0 }
 0x174   : > { %v674_v35 = vpop.f32.mrb[3].mxu0 }
 0x175   : > { %v501_v36 = vadd.f32 %v672_v33, %v627_v32  ;;  %v675_v37 = vadd.f32 %v674_v35, %v673_v34 }
 0x177   : > { %v542_v38 = vadd.f32 %v541_v26, %v501_v36  ;;  %v504_v39 = vadd.f32 %v675_v37, %v627_v32 }
 0x179   : > { %v652_v40 = vpack.c.bf16 %v542_v38, %v542_v38  ;;  %v545_v41 = vadd.f32 %v544_v28, %v504_v39 }
 0x17b   : > { %557 = vst.msk [vmem:[%s767_s24] sm:$0xf] %vm556_vm13, %v652_v40  ;;  %v653_v42 = vpack.c.bf16 %v545_v41, %v545_v41 }
 0x17d   : > { %558 = vst.msk [vmem:[%s767_s24 + $0x4] sm:$0xf] %vm556_vm13, %v653_v42 }
 0x17e PF: > { %s13_s12 = sadd.s32 1, %s726_s12  }
 0x17f   : > { %p10_p4 = scmp.ge.s32.totalorder %s13_s12, 7  }
 0x181   :  { %12 = sbr.rel (!%p10_p4) target bundleno = 1 (0x1), region = 98 }
 0x188   :  { %581 = vsyncmov [#allocation4] }
 0x18b   :  { %s582_s15 = vpop.sfrf %581 }
 0x18c   :  { %p651_p5 = scmp.ne.s32.totalorder %s582_s15, 0 }
 0x18e   :  { %586 = shalt.err (%p651_p5)  }

// kernel: ptychonn_forward.33
= control target key start
LH: loop header
LB: loop body
LE: loop exit
PB: predicated region body
PF: predicated region fallthrough
CT: control target
= control target key end

     0   :  { %s774_s12 = smov 0   ;;  %s893_s0 = inlined_call_operand.vmem [shape: bf16[48,32], index: 0, kind: input, shape index: {}]   ;;  %s894_s1 = inlined_call_operand.vmem [shape: bf16[288,32], index: 1, kind: input, shape index: {}]   ;;  %s895_s2 = inlined_call_operand.vmem [shape: f32[1,32], index: 2, kind: input, shape index: {}]   ;;  %s896_s3 = inlined_call_operand.vmem [shape: bf16[32,32], index: 3, kind: output, shape index: {}]  }
   0x1 LB: > { %s634_s13 = sadd.s32 4294967295, %s747_s12   ;;  %p637_p0 = scmp.ge.s32.totalorder %s747_s12, 1  ;;  %s747_s12 = sphi %s774_s12, %s13_s12  }
   0x2   : > { %p103_p1 = scmp.lt.s32.totalorder %s747_s12, 5 }
   0x4   : > { %p104_p2 = pnand %p637_p0, %p103_p1 }
   0x5   : > { %p119_p3 = scmp.lt.s32.totalorder (!%p104_p2), %s634_s13, 3  ;;  %s639_s14 = sshll.u32 (!%p104_p2), %s634_s13, 3 }
   0x6   : > { %107 = sbr.rel (%p104_p2) target bundleno = 387 (0x183), region = 28  ;;  %s125_s15 = sshra.s32 (!%p104_p2), %s639_s14, 3 }
   0x7   : > { %s640_s16 = sshll.u32 (!%p104_p2), %s125_s15, 2 }
   0x8   : > { %s128_s20 = scalar_lea.vmem (!%p104_p2), %s893_s0, %s640_s16 }
   0x9   : > { %v166_v0 = vld [vmem:[%s128_s20] sm:$0xff] (!%p104_p2)  ;;  %v641_v1 = vld [vmem:[%s128_s20 + $0x8] sm:$0xf] (!%p104_p2) }
   0xa   : > { %167 = vst [vmem:[#allocation2] sm:$0xff] (!%p104_p2), %v166_v0  ;;  %178 = vst [vmem:[#allocation2 + $0x8] sm:$0xf] (!%p104_p2), %v641_v1 }
   0xd   : > { %s906_s13 = smov (!%p119_p3, %s634_s13), 3 }
   0xe   : > { %s638_s17 = sshll.u32 %s906_s13, 2 }
   0xf   : > { %s788_s23 = scalar_lea.vmem %s896_s3, %s638_s17 }
  0x10   : > { %182 = vsyncadd [#allocation4], 192 }
  0x11   : > { %743 = dma.done.wait [#allocation4], 192 }
  0x12   : > { %744 = vsyncadd [#allocation4], 4294967104  ;;  %vm275_vm0 = vcmask 1040384   ;;  %vm276_vm1 = vcmask 1044484   ;;  %vm218_vm2 = vcmask 1042432   ;;  %vm219_vm3 = vcmask 1046532  }
  0x13   : > { %vm192_vm4 = vsmask.f32 3328  ;;  %vm790_vm5 = vmor %vm275_vm0, %vm276_vm1  ;;  %vm188_vm6 = vcmask 257024   ;;  %vm193_vm7 = vsmask.f32 7440  ;;  %vm234_vm8 = vcmask 1041408  }
  0x14   : > { %vm235_vm9 = vcmask 1045508   ;;  %v271_v3 = vld [vmem:[#allocation2] sm:$0x8]  ;;  %v272_v4 = vld [vmem:[#allocation2 + $0x4] sm:$0x7]  ;;  %s749_s24 = smov 64   ;;  %vm796_vm10 = vmor %vm218_vm2, %vm219_vm3 }
  0x15   : > { %v286_v5 = vld [vmem:[#allocation2 + $0x4] sm:$0xf]  ;;  %v644_v6 = vrot.slane %v271_v3, 11  ;;  %v280_v7 = vrot.slane %v272_v4, 7  ;;  %v214_v8 = vld [vmem:[#allocation2] sm:$0xe]  ;;  %vm813_vm11 = vmor %vm192_vm4, %vm193_vm7 }
  0x16   : > { %288 = vrot.lane.b32.xlu1 %v286_v5, %s749_s24  ;;  %v215_v9 = vld [vmem:[#allocation2 + $0x4] sm:$0x1]  ;;  %v642_v11 = vrot.slane %v214_v8, 9  ;;  %v312_v13 = vld [vmem:[#allocation2 + $0x4] sm:$0xe]  ;;  %s750_s25 = smov 32   ;;  %vm819_vm14 = vmor %vm234_vm8, %vm235_vm9 }
  0x17   : > { %v223_v12 = vrot.slane %v215_v9, 5  ;;  %v313_v14 = vld [vmem:[#allocation2 + $0x8] sm:$0x1]  ;;  %v281_v15 = vsel %vm790_vm5, %v644_v6, %v280_v7  ;;  %v645_v16 = vrot.slane %v312_v13, 9  ;;  %v190_v18 = vld [vmem:[#allocation2] sm:$0xf] }
  0x18   : > { %v318_v17 = vrot.slane %v313_v14, 5  ;;  %v191_v19 = vld [vmem:[#allocation2 + $0x4] sm:$0x1]  ;;  %282 = vrot.lane.b32.xlu0 %v281_v15, %s750_s25  ;;  %v196_v21 = vshrl.u32 %v190_v18, 16  ;;  %v199_v22 = vshll.u32 %v190_v18, 16  ;;  %v720_v47 = vld [vmem:[%s894_s1 + $0x48] sm:$0xff]  }
  0x19   : > { %v224_v20 = vsel %vm796_vm10, %v642_v11, %v223_v12  ;;  %v205_v23 = vshll.u32 %v191_v19, 16  ;;  %v292_v24 = vld [vmem:[#allocation2 + $0x4] sm:$0xf]  ;;  %v293_v27 = vld [vmem:[#allocation2 + $0x8] sm:$0x1]  ;;  %v722_v51 = vld [vmem:[%s894_s1 + $0x50] sm:$0xff]  }
  0x1a   : > { %v718_v25 = vld [vmem:[%s894_s1 + $0x40] sm:$0xff]   ;;  %v319_v26 = vsel %vm796_vm10, %v645_v16, %v318_v17  ;;  %225 = vrot.lane.b32.xlu1 %v224_v20, %s749_s24  ;;  %v295_v28 = vshrl.u32 %v292_v24, 16  ;;  %v298_v29 = vshll.u32 %v292_v24, 16  ;;  %v198_v32 = vrot.slane %v196_v21, 4  ;;  %v721_v49 = vld [vmem:[%s894_s1 + $0x8] sm:$0xff]   ;;  %v723_v54 = vld [vmem:[%s894_s1 + $0x10] sm:$0xff]  }
  0x1b   : > { %v230_v30 = vld [vmem:[#allocation2] sm:$0xc]  ;;  %321 = vst.msk [vmem:[#allocation3 + $0x8] sm:$0xf] %vm188_vm6, %v319_v26  ;;  %v201_v33 = vrot.slane %v199_v22, 5  ;;  %v207_v34 = vrot.slane %v205_v23, 5  ;;  %672 = vmatprep.subr.bf16.mxu0 %v718_v25 }
  0x1c   : > { %v304_v35 = vshll.u32 %v293_v27, 16  ;;  %v231_v36 = vld [vmem:[#allocation2 + $0x4] sm:$0x3]  ;;  %vm248_vm12 = vsmask.f32 1280  ;;  %v297_v37 = vrot.slane %v295_v28, 4 }
  0x1d   : > { %vm249_vm13 = vsmask.f32 5392  ;;  %v300_v38 = vrot.slane %v298_v29, 5  ;;  %v643_v40 = vrot.slane %v230_v30, 10  ;;  %v239_v41 = vrot.slane %v231_v36, 6  ;;  %v719_v44 = vld [vmem:[%s894_s1] sm:$0xff]  }
  0x1e   : > { %v202_v42 = vor.u32 %v201_v33, %v198_v32  ;;  %v306_v43 = vrot.slane %v304_v35, 5  ;;  %673 = vmatpush3.bf16.msra.mxu0 %v719_v44  ;;  %v246_v55 = vld [vmem:[#allocation2] sm:$0xc]  ;;  %v247_v56 = vld [vmem:[#allocation2 + $0x4] sm:$0x7]  ;;  %s751_s11 = smov 96   ;;  %vm250_vm0 = vmor %vm248_vm12, %vm249_vm13 }
  0x1f   : > { %v301_v45 = vor.u32 %v300_v38, %v297_v37  ;;  %674 = vmatprep.subr.bf16.mxu0 %v720_v47  ;;  %v240_v53 = vsel %vm819_vm14, %v643_v40, %v239_v41  ;;  %v252_v57 = vshrl.u32 %v246_v55, 16  ;;  %v255_v58 = vshll.u32 %v246_v55, 16  ;;  %v724_v61 = vld [vmem:[%s894_s1 + $0x58] sm:$0xff]   ;;  %v187_v6 = vld [vmem:[#allocation2] sm:$0xf]  ;;  %v728_v11 = vld [vmem:[%s894_s1 + $0x68] sm:$0xff]  }
  0x20   : > { %v203_v46 = vrot.slane %v202_v42, 4  ;;  %v261_v59 = vshrl.u32 %v247_v56, 16  ;;  %v264_v60 = vshll.u32 %v247_v56, 16  ;;  %v752_v62 = vmov 0.0   ;;  %v725_v5 = vld [vmem:[%s894_s1 + $0x18] sm:$0xff]   ;;  %v726_v7 = vld [vmem:[%s894_s1 + $0x60] sm:$0xff]  }
  0x21   : > { %v302_v48 = vrot.slane %v301_v45, 4  ;;  %697 = vmatprep.subr.bf16.mxu1 %v752_v62  ;;  %v254_v63 = vrot.slane %v252_v57, 6  ;;  %v257_v0 = vrot.slane %v255_v58, 7  ;;  %vm753_vm15 = vmmov 0   ;;  %189 = vst.msk [vmem:[#allocation3] sm:$0xf] %vm188_vm6, %v187_v6 }
  0x22   : > { %v208_v50 = vsel %vm813_vm11, %v203_v46, %v207_v34  ;;  %675 = vmatpush3.bf16.msra.mxu0 %v721_v49  ;;  %v263_v1 = vrot.slane %v261_v59, 6  ;;  %v266_v2 = vrot.slane %v264_v60, 7  ;;  %701 = vmatprep.mubr.msk.bf16.mxu1 %vm753_vm15, %v752_v62  ;;  %v727_v10 = vld [vmem:[%s894_s1 + $0x20] sm:$0xff]   ;;  %v729_v13 = vld [vmem:[%s894_s1 + $0x28] sm:$0xff]   ;;  %v730_v14 = vld [vmem:[%s894_s1 + $0x70] sm:$0xff]   ;;  %vm485_vm1 = vcmask 261120  }
  0x23   : > { %209 = vrot.lane.b32.xlu0 %v208_v50, %s750_s25  ;;  %v307_v52 = vsel %vm813_vm11, %v302_v48, %v306_v43  ;;  %676 = vmatprep.subr.bf16.mxu0 %v722_v51  ;;  %v258_v3 = vor.u32 %v257_v0, %v254_v63  ;;  %v732_v12 = vld [vmem:[%s894_s1 + $0x80] sm:$0xff]   ;;  %v737_v15 = vld [vmem:[%s894_s1 + $0x88] sm:$0xff]   ;;  %v738_v16 = vld [vmem:[#allocation3 + $0x8] ss:$0 sps:$4 sm:$0xff]   ;;  %vm212_vm2 = vcmask 519424   ;;  %vm228_vm3 = vcmask 781824  }
  0x24   : > { %308 = vrot.lane.b32.xlu1 %v307_v52, %s751_s11  ;;  %v267_v4 = vor.u32 %v266_v2, %v263_v1  ;;  %698 = vmatpush3.bf16.msra.mxu1 %v732_v12  ;;  %v731_v17 = vld [vmem:[%s894_s1 + $0x30] sm:$0xff]   ;;  %v733_v18 = vld [vmem:[%s894_s1 + $0x78] sm:$0xff]   ;;  %vm244_vm4 = vcmask 1044224   ;;  %v646_v35 = vld [vmem:[%s895_s2] ss:$0 sm:$0xff] }
  0x25   : > { %v259_v8 = vrot.slane %v258_v3, 4  ;;  %699 = vmatprep.subr.bf16.mxu1 %v752_v62  ;;  %v734_v19 = vld [vmem:[%s894_s1 + $0x38] sm:$0xff]  }
  0x26   : > { %677 = vmatpush3.bf16.msra.mxu0 %v723_v54 }
  0x27   : > { %241 = vrot.lane.b32.xlu0 %v240_v53, %s751_s11  ;;  %678 = vmatprep.subr.bf16.mxu0 %v724_v61  ;;  %v268_v9 = vsel %vm250_vm0, %v259_v8, %v267_v4 }
  0x28   : > { %270 = vst.msk [vmem:[#allocation3 + $0x4] sm:$0xf] %vm188_vm6, %v268_v9  ;;  %700 = vmatpush3.bf16.msra.mxu1 %v737_v15 }
  0x2a   : > { %679 = vmatpush3.bf16.msra.mxu0 %v725_v5 }
  0x2b   : > { %680 = vmatprep.subr.bf16.mxu0 %v726_v7  ;;  %702 = vmatmul.mubr.msk.bf16.vlgmr.msra.gmra.mrb[0].mxu1 %vm485_vm1, %v738_v16 }
  0x2e   : > { %681 = vmatpush3.bf16.msra.mxu0 %v727_v10 }
  0x2f   : > { %682 = vmatprep.subr.bf16.mxu0 %v728_v11 }
  0x32   : > { %683 = vmatpush3.bf16.msra.mxu0 %v729_v13 }
  0x33   : > { %684 = vmatprep.subr.bf16.mxu0 %v730_v14 }
  0x36   : > { %685 = vmatpush3.bf16.msra.mxu0 %v731_v17 }
  0x37   : > { %686 = vmatprep.subr.bf16.mxu0 %v733_v18 }
  0x3a   : > { %687 = vmatpush3.bf16.msra.mxu0 %v734_v19 }
  0x88   : > { %v289_v20 = vpop.permute.xlu1 %288 }
  0x8a   : > { %v283_v21 = vpop.permute.xlu0 %282 }
  0x8b   : > { %285 = vst.msk [vmem:[#allocation3 + $0x4] sm:$0xf] %vm212_vm2, %v283_v21 }
  0x8c   : > { %291 = vst.msk [vmem:[#allocation3 + $0x4] sm:$0xf] %vm228_vm3, %v289_v20  ;;  %v226_v22 = vpop.permute.xlu1 %225 }
  0x95   : > { %v210_v23 = vpop.permute.xlu0 %209 }
  0x96   : > { %213 = vst.msk [vmem:[#allocation3] sm:$0xf] %vm212_vm2, %v210_v23  ;;  %v309_v24 = vpop.permute.xlu1 %308 }
  0x97   : > { %229 = vst.msk [vmem:[#allocation3] sm:$0xf] %vm228_vm3, %v226_v22 }
  0x98   : > { %311 = vst.msk [vmem:[#allocation3 + $0x4] sm:$0xf] %vm244_vm4, %v309_v24 }
  0x99   : > { %v242_v25 = vpop.permute.xlu0 %241 }
  0x9a   : > { %245 = vst.msk [vmem:[#allocation3] sm:$0xf] %vm244_vm4, %v242_v25 }
  0xa1   : > { %v322_v26 = vld [vmem:[#allocation3] sm:$0xff] }
  0xa2   : > { %v647_v27 = vcombine.low %v322_v26, %v322_v26  ;;  %v648_v28 = vcombine.high %v322_v26, %v322_v26 }
  0xa4   : > { %521 = vmatprep.mubr.bf16.mxu0 %v648_v28 }
  0xa5   : > { %522 = vmatmul.mubr.bf16.vlgmr.msra.gmra.mrb[0].mxu0 %v647_v27 }
  0xfe   : > { %v563_v29 = vpop.f32.mrb[0].mxu1 }
  0xff   : > { %v703_v30 = vpop.f32.mrb[1].mxu1 }
 0x100   : > { %v566_v31 = vpop.f32.mrb[2].mxu1 }
 0x101   : > { %v704_v32 = vpop.f32.mrb[3].mxu1 }
 0x178   : > { %v688_v33 = vpop.f32.mrb[0].mxu0 }
 0x179   : > { %v689_v34 = vpop.f32.mrb[1].mxu0 }
 0x17a   : > { %v690_v36 = vadd.f32 %v689_v34, %v688_v33  ;;  %v691_v37 = vpop.f32.mrb[2].mxu0 }
 0x17b   : > { %v692_v38 = vpop.f32.mrb[3].mxu0 }
 0x17c   : > { %v524_v39 = vadd.f32 %v690_v36, %v646_v35 }
 0x17e   : > { %v564_v40 = vadd.f32 %v563_v29, %v524_v39 }
 0x180   : > { %v569_v41 = vpack.c.bf16 %v564_v40, %v564_v40 }
 0x182   : > { %570 = vst.msk [vmem:[%s788_s23] sm:$0xf] %vm188_vm6, %v569_v41 }
 0x183 PF: > { %s13_s12 = sadd.s32 1, %s747_s12  }
 0x184   : > { %p10_p4 = scmp.ge.s32.totalorder %s13_s12, 6  }
 0x186   :  { %12 = sbr.rel (!%p10_p4) target bundleno = 1 (0x1), region = 107 }
 0x18d   :  { %590 = vsyncmov [#allocation4] }
 0x190   :  { %s591_s14 = vpop.sfrf %590 }
 0x191   :  { %p671_p5 = scmp.ne.s32.totalorder %s591_s14, 0 }
 0x193   :  { %595 = shalt.err (%p671_p5)  }

// kernel: ptychonn_forward.28
= control target key start
LH: loop header
LB: loop body
LE: loop exit
PB: predicated region body
PF: predicated region fallthrough
CT: control target
= control target key end

     0   :  { %s753_s12 = smov 0   ;;  %s845_s0 = inlined_call_operand.vmem [shape: bf16[96,32], index: 0, kind: input, shape index: {}]   ;;  %s846_s1 = inlined_call_operand.vmem [shape: bf16[288,16], index: 1, kind: input, shape index: {}]   ;;  %s847_s2 = inlined_call_operand.vmem [shape: f32[1,16], index: 2, kind: input, shape index: {}]   ;;  %s848_s3 = inlined_call_operand.vmem [shape: bf16[80,16], index: 3, kind: output, shape index: {}]  }
   0x1 LB: > { %s619_s13 = sadd.s32 4294967295, %s726_s12   ;;  %p622_p0 = scmp.ge.s32.totalorder %s726_s12, 1  ;;  %s726_s12 = sphi %s753_s12, %s13_s12  }
   0x2   : > { %p103_p1 = scmp.lt.s32.totalorder %s726_s12, 6 }
   0x4   : > { %p104_p2 = pnand %p622_p0, %p103_p1 }
   0x5   : > { %s623_s14 = sshll.u32 (!%p104_p2), %s619_s13, 1  ;;  %s625_s15 = sshll.u32 (!%p104_p2), %s619_s13, 4 }
   0x6   : > { %107 = sbr.rel (%p104_p2) target bundleno = 382 (0x17e), region = 28  ;;  %p121_p3 = scmp.lt.s32.totalorder (!%p104_p2), %s623_s14, 9 }
   0x7   : > { %s128_s16 = sshra.s32 (!%p104_p2), %s625_s15, 3 }
   0x8   : > { %s626_s17 = sshll.u32 (!%p104_p2), %s128_s16, 2 }
   0x9   : > { %s131_s20 = scalar_lea.vmem (!%p104_p2), %s845_s0, %s626_s17 }
   0xa   : > { %v164_v0 = vld [vmem:[%s131_s20] sm:$0xff] (!%p104_p2)  ;;  %v166_v1 = vld [vmem:[%s131_s20 + $0x8] sm:$0xff] (!%p104_p2) }
   0xb   : > { %165 = vst [vmem:[#allocation2] sm:$0xff] (!%p104_p2), %v164_v0  ;;  %167 = vst [vmem:[#allocation2 + $0x8] sm:$0xff] (!%p104_p2), %v166_v1 }
   0xd   : > { %s850_s14 = smov (!%p121_p3, %s623_s14), 9 }
   0xe   : > { %s624_s21 = sshll.u32 %s850_s14, 2 }
   0xf   : > { %s767_s24 = scalar_lea.vmem %s848_s3, %s624_s21 }
  0x10   : > { %175 = vsyncadd [#allocation4], 256 }
  0x11   : > { %722 = dma.done.wait [#allocation4], 256 }
  0x12   : > { %723 = vsyncadd [#allocation4], 4294967040  ;;  %vm255_vm0 = vcmask 1043456   ;;  %vm267_vm1 = vcmask 1041408   ;;  %vm185_vm2 = vsmask.f32 7424 }
  0x13   : > { %vm207_vm3 = vcmask 1046528   ;;  %vm220_vm4 = vcmask 1044480   ;;  %vm181_vm5 = vcmask 261120   ;;  %v251_v2 = vld [vmem:[#allocation2] sm:$0xf0]  ;;  %s728_s29 = smov 32  }
  0x14   : > { %v252_v3 = vld [vmem:[#allocation2 + $0x8] sm:$0xf]  ;;  %v263_v4 = vld [vmem:[#allocation2] sm:$0xc0]  ;;  %v256_v5 = vrot.slane %v251_v2, 4  ;;  %s729_s5 = smov 64  }
  0x15   : > { %v257_v6 = vrot.slane %v252_v3, 4  ;;  %v264_v7 = vld [vmem:[#allocation2 + $0x8] sm:$0x3f]  ;;  %v268_v8 = vrot.slane %v263_v4, 6  ;;  %v183_v9 = vld [vmem:[#allocation2] sm:$0xff]  ;;  %vm303_vm7 = vcmask 1040384  }
  0x16   : > { %vm277_vm6 = vsmask.f32 1280  ;;  %v269_v10 = vrot.slane %v264_v7, 6  ;;  %v184_v11 = vld [vmem:[#allocation2 + $0x8] sm:$0x1]  ;;  %v187_v12 = vshrl.u32 %v183_v9, 16 }
  0x17   : > { %v189_v13 = vshll.u32 %v183_v9, 16  ;;  %v700_v14 = vld [vmem:[%s846_s1 + $0x40] sm:$0xff]   ;;  %182 = vst.msk [vmem:[#allocation3] sm:$0xff] %vm181_vm5, %v183_v9  ;;  %v258_v15 = vsel %vm255_vm0, %v256_v5, %v257_v6  ;;  %v194_v16 = vshll.u32 %v184_v11, 16  ;;  %v204_v18 = vld [vmem:[#allocation2 + $0x8] sm:$0x1] }
  0x18   : > { %v203_v17 = vld [vmem:[#allocation2] sm:$0xfe]  ;;  %259 = vrot.lane.b32.xlu0 %v258_v15, %s728_s29  ;;  %v270_v20 = vsel %vm267_vm1, %v268_v8, %v269_v10  ;;  %v209_v23 = vrot.slane %v204_v18, 1  ;;  %654 = vmatprep.subr.bf16.mxu0 %v700_v14  ;;  %v702_v25 = vld [vmem:[%s846_s1 + $0x48] sm:$0xff]   ;;  %v704_v48 = vld [vmem:[%s846_s1 + $0x50] sm:$0xff]   ;;  %s730_s13 = smov 96  }
  0x19   : > { %v701_v19 = vld [vmem:[%s846_s1] sm:$0xff]   ;;  %v191_v21 = vrot.slane %v189_v13, 1  ;;  %v208_v22 = vrot.slane %v203_v17, 1  ;;  %271 = vrot.lane.b32.xlu1 %v270_v20, %s729_s5  ;;  %v196_v26 = vrot.slane %v194_v16, 1  ;;  %v276_v27 = vld [vmem:[#allocation2 + $0x8] sm:$0x7f] }
  0x1a   : > { %v275_v24 = vld [vmem:[#allocation2] sm:$0xc0]  ;;  %655 = vmatpush3.bf16.msra.mxu0 %v701_v19  ;;  %v703_v30 = vld [vmem:[%s846_s1 + $0x8] sm:$0xff]   ;;  %v287_v33 = vshrl.u32 %v276_v27, 16  ;;  %v290_v34 = vshll.u32 %v276_v27, 16  ;;  %v705_v51 = vld [vmem:[%s846_s1 + $0x10] sm:$0xff]  }
  0x1b   : > { %v279_v28 = vshrl.u32 %v275_v24, 16  ;;  %v282_v29 = vshll.u32 %v275_v24, 16  ;;  %v192_v31 = vor.u32 %v191_v21, %v187_v12  ;;  %v210_v32 = vsel %vm207_vm3, %v208_v22, %v209_v23  ;;  %v216_v35 = vld [vmem:[#allocation2] sm:$0xf8]  ;;  %v217_v36 = vld [vmem:[#allocation2 + $0x8] sm:$0x7]  ;;  %656 = vmatprep.subr.bf16.mxu0 %v702_v25 }
  0x1c   : > { %v221_v39 = vrot.slane %v216_v35, 3  ;;  %v222_v40 = vrot.slane %v217_v36, 3  ;;  %v289_v42 = vrot.slane %v287_v33, 6  ;;  %v292_v43 = vrot.slane %v290_v34, 7  ;;  %v299_v45 = vld [vmem:[#allocation2] sm:$0x80] }
  0x1d   : > { %v281_v37 = vrot.slane %v279_v28, 6  ;;  %v284_v38 = vrot.slane %v282_v29, 7  ;;  %v197_v41 = vsel %vm185_vm2, %v192_v31, %v196_v26  ;;  %211 = vrot.lane.b32.xlu1 %v210_v32, %s729_s5  ;;  %v304_v49 = vrot.slane %v299_v45, 7  ;;  %v300_v52 = vld [vmem:[#allocation2 + $0x8] sm:$0x7f]  ;;  %v706_v53 = vld [vmem:[%s846_s1 + $0x58] sm:$0xff]  }
  0x1e   : > { %198 = vrot.lane.b32.xlu0 %v197_v41, %s728_s29  ;;  %v293_v46 = vor.u32 %v292_v43, %v289_v42  ;;  %v223_v47 = vsel %vm220_vm4, %v221_v39, %v222_v40  ;;  %657 = vmatpush3.bf16.msra.mxu0 %v703_v30  ;;  %vm231_vm8 = vsmask.f32 4352  ;;  %v305_v54 = vrot.slane %v300_v52, 7  ;;  %v707_v56 = vld [vmem:[%s846_s1 + $0x18] sm:$0xff]   ;;  %v229_v57 = vld [vmem:[#allocation2] sm:$0xf8] }
  0x1f   : > { %v285_v44 = vor.u32 %v284_v38, %v281_v37  ;;  %658 = vmatprep.subr.bf16.mxu0 %v704_v48  ;;  %v731_v55 = vmov 0.0   ;;  %v230_v58 = vld [vmem:[#allocation2 + $0x8] sm:$0xf]  ;;  %v233_v60 = vshrl.u32 %v229_v57, 16  ;;  %v236_v61 = vshll.u32 %v229_v57, 16  ;;  %v708_v63 = vld [vmem:[%s846_s1 + $0x60] sm:$0xff]  }
  0x20   : > { %679 = vmatprep.subr.bf16.mxu1 %v731_v55  ;;  %v306_v59 = vsel %vm303_vm7, %v304_v49, %v305_v54  ;;  %v241_v62 = vshrl.u32 %v230_v58, 16  ;;  %vm732_vm9 = vmmov 0   ;;  %v244_v0 = vshll.u32 %v230_v58, 16  ;;  %v709_v4 = vld [vmem:[%s846_s1 + $0x20] sm:$0xff]   ;;  %v710_v6 = vld [vmem:[%s846_s1 + $0x68] sm:$0xff]   ;;  %v712_v12 = vld [vmem:[%s846_s1 + $0x70] sm:$0xff]  }
  0x21   : > { %v294_v50 = vsel %vm277_vm6, %v285_v44, %v293_v46  ;;  %224 = vrot.lane.b32.xlu1 %v223_v47, %s730_s13  ;;  %683 = vmatprep.mubr.msk.bf16.mxu1 %vm732_vm9, %v731_v55  ;;  %308 = vst.msk [vmem:[#allocation3 + $0x10] sm:$0xff] %vm181_vm5, %v306_v59  ;;  %v235_v1 = vrot.slane %v233_v60, 3  ;;  %v238_v2 = vrot.slane %v236_v61, 4  ;;  %v711_v9 = vld [vmem:[%s846_s1 + $0x28] sm:$0xff]   ;;  %v714_v11 = vld [vmem:[%s846_s1 + $0x80] sm:$0xff]   ;;  %v713_v14 = vld [vmem:[%s846_s1 + $0x30] sm:$0xff]  }
  0x22   : > { %295 = vrot.lane.b32.xlu0 %v294_v50, %s730_s13  ;;  %659 = vmatpush3.bf16.msra.mxu0 %v705_v51  ;;  %v243_v3 = vrot.slane %v241_v62, 3  ;;  %v246_v5 = vrot.slane %v244_v0, 4  ;;  %v717_v13 = vld [vmem:[%s846_s1 + $0x88] sm:$0xff]   ;;  %v715_v15 = vld [vmem:[%s846_s1 + $0x78] sm:$0xff]   ;;  %vm201_vm10 = vcmask 523520   ;;  %vm214_vm11 = vcmask 785920  }
  0x23   : > { %660 = vmatprep.subr.bf16.mxu0 %v706_v53  ;;  %v239_v7 = vor.u32 %v238_v2, %v235_v1  ;;  %680 = vmatpush3.bf16.msra.mxu1 %v714_v11  ;;  %v716_v17 = vld [vmem:[%s846_s1 + $0x38] sm:$0xff]   ;;  %vm227_vm12 = vcmask 1048320   ;;  %v627_v32 = vld [vmem:[%s847_s2] ss:$0 sm:$0xff]  ;;  %vm556_vm13 = vcmask 125952  }
  0x24   : > { %v247_v8 = vor.u32 %v246_v5, %v243_v3  ;;  %681 = vmatprep.subr.bf16.mxu1 %v731_v55 }
  0x26   : > { %661 = vmatpush3.bf16.msra.mxu0 %v707_v56  ;;  %v248_v10 = vsel %vm231_vm8, %v239_v7, %v247_v8 }
  0x27   : > { %662 = vmatprep.subr.bf16.mxu0 %v708_v63  ;;  %250 = vst.msk [vmem:[#allocation3 + $0x8] sm:$0xff] %vm181_vm5, %v248_v10  ;;  %682 = vmatpush3.bf16.msra.mxu1 %v717_v13 }
  0x28   : > { %v311_v16 = vld [vmem:[#allocation3 + $0x10] sm:$0xff] }
  0x2a   : > { %663 = vmatpush3.bf16.msra.mxu0 %v709_v4  ;;  %684 = vmatmul.mubr.msk.bf16.vlgmr.msra.gmra.mrb[0].mxu1 %vm181_vm5, %v311_v16 }
  0x2b   : > { %664 = vmatprep.subr.bf16.mxu0 %v710_v6 }
  0x2e   : > { %665 = vmatpush3.bf16.msra.mxu0 %v711_v9 }
  0x2f   : > { %666 = vmatprep.subr.bf16.mxu0 %v712_v12 }
  0x32   : > { %667 = vmatpush3.bf16.msra.mxu0 %v713_v14 }
  0x33   : > { %668 = vmatprep.subr.bf16.mxu0 %v715_v15 }
  0x36   : > { %669 = vmatpush3.bf16.msra.mxu0 %v716_v17 }
  0x8a   : > { %v260_v18 = vpop.permute.xlu0 %259 }
  0x8b   : > { %262 = vst.msk [vmem:[#allocation3 + $0x8] sm:$0xff] %vm201_vm10, %v260_v18  ;;  %v272_v19 = vpop.permute.xlu1 %271 }
  0x8c   : > { %274 = vst.msk [vmem:[#allocation3 + $0x8] sm:$0xff] %vm214_vm11, %v272_v19 }
  0x8f   : > { %v212_v21 = vpop.permute.xlu1 %211 }
  0x90   : > { %v199_v20 = vpop.permute.xlu0 %198 }
  0x91   : > { %202 = vst.msk [vmem:[#allocation3] sm:$0xff] %vm201_vm10, %v199_v20 }
  0x92   : > { %215 = vst.msk [vmem:[#allocation3] sm:$0xff] %vm214_vm11, %v212_v21 }
  0x93   : > { %v225_v23 = vpop.permute.xlu1 %224 }
  0x94   : > { %v296_v22 = vpop.permute.xlu0 %295  ;;  %228 = vst.msk [vmem:[#allocation3] sm:$0xff] %vm227_vm12, %v225_v23 }
  0x95   : > { %298 = vst.msk [vmem:[#allocation3 + $0x8] sm:$0xff] %vm227_vm12, %v296_v22 }
  0x9b   : > { %v309_v25 = vld [vmem:[#allocation3] sm:$0xff] }
  0x9c   : > { %v310_v24 = vld [vmem:[#allocation3 + $0x8] sm:$0xff] }
  0x9d   : > { %498 = vmatprep.mubr.bf16.mxu0 %v310_v24 }
  0x9e   : > { %499 = vmatmul.mubr.bf16.vlgmr.msra.gmra.mrb[0].mxu0 %v309_v25 }
  0xfd   : > { %v541_v26 = vpop.f32.mrb[0].mxu1 }
  0xfe   : > { %v685_v27 = vpop.f32.mrb[1].mxu1 }
  0xff   : > { %v544_v28 = vpop.f32.mrb[2].mxu1 }
 0x100   : > { %v686_v29 = vpop.f32.mrb[3].mxu1 }
 0x171   : > { %v670_v30 = vpop.f32.mrb[0].mxu0 }
 0x172   : > { %v671_v31 = vpop.f32.mrb[1].mxu0 }
 0x173   : > { %v672_v33 = vadd.f32 %v671_v31, %v670_v30  ;;  %v673_v34 = vpop.f32.mrb[2].mxu0 }
 0x174   : > { %v674_v35 = vpop.f32.mrb[3].mxu0 }
 0x175   : > { %v501_v36 = vadd.f32 %v672_v33, %v627_v32  ;;  %v675_v37 = vadd.f32 %v674_v35, %v673_v34 }
 0x177   : > { %v542_v38 = vadd.f32 %v541_v26, %v501_v36  ;;  %v504_v39 = vadd.f32 %v675_v37, %v627_v32 }
 0x179   : > { %v652_v40 = vpack.c.bf16 %v542_v38, %v542_v38  ;;  %v545_v41 = vadd.f32 %v544_v28, %v504_v39 }
 0x17b   : > { %557 = vst.msk [vmem:[%s767_s24] sm:$0xf] %vm556_vm13, %v652_v40  ;;  %v653_v42 = vpack.c.bf16 %v545_v41, %v545_v41 }
 0x17d   : > { %558 = vst.msk [vmem:[%s767_s24 + $0x4] sm:$0xf] %vm556_vm13, %v653_v42 }
 0x17e PF: > { %s13_s12 = sadd.s32 1, %s726_s12  }
 0x17f   : > { %p10_p4 = scmp.ge.s32.totalorder %s13_s12, 7  }
 0x181   :  { %12 = sbr.rel (!%p10_p4) target bundleno = 1 (0x1), region = 98 }
 0x188   :  { %581 = vsyncmov [#allocation4] }
 0x18b   :  { %s582_s15 = vpop.sfrf %581 }
 0x18c   :  { %p651_p5 = scmp.ne.s32.totalorder %s582_s15, 0 }
 0x18e   :  { %586 = shalt.err (%p651_p5)  }

// kernel: ptychonn_forward.36
= control target key start
LH: loop header
LB: loop body
LE: loop exit
PB: predicated region body
PF: predicated region fallthrough
CT: control target
= control target key end

     0   :  { %s600_s12 = smov 0   ;;  %s670_s0 = inlined_call_operand.vmem [shape: bf16[96,16], index: 0, kind: input, shape index: {}]   ;;  %s671_s1 = inlined_call_operand.vmem [shape: bf16[144,16], index: 1, kind: input, shape index: {}]   ;;  %s672_s2 = inlined_call_operand.vmem [shape: f32[1,16], index: 2, kind: input, shape index: {}]   ;;  %s673_s3 = inlined_call_operand.vmem [shape: bf16[80,16], index: 3, kind: output, shape index: {}]  }
   0x1 LB: > { %s511_s13 = sadd.s32 4294967295, %s570_s12   ;;  %p514_p0 = scmp.ge.s32.totalorder %s570_s12, 1  ;;  %s570_s12 = sphi %s600_s12, %s13_s12  }
   0x2   : > { %p103_p1 = scmp.lt.s32.totalorder %s570_s12, 6 }
   0x4   : > { %p104_p2 = pnand %p514_p0, %p103_p1 }
   0x5   : > { %s515_s14 = sshll.u32 (!%p104_p2), %s511_s13, 1  ;;  %s517_s15 = sshll.u32 (!%p104_p2), %s511_s13, 4 }
   0x6   : > { %107 = sbr.rel (%p104_p2) target bundleno = 380 (0x17c), region = 28  ;;  %p121_p3 = scmp.lt.s32.totalorder (!%p104_p2), %s515_s14, 9 }
   0x7   : > { %s128_s16 = sshra.s32 (!%p104_p2), %s517_s15, 3 }
   0x8   : > { %s518_s17 = sshll.u32 (!%p104_p2), %s128_s16, 2 }
   0x9   : > { %s131_s20 = scalar_lea.vmem (!%p104_p2), %s670_s0, %s518_s17 }
   0xa   : > { %v164_v0 = vld [vmem:[%s131_s20] sm:$0xff] (!%p104_p2)  ;;  %v166_v1 = vld [vmem:[%s131_s20 + $0x8] sm:$0xff] (!%p104_p2) }
   0xb   : > { %165 = vst [vmem:[#allocation2] sm:$0xff] (!%p104_p2), %v164_v0  ;;  %167 = vst [vmem:[#allocation2 + $0x8] sm:$0xff] (!%p104_p2), %v166_v1 }
   0xd   : > { %s675_s14 = smov (!%p121_p3, %s515_s14), 9 }
   0xe   : > { %s516_s21 = sshll.u32 %s675_s14, 2 }
   0xf   : > { %s614_s24 = scalar_lea.vmem %s673_s3, %s516_s21 }
  0x10   : > { %175 = vsyncadd [#allocation4], 256 }
  0x11   : > { %566 = dma.done.wait [#allocation4], 256 }
  0x12   : > { %567 = vsyncadd [#allocation4], 4294967040  ;;  %v572_v2 = vmov 0   ;;  %vm207_vm0 = vcmask 1046528   ;;  %vm220_vm1 = vcmask 1044480   ;;  %vm181_vm3 = vcmask 130048  }
  0x13   : > { %399 = vmatprep.subr.bf16.mxu0 %v572_v2  ;;  %vm185_vm2 = vsmask.f32 7424  ;;  %v203_v3 = vld [vmem:[#allocation2] sm:$0xfe]  ;;  %v204_v4 = vld [vmem:[#allocation2 + $0x8] sm:$0x1] }
  0x14   : > { %v216_v5 = vld [vmem:[#allocation2] sm:$0xf8]  ;;  %vm231_vm4 = vsmask.f32 4352  ;;  %v208_v6 = vrot.slane %v203_v3, 1  ;;  %v209_v7 = vrot.slane %v204_v4, 1 }
  0x15   : > { %v217_v8 = vld [vmem:[#allocation2 + $0x8] sm:$0x7]  ;;  %v221_v9 = vrot.slane %v216_v5, 3  ;;  %v183_v10 = vld [vmem:[#allocation2] sm:$0xff]  ;;  %vm258_vm5 = vcmask 1043456   ;;  %s573_s27 = smov 32  }
  0x16   : > { %v222_v11 = vrot.slane %v217_v8, 3  ;;  %v184_v12 = vld [vmem:[#allocation2 + $0x8] sm:$0x1]  ;;  %v187_v13 = vshrl.u32 %v183_v10, 16  ;;  %v189_v14 = vshll.u32 %v183_v10, 16  ;;  %v553_v15 = vld [vmem:[%s671_s1] sm:$0xff]   ;;  %v210_v16 = vsel %vm207_vm0, %v208_v6, %v209_v7 }
  0x17   : > { %182 = vst.msk [vmem:[#allocation3] sm:$0xff] %vm181_vm3, %v183_v10  ;;  %v194_v17 = vshll.u32 %v184_v12, 16  ;;  %v229_v18 = vld [vmem:[#allocation2] sm:$0xf8]  ;;  %v230_v19 = vld [vmem:[#allocation2 + $0x8] sm:$0xf]  ;;  %211 = vrot.lane.b32.xlu0 %v210_v16, %s573_s27  ;;  %400 = vmatpush1.bf16.msra.mxu0 %v553_v15 }
  0x18   : > { %v223_v20 = vsel %vm220_vm1, %v221_v9, %v222_v11  ;;  %v191_v21 = vrot.slane %v189_v14, 1  ;;  %v233_v22 = vshrl.u32 %v229_v18, 16  ;;  %v236_v23 = vshll.u32 %v229_v18, 16  ;;  %v254_v24 = vld [vmem:[#allocation2] sm:$0xf0]  ;;  %v554_v25 = vld [vmem:[%s671_s1 + $0x8] sm:$0xff]   ;;  %401 = vmatprep.subr.bf16.mxu0 %v572_v2 }
  0x19   : > { %s574_s30 = smov 48   ;;  %v196_v26 = vrot.slane %v194_v17, 1  ;;  %v241_v27 = vshrl.u32 %v230_v19, 16  ;;  %v244_v28 = vshll.u32 %v230_v19, 16  ;;  %v255_v29 = vld [vmem:[#allocation2 + $0x8] sm:$0xf] }
  0x1a   : > { %224 = vrot.lane.b32.xlu1 %v223_v20, %s574_s30  ;;  %v259_v30 = vrot.slane %v254_v24, 4  ;;  %vm282_vm6 = vsmask.f32 1280  ;;  %v192_v31 = vor.u32 %v191_v21, %v187_v13  ;;  %v235_v32 = vrot.slane %v233_v22, 3  ;;  %v267_v35 = vld [vmem:[#allocation2] sm:$0xc0] }
  0x1b   : > { %v238_v33 = vrot.slane %v236_v23, 4  ;;  %v260_v34 = vrot.slane %v255_v29, 4  ;;  %v243_v36 = vrot.slane %v241_v27, 3  ;;  %v246_v37 = vrot.slane %v244_v28, 4  ;;  %v268_v38 = vld [vmem:[#allocation2 + $0x8] sm:$0x3f]  ;;  %402 = vmatpush1.bf16.msra.mxu0 %v554_v25 }
  0x1c   : > { %vm271_vm7 = vcmask 1041408   ;;  %v555_v39 = vld [vmem:[%s671_s1 + $0x10] sm:$0xff]   ;;  %v197_v40 = vsel %vm185_vm2, %v192_v31, %v196_v26  ;;  %v272_v42 = vrot.slane %v267_v35, 6  ;;  %v273_v43 = vrot.slane %v268_v38, 6  ;;  %v280_v44 = vld [vmem:[#allocation2] sm:$0xc0]  ;;  %403 = vmatprep.subr.bf16.mxu0 %v572_v2 }
  0x1d   : > { %v239_v41 = vor.u32 %v238_v33, %v235_v32  ;;  %v281_v45 = vld [vmem:[#allocation2 + $0x8] sm:$0x7f]  ;;  %s575_s6 = smov 16   ;;  %v247_v46 = vor.u32 %v246_v37, %v243_v36  ;;  %v284_v47 = vshrl.u32 %v280_v44, 16  ;;  %v287_v48 = vshll.u32 %v280_v44, 16  ;;  %s576_s7 = smov 64  }
  0x1e   : > { %198 = vrot.lane.b32.xlu0 %v197_v40, %s575_s6  ;;  %v292_v49 = vshrl.u32 %v281_v45, 16  ;;  %v261_v50 = vsel %vm258_vm5, %v259_v30, %v260_v34  ;;  %v295_v51 = vshll.u32 %v281_v45, 16  ;;  %v556_v57 = vld [vmem:[%s671_s1 + $0x18] sm:$0xff]   ;;  %s577_s10 = smov 80   ;;  %v274_v58 = vsel %vm271_vm7, %v272_v42, %v273_v43  ;;  %v557_v61 = vld [vmem:[%s671_s1 + $0x20] sm:$0xff]   ;;  %s578_s14 = smov 96  }
  0x1f   : > { %v248_v52 = vsel %vm231_vm4, %v239_v41, %v247_v46  ;;  %v286_v53 = vrot.slane %v284_v47, 6  ;;  %v289_v54 = vrot.slane %v287_v48, 7  ;;  %404 = vmatpush1.bf16.msra.mxu0 %v555_v39  ;;  %s579_s15 = smov 112   ;;  %v305_v63 = vld [vmem:[#allocation2] sm:$0x80]  ;;  %vm309_vm8 = vcmask 1040384  }
  0x20   : > { %v294_v55 = vrot.slane %v292_v49, 6  ;;  %249 = vrot.lane.b32.xlu1 %v248_v52, %s576_s7  ;;  %v297_v56 = vrot.slane %v295_v51, 7  ;;  %405 = vmatprep.subr.bf16.mxu0 %v572_v2  ;;  %v306_v0 = vld [vmem:[#allocation2 + $0x8] sm:$0x7f]  ;;  %v310_v1 = vrot.slane %v305_v63, 7  ;;  %v559_v6 = vld [vmem:[%s671_s1 + $0x30] sm:$0xff]  }
  0x21   : > { %v290_v59 = vor.u32 %v289_v54, %v286_v53  ;;  %v311_v3 = vrot.slane %v306_v0, 7  ;;  %v558_v4 = vld [vmem:[%s671_s1 + $0x28] sm:$0xff]   ;;  %v560_v7 = vld [vmem:[%s671_s1 + $0x38] sm:$0xff]   ;;  %v561_v9 = vld [vmem:[%s671_s1 + $0x40] sm:$0xff]   ;;  %vm201_vm9 = vcmask 261248   ;;  %vm214_vm10 = vcmask 392448  }
  0x22   : > { %262 = vrot.lane.b32.xlu0 %v261_v50, %s577_s10  ;;  %v298_v60 = vor.u32 %v297_v56, %v294_v55  ;;  %vm227_vm11 = vcmask 523648   ;;  %vm252_vm12 = vcmask 654848   ;;  %vm265_vm13 = vcmask 786048   ;;  %v519_v17 = vld [vmem:[%s672_s2] ss:$0 sm:$0xff] }
  0x23   : > { %406 = vmatpush1.bf16.msra.mxu0 %v556_v57  ;;  %v312_v5 = vsel %vm309_vm8, %v310_v1, %v311_v3  ;;  %vm278_vm14 = vcmask 917248   ;;  %vm303_vm15 = vcmask 1048448   ;;  %vm448_vm0 = vcmask 125952  }
  0x24   : > { %275 = vrot.lane.b32.xlu1 %v274_v58, %s578_s14  ;;  %v299_v62 = vsel %vm282_vm6, %v290_v59, %v298_v60  ;;  %407 = vmatprep.subr.bf16.mxu0 %v572_v2  ;;  %314 = vst.msk [vmem:[#allocation3 + $0x8] sm:$0xff] %vm181_vm3, %v312_v5 }
  0x26   : > { %300 = vrot.lane.b32.xlu0 %v299_v62, %s579_s15 }
  0x27   : > { %408 = vmatpush1.bf16.msra.mxu0 %v557_v61 }
  0x28   : > { %409 = vmatprep.subr.bf16.mxu0 %v572_v2 }
  0x2b   : > { %410 = vmatpush1.bf16.msra.mxu0 %v558_v4  ;;  %v316_v8 = vld [vmem:[#allocation3 + $0x8] sm:$0xff] }
  0x2c   : > { %411 = vmatprep.subr.bf16.mxu0 %v572_v2  ;;  %529 = vmatprep.mubr.msk.bf16.mxu0 %vm181_vm3, %v316_v8 }
  0x2f   : > { %412 = vmatpush1.bf16.msra.mxu0 %v559_v6 }
  0x30   : > { %413 = vmatprep.subr.bf16.mxu0 %v572_v2 }
  0x33   : > { %414 = vmatpush1.bf16.msra.mxu0 %v560_v7 }
  0x34   : > { %415 = vmatprep.subr.bf16.mxu0 %v572_v2 }
  0x37   : > { %416 = vmatpush1.bf16.msra.mxu0 %v561_v9 }
  0x89   : > { %v212_v10 = vpop.permute.xlu0 %211 }
  0x8c   : > { %v225_v11 = vpop.permute.xlu1 %224 }
  0x90   : > { %v199_v12 = vpop.permute.xlu0 %198 }
  0x91   : > { %202 = vst.msk [vmem:[#allocation3] sm:$0xff] %vm201_vm9, %v199_v12 }
  0x92   : > { %215 = vst.msk [vmem:[#allocation3] sm:$0xff] %vm214_vm10, %v212_v10  ;;  %v250_v13 = vpop.permute.xlu1 %249 }
  0x93   : > { %228 = vst.msk [vmem:[#allocation3] sm:$0xff] %vm227_vm11, %v225_v11 }
  0x94   : > { %v263_v14 = vpop.permute.xlu0 %262  ;;  %253 = vst.msk [vmem:[#allocation3] sm:$0xff] %vm252_vm12, %v250_v13 }
  0x95   : > { %266 = vst.msk [vmem:[#allocation3] sm:$0xff] %vm265_vm13, %v263_v14 }
  0x96   : > { %v276_v2 = vpop.permute.xlu1 %275 }
  0x97   : > { %279 = vst.msk [vmem:[#allocation3] sm:$0xff] %vm278_vm14, %v276_v2 }
  0x98   : > { %v301_v15 = vpop.permute.xlu0 %300 }
  0x99   : > { %304 = vst.msk [vmem:[#allocation3] sm:$0xff] %vm303_vm15, %v301_v15 }
  0xa0   : > { %v315_v16 = vld [vmem:[#allocation3] sm:$0xff] }
  0xa1   : > { %432 = vmatmul.mubr.bf16.vlgmr.msra.gmra.mrb[0].mxu0 %v315_v16 }
 0x174   : > { %v433_v18 = vpop.f32.mrb[0].mxu0 }
 0x175   : > { %v434_v19 = vadd.f32 %v519_v17, %v433_v18  ;;  %v435_v20 = vpop.f32.mrb[1].mxu0 }
 0x176   : > { %v436_v21 = vpop.f32.mrb[2].mxu0 }
 0x177   : > { %v535_v22 = vpack.c.bf16 %v434_v19, %v434_v19  ;;  %v437_v23 = vadd.f32 %v519_v17, %v436_v21  ;;  %v438_v24 = vpop.f32.mrb[3].mxu0 }
 0x179   : > { %449 = vst.msk [vmem:[%s614_s24] sm:$0xf] %vm448_vm0, %v535_v22  ;;  %v536_v25 = vpack.c.bf16 %v437_v23, %v437_v23 }
 0x17b   : > { %450 = vst.msk [vmem:[%s614_s24 + $0x4] sm:$0xf] %vm448_vm0, %v536_v25 }
 0x17c PF: > { %s13_s12 = sadd.s32 1, %s570_s12  }
 0x17d   : > { %p10_p4 = scmp.ge.s32.totalorder %s13_s12, 7  }
 0x17f   :  { %12 = sbr.rel (!%p10_p4) target bundleno = 1 (0x1), region = 98 }
 0x186   :  { %473 = vsyncmov [#allocation4] }
 0x189   :  { %s474_s27 = vpop.sfrf %473 }
 0x18a   :  { %p534_p5 = scmp.ne.s32.totalorder %s474_s27, 0 }
 0x18c   :  { %478 = shalt.err (%p534_p5)  }

// kernel: ptychonn_forward.39
= control target key start
LH: loop header
LB: loop body
LE: loop exit
PB: predicated region body
PF: predicated region fallthrough
CT: control target
= control target key end

     0   :  { %s2021_s14 = smov 0   ;;  %s2923_s0 = inlined_call_operand.vmem [shape: bf16[744,16], index: 0, kind: input, shape index: {}]   ;;  %s2924_s1 = inlined_call_operand.vmem [shape: bf16[144,1], index: 1, kind: input, shape index: {}]   ;;  %s2925_s2 = inlined_call_operand.<no memory space> [shape: f32[1,1], index: 2, kind: input, shape index: {}]   ;;  %s2926_s3 = inlined_call_operand.vmem [shape: f32[704,1], index: 3, kind: output, shape index: {}]  }
   0x1   :  { %v8_v0 = vstv %s2925_s2 }
   0x2   :  { %9 = vst [vmem:[#allocation5] sm:$0x1] %v8_v0 }
   0x3 LB: > { %s1726_s15 = sadd.s32 4294967295, %s1988_s14   ;;  %p1729_p0 = scmp.ge.s32.totalorder %s1988_s14, 1  ;;  %s1988_s14 = sphi %s2021_s14, %s15_s14  }
   0x4   : > { %p105_p1 = scmp.lt.s32.totalorder %s1988_s14, 9 }
   0x6   : > { %p106_p2 = pnand %p1729_p0, %p105_p1 }
   0x7   : > { %s122_s16 = smul.u32 (!%p106_p2), 11, %s1726_s15 }
   0x8   : > { %109 = sbr.rel (%p106_p2) target bundleno = 525 (0x20d), region = 28 }
   0x9   : > { %s129_s17 = smul.u32 (!%p106_p2), 88, %s1726_s15  ;;  %p123_p3 = scmp.lt.s32.totalorder (!%p106_p2), %s122_s16, 87 }
   0xb   : > { %s130_s2 = sshra.s32 (!%p106_p2), %s129_s17, 3 }
   0xc   : > { %s1731_s18 = sshll.u32 (!%p106_p2), %s130_s2, 2 }
   0xd   : > { %s133_s22 = scalar_lea.vmem (!%p106_p2), %s2923_s0, %s1731_s18 }
   0xe   : > { %v166_v1 = vld [vmem:[%s133_s22] sm:$0xff] (!%p106_p2)  ;;  %v168_v2 = vld [vmem:[%s133_s22 + $0x8] sm:$0xff] (!%p106_p2)  ;;  %v170_v3 = vld [vmem:[%s133_s22 + $0x10] sm:$0xff] (!%p106_p2) }
   0xf   : > { %s2971_s16 = smov (!%p123_p3, %s122_s16), 87  ;;  %167 = vst [vmem:[#allocation2] sm:$0xff] %v166_v1  ;;  %169 = vst [vmem:[#allocation2 + $0x8] sm:$0xff] %v168_v2  ;;  %v172_v4 = vld [vmem:[%s133_s22 + $0x18] sm:$0xff]  ;;  %v174_v5 = vld [vmem:[%s133_s22 + $0x20] sm:$0xff] }
  0x10   : > { %s1730_s19 = sshll.u32 %s2971_s16, 3  ;;  %171 = vst [vmem:[#allocation2 + $0x10] sm:$0xff] %v170_v3  ;;  %v176_v6 = vld [vmem:[%s133_s22 + $0x28] sm:$0xff]  ;;  %173 = vst [vmem:[#allocation2 + $0x18] sm:$0xff] %v172_v4  ;;  %v178_v7 = vld [vmem:[%s133_s22 + $0x30] sm:$0xff] }
  0x11   : > { %s2035_s25 = scalar_lea.vmem %s2926_s3, %s1730_s19  ;;  %175 = vst [vmem:[#allocation2 + $0x20] sm:$0xff] %v174_v5  ;;  %177 = vst [vmem:[#allocation2 + $0x28] sm:$0xff] %v176_v6  ;;  %v180_v8 = vld [vmem:[%s133_s22 + $0x38] sm:$0xff] }
  0x12   : > { %179 = vst [vmem:[#allocation2 + $0x30] sm:$0xff] %v178_v7  ;;  %181 = vst [vmem:[#allocation2 + $0x38] sm:$0xff] %v180_v8 }
  0x13   : > { %189 = vsyncadd [#allocation4], 1024 }
  0x14   : > { %1984 = dma.done.wait [#allocation4], 1024 }
  0x15   : > { %1985 = vsyncadd [#allocation4], 4294966272  ;;  %vm485_vm0 = vcmask 1042432   ;;  %vm486_vm1 = vcmask 1046532   ;;  %vm287_vm3 = vsmask.f32 3328 }
  0x16   : > { %v567_v9 = vld [vmem:[#allocation2 + $0x8] sm:$0xfe]  ;;  %v449_v10 = vld [vmem:[#allocation2] sm:$0xfe]  ;;  %vm2041_vm2 = vmor %vm485_vm0, %vm486_vm1  ;;  %s1990_s26 = smov 48   ;;  %s1991_s27 = smov 32  }
  0x17   : > { %v452_v11 = vld [vmem:[#allocation2 + $0x18] sm:$0xff]  ;;  %v1768_v12 = vcombine.low %v567_v9, %v567_v9  ;;  %v1769_v13 = vcombine.high %v567_v9, %v567_v9  ;;  %v1755_v14 = vcombine.low %v449_v10, %v449_v10  ;;  %v1756_v15 = vcombine.high %v449_v10, %v449_v10  ;;  %v2037_v16 = vld [vmem:[#allocation2 + $0x8] sm:$0xff]  ;;  %v2039_v17 = vld [vmem:[#allocation2 + $0x10] sm:$0xff]  ;;  %s1992_s28 = smov 16   ;;  %s1993_s29 = smov 64  }
  0x18   : > { %v2045_v19 = vcombine.low %v452_v11, %v452_v11  ;;  %v2047_v20 = vcombine.high %v452_v11, %v452_v11  ;;  %v2051_v21 = vcombine.low %v2037_v16, %v2037_v16  ;;  %v2055_v22 = vcombine.low %v2039_v17, %v2039_v17  ;;  %v251_v27 = vld [vmem:[#allocation2] sm:$0xff]  ;;  %v682_v56 = vld [vmem:[#allocation2 + $0x8] sm:$0xfe]  ;;  %s1994_s30 = smov 80   ;;  %s1995_s4 = smov 96  }
  0x19   : > { %v1780_v23 = vrot.slane %v1768_v12, 9  ;;  %v605_v24 = vrot.slane %v1769_v13, 5  ;;  %v1767_v25 = vrot.slane %v1755_v14, 9  ;;  %v490_v26 = vrot.slane %v1756_v15, 5  ;;  %v453_v28 = vld [vmem:[#allocation2 + $0x20] sm:$0xff]  ;;  %v2135_v14 = vld [vmem:[#allocation2 + $0x28] sm:$0xff] }
  0x1a   : > { %v2932_v29 = vrot.slane %v2045_v19, 5  ;;  %v508_v30 = vrot.slane %v2047_v20, 5  ;;  %v2934_v31 = vrot.slane %v2051_v21, 5  ;;  %v2061_v32 = vrot.slane %v2055_v22, 5  ;;  %s1996_s5 = smov 112  }
  0x1b   : > { %v606_v33 = vsel %vm2041_vm2, %v1780_v23, %v605_v24  ;;  %v491_v34 = vsel %vm2041_vm2, %v1767_v25, %v490_v26  ;;  %v492_v35 = vrot.slane %v490_v26, 4  ;;  %v607_v36 = vrot.slane %v605_v24, 4 }
  0x1c   : > { %637 = vrot.lane.b32.xlu0 %v606_v33, %s1990_s26  ;;  %522 = vrot.lane.b32.xlu1 %v491_v34, %s1991_s27  ;;  %v507_v37 = vrot.slane %v2932_v29, 4  ;;  %v2071_v38 = vcombine.low %v251_v27, %v251_v27  ;;  %v2073_v39 = vcombine.high %v251_v27, %v251_v27  ;;  %v2075_v40 = vcombine.low %v453_v28, %v453_v28 }
  0x1d   : > { %v494_v41 = vsel %vm2041_vm2, %v492_v35, %v2934_v31  ;;  %v609_v42 = vsel %vm2041_vm2, %v607_v36, %v2061_v32  ;;  %vm288_vm4 = vsmask.f32 7440  ;;  %v510_v43 = vrot.slane %v508_v30, 4 }
  0x1e   : > { %v2086_v44 = vsel %vm2041_vm2, %v507_v37, %v508_v30  ;;  %v291_v45 = vshrl.u32 %v2071_v38, 16  ;;  %v294_v46 = vshll.u32 %v2071_v38, 16  ;;  %v300_v47 = vshll.u32 %v2073_v39, 16  ;;  %vm2122_vm7 = vmor %vm287_vm3, %vm288_vm4 }
  0x1f   : > { %v511_v48 = vrot.slane %v2075_v40, 5  ;;  %v304_v49 = vshrl.u32 %v2073_v39, 16  ;;  %v310_v50 = vshll.u32 %v2051_v21, 16  ;;  %v2094_v51 = vcombine.high %v453_v28, %v453_v28 }
  0x20   : > { %534 = vrot.lane.b32.xlu0 %v2086_v44, %s1991_s27  ;;  %524 = vrot.lane.b32.xlu1 %v494_v41, %s1991_s27  ;;  %v293_v52 = vrot.slane %v291_v45, 4  ;;  %v296_v53 = vrot.slane %v294_v46, 5  ;;  %v302_v54 = vrot.slane %v300_v47, 5  ;;  %v2100_v55 = vshll.u32 %v2047_v20, 16 }
  0x21   : > { %vm718_vm5 = vsmask.f32 2304  ;;  %vm719_vm6 = vsmask.f32 6416  ;;  %v2106_v57 = vsel %vm2041_vm2, %v510_v43, %v511_v48  ;;  %v306_v58 = vrot.slane %v304_v49, 4 }
  0x22   : > { %v2108_v59 = vrot.slane %v310_v50, 5  ;;  %v2111_v60 = vshrl.u32 %v2047_v20, 16  ;;  %v297_v61 = vor.u32 %v296_v53, %v293_v52  ;;  %v362_v62 = vrot.slane %v2100_v55, 5  ;;  %v884_v43 = vld [vmem:[#allocation2 + $0x8] sm:$0xfc]  ;;  %vm2168_vm10 = vmor %vm718_vm5, %vm719_vm6 }
  0x23   : > { %v2115_v63 = vshll.u32 %v2075_v40, 16  ;;  %v2118_v0 = vshll.u32 %v2045_v19, 16  ;;  %v307_v2 = vor.u32 %v306_v58, %v302_v54  ;;  %v2128_v4 = vshrl.u32 %v2045_v19, 16 }
  0x24   : > { %v366_v3 = vrot.slane %v2111_v60, 4  ;;  %v1782_v5 = vcombine.high %v682_v56, %v682_v56  ;;  %639 = vrot.lane.b32.xlu1 %v609_v42, %s1990_s26  ;;  %v298_v6 = vrot.slane %v297_v61, 4  ;;  %v2928_v9 = vshrl.u32 %v2055_v22, 16 }
  0x25   : > { %v2933_v7 = vrot.slane %v2115_v63, 5  ;;  %v2927_v8 = vrot.slane %v2118_v0, 5  ;;  %v308_v10 = vrot.slane %v307_v2, 4  ;;  %v356_v12 = vrot.slane %v2128_v4, 4 }
  0x26   : > { %v367_v11 = vor.u32 %v366_v3, %v362_v62  ;;  %v731_v13 = vshrl.u32 %v1782_v5, 16  ;;  %v303_v15 = vsel %vm2122_vm7, %v298_v6, %v302_v54  ;;  %v734_v23 = vshll.u32 %v1782_v5, 16 }
  0x27   : > { %v743_v24 = vrot.slane %v2928_v9, 5  ;;  %v744_v25 = vshll.u32 %v2055_v22, 16  ;;  %vm920_vm8 = vcmask 1041408   ;;  %vm921_vm9 = vcmask 1045508   ;;  %404 = vrot.lane.b32.xlu0 %v303_v15, %s1992_s28 }
  0x28   : > { %v313_v26 = vsel %vm2122_vm7, %v308_v10, %v2108_v59  ;;  %v368_v27 = vrot.slane %v367_v11, 4  ;;  %v357_v28 = vor.u32 %v356_v12, %v2927_v8  ;;  %v733_v30 = vrot.slane %v731_v13, 5  ;;  %536 = vrot.lane.b32.xlu1 %v2106_v57, %s1991_s27  ;;  %vm2202_vm11 = vmor %vm920_vm8, %vm921_vm9 }
  0x29   : > { %v736_v33 = vrot.slane %v734_v23, 6  ;;  %v746_v34 = vrot.slane %v744_v25, 6  ;;  %v1781_v35 = vcombine.low %v682_v56, %v682_v56  ;;  %v2154_v36 = vcombine.low %v2135_v14, %v2135_v14 }
  0x2a   : > { %v373_v37 = vsel %vm2122_vm7, %v368_v27, %v2933_v7  ;;  %v358_v41 = vrot.slane %v357_v28, 4  ;;  %v623_v42 = vrot.slane %v2094_v51, 5  ;;  %v622_v56 = vrot.slane %v511_v48, 4 }
  0x2b   : > { %v737_v45 = vor.u32 %v736_v33, %v733_v30  ;;  %v2161_v46 = vor.u32 %v746_v34, %v743_v24  ;;  %v722_v47 = vshrl.u32 %v1781_v35, 16  ;;  %v725_v49 = vshll.u32 %v1781_v35, 16  ;;  %406 = vrot.lane.b32.xlu0 %v313_v26, %s1992_s28  ;;  %v1002_v24 = vld [vmem:[#allocation2 + $0x10] sm:$0xfc] }
  0x2c   : > { %v363_v50 = vsel %vm2122_vm7, %v358_v41, %v362_v62  ;;  %v2172_v53 = vrot.slane %v623_v42, 4  ;;  %v2931_v54 = vrot.slane %v2154_v36, 5  ;;  %418 = vrot.lane.b32.xlu1 %v373_v37, %s1992_s28  ;;  %v1794_v3 = vcombine.high %v884_v43, %v884_v43 }
  0x2d   : > { %v739_v58 = vrot.slane %v737_v45, 4  ;;  %v724_v61 = vrot.slane %v722_v47, 5  ;;  %v727_v2 = vrot.slane %v725_v49, 6  ;;  %v2930_v62 = vrot.slane %v2055_v22, 6  ;;  %v1117_v49 = vld [vmem:[#allocation2 + $0x10] sm:$0xfc] }
  0x2e   : > { %v2935_v5 = vshrl.u32 %v2094_v51, 16  ;;  %v925_v11 = vrot.slane %v1794_v3, 6  ;;  %v794_v12 = vshll.u32 %v2094_v51, 16  ;;  %v1793_v48 = vcombine.low %v884_v43, %v884_v43 }
  0x2f   : > { %v748_v6 = vsel %vm2168_vm10, %v739_v58, %v2161_v46  ;;  %v728_v10 = vor.u32 %v727_v2, %v724_v61  ;;  %416 = vrot.lane.b32.xlu0 %v363_v50, %s1992_s28  ;;  %v801_v15 = vshrl.u32 %v2154_v36, 16  ;;  %v804_v23 = vshll.u32 %v2154_v36, 16 }
  0x30   : > { %v793_v13 = vrot.slane %v2935_v5, 5  ;;  %841 = vrot.lane.b32.xlu1 %v748_v6, %s1993_s29  ;;  %v927_v27 = vrot.slane %v925_v11, 4  ;;  %v796_v28 = vrot.slane %v794_v12, 6  ;;  %v2193_v30 = vshrl.u32 %v2075_v40, 16 }
  0x31   : > { %v729_v26 = vrot.slane %v728_v10, 4  ;;  %v627_v33 = vsel %vm2041_vm2, %v2172_v53, %v2931_v54  ;;  %v803_v35 = vrot.slane %v801_v15, 5  ;;  %v806_v37 = vrot.slane %v804_v23, 6 }
  0x32   : > { %v797_v43 = vor.u32 %v796_v28, %v793_v13  ;;  %v783_v47 = vrot.slane %v2193_v30, 5  ;;  %v786_v50 = vrot.slane %v2115_v63, 6  ;;  %v1807_v58 = vcombine.high %v1002_v24, %v1002_v24 }
  0x33   : > { %v738_v41 = vsel %vm2168_vm10, %v729_v26, %v737_v45  ;;  %v2218_v61 = vsel %vm2041_vm2, %v622_v56, %v623_v42  ;;  %v929_v45 = vsel %vm2202_vm11, %v927_v27, %v2930_v62  ;;  %v1805_v2 = vrot.slane %v1793_v48, 10 }
  0x34   : > { %839 = vrot.lane.b32.xlu0 %v738_v41, %s1993_s29  ;;  %651 = vrot.lane.b32.xlu1 %v627_v33, %s1990_s26  ;;  %v2224_v3 = vor.u32 %v806_v37, %v803_v35  ;;  %v799_v6 = vrot.slane %v797_v43, 4  ;;  %v2226_v10 = vor.u32 %v786_v50, %v783_v47  ;;  %v1040_v13 = vrot.slane %v1807_v58, 6 }
  0x35   : > { %v1820_v26 = vcombine.high %v1117_v49, %v1117_v49  ;;  %v2230_v28 = vcombine.high %v2037_v16, %v2037_v16  ;;  %v1806_v42 = vcombine.low %v1002_v24, %v1002_v24  ;;  %v943_v56 = vrot.slane %v2094_v51, 6 }
  0x36   : > { %v2929_v27 = vrot.slane %v2075_v40, 6  ;;  %vm1153_vm12 = vsmask.f32 1280  ;;  %v926_v33 = vsel %vm2202_vm11, %v1805_v2, %v925_v11  ;;  %v789_v35 = vrot.slane %v2226_v10, 4 }
  0x37   : > { %v1166_v48 = vshrl.u32 %v1820_v26, 16  ;;  %v2241_v16 = vrot.slane %v2045_v19, 6  ;;  %v1169_v37 = vshll.u32 %v1820_v26, 16  ;;  %v808_v24 = vsel %vm2168_vm10, %v799_v6, %v2224_v3  ;;  %v2258_v6 = vld [vmem:[#allocation2 + $0x30] sm:$0xff] }
  0x38   : > { %649 = vrot.lane.b32.xlu0 %v2218_v61, %s1990_s26  ;;  %959 = vrot.lane.b32.xlu1 %v929_v45, %s1994_s30  ;;  %v1042_v41 = vrot.slane %v1040_v13, 4  ;;  %v1819_v58 = vcombine.low %v1117_v49, %v1117_v49  ;;  %v2248_v45 = vcombine.high %v2135_v14, %v2135_v14  ;;  %v1818_v11 = vrot.slane %v1806_v42, 10 }
  0x39   : > { %v1168_v47 = vrot.slane %v1166_v48, 6  ;;  %v1171_v50 = vrot.slane %v1169_v37, 7  ;;  %v945_v2 = vrot.slane %v943_v56, 4  ;;  %v2252_v8 = vrot.slane %v2154_v36, 6 }
  0x3a   : > { %v2256_v26 = vrot.slane %v2929_v27, 4  ;;  %v798_v49 = vsel %vm2168_vm10, %v789_v35, %v797_v43  ;;  %v1157_v14 = vshrl.u32 %v1819_v58, 16  ;;  %v1160_v48 = vshll.u32 %v1819_v58, 16 }
  0x3b   : > { %v1044_v42 = vsel %vm2202_vm11, %v1042_v41, %v2241_v16  ;;  %v1172_v37 = vor.u32 %v1171_v50, %v1168_v47  ;;  %v1178_v9 = vrot.slane %v2128_v4, 6  ;;  %v1181_v27 = vrot.slane %v2118_v0, 7 }
  0x3c   : > { %957 = vrot.lane.b32.xlu0 %v926_v33, %s1994_s30  ;;  %853 = vrot.lane.b32.xlu1 %v808_v24, %s1993_s29  ;;  %v320_v33 = vshll.u32 %v2230_v28, 16  ;;  %v1159_v62 = vrot.slane %v1157_v14, 6  ;;  %v1162_v54 = vrot.slane %v1160_v48, 7  ;;  %v2271_v24 = vcombine.low %v2258_v6, %v2258_v6 }
  0x3d   : > { %v1058_v43 = vrot.slane %v2248_v45, 6  ;;  %v1041_v35 = vsel %vm2202_vm11, %v1818_v11, %v1040_v13  ;;  %v947_v41 = vsel %vm2202_vm11, %v945_v2, %v2252_v8  ;;  %vm1154_vm13 = vsmask.f32 5392 }
  0x3e   : > { %v324_v47 = vshrl.u32 %v2230_v28, 16  ;;  %v1163_v50 = vor.u32 %v1162_v54, %v1159_v62  ;;  %v322_v58 = vrot.slane %v320_v33, 5  ;;  %v314_v14 = vshrl.u32 %v2051_v21, 16  ;;  %vm2291_vm14 = vmor %vm1153_vm12, %vm1154_vm13 }
  0x3f   : > { %v2937_v48 = vshrl.u32 %v2248_v45, 16  ;;  %v2284_v29 = vor.u32 %v1181_v27, %v1178_v9  ;;  %v2936_v11 = vshll.u32 %v2248_v45, 16  ;;  %v944_v2 = vsel %vm2202_vm11, %v2256_v26, %v943_v56 }
  0x40   : > { %851 = vrot.lane.b32.xlu0 %v798_v49, %s1993_s29  ;;  %1074 = vrot.lane.b32.xlu1 %v1044_v42, %s1995_s4  ;;  %v1174_v49 = vrot.slane %v1172_v37, 4  ;;  %v326_v13 = vrot.slane %v324_v47, 4  ;;  %v2295_v54 = vrot.slane %v1058_v43, 4  ;;  %v2938_v62 = vrot.slane %v2271_v24, 6 }
  0x41   : > { %v1164_v9 = vrot.slane %v1163_v50, 4  ;;  %v316_v27 = vrot.slane %v314_v14, 4  ;;  %v1228_v33 = vrot.slane %v2937_v48, 6  ;;  %v1231_v56 = vrot.slane %v2936_v11, 7 }
  0x42   : > { %v327_v42 = vor.u32 %v326_v13, %v322_v58  ;;  %v1183_v47 = vsel %vm2291_vm14, %v1174_v49, %v2284_v29  ;;  %v1236_v31 = vshrl.u32 %v2271_v24, 16  ;;  %v1239_v5 = vshll.u32 %v2271_v24, 16 }
  0x43   : > { %v1173_v50 = vsel %vm2291_vm14, %v1164_v9, %v1172_v37  ;;  %v2320_v14 = vrot.slane %v744_v25, 5  ;;  %v317_v49 = vor.u32 %v316_v27, %v2108_v59  ;;  %v1218_v37 = vrot.slane %v801_v15, 6 }
  0x44   : > { %1072 = vrot.lane.b32.xlu0 %v1041_v35, %s1995_s4  ;;  %971 = vrot.lane.b32.xlu1 %v947_v41, %s1994_s30  ;;  %v1057_v35 = vrot.slane %v2252_v8, 4  ;;  %v1062_v41 = vsel %vm2202_vm11, %v2295_v54, %v2938_v62  ;;  %v328_v13 = vrot.slane %v327_v42, 4  ;;  %v1221_v9 = vrot.slane %v804_v23, 7  ;;  %v2328_v62 = vld [vmem:[#allocation2 + $0x28] sm:$0x1f] }
  0x45   : > { %v1238_v11 = vrot.slane %v1236_v31, 6  ;;  %v1241_v48 = vrot.slane %v1239_v5, 7  ;;  %v318_v25 = vrot.slane %v317_v49, 4  ;;  %v496_v31 = vrot.slane %v2230_v28, 5 }
  0x46   : > { %v2333_v59 = vsel %vm2202_vm11, %v1057_v35, %v1058_v43  ;;  %v333_v15 = vsel %vm2122_vm7, %v328_v13, %v2320_v14  ;;  %v2346_v23 = vcombine.low %v2328_v62, %v2328_v62  ;;  %v382_v43 = vrot.slane %v794_v12, 5 }
  0x47   : > { %v2342_v5 = vor.u32 %v1241_v48, %v1238_v11  ;;  %v2951_v42 = vshrl.u32 %v2094_v51, 16  ;;  %v2357_v28 = vcombine.high %v2039_v17, %v2039_v17  ;;  %v323_v48 = vsel %vm2122_vm7, %v318_v25, %v322_v58 }
  0x48   : > { %969 = vrot.lane.b32.xlu0 %v944_v2, %s1994_s30  ;;  %1276 = vrot.lane.b32.xlu1 %v1183_v47, %s1996_s5  ;;  %v1232_v2 = vor.u32 %v1231_v56, %v1228_v33  ;;  %v2339_v33 = vor.u32 %v1221_v9, %v1218_v37  ;;  %v376_v47 = vrot.slane %v2193_v30, 4  ;;  %v498_v12 = vrot.slane %v496_v31, 4 }
  0x49   : > { %v386_v56 = vrot.slane %v2951_v42, 4  ;;  %v2952_v17 = vrot.slane %v2051_v21, 5  ;;  %v2953_v49 = vrot.slane %v2115_v63, 5  ;;  %v2939_v37 = vshrl.u32 %v2357_v28, 16  ;;  %v2383_v42 = vld [vmem:[#allocation2 + $0x28] sm:$0x1f] }
  0x4a   : > { %v1234_v27 = vrot.slane %v1232_v2, 4  ;;  %v1224_v11 = vrot.slane %v2339_v33, 4  ;;  %v2940_v9 = vshll.u32 %v2357_v28, 16  ;;  %v500_v25 = vsel %vm2041_vm2, %v498_v12, %v2061_v32 }
  0x4b   : > { %v387_v35 = vor.u32 %v386_v56, %v382_v43  ;;  %v377_v13 = vor.u32 %v376_v47, %v2953_v49  ;;  %v611_v21 = vrot.slane %v2357_v28, 5  ;;  %v753_v47 = vrot.slane %v2939_v37, 5 }
  0x4c   : > { %1274 = vrot.lane.b32.xlu0 %v1173_v50, %s1996_s5  ;;  %1086 = vrot.lane.b32.xlu1 %v1062_v41, %s1995_s4  ;;  %v1243_v51 = vsel %vm2291_vm14, %v1234_v27, %v2342_v5  ;;  %v390_v50 = vshll.u32 %v2346_v23, 16  ;;  %v495_v41 = vrot.slane %v2952_v17, 4  ;;  %v1233_v58 = vsel %vm2291_vm14, %v1224_v11, %v1232_v2 }
  0x4d   : > { %v378_v56 = vrot.slane %v377_v13, 4  ;;  %v1765_v12 = vcombine.low %v2383_v42, %v2383_v42  ;;  %v763_v17 = vrot.slane %v2128_v4, 5  ;;  %v2954_v49 = vrot.slane %v2045_v19, 5 }
  0x4e   : > { %v2380_v27 = vrot.slane %v390_v50, 5  ;;  %v497_v2 = vsel %vm2041_vm2, %v495_v41, %v496_v31  ;;  %v610_v31 = vrot.slane %v2061_v32, 4  ;;  %v766_v41 = vrot.slane %v2118_v0, 6  ;;  %v2415_v32 = vld [vmem:[#allocation2 + $0x30] sm:$0x3f] }
  0x4f   : > { %v2958_v37 = vrot.slane %v2055_v22, 6  ;;  %vm239_vm15 = vcmask 125952   ;;  %vm1355_vm0 = vcmask 1040384   ;;  %vm1356_vm1 = vcmask 1044484  }
  0x50   : > { %1084 = vrot.lane.b32.xlu0 %v2333_v59, %s1995_s4  ;;  %410 = vrot.lane.b32.xlu1 %v333_v15, %s1992_s28  ;;  %v388_v15 = vrot.slane %v387_v35, 4  ;;  %v383_v35 = vsel %vm2122_vm7, %v378_v56, %v382_v43  ;;  %v2420_v43 = vsel %vm2041_vm2, %v610_v31, %v611_v21  ;;  %v2424_v4 = vor.u32 %v766_v41, %v763_v17  ;;  %vm2610_vm3 = vmor %vm1355_vm0, %vm1356_vm1 }
  0x51   : > { %240 = vst.msk [vmem:[#allocation3] sm:$0xf] %vm239_vm15, %v2071_v38  ;;  %241 = vst.msk [vmem:[#allocation3 + $0x8] sm:$0xf] %vm239_vm15, %v2073_v39  ;;  %v1944_v39 = vld [vmem:[%s2924_s1] sm:$0xff]   ;;  %vm437_vm4 = vcmask 257152  }
  0x52   : > { %v393_v11 = vsel %vm2122_vm7, %v388_v15, %v2380_v27  ;;  %vm555_vm5 = vcmask 388352   ;;  %vm670_vm6 = vcmask 519552   ;;  %vm1105_vm8 = vcmask 913152  }
  0x53   : > { %vm1307_vm9 = vcmask 1044352  }
  0x54   : > { %408 = vrot.lane.b32.xlu0 %v323_v48, %s1992_s28  ;;  %1288 = vrot.lane.b32.xlu1 %v1243_v51, %s1996_s5  ;;  %v756_v48 = vrot.slane %v2940_v9, 6  ;;  %v613_v51 = vrot.slane %v611_v21, 4  ;;  %v1791_v21 = vcombine.low %v2415_v32, %v2415_v32 }
  0x56   : > { %v757_v50 = vor.u32 %v756_v48, %v753_v47  ;;  %v2409_v13 = vsel %vm2041_vm2, %v613_v51, %v2954_v49  ;;  %v749_v47 = vrot.slane %v2161_v46, 4  ;;  %v821_v41 = vshrl.u32 %v1791_v21, 16 }
  0x57   : > { %v824_v49 = vshll.u32 %v1791_v21, 16  ;;  %v2957_v46 = vrot.slane %v2154_v36, 5  ;;  %v197_v36 = vld [vmem:[#allocation2 + $0x18] sm:$0xff] }
  0x58   : > { %1286 = vrot.lane.b32.xlu0 %v1233_v58, %s1996_s5  ;;  %528 = vrot.lane.b32.xlu1 %v500_v25, %s1991_s27  ;;  %v2411_v58 = vrot.slane %v1765_v12, 5  ;;  %v2413_v25 = vld [vmem:[#allocation2 + $0x30] sm:$0x1f]  ;;  %v759_v19 = vrot.slane %v757_v50, 4  ;;  %v931_v12 = vrot.slane %v2357_v28, 6  ;;  %v2483_v38 = vcombine.low %v197_v36, %v197_v36 }
  0x59   : > { %v1778_v15 = vcombine.low %v2413_v25, %v2413_v25  ;;  %v826_v9 = vrot.slane %v824_v49, 6  ;;  %v1779_v1 = vcombine.high %v2413_v25, %v2413_v25 }
  0x5a   : > { %v518_v56 = vsel %vm2041_vm2, %v2172_v53, %v2411_v58  ;;  %v768_v48 = vsel %vm2168_vm10, %v759_v19, %v2424_v4  ;;  %v2955_v53 = vshrl.u32 %v2248_v45, 16  ;;  %v758_v19 = vsel %vm2168_vm10, %v749_v47, %v757_v50  ;;  %246 = vst.msk [vmem:[#allocation3 + $0x30] sm:$0xf] %vm239_vm15, %v2483_v38 }
  0x5b   : > { %v2442_v51 = vrot.slane %v1778_v15, 5  ;;  %v933_v15 = vrot.slane %v931_v12, 4 }
  0x5c   : > { %526 = vrot.lane.b32.xlu0 %v497_v2, %s1991_s27  ;;  %422 = vrot.lane.b32.xlu1 %v393_v11, %s1992_s28  ;;  %v629_v2 = vrot.slane %v2248_v45, 5  ;;  %v813_v31 = vrot.slane %v2955_v53, 5  ;;  %v930_v53 = vrot.slane %v2958_v37, 4 }
  0x5d   : > { %v935_v37 = vsel %vm2202_vm11, %v933_v15, %v2241_v16  ;;  %v1945_v15 = vld [vmem:[%s2924_s1 + $0x8] sm:$0xff]   ;;  %v634_v25 = vrot.slane %v2442_v51, 4 }
  0x5e   : > { %v631_v11 = vrot.slane %v629_v2, 4  ;;  %v932_v50 = vsel %vm2202_vm11, %v930_v53, %v931_v12  ;;  %v1191_v12 = vrot.slane %v2100_v55, 7  ;;  %v1198_v53 = vrot.slane %v2193_v30, 6 }
  0x60   : > { %420 = vrot.lane.b32.xlu0 %v383_v35, %s1992_s28  ;;  %643 = vrot.lane.b32.xlu1 %v2409_v13, %s1990_s26  ;;  %v2956_v35 = vshll.u32 %v2248_v45, 16  ;;  %v633_v45 = vsel %vm2041_vm2, %v631_v11, %v2442_v51  ;;  %v1046_v11 = vrot.slane %v2047_v20, 6  ;;  %v809_v20 = vrot.slane %v2224_v3, 4 }
  0x61   : > { %v1997_v3 = vmov 0  }
  0x62   : > { %v816_v17 = vrot.slane %v2956_v35, 6  ;;  %v823_v35 = vrot.slane %v821_v41, 5  ;;  %v1048_v49 = vrot.slane %v1046_v11, 4  ;;  %1574 = vmatprep.subr.bf16.mxu0 %v1997_v3  ;;  %1875 = vmatprep.subr.bf16.mxu1 %v1997_v3 }
  0x63   : > { %1575 = vmatpush1.bf16.msra.mxu0 %v1944_v39  ;;  %1884 = vmatpush1.bf16.msra.mxu1 %v1944_v39  ;;  %v2962_v39 = vshrl.u32 %v2055_v22, 16 }
  0x64   : > { %641 = vrot.lane.b32.xlu0 %v2420_v43, %s1990_s26  ;;  %540 = vrot.lane.b32.xlu1 %v518_v56, %s1991_s27  ;;  %v628_v56 = vrot.slane %v2957_v46, 4  ;;  %v817_v21 = vor.u32 %v816_v17, %v813_v31  ;;  %v2477_v31 = vld [vmem:[#allocation2 + $0x30] sm:$0x3f]  ;;  %v2481_v17 = vcombine.high %v197_v36, %v197_v36 }
  0x65   : > { %v1803_v46 = vcombine.low %v2477_v31, %v2477_v31  ;;  %1576 = vmatprep.subr.bf16.mxu0 %v1997_v3  ;;  %1876 = vmatprep.subr.bf16.mxu1 %v1997_v3  ;;  %v1804_v52 = vcombine.high %v2477_v31, %v2477_v31 }
  0x66   : > { %v819_v47 = vrot.slane %v817_v21, 4  ;;  %247 = vst.msk [vmem:[#allocation3 + $0x38] sm:$0xf] %vm239_vm15, %v2481_v17 }
  0x67   : > { %1577 = vmatpush1.bf16.msra.mxu0 %v1945_v15  ;;  %1885 = vmatpush1.bf16.msra.mxu1 %v1945_v15 }
  0x68   : > { %538 = vrot.lane.b32.xlu0 %v2218_v61, %s1991_s27  ;;  %845 = vrot.lane.b32.xlu1 %v768_v48, %s1993_s29  ;;  %v630_v61 = vsel %vm2041_vm2, %v628_v56, %v629_v2  ;;  %v2474_v48 = vor.u32 %v826_v9, %v823_v35  ;;  %v1188_v2 = vrot.slane %v2111_v60, 6  ;;  %v1815_v9 = vcombine.high %v2258_v6, %v2258_v6  ;;  %v2502_v56 = vld [vmem:[#allocation2 + $0x38] sm:$0x3f] }
  0x69   : > { %v2959_v35 = vshll.u32 %v2357_v28, 16  ;;  %v1816_v30 = vcombine.low %v2502_v56, %v2502_v56  ;;  %1578 = vmatprep.subr.bf16.mxu0 %v1997_v3  ;;  %1877 = vmatprep.subr.bf16.mxu1 %v1997_v3  ;;  %v1817_v31 = vcombine.high %v2502_v56, %v2502_v56 }
  0x6a   : > { %v828_v41 = vsel %vm2168_vm10, %v819_v47, %v2474_v48  ;;  %v1192_v6 = vor.u32 %v1191_v12, %v1188_v2  ;;  %v818_v47 = vsel %vm2168_vm10, %v809_v20, %v817_v21  ;;  %v2961_v2 = vrot.slane %v2075_v40, 6  ;;  %v1946_v40 = vld [vmem:[%s2924_s1 + $0x10] sm:$0xff]  }
  0x6b   : > { %v2516_v36 = vrot.slane %v2959_v35, 5  ;;  %v2534_v12 = vrot.slane %v1803_v46, 6  ;;  %v1184_v20 = vrot.slane %v2284_v29, 4  ;;  %v2963_v35 = vrot.slane %v2271_v24, 6  ;;  %1579 = vmatpush1.bf16.msra.mxu0 %v1946_v40  ;;  %1886 = vmatpush1.bf16.msra.mxu1 %v1946_v40 }
  0x6c   : > { %843 = vrot.lane.b32.xlu0 %v758_v19, %s1993_s29  ;;  %655 = vrot.lane.b32.xlu1 %v633_v45, %s1990_s26  ;;  %v2506_v19 = vld [vmem:[#allocation2 + $0x38] sm:$0x7f]  ;;  %v1201_v45 = vrot.slane %v2115_v63, 7  ;;  %v1064_v63 = vrot.slane %v1815_v9, 6  ;;  %v1194_v21 = vrot.slane %v1192_v6, 4  ;;  %v1246_v46 = vshrl.u32 %v1815_v9, 16 }
  0x6d   : > { %v2559_v15 = vrot.slane %v1816_v30, 6  ;;  %v1947_v30 = vld [vmem:[%s2924_s1 + $0x18] sm:$0xff]   ;;  %1580 = vmatprep.subr.bf16.mxu0 %v1997_v3  ;;  %1878 = vmatprep.subr.bf16.mxu1 %v1997_v3 }
  0x6e   : > { %v2557_v24 = vrot.slane %v1064_v63, 4 }
  0x6f   : > { %1581 = vmatpush1.bf16.msra.mxu0 %v1947_v30  ;;  %1887 = vmatpush1.bf16.msra.mxu1 %v1947_v30  ;;  %v1366_v30 = vrot.slane %v2481_v17, 7 }
  0x70   : > { %653 = vrot.lane.b32.xlu0 %v630_v61, %s1990_s26  ;;  %963 = vrot.lane.b32.xlu1 %v935_v37, %s1994_s30  ;;  %v2960_v61 = vshrl.u32 %v2357_v28, 16  ;;  %v2532_v28 = vsel %vm2202_vm11, %v1048_v49, %v2961_v2  ;;  %v2547_v49 = vor.u32 %v1201_v45, %v1198_v53  ;;  %v1249_v2 = vshll.u32 %v1815_v9, 16 }
  0x71   : > { %v953_v9 = vsel %vm2202_vm11, %v2295_v54, %v2534_v12  ;;  %1582 = vmatprep.subr.bf16.mxu0 %v1997_v3  ;;  %1879 = vmatprep.subr.bf16.mxu1 %v1997_v3 }
  0x72   : > { %v346_v37 = vrot.slane %v2960_v61, 4  ;;  %v1063_v61 = vrot.slane %v2963_v35, 4  ;;  %v1203_v54 = vsel %vm2291_vm14, %v1194_v21, %v2547_v49 }
  0x74   : > { %961 = vrot.lane.b32.xlu0 %v932_v50, %s1994_s30  ;;  %857 = vrot.lane.b32.xlu1 %v828_v41, %s1993_s29  ;;  %v1045_v50 = vrot.slane %v2241_v16, 4  ;;  %v336_v41 = vrot.slane %v2962_v39, 4  ;;  %v1829_v16 = vcombine.low %v2506_v19, %v2506_v19  ;;  %v347_v22 = vor.u32 %v346_v37, %v2516_v36 }
  0x75   : > { %v1248_v39 = vrot.slane %v1246_v46, 6  ;;  %v1948_v46 = vld [vmem:[%s2924_s1 + $0x20] sm:$0xff]  }
  0x76   : > { %v2555_v29 = vsel %vm2202_vm11, %v1045_v50, %v1046_v11  ;;  %v337_v53 = vor.u32 %v336_v41, %v2320_v14  ;;  %v1256_v45 = vshrl.u32 %v1829_v16, 16  ;;  %v1259_v37 = vshll.u32 %v1829_v16, 16  ;;  %1583 = vmatpush1.bf16.msra.mxu0 %v1948_v46  ;;  %1888 = vmatpush1.bf16.msra.mxu1 %v1948_v46 }
  0x77   : > { %v1193_v11 = vsel %vm2291_vm14, %v1184_v20, %v1192_v6  ;;  %v2571_v50 = vsel %vm2202_vm11, %v1063_v61, %v1064_v63  ;;  %v348_v14 = vrot.slane %v347_v22, 4  ;;  %v1251_v6 = vrot.slane %v1249_v2, 7  ;;  %v1319_v63 = vld [vmem:[#allocation2 + $0x10] sm:$0xf8]  ;;  %1584 = vmatprep.subr.bf16.mxu0 %v1997_v3  ;;  %1880 = vmatprep.subr.bf16.mxu1 %v1997_v3 }
  0x78   : > { %855 = vrot.lane.b32.xlu0 %v818_v47, %s1993_s29  ;;  %1078 = vrot.lane.b32.xlu1 %v2532_v28, %s1995_s4  ;;  %v195_v47 = vld [vmem:[#allocation2 + $0x8] sm:$0xff]  ;;  %v1068_v41 = vsel %vm2202_vm11, %v2557_v24, %v2559_v15  ;;  %v2588_v35 = vrot.slane %v337_v53, 4  ;;  %v1258_v21 = vrot.slane %v1256_v45, 6  ;;  %v1261_v61 = vrot.slane %v1259_v37, 7  ;;  %v2645_v45 = vld [vmem:[#allocation2 + $0x38] sm:$0x7f] }
  0x79   : > { %v1735_v16 = vcombine.high %v195_v47, %v195_v47  ;;  %v1734_v20 = vcombine.low %v195_v47, %v195_v47  ;;  %v1831_v40 = vcombine.low %v1319_v63, %v1319_v63  ;;  %v394_v22 = vshrl.u32 %v2346_v23, 16 }
  0x7a   : > { %v1832_v2 = vcombine.high %v1319_v63, %v1319_v63  ;;  %v2964_v24 = vrot.slane %v2118_v0, 5  ;;  %v1363_v47 = vrot.slane %v2483_v38, 7  ;;  %v2622_v63 = vor.u32 %v1261_v61, %v1258_v21  ;;  %v1949_v38 = vld [vmem:[%s2924_s1 + $0x28] sm:$0xff]  }
  0x7b   : > { %243 = vst.msk [vmem:[#allocation3 + $0x18] sm:$0xf] %vm239_vm15, %v1735_v16  ;;  %242 = vst.msk [vmem:[#allocation3 + $0x10] sm:$0xf] %vm239_vm15, %v1734_v20  ;;  %v1843_v0 = vrot.slane %v1831_v40, 11  ;;  %v2626_v20 = vrot.slane %v394_v22, 4  ;;  %1585 = vmatpush1.bf16.msra.mxu0 %v1949_v38  ;;  %1889 = vmatpush1.bf16.msra.mxu1 %v1949_v38  ;;  %v1841_v38 = vcombine.low %v2645_v45, %v2645_v45 }
  0x7c   : > { %1076 = vrot.lane.b32.xlu0 %v2555_v29, %s1995_s4  ;;  %975 = vrot.lane.b32.xlu1 %v953_v9, %s1994_s30  ;;  %v2602_v23 = vsel %vm2122_vm7, %v348_v14, %v2964_v24  ;;  %v2604_v9 = vor.u32 %v1251_v6, %v1248_v39  ;;  %v198_v14 = vld [vmem:[#allocation2 + $0x20] sm:$0xff]  ;;  %v1322_v39 = vld [vmem:[#allocation2 + $0x28] sm:$0xff]  ;;  %v196_v24 = vld [vmem:[#allocation2 + $0x10] sm:$0xff] }
  0x7d   : > { %v2624_v16 = vcombine.high %v198_v14, %v198_v14  ;;  %v2639_v61 = vcombine.low %v198_v14, %v198_v14  ;;  %v1837_v22 = vcombine.low %v1322_v39, %v1322_v39  ;;  %v1737_v53 = vcombine.high %v196_v24, %v196_v24  ;;  %1586 = vmatprep.subr.bf16.mxu0 %v1997_v3 }
  0x7e   : > { %v1254_v21 = vrot.slane %v2604_v9, 4  ;;  %1881 = vmatprep.subr.bf16.mxu1 %v1997_v3 }
  0x7f   : > { %249 = vst.msk [vmem:[#allocation3 + $0x48] sm:$0xf] %vm239_vm15, %v2624_v16  ;;  %248 = vst.msk [vmem:[#allocation3 + $0x40] sm:$0xf] %vm239_vm15, %v2639_v61 }
  0x80   : > { %973 = vrot.lane.b32.xlu0 %v2333_v59, %s1994_s30  ;;  %1280 = vrot.lane.b32.xlu1 %v1203_v54, %s1996_s5  ;;  %v1360_v59 = vrot.slane %v1832_v2, 7  ;;  %v1323_v54 = vld [vmem:[#allocation2 + $0x30] sm:$0xff]  ;;  %v1365_v2 = vrot.slane %v1363_v47, 4  ;;  %245 = vst.msk [vmem:[#allocation3 + $0x28] sm:$0xf] %vm239_vm15, %v1737_v53 }
  0x81   : > { %v1840_v14 = vcombine.high %v1323_v54, %v1323_v54 }
  0x82   : > { %v1361_v17 = vsel %vm2610_vm3, %v1843_v0, %v1360_v59  ;;  %v1362_v40 = vrot.slane %v1360_v59, 4  ;;  %v1838_v0 = vcombine.high %v1322_v39, %v1322_v39  ;;  %v1839_v59 = vcombine.low %v1323_v54, %v1323_v54 }
  0x83   : > { %1403 = vst.msk [vmem:[#allocation3 + $0x4] sm:$0xf] %vm239_vm15, %v1361_v17  ;;  %v2650_v17 = vrot.slane %v1837_v22, 7  ;;  %v1367_v6 = vsel %vm2610_vm3, %v1365_v2, %v1366_v30  ;;  %v1263_v54 = vsel %vm2291_vm14, %v1254_v21, %v2622_v63  ;;  %v1384_v22 = vrot.slane %v1840_v14, 7 }
  0x84   : > { %1278 = vrot.lane.b32.xlu0 %v1193_v11, %s1996_s5  ;;  %1090 = vrot.lane.b32.xlu1 %v1068_v41, %s1995_s4  ;;  %v1364_v46 = vsel %vm2610_vm3, %v1362_v40, %v1363_v47  ;;  %v1368_v11 = vrot.slane %v1366_v30, 4  ;;  %v1736_v41 = vcombine.low %v196_v24, %v196_v24  ;;  %v1950_v47 = vld [vmem:[%s2924_s1 + $0x30] sm:$0xff]   ;;  %v1378_v39 = vrot.slane %v1838_v0, 7  ;;  %1405 = vst.msk [vmem:[#allocation3 + $0x14] sm:$0xf] %vm239_vm15, %v1367_v6 }
  0x85   : > { %1404 = vst.msk [vmem:[#allocation3 + $0xc] sm:$0xf] %vm239_vm15, %v1364_v46  ;;  %v1381_v40 = vrot.slane %v1839_v59, 7  ;;  %v1369_v46 = vrot.slane %v2639_v61, 7  ;;  %v1377_v24 = vrot.slane %v2650_v17, 4  ;;  %v1386_v6 = vrot.slane %v1384_v22, 4  ;;  %1587 = vmatpush1.bf16.msra.mxu0 %v1950_v47  ;;  %1890 = vmatpush1.bf16.msra.mxu1 %v1950_v47 }
  0x86   : > { %244 = vst.msk [vmem:[#allocation3 + $0x20] sm:$0xf] %vm239_vm15, %v1736_v41  ;;  %v1970_v30 = vld [vmem:[#allocation2 + $0x28] ss:$0 sps:$4 sm:$0xff]   ;;  %v2681_v0 = vrot.slane %v1841_v38, 7  ;;  %v2967_v14 = vsel %vm2122_vm7, %v2588_v35, %v2516_v36  ;;  %1588 = vmatprep.subr.bf16.mxu0 %v1997_v3  ;;  %v2968_v47 = vrot.slane %v2342_v5, 4  ;;  %v397_v36 = vor.u32 %v2626_v20, %v2380_v27  ;;  %1882 = vmatprep.subr.bf16.mxu1 %v1997_v3 }
  0x87   : > { %v1383_v2 = vrot.slane %v1381_v40, 4  ;;  %v1370_v53 = vsel %vm2610_vm3, %v1368_v11, %v1369_v46  ;;  %v1379_v21 = vsel %vm2610_vm3, %v1377_v24, %v1378_v39  ;;  %250 = vst.msk [vmem:[#allocation3 + $0x50] sm:$0xf] %vm239_vm15, %v1970_v30  ;;  %v2969_v35 = vcombine.high %v2328_v62, %v2328_v62  ;;  %v1953_v27 = vld [vmem:[%s2924_s1 + $0x40] sm:$0xff]  }
  0x88   : > { %1088 = vrot.lane.b32.xlu0 %v2571_v50, %s1995_s4  ;;  %414 = vrot.lane.b32.xlu1 %v2602_v23, %s1992_s28  ;;  %v1380_v50 = vrot.slane %v1378_v39, 4  ;;  %1406 = vst.msk [vmem:[#allocation3 + $0x1c] sm:$0xf] %vm239_vm15, %v1370_v53  ;;  %v1951_v23 = vld [vmem:[%s2924_s1 + $0x38] sm:$0xff]   ;;  %1409 = vst.msk [vmem:[#allocation3 + $0x34] sm:$0xf] %vm239_vm15, %v1379_v21  ;;  %v1388_v41 = vsel %vm2610_vm3, %v1386_v6, %v2681_v0  ;;  %v1253_v39 = vsel %vm2291_vm14, %v2968_v47, %v2604_v9 }
  0x89   : > { %v1385_v11 = vsel %vm2610_vm3, %v1383_v2, %v1384_v22  ;;  %1412 = vst.msk [vmem:[#allocation3 + $0x4c] sm:$0xf] %vm239_vm15, %v1388_v41  ;;  %v773_v24 = vrot.slane %v2111_v60, 5  ;;  %v776_v5 = vrot.slane %v2100_v55, 6  ;;  %1589 = vmatpush1.bf16.msra.mxu0 %v1951_v23  ;;  %1891 = vmatpush1.bf16.msra.mxu1 %v1951_v23  ;;  %v398_v62 = vrot.slane %v397_v36, 4 }
  0x8a   : > { %v1382_v59 = vsel %vm2610_vm3, %v1380_v50, %v1381_v40  ;;  %1411 = vst.msk [vmem:[#allocation3 + $0x44] sm:$0xf] %vm239_vm15, %v1385_v11  ;;  %v400_v40 = vshll.u32 %v2969_v35, 16  ;;  %1590 = vmatprep.subr.bf16.mxu0 %v1997_v3  ;;  %1883 = vmatprep.subr.bf16.mxu1 %v1997_v3  ;;  %v519_v55 = vrot.slane %v2411_v58, 4  ;;  %v1792_v30 = vcombine.high %v2415_v32, %v2415_v32 }
  0x8b   : > { %1410 = vst.msk [vmem:[#allocation3 + $0x3c] sm:$0xf] %vm239_vm15, %v1382_v59  ;;  %v777_v20 = vor.u32 %v776_v5, %v773_v24  ;;  %v635_v41 = vrot.slane %v1779_v1, 5  ;;  %v1371_v18 = vrot.slane %v1369_v46, 4  ;;  %v1830_v61 = vcombine.high %v2506_v19, %v2506_v19 }
  0x8c   : > { %412 = vrot.lane.b32.xlu0 %v2967_v14, %s1992_s28  ;;  %1292 = vrot.lane.b32.xlu1 %v1263_v54, %s1996_s5  ;;  %v1766_v54 = vcombine.high %v2383_v42, %v2383_v42  ;;  %v402_v42 = vrot.slane %v400_v40, 5  ;;  %v831_v2 = vshrl.u32 %v1792_v30, 16  ;;  %v834_v53 = vshll.u32 %v1792_v30, 16 }
  0x8d   : > { %1591 = vmatpush1.bf16.msra.mxu0 %v1953_v27  ;;  %1892 = vmatpush1.bf16.msra.mxu1 %v1953_v27  ;;  %v779_v3 = vrot.slane %v777_v20, 4  ;;  %v636_v51 = vsel %vm2041_vm2, %v634_v25, %v635_v41  ;;  %v1266_v30 = vshrl.u32 %v1830_v61, 16  ;;  %v1264_v1 = vrot.slane %v2622_v63, 4 }
  0x8e   : > { %v638_v22 = vpop.permute.xlu0 %637  ;;  %v523_v9 = vpop.permute.xlu1 %522  ;;  %v520_v60 = vrot.slane %v1766_v54, 5  ;;  %v833_v59 = vrot.slane %v831_v2, 5  ;;  %v836_v11 = vrot.slane %v834_v53, 6 }
  0x8f   : > { %v788_v23 = vsel %vm2168_vm10, %v779_v3, %v2226_v10  ;;  %v829_v10 = vrot.slane %v2474_v48, 4  ;;  %v1268_v3 = vrot.slane %v1266_v30, 6  ;;  %v1968_v30 = vld [vmem:[#allocation3 + $0x14] ss:$8 sps:$4 sm:$0xff]  }
  0x90   : > { %1290 = vrot.lane.b32.xlu0 %v1253_v39, %s1996_s5  ;;  %532 = vrot.lane.b32.xlu1 %v2409_v13, %s1991_s27  ;;  %v403_v13 = vsel %vm2122_vm7, %v398_v62, %v402_v42  ;;  %v521_v58 = vsel %vm2041_vm2, %v519_v55, %v520_v60  ;;  %v837_v36 = vor.u32 %v836_v11, %v833_v59  ;;  %vm872_vm7 = vcmask 650752  }
  0x91   : > { %v1204_v62 = vrot.slane %v2547_v49, 4  ;;  %v1389_v49 = vrot.slane %v2681_v0, 4  ;;  %vm990_vm2 = vcmask 781952  }
  0x92   : > { %v525_v38 = vpop.permute.xlu1 %524  ;;  %v535_v50 = vpop.permute.xlu0 %534  ;;  %v838_v24 = vsel %vm2168_vm10, %v829_v10, %v837_v36  ;;  %v1958_v10 = vld [vmem:[#allocation3 + $0x4] ss:$8 sps:$4 sm:$0xff]  }
  0x94   : > { %530 = vrot.lane.b32.xlu0 %v2420_v43, %s1991_s27  ;;  %645 = vrot.lane.b32.xlu1 %v2086_v44, %s1990_s26  ;;  %v769_v43 = vrot.slane %v2424_v4, 4  ;;  %v1979_v44 = vld [vmem:[#allocation2 + $0x20] sm:$0xff] }
  0x95   : > { %v1811_v21 = vcombine.high %v1979_v44, %v1979_v44 }
  0x96   : > { %v640_v32 = vpop.permute.xlu1 %639  ;;  %v778_v4 = vsel %vm2168_vm10, %v769_v43, %v777_v20  ;;  %v955_v20 = vrot.slane %v1804_v52, 6  ;;  %vm1555_vm10 = vcmask 130048  }
  0x97   : > { %v1052_v47 = vrot.slane %v1811_v21, 6  ;;  %v1206_v35 = vshrl.u32 %v1811_v21, 16  ;;  %v1209_v40 = vshll.u32 %v1811_v21, 16  ;;  %1866 = vmatprep.mubr.msk.bf16.mxu0 %vm1555_vm10, %v1958_v10 }
  0x98   : > { %424 = vrot.lane.b32.xlu0 %v403_v13, %s1992_s28  ;;  %542 = vrot.lane.b32.xlu1 %v521_v58, %s1991_s27  ;;  %v1069_v13 = vrot.slane %v2559_v15, 4  ;;  %v1070_v58 = vrot.slane %v1817_v31, 6 }
  0x99   : > { %v405_v6 = vpop.permute.xlu0 %404  ;;  %v1054_v48 = vrot.slane %v1052_v47, 4  ;;  %v1208_v5 = vrot.slane %v1206_v35, 6  ;;  %v1053_v56 = vsel %vm2202_vm11, %v2256_v26, %v1052_v47 }
  0x9a   : > { %438 = vst.msk [vmem:[#allocation3] sm:$0xf] %vm437_vm4, %v405_v6  ;;  %v537_v14 = vpop.permute.xlu1 %536  ;;  %v1071_v53 = vsel %vm2202_vm11, %v1069_v13, %v1070_v58 }
  0x9b   : > { %556 = vst.msk [vmem:[#allocation3] sm:$0xf] %vm555_vm5, %v523_v9  ;;  %v1372_v9 = vrot.slane %v2624_v16, 7  ;;  %v1056_v16 = vsel %vm2202_vm11, %v1054_v48, %v2252_v8  ;;  %v1842_v8 = vcombine.high %v2645_v45, %v2645_v45  ;;  %v954_v45 = vrot.slane %v2534_v12, 4  ;;  %v1966_v48 = vld [vmem:[#allocation3 + $0x34] ss:$8 sps:$4 sm:$0xff]  }
  0x9c   : > { %647 = vrot.lane.b32.xlu0 %v2106_v57, %s1990_s26  ;;  %849 = vrot.lane.b32.xlu1 %v788_v23, %s1993_s29  ;;  %671 = vst.msk [vmem:[#allocation3] sm:$0xf] %vm670_vm6, %v638_v22  ;;  %v1211_v22 = vrot.slane %v1209_v40, 7 }
  0x9d   : > { %v407_v39 = vpop.permute.xlu0 %406  ;;  %v1373_v46 = vsel %vm2610_vm3, %v1371_v18, %v1372_v9  ;;  %v956_v12 = vsel %vm2202_vm11, %v954_v45, %v955_v20  ;;  %1869 = vmatprep.mubr.msk.bf16.mxu1 %vm1555_vm10, %v1966_v48  ;;  %vm1654_vm11 = vcmask 7168  }
  0x9e   : > { %439 = vst.msk [vmem:[#allocation3 + $0x8] sm:$0xf] %vm437_vm4, %v407_v39  ;;  %v419_v57 = vpop.permute.xlu1 %418  ;;  %v1212_v55 = vor.u32 %v1211_v22, %v1208_v5 }
  0x9f   : > { %557 = vst.msk [vmem:[#allocation3 + $0x8] sm:$0xf] %vm555_vm5, %v525_v38  ;;  %v1269_v38 = vshll.u32 %v1830_v61, 16 }
  0xa0   : > { %847 = vrot.lane.b32.xlu0 %v778_v4, %s1993_s29  ;;  %445 = vst.msk [vmem:[#allocation3 + $0x38] sm:$0xf] %vm437_vm4, %v419_v57  ;;  %965 = vrot.lane.b32.xlu1 %v2555_v29, %s1994_s30  ;;  %v1374_v29 = vrot.slane %v1372_v9, 4  ;;  %v1214_v15 = vrot.slane %v1212_v55, 4 }
  0xa1   : > { %563 = vst.msk [vmem:[#allocation3 + $0x38] sm:$0xf] %vm555_vm5, %v537_v14  ;;  %v417_v54 = vpop.permute.xlu0 %416  ;;  %v1271_v2 = vrot.slane %v1269_v38, 7 }
  0xa2   : > { %672 = vst.msk [vmem:[#allocation3 + $0x8] sm:$0xf] %vm670_vm6, %v640_v32  ;;  %v842_v27 = vpop.permute.xlu1 %841  ;;  %v1376_v60 = vsel %vm2610_vm3, %v1374_v29, %v2650_v17  ;;  %v1390_v17 = vrot.slane %v1842_v8, 7  ;;  %v1223_v43 = vsel %vm2291_vm14, %v1214_v15, %v2339_v33 }
  0xa3   : > { %444 = vst.msk [vmem:[#allocation3 + $0x30] sm:$0xf] %vm437_vm4, %v417_v54  ;;  %v1272_v44 = vor.u32 %v1271_v2, %v1268_v3  ;;  %v1972_v3 = vld [vmem:[#allocation3 + $0x44] ss:$8 sps:$4 sm:$0xff]  }
  0xa4   : > { %562 = vst.msk [vmem:[#allocation3 + $0x30] sm:$0xf] %vm555_vm5, %v535_v50  ;;  %657 = vrot.lane.b32.xlu0 %v636_v51, %s1990_s26  ;;  %859 = vrot.lane.b32.xlu1 %v838_v24, %s1993_s29  ;;  %v1391_v26 = vsel %vm2610_vm3, %v1389_v49, %v1390_v17 }
  0xa5   : > { %874 = vst.msk [vmem:[#allocation3 + $0x8] sm:$0xf] %vm872_vm7, %v842_v27  ;;  %v1273_v6 = vsel %vm2291_vm14, %v1264_v1, %v1272_v44 }
  0xa6   : > { %v840_v42 = vpop.permute.xlu0 %839  ;;  %1407 = vst.msk [vmem:[#allocation3 + $0x24] sm:$0xf] %vm239_vm15, %v1373_v46  ;;  %v652_v19 = vpop.permute.xlu1 %651  ;;  %1408 = vst.msk [vmem:[#allocation3 + $0x2c] sm:$0xf] %vm239_vm15, %v1376_v60 }
  0xa7   : > { %873 = vst.msk [vmem:[#allocation3] sm:$0xf] %vm872_vm7, %v840_v42 }
  0xa8   : > { %967 = vrot.lane.b32.xlu0 %v2532_v28, %s1994_s30  ;;  %678 = vst.msk [vmem:[#allocation3 + $0x38] sm:$0xf] %vm670_vm6, %v652_v19  ;;  %1082 = vrot.lane.b32.xlu1 %v1056_v16, %s1995_s4  ;;  %v1213_v28 = vsel %vm2291_vm14, %v1204_v62, %v1212_v55 }
  0xa9   : > { %1413 = vst.msk [vmem:[#allocation3 + $0x54] sm:$0xf] %vm239_vm15, %v1391_v26 }
  0xaa   : > { %v650_v50 = vpop.permute.xlu0 %649  ;;  %v960_v0 = vpop.permute.xlu1 %959 }
  0xab   : > { %677 = vst.msk [vmem:[#allocation3 + $0x30] sm:$0xf] %vm670_vm6, %v650_v50 }
  0xac   : > { %1080 = vrot.lane.b32.xlu0 %v1053_v56, %s1995_s4  ;;  %992 = vst.msk [vmem:[#allocation3 + $0x8] sm:$0xf] %vm990_vm2, %v960_v0  ;;  %1282 = vrot.lane.b32.xlu1 %v1213_v28, %s1996_s5 }
  0xae   : > { %v958_v37 = vpop.permute.xlu0 %957  ;;  %v854_v32 = vpop.permute.xlu1 %853 }
  0xaf   : > { %991 = vst.msk [vmem:[#allocation3] sm:$0xf] %vm990_vm2, %v958_v37 }
  0xb0   : > { %977 = vrot.lane.b32.xlu0 %v956_v12, %s1994_s30  ;;  %880 = vst.msk [vmem:[#allocation3 + $0x38] sm:$0xf] %vm872_vm7, %v854_v32  ;;  %1092 = vrot.lane.b32.xlu1 %v1071_v53, %s1995_s4 }
  0xb2   : > { %v852_v21 = vpop.permute.xlu0 %851  ;;  %v1075_v34 = vpop.permute.xlu1 %1074 }
  0xb3   : > { %879 = vst.msk [vmem:[#allocation3 + $0x30] sm:$0xf] %vm872_vm7, %v852_v21 }
  0xb4   : > { %1284 = vrot.lane.b32.xlu0 %v1223_v43, %s1996_s5  ;;  %1107 = vst.msk [vmem:[#allocation3 + $0x8] sm:$0xf] %vm1105_vm8, %v1075_v34 }
  0xb6   : > { %v1073_v23 = vpop.permute.xlu0 %1072  ;;  %v972_v33 = vpop.permute.xlu1 %971 }
  0xb7   : > { %1106 = vst.msk [vmem:[#allocation3] sm:$0xf] %vm1105_vm8, %v1073_v23 }
  0xb8   : > { %1294 = vrot.lane.b32.xlu0 %v1273_v6, %s1996_s5  ;;  %998 = vst.msk [vmem:[#allocation3 + $0x38] sm:$0xf] %vm990_vm2, %v972_v33 }
  0xba   : > { %v970_v63 = vpop.permute.xlu0 %969  ;;  %v1277_v59 = vpop.permute.xlu1 %1276 }
  0xbb   : > { %997 = vst.msk [vmem:[#allocation3 + $0x30] sm:$0xf] %vm990_vm2, %v970_v63 }
  0xbc   : > { %1309 = vst.msk [vmem:[#allocation3 + $0x8] sm:$0xf] %vm1307_vm9, %v1277_v59 }
  0xbe   : > { %v1275_v11 = vpop.permute.xlu0 %1274  ;;  %v1087_v7 = vpop.permute.xlu1 %1086 }
  0xbf   : > { %1308 = vst.msk [vmem:[#allocation3] sm:$0xf] %vm1307_vm9, %v1275_v11 }
  0xc0   : > { %1113 = vst.msk [vmem:[#allocation3 + $0x38] sm:$0xf] %vm1105_vm8, %v1087_v7 }
  0xc2   : > { %v1085_v14 = vpop.permute.xlu0 %1084  ;;  %v411_v25 = vpop.permute.xlu1 %410 }
  0xc3   : > { %1112 = vst.msk [vmem:[#allocation3 + $0x30] sm:$0xf] %vm1105_vm8, %v1085_v14  ;;  %v1974_v14 = vld [vmem:[#allocation3 + $0x24] ss:$8 sps:$4 sm:$0xff]  }
  0xc4   : > { %441 = vst.msk [vmem:[#allocation3 + $0x18] sm:$0xf] %vm437_vm4, %v411_v25 }
  0xc6   : > { %v409_v4 = vpop.permute.xlu0 %408  ;;  %v1956_v41 = vld [vmem:[#allocation3] ss:$8 sps:$4 sm:$0xff]   ;;  %v1289_v47 = vpop.permute.xlu1 %1288 }
  0xc7   : > { %440 = vst.msk [vmem:[#allocation3 + $0x10] sm:$0xf] %vm437_vm4, %v409_v4  ;;  %1607 = vmatmul.mubr.bf16.vlgmr.msra.gmra.mrb[0].mxu0 %v1956_v41 }
  0xc8   : > { %1315 = vst.msk [vmem:[#allocation3 + $0x38] sm:$0xf] %vm1307_vm9, %v1289_v47  ;;  %1867 = vmatprep.mubr.msk.bf16.mxu0 %vm1555_vm10, %v1968_v30  ;;  %v1844_v47 = vld [vmem:[#allocation5] ss:$0 sm:$0xff] }
  0xca   : > { %v1287_v39 = vpop.permute.xlu0 %1286  ;;  %v529_v36 = vpop.permute.xlu1 %528 }
  0xcb   : > { %1314 = vst.msk [vmem:[#allocation3 + $0x30] sm:$0xf] %vm1307_vm9, %v1287_v39 }
  0xcc   : > { %559 = vst.msk [vmem:[#allocation3 + $0x18] sm:$0xf] %vm555_vm5, %v529_v36 }
  0xce   : > { %v527_v35 = vpop.permute.xlu0 %526  ;;  %v423_v40 = vpop.permute.xlu1 %422 }
  0xcf   : > { %558 = vst.msk [vmem:[#allocation3 + $0x10] sm:$0xf] %vm555_vm5, %v527_v35 }
  0xd0   : > { %447 = vst.msk [vmem:[#allocation3 + $0x48] sm:$0xf] %vm437_vm4, %v423_v40 }
  0xd2   : > { %v421_v57 = vpop.permute.xlu0 %420  ;;  %v1964_v51 = vld [vmem:[#allocation3 + $0x30] ss:$8 sps:$4 sm:$0xff]   ;;  %v644_v54 = vpop.permute.xlu1 %643 }
  0xd3   : > { %446 = vst.msk [vmem:[#allocation3 + $0x40] sm:$0xf] %vm437_vm4, %v421_v57  ;;  %1631 = vmatmul.mubr.bf16.vlgmr.msra.gmra.mrb[0].mxu1 %v1964_v51 }
  0xd4   : > { %674 = vst.msk [vmem:[#allocation3 + $0x18] sm:$0xf] %vm670_vm6, %v644_v54  ;;  %1870 = vmatprep.mubr.msk.bf16.mxu1 %vm1555_vm10, %v1972_v3 }
  0xd6   : > { %v642_v24 = vpop.permute.xlu0 %641  ;;  %v541_v5 = vpop.permute.xlu1 %540 }
  0xd7   : > { %673 = vst.msk [vmem:[#allocation3 + $0x10] sm:$0xf] %vm670_vm6, %v642_v24 }
  0xd8   : > { %565 = vst.msk [vmem:[#allocation3 + $0x48] sm:$0xf] %vm555_vm5, %v541_v5 }
  0xda   : > { %v539_v22 = vpop.permute.xlu0 %538  ;;  %v846_v9 = vpop.permute.xlu1 %845 }
  0xdb   : > { %564 = vst.msk [vmem:[#allocation3 + $0x40] sm:$0xf] %vm555_vm5, %v539_v22 }
  0xdc   : > { %876 = vst.msk [vmem:[#allocation3 + $0x18] sm:$0xf] %vm872_vm7, %v846_v9 }
  0xde   : > { %v844_v27 = vpop.permute.xlu0 %843  ;;  %v656_v18 = vpop.permute.xlu1 %655 }
  0xdf   : > { %875 = vst.msk [vmem:[#allocation3 + $0x10] sm:$0xf] %vm872_vm7, %v844_v27 }
  0xe0   : > { %680 = vst.msk [vmem:[#allocation3 + $0x48] sm:$0xf] %vm670_vm6, %v656_v18 }
  0xe2   : > { %v654_v52 = vpop.permute.xlu0 %653  ;;  %v964_v29 = vpop.permute.xlu1 %963 }
  0xe3   : > { %679 = vst.msk [vmem:[#allocation3 + $0x40] sm:$0xf] %vm670_vm6, %v654_v52 }
  0xe4   : > { %994 = vst.msk [vmem:[#allocation3 + $0x18] sm:$0xf] %vm990_vm2, %v964_v29 }
  0xe6   : > { %v962_v16 = vpop.permute.xlu0 %961  ;;  %v858_v62 = vpop.permute.xlu1 %857 }
  0xe7   : > { %993 = vst.msk [vmem:[#allocation3 + $0x10] sm:$0xf] %vm990_vm2, %v962_v16 }
  0xe8   : > { %882 = vst.msk [vmem:[#allocation3 + $0x48] sm:$0xf] %vm872_vm7, %v858_v62 }
  0xea   : > { %v856_v61 = vpop.permute.xlu0 %855  ;;  %v1079_v46 = vpop.permute.xlu1 %1078 }
  0xeb   : > { %881 = vst.msk [vmem:[#allocation3 + $0x40] sm:$0xf] %vm872_vm7, %v856_v61 }
  0xec   : > { %1109 = vst.msk [vmem:[#allocation3 + $0x18] sm:$0xf] %vm1105_vm8, %v1079_v46 }
  0xee   : > { %v1077_v42 = vpop.permute.xlu0 %1076  ;;  %v976_v55 = vpop.permute.xlu1 %975 }
  0xef   : > { %1108 = vst.msk [vmem:[#allocation3 + $0x10] sm:$0xf] %vm1105_vm8, %v1077_v42 }
  0xf0   : > { %1000 = vst.msk [vmem:[#allocation3 + $0x48] sm:$0xf] %vm990_vm2, %v976_v55 }
  0xf2   : > { %v974_v31 = vpop.permute.xlu0 %973  ;;  %v1281_v60 = vpop.permute.xlu1 %1280 }
  0xf3   : > { %999 = vst.msk [vmem:[#allocation3 + $0x40] sm:$0xf] %vm990_vm2, %v974_v31 }
  0xf4   : > { %1311 = vst.msk [vmem:[#allocation3 + $0x18] sm:$0xf] %vm1307_vm9, %v1281_v60 }
  0xf6   : > { %v1279_v8 = vpop.permute.xlu0 %1278  ;;  %v1091_v19 = vpop.permute.xlu1 %1090 }
  0xf7   : > { %1310 = vst.msk [vmem:[#allocation3 + $0x10] sm:$0xf] %vm1307_vm9, %v1279_v8 }
  0xf8   : > { %1115 = vst.msk [vmem:[#allocation3 + $0x48] sm:$0xf] %vm1105_vm8, %v1091_v19 }
  0xfa   : > { %v1089_v56 = vpop.permute.xlu0 %1088  ;;  %v415_v49 = vpop.permute.xlu1 %414 }
  0xfb   : > { %1114 = vst.msk [vmem:[#allocation3 + $0x40] sm:$0xf] %vm1105_vm8, %v1089_v56  ;;  %v1417_v17 = vld [vmem:[#allocation3 + $0x18] sm:$0xff] }
  0xfc   : > { %443 = vst.msk [vmem:[#allocation3 + $0x28] sm:$0xf] %vm437_vm4, %v415_v49 }
  0xfe   : > { %v413_v45 = vpop.permute.xlu0 %412  ;;  %v1416_v20 = vld [vmem:[#allocation3 + $0x10] sm:$0xff]  ;;  %v1293_v38 = vpop.permute.xlu1 %1292 }
  0xff   : > { %442 = vst.msk [vmem:[#allocation3 + $0x20] sm:$0xf] %vm437_vm4, %v413_v45  ;;  %v1847_v50 = vcombine.low %v1416_v20, %v1417_v17 }
 0x100   : > { %1317 = vst.msk [vmem:[#allocation3 + $0x48] sm:$0xf] %vm1307_vm9, %v1293_v38 }
 0x101   : > { %1615 = vmatmul.mubr.bf16.gmra.mrb[4].mxu0 %v1847_v50 }
 0x102   : > { %v1291_v28 = vpop.permute.xlu0 %1290  ;;  %v533_v13 = vpop.permute.xlu1 %532  ;;  %1868 = vmatprep.mubr.msk.bf16.mxu0 %vm1555_vm10, %v1974_v14 }
 0x103   : > { %1316 = vst.msk [vmem:[#allocation3 + $0x40] sm:$0xf] %vm1307_vm9, %v1291_v28 }
 0x104   : > { %561 = vst.msk [vmem:[#allocation3 + $0x28] sm:$0xf] %vm555_vm5, %v533_v13 }
 0x106   : > { %v531_v58 = vpop.permute.xlu0 %530  ;;  %v646_v26 = vpop.permute.xlu1 %645 }
 0x107   : > { %560 = vst.msk [vmem:[#allocation3 + $0x20] sm:$0xf] %vm555_vm5, %v531_v58  ;;  %v1423_v0 = vld [vmem:[#allocation3 + $0x48] sm:$0xff] }
 0x108   : > { %675 = vst.msk [vmem:[#allocation3 + $0x20] sm:$0xf] %vm670_vm6, %v646_v26 }
 0x10a   : > { %v425_v12 = vpop.permute.xlu0 %424  ;;  %v1422_v15 = vld [vmem:[#allocation3 + $0x40] sm:$0xff]  ;;  %v543_v37 = vpop.permute.xlu1 %542 }
 0x10b   : > { %448 = vst.msk [vmem:[#allocation3 + $0x50] sm:$0xf] %vm437_vm4, %v425_v12  ;;  %v1853_v2 = vcombine.low %v1422_v15, %v1423_v0 }
 0x10c   : > { %566 = vst.msk [vmem:[#allocation3 + $0x50] sm:$0xf] %vm555_vm5, %v543_v37 }
 0x10d   : > { %1639 = vmatmul.mubr.bf16.gmra.mrb[4].mxu1 %v1853_v2 }
 0x10e   : > { %v648_v53 = vpop.permute.xlu0 %647  ;;  %v850_v32 = vpop.permute.xlu1 %849 }
 0x10f   : > { %676 = vst.msk [vmem:[#allocation3 + $0x28] sm:$0xf] %vm670_vm6, %v648_v53 }
 0x110   : > { %878 = vst.msk [vmem:[#allocation3 + $0x28] sm:$0xf] %vm872_vm7, %v850_v32 }
 0x112   : > { %v848_v43 = vpop.permute.xlu0 %847  ;;  %v966_v1 = vpop.permute.xlu1 %965 }
 0x113   : > { %877 = vst.msk [vmem:[#allocation3 + $0x20] sm:$0xf] %vm872_vm7, %v848_v43 }
 0x114   : > { %995 = vst.msk [vmem:[#allocation3 + $0x20] sm:$0xf] %vm990_vm2, %v966_v1 }
 0x116   : > { %v658_v44 = vpop.permute.xlu0 %657  ;;  %v860_v21 = vpop.permute.xlu1 %859 }
 0x117   : > { %681 = vst.msk [vmem:[#allocation3 + $0x50] sm:$0xf] %vm670_vm6, %v658_v44 }
 0x118   : > { %883 = vst.msk [vmem:[#allocation3 + $0x50] sm:$0xf] %vm872_vm7, %v860_v21 }
 0x11a   : > { %v968_v34 = vpop.permute.xlu0 %967  ;;  %v1083_v6 = vpop.permute.xlu1 %1082 }
 0x11b   : > { %996 = vst.msk [vmem:[#allocation3 + $0x28] sm:$0xf] %vm990_vm2, %v968_v34 }
 0x11c   : > { %1111 = vst.msk [vmem:[#allocation3 + $0x28] sm:$0xf] %vm1105_vm8, %v1083_v6 }
 0x11e   : > { %v1081_v23 = vpop.permute.xlu0 %1080  ;;  %v1283_v33 = vpop.permute.xlu1 %1282 }
 0x11f   : > { %1110 = vst.msk [vmem:[#allocation3 + $0x20] sm:$0xf] %vm1105_vm8, %v1081_v23 }
 0x120   : > { %1312 = vst.msk [vmem:[#allocation3 + $0x20] sm:$0xf] %vm1307_vm9, %v1283_v33 }
 0x122   : > { %v978_v63 = vpop.permute.xlu0 %977  ;;  %v1093_v59 = vpop.permute.xlu1 %1092 }
 0x123   : > { %1001 = vst.msk [vmem:[#allocation3 + $0x50] sm:$0xf] %vm990_vm2, %v978_v63 }
 0x124   : > { %1116 = vst.msk [vmem:[#allocation3 + $0x50] sm:$0xf] %vm1105_vm8, %v1093_v59 }
 0x126   : > { %v1285_v11 = vpop.permute.xlu0 %1284 }
 0x127   : > { %1313 = vst.msk [vmem:[#allocation3 + $0x28] sm:$0xf] %vm1307_vm9, %v1285_v11 }
 0x12a   : > { %v1295_v7 = vpop.permute.xlu0 %1294 }
 0x12b   : > { %1318 = vst.msk [vmem:[#allocation3 + $0x50] sm:$0xf] %vm1307_vm9, %v1295_v7 }
 0x12e   : > { %v1976_v25 = vld [vmem:[#allocation3 + $0x20] ss:$8 sps:$4 sm:$0xff]  }
 0x12f   : > { %1623 = vmatmul.mubr.bf16.gmra.mrb[8].mxu0 %v1976_v25 }
 0x132   : > { %v1424_v4 = vld [vmem:[#allocation3 + $0x50] sm:$0xff] }
 0x133   : > { %v1856_v41 = vcombine.high %v1424_v4, %v1424_v4  ;;  %v1855_v10 = vcombine.low %v1424_v4, %v1424_v4 }
 0x135   : > { %1871 = vmatprep.mubr.msk.bf16.mxu1 %vm1555_vm10, %v1856_v41 }
 0x136   : > { %1647 = vmatmul.mubr.bf16.gmra.mrb[8].mxu1 %v1855_v10 }
 0x19a   : > { %v1608_v39 = vpop.f32.mrb[0].mxu0 }
 0x19b   : > { %v1609_v36 = vadd.f32 %v1844_v47, %v1608_v39  ;;  %v1610_v35 = vpop.f32.mrb[1].mxu0 }
 0x19c   : > { %v1611_v40 = vpop.f32.mrb[2].mxu0 }
 0x19d   : > { %1655 = vst.msk [vmem:[%s2035_s25] sm:$0xff] %vm1654_vm11, %v1609_v36  ;;  %v1612_v57 = vadd.f32 %v1844_v47, %v1611_v40  ;;  %v1613_v51 = vpop.f32.mrb[3].mxu0 }
 0x19f   : > { %1656 = vst.msk [vmem:[%s2035_s25 + $0x8] sm:$0xff] %vm1654_vm11, %v1612_v57 }
 0x1a6   : > { %v1632_v48 = vpop.f32.mrb[0].mxu1 }
 0x1a7   : > { %v1633_v54 = vadd.f32 %v1844_v47, %v1632_v48  ;;  %v1634_v24 = vpop.f32.mrb[1].mxu1 }
 0x1a8   : > { %v1635_v5 = vpop.f32.mrb[2].mxu1 }
 0x1a9   : > { %1661 = vst.msk [vmem:[%s2035_s25 + $0x30] sm:$0xff] %vm1654_vm11, %v1633_v54  ;;  %v1636_v22 = vadd.f32 %v1844_v47, %v1635_v5  ;;  %v1637_v9 = vpop.f32.mrb[3].mxu1 }
 0x1ab   : > { %1662 = vst.msk [vmem:[%s2035_s25 + $0x38] sm:$0xff] %vm1654_vm11, %v1636_v22 }
 0x1d4   : > { %v1616_v27 = vpop.f32.mrb[4].mxu0 }
 0x1d5   : > { %v1617_v18 = vadd.f32 %v1844_v47, %v1616_v27  ;;  %v1618_v52 = vpop.f32.mrb[5].mxu0 }
 0x1d6   : > { %v1619_v29 = vpop.f32.mrb[6].mxu0 }
 0x1d7   : > { %1657 = vst.msk [vmem:[%s2035_s25 + $0x10] sm:$0xff] %vm1654_vm11, %v1617_v18  ;;  %v1620_v16 = vadd.f32 %v1844_v47, %v1619_v29  ;;  %v1621_v62 = vpop.f32.mrb[7].mxu0 }
 0x1d9   : > { %1658 = vst.msk [vmem:[%s2035_s25 + $0x18] sm:$0xff] %vm1654_vm11, %v1620_v16 }
 0x1e0   : > { %v1640_v61 = vpop.f32.mrb[4].mxu1 }
 0x1e1   : > { %v1641_v46 = vadd.f32 %v1844_v47, %v1640_v61  ;;  %v1642_v42 = vpop.f32.mrb[5].mxu1 }
 0x1e2   : > { %v1643_v55 = vpop.f32.mrb[6].mxu1 }
 0x1e3   : > { %1663 = vst.msk [vmem:[%s2035_s25 + $0x40] sm:$0xff] %vm1654_vm11, %v1641_v46  ;;  %v1644_v31 = vadd.f32 %v1844_v47, %v1643_v55  ;;  %v1645_v60 = vpop.f32.mrb[7].mxu1 }
 0x1e5   : > { %1664 = vst.msk [vmem:[%s2035_s25 + $0x48] sm:$0xff] %vm1654_vm11, %v1644_v31 }
 0x202   : > { %v1624_v8 = vpop.f32.mrb[8].mxu0 }
 0x203   : > { %v1625_v19 = vadd.f32 %v1844_v47, %v1624_v8  ;;  %v1626_v56 = vpop.f32.mrb[9].mxu0 }
 0x204   : > { %v1627_v49 = vpop.f32.mrb[10].mxu0 }
 0x205   : > { %1659 = vst.msk [vmem:[%s2035_s25 + $0x20] sm:$0xff] %vm1654_vm11, %v1625_v19  ;;  %v1628_v17 = vadd.f32 %v1844_v47, %v1627_v49  ;;  %v1629_v45 = vpop.f32.mrb[11].mxu0 }
 0x207   : > { %1660 = vst.msk [vmem:[%s2035_s25 + $0x28] sm:$0xff] %vm1654_vm11, %v1628_v17 }
 0x209   : > { %v1648_v20 = vpop.f32.mrb[8].mxu1 }
 0x20a   : > { %v1649_v30 = vadd.f32 %v1844_v47, %v1648_v20  ;;  %v1650_v38 = vpop.f32.mrb[9].mxu1 }
 0x20b   : > { %v1651_v50 = vpop.f32.mrb[10].mxu1 }
 0x20c   : > { %1665 = vst.msk [vmem:[%s2035_s25 + $0x50] sm:$0xff] %vm1654_vm11, %v1649_v30  ;;  %v1652_v28 = vpop.f32.mrb[11].mxu1 }
 0x20d PF: > { %s15_s14 = sadd.s32 1, %s1988_s14  }
 0x20e   : > { %p12_p4 = scmp.ge.s32.totalorder %s15_s14, 10  }
 0x210   :  { %14 = sbr.rel (!%p12_p4) target bundleno = 3 (0x3), region = 98 }
 0x217   :  { %1688 = vsyncmov [#allocation4] }
 0x21a   :  { %s1689_s24 = vpop.sfrf %1688 }
 0x21b   :  { %p1874_p5 = scmp.ne.s32.totalorder %s1689_s24, 0 }
 0x21d   :  { %1693 = shalt.err (%p1874_p5)  }

</bundles_post_ra>
